<compile_context>
chip_gen: v7x
topology: tpu7x:2x2x1
jax: 0.10.0
libtpu: 0.0.40
codegen_flags: <defaults>
</compile_context>

<pallas_src>
import jax
import jax.numpy as jnp
from jax.experimental import pallas as pl
from jax.experimental.pallas import tpu as pltpu


def _round_up(x, m):
    return (x + m - 1) // m * m


def _cdiv(a, b):
    return -(-a // b)


def _vmem_budget():
    """~85% of per-core physical VMEM (headroom for compiler scratch)."""
    cap = 128 << 20
    try:
        info = pltpu.get_tpu_info()
        cap = int(getattr(info, "vmem_capacity_bytes", cap)) or cap
    except Exception:
        pass
    return int(cap * 0.85)


# ---------------------------------------------------------------------------
# Kernels
# ---------------------------------------------------------------------------

def ffn_resident_kernel(x_ref, w1_ref, b1_ref, w2_ref, b2_ref, o_ref):
    """Whole W1/W2 resident in VMEM (constant index_map -> DMA'd once).

    Grid: (row_tiles,).  No accumulator, no init/finalize phases.
    """
    xv = x_ref[...].astype(w1_ref.dtype)              # in-kernel activation cast
    h = jnp.dot(xv, w1_ref[...], preferred_element_type=jnp.float32)
    h = jnp.maximum(h + b1_ref[...], 0.0)
    y = jnp.dot(h.astype(w2_ref.dtype), w2_ref[...],
                preferred_element_type=jnp.float32)
    o_ref[...] = (y + b2_ref[...]).astype(o_ref.dtype)


def ffn_streaming_kernel(x_ref, w1_ref, b1_ref, w2_ref, b2_ref, o_ref, acc_ref):
    """Weight-streaming path.  Grid: (row_tiles, d_ff_tiles), requires
    num_programs(1) >= 2.  d_ff is the contraction axis of fc2, so partial
    fc2 products accumulate in f32 scratch.  ReLU is elementwise over d_ff,
    so the fused relu(x@W1+b1) survives d_ff tiling.
    """
    j = pl.program_id(1)
    last = pl.num_programs(1) - 1

    xv = x_ref[...].astype(w1_ref.dtype)
    h = jnp.dot(xv, w1_ref[...], preferred_element_type=jnp.float32)
    h = jnp.maximum(h + b1_ref[...], 0.0)
    part = jnp.dot(h.astype(w2_ref.dtype), w2_ref[...],
                   preferred_element_type=jnp.float32)

    @pl.when(j == 0)
    def _():                               # no zeros_like init + separate add
        acc_ref[...] = part

    @pl.when(jnp.logical_and(j > 0, j < last))
    def _():
        acc_ref[...] += part

    @pl.when(j == last)                    # reuse fresh partial sum: no extra
    def _():                               # acc store/reload on the last step
        o_ref[...] = (acc_ref[...] + part + b2_ref[...]).astype(o_ref.dtype)


# ---------------------------------------------------------------------------
# Wrapper
# ---------------------------------------------------------------------------

def position_wise_feed_forward(x, w1, b1, w2, b2, *, tm=512, tf=512,
                               compute_dtype=None, force_stream=False):
    """x: [batch, seq, d_model]; w1: [d_model, d_ff]; b1: [d_ff];
    w2: [d_ff, d_model]; b2: [d_model].

    compute_dtype: optional dtype (e.g. jnp.bfloat16) for W1/W2 (and the MXU
    inputs); accumulation stays f32 and biases stay f32.  x is cast inside
    the kernel, so no extra wrapper-side pass over the activations.
    force_stream: force the d_ff-tiled streaming path (testing / huge d_ff).
    """
    batch, seq, d_model = x.shape
    d_ff = w1.shape[1]
    out_dtype = x.dtype

    w_dtype = compute_dtype if compute_dtype is not None else w1.dtype
    w1 = w1.astype(w_dtype)
    w2 = w2.astype(w_dtype)
    b1 = b1.astype(jnp.float32)
    b2 = b2.astype(jnp.float32)

    M = batch * seq
    x2d = x.reshape(M, d_model)

    x_itm = x2d.dtype.itemsize
    w_itm = jnp.dtype(w_dtype).itemsize
    o_itm = jnp.dtype(out_dtype).itemsize

    # ---- tile sizing ------------------------------------------------------
    sub = 16 if x2d.dtype == jnp.bfloat16 else 8
    # Distribute rows evenly over ceil(M/tm) tiles: minimal M-axis padding and
    # >=2 row tiles (megacore on v7x) whenever M > tm.
    n_rows = max(1, _cdiv(M, tm))
    tm_eff = _round_up(_cdiv(M, n_rows), sub)
    M_p = n_rows * tm_eff

    dm_p = _round_up(d_model, 128)
    tf_eff = _round_up(min(tf, _round_up(d_ff, 128)), 128)
    dff_p = _round_up(d_ff, tf_eff)

    budget = _vmem_budget()

    # ---- resident vs streaming decision -----------------------------------
    resident_bytes = (2 * 2 * dm_p * dff_p * w_itm       # W1+W2 (x2 buffers)
                      + 2 * (dff_p + dm_p) * 4           # biases (f32)
                      + 2 * tm_eff * dm_p * x_itm        # x tiles
                      + 2 * tm_eff * dm_p * o_itm        # out tiles
                      + tm_eff * dff_p * 4)              # h intermediate
    if (not force_stream) and resident_bytes <= budget:
        tf_eff = dff_p                                    # weights resident
    nj = dff_p // tf_eff
    use_resident = (nj == 1)

    # ---- padding (only when needed) ----------------------------------------
    if M_p != M or dm_p != d_model:
        x2d = jnp.pad(x2d, ((0, M_p - M), (0, dm_p - d_model)))
    if dm_p != d_model or dff_p != d_ff:
        w1 = jnp.pad(w1, ((0, dm_p - d_model), (0, dff_p - d_ff)))
        w2 = jnp.pad(w2, ((0, dff_p - d_ff), (0, dm_p - d_model)))
    b1p = jnp.pad(b1, ((0, dff_p - d_ff),)).reshape(1, dff_p)
    b2p = jnp.pad(b2, ((0, dm_p - d_model),)).reshape(1, dm_p)

    # ---- VMEM budget / cost hint -------------------------------------------
    if use_resident:
        need = resident_bytes
        weight_passes = 1
    else:
        need = (2 * tm_eff * dm_p * x_itm
                + 2 * 2 * tf_eff * dm_p * w_itm           # W1/W2 tiles
                + 2 * (tf_eff + dm_p) * 4                 # biases
                + 2 * tm_eff * dm_p * o_itm               # out tiles
                + tm_eff * dm_p * 4                       # f32 acc
                + tm_eff * tf_eff * 4)                    # h intermediate
        weight_passes = n_rows                            # re-streamed per row tile
    vmem_limit = int(min(max(need + (8 << 20), 32 << 20), budget))

    cost = pl.CostEstimate(
        flops=int(4.0 * M * d_model * d_ff),              # two matmuls
        transcendentals=0,
        bytes_accessed=int(M_p * dm_p * x_itm
                           + weight_passes * 2 * dm_p * dff_p * w_itm
                           + (dff_p + dm_p) * 4
                           + M_p * dm_p * o_itm))

    out_shape = jax.ShapeDtypeStruct((M_p, dm_p), out_dtype)

    if use_resident:
        grid_spec = pltpu.PrefetchScalarGridSpec(
            num_scalar_prefetch=0,
            grid=(n_rows,),
            in_specs=[
                pl.BlockSpec((tm_eff, dm_p), lambda i: (i, 0)),   # x rows
                pl.BlockSpec((dm_p, dff_p), lambda i: (0, 0)),    # W1 (resident)
                pl.BlockSpec((1, dff_p), lambda i: (0, 0)),       # b1
                pl.BlockSpec((dff_p, dm_p), lambda i: (0, 0)),    # W2 (resident)
                pl.BlockSpec((1, dm_p), lambda i: (0, 0)),        # b2
            ],
            out_specs=pl.BlockSpec((tm_eff, dm_p), lambda i: (i, 0)),
            scratch_shapes=[],
        )
        kernel = ffn_resident_kernel
        dims = ("parallel",)
    else:
        # NOTE: on v5e/v6e with spare VMEM, pipeline_mode=pl.Buffered(3) on the
        # W1/W2 specs can hide HBM jitter; kept at default depth here.
        grid_spec = pltpu.PrefetchScalarGridSpec(
            num_scalar_prefetch=0,
            grid=(n_rows, nj),
            in_specs=[
                pl.BlockSpec((tm_eff, dm_p), lambda i, j: (i, 0)),   # x rows
                pl.BlockSpec((dm_p, tf_eff), lambda i, j: (0, j)),   # W1 tile
                pl.BlockSpec((1, tf_eff), lambda i, j: (0, j)),      # b1 tile
                pl.BlockSpec((tf_eff, dm_p), lambda i, j: (j, 0)),   # W2 tile
                pl.BlockSpec((1, dm_p), lambda i, j: (0, 0)),        # b2
            ],
            out_specs=pl.BlockSpec((tm_eff, dm_p), lambda i, j: (i, 0)),
            scratch_shapes=[pltpu.VMEM((tm_eff, dm_p), jnp.float32)],
        )
        kernel = ffn_streaming_kernel
        dims = ("parallel", "arbitrary")

    out2d = pl.pallas_call(
        kernel,
        out_shape=out_shape,
        grid_spec=grid_spec,
        compiler_params=pltpu.CompilerParams(
            dimension_semantics=dims,
            vmem_limit_bytes=vmem_limit),
        cost_estimate=cost,
    )(x2d, w1, b1p, w2, b2p)

    return out2d[:M, :d_model].reshape(batch, seq, d_model)


if __name__ == "__main__":
    # Module constants from the tutorial: d_model=512, d_ff=2048.
    batch, seq, d_model, d_ff = 2, 8, 512, 2048

    key = jax.random.PRNGKey(0)
    kx, kw1, kb1, kw2, kb2 = jax.random.split(key, 5)

    x = jax.random.normal(kx, (batch, seq, d_model), dtype=jnp.float32)
    # Pre-transposed (in, out) layout (PyTorch stores Linear weight as (out, in)).
    w1 = jax.random.normal(kw1, (d_model, d_ff), dtype=jnp.float32) * 0.02
    b1 = jax.random.normal(kb1, (d_ff,), dtype=jnp.float32) * 0.02
    w2 = jax.random.normal(kw2, (d_ff, d_model), dtype=jnp.float32) * 0.02
    b2 = jax.random.normal(kb2, (d_model,), dtype=jnp.float32) * 0.02

    # High-precision reference (TPU default f32 matmul precision is bf16-based,
    # so compare against an explicit HIGHEST-precision reference with a
    # tolerance that covers either MXU precision mode in the kernel).
    hp = jax.lax.Precision.HIGHEST
    ref = jnp.maximum(jnp.dot(x, w1, precision=hp) + b1, 0.0)
    ref = jnp.dot(ref, w2, precision=hp) + b2

    # 1) Default path: weights resident in VMEM (they fit for 512/2048), f32.
    out = position_wise_feed_forward(x, w1, b1, w2, b2)
    jax.block_until_ready(out)
    assert out.shape == (batch, seq, d_model)
    assert jnp.allclose(out, ref, atol=1e-2, rtol=1e-2), \
        float(jnp.max(jnp.abs(out - ref)))

    # 2) Forced streaming path (d_ff tiled) -- exercises the accumulator kernel.
    out_s = position_wise_feed_forward(x, w1, b1, w2, b2, tf=512,
                                       force_stream=True)
    jax.block_until_ready(out_s)
    assert out_s.shape == (batch, seq, d_model)
    assert jnp.allclose(out_s, ref, atol=1e-2, rtol=1e-2), \
        float(jnp.max(jnp.abs(out_s - ref)))

    # 3) bf16 fast path (recommended on v5e/v6e/v7x), f32 MXU accumulation.
    out_bf16 = position_wise_feed_forward(x, w1, b1, w2, b2,
                                          compute_dtype=jnp.bfloat16)
    jax.block_until_ready(out_bf16)
    assert out_bf16.shape == (batch, seq, d_model)
    assert jnp.allclose(out_bf16, ref, atol=5e-2, rtol=5e-2), \
        float(jnp.max(jnp.abs(out_bf16 - ref)))

    print("KERNEL_OK")
</pallas_src>

<mosaic_0001>
module attributes {stable_mosaic.version = 11 : i64} {
  func.func @ffn_resident_kernel(%arg0: i32, %arg1: memref<16x512xf32, #tpu.memory_space<vmem>>, %arg2: memref<512x2048xf32, #tpu.memory_space<vmem>>, %arg3: memref<1x2048xf32, #tpu.memory_space<vmem>>, %arg4: memref<2048x512xf32, #tpu.memory_space<vmem>>, %arg5: memref<1x512xf32, #tpu.memory_space<vmem>>, %arg6: memref<16x512xf32, #tpu.memory_space<vmem>>) attributes {dimension_semantics = [#tpu.dimension_semantics<parallel>], iteration_bounds = array<i64: 1>, scalar_prefetch = 0 : i64, scratch_operands = 0 : i64, tpu.core_type = #tpu.core_type<tc>, window_params = [{transform_indices = @transform_0, window_bounds = array<i64: 16, 512>}, {pipeline_mode = #tpu.pipeline_mode<synchronous>, transform_indices = @transform_1, window_bounds = array<i64: 512, 2048>}, {pipeline_mode = #tpu.pipeline_mode<synchronous>, transform_indices = @transform_2, window_bounds = array<i64: 1, 2048>}, {pipeline_mode = #tpu.pipeline_mode<synchronous>, transform_indices = @transform_3, window_bounds = array<i64: 2048, 512>}, {pipeline_mode = #tpu.pipeline_mode<synchronous>, transform_indices = @transform_4, window_bounds = array<i64: 1, 512>}, {transform_indices = @transform_5, window_bounds = array<i64: 16, 512>}]} {
    %c0 = arith.constant 0 : index
    %c0_0 = arith.constant 0 : index
    %0 = vector.load %arg1[%c0, %c0_0] : memref<16x512xf32, #tpu.memory_space<vmem>>, vector<16x512xf32>
    %c0_1 = arith.constant 0 : index
    %c0_2 = arith.constant 0 : index
    %1 = vector.load %arg2[%c0_1, %c0_2] : memref<512x2048xf32, #tpu.memory_space<vmem>>, vector<512x2048xf32>
    %cst = arith.constant dense<0.000000e+00> : vector<16x2048xf32>
    %2 = tpu.matmul %0, %1, %cst {dimension_numbers = #tpu.dot_dimension_numbers<[1], [0], [0], [1], [0, 0, 1, 1], [], []>} : vector<16x512xf32>, vector<512x2048xf32>, vector<16x2048xf32> -> vector<16x2048xf32>
    %c0_3 = arith.constant 0 : index
    %c0_4 = arith.constant 0 : index
    %3 = vector.load %arg3[%c0_3, %c0_4] : memref<1x2048xf32, #tpu.memory_space<vmem>>, vector<1x2048xf32>
    %4 = vector.broadcast %3 : vector<1x2048xf32> to vector<16x2048xf32>
    %5 = arith.addf %2, %4 : vector<16x2048xf32>
    %cst_5 = arith.constant 0.000000e+00 : f32
    %6 = vector.broadcast %cst_5 : f32 to vector<16x2048xf32>
    %7 = arith.maximumf %5, %6 : vector<16x2048xf32>
    %c0_6 = arith.constant 0 : index
    %c0_7 = arith.constant 0 : index
    %8 = vector.load %arg4[%c0_6, %c0_7] : memref<2048x512xf32, #tpu.memory_space<vmem>>, vector<2048x512xf32>
    %cst_8 = arith.constant dense<0.000000e+00> : vector<16x512xf32>
    %9 = tpu.matmul %7, %8, %cst_8 {dimension_numbers = #tpu.dot_dimension_numbers<[1], [0], [0], [1], [0, 0, 1, 1], [], []>} : vector<16x2048xf32>, vector<2048x512xf32>, vector<16x512xf32> -> vector<16x512xf32>
    %c0_9 = arith.constant 0 : index
    %c0_10 = arith.constant 0 : index
    %10 = vector.load %arg5[%c0_9, %c0_10] : memref<1x512xf32, #tpu.memory_space<vmem>>, vector<1x512xf32>
    %11 = vector.broadcast %10 : vector<1x512xf32> to vector<16x512xf32>
    %12 = arith.addf %9, %11 : vector<16x512xf32>
    %c0_11 = arith.constant 0 : index
    %c0_12 = arith.constant 0 : index
    %13 = vector.load %arg6[%c0_11, %c0_12] : memref<16x512xf32, #tpu.memory_space<vmem>>, vector<16x512xf32>
    tpu.vector_store %arg6[%c0_11, %c0_12], %12 {strides = array<i32>} : memref<16x512xf32, #tpu.memory_space<vmem>>, vector<16x512xf32>,
    return
  }
  func.func @transform_0(%arg0: i32) -> (i32, i32) {
    %c0_i32 = arith.constant 0 : i32
    %c0_i32_0 = arith.constant 0 : i32
    return %arg0, %c0_i32 : i32, i32
  }
  func.func @transform_1(%arg0: i32) -> (i32, i32) {
    %c0_i32 = arith.constant 0 : i32
    %c0_i32_0 = arith.constant 0 : i32
    %c0_i32_1 = arith.constant 0 : i32
    return %c0_i32, %c0_i32_0 : i32, i32
  }
  func.func @transform_2(%arg0: i32) -> (i32, i32) {
    %c0_i32 = arith.constant 0 : i32
    %c0_i32_0 = arith.constant 0 : i32
    %c0_i32_1 = arith.constant 0 : i32
    return %c0_i32, %c0_i32_0 : i32, i32
  }
  func.func @transform_3(%arg0: i32) -> (i32, i32) {
    %c0_i32 = arith.constant 0 : i32
    %c0_i32_0 = arith.constant 0 : i32
    %c0_i32_1 = arith.constant 0 : i32
    return %c0_i32, %c0_i32_0 : i32, i32
  }
  func.func @transform_4(%arg0: i32) -> (i32, i32) {
    %c0_i32 = arith.constant 0 : i32
    %c0_i32_0 = arith.constant 0 : i32
    %c0_i32_1 = arith.constant 0 : i32
    return %c0_i32, %c0_i32_0 : i32, i32
  }
  func.func @transform_5(%arg0: i32) -> (i32, i32) {
    %c0_i32 = arith.constant 0 : i32
    %c0_i32_0 = arith.constant 0 : i32
    return %arg0, %c0_i32 : i32, i32
  }
}

</mosaic_0001>

<bundles_post_ra>
// kernel: tpu_custom_call.1
= control target key start
LH: loop header
LB: loop body
LE: loop exit
PB: predicated region body
PF: predicated region fallthrough
CT: control target
= control target key end

     0   :  { %10 = vsyncpa [#allocation3], 0  ;;  %s7461_s0 = inlined_call_operand.hbm [shape: f32[16,512], index: 0, kind: input, shape index: {}]   ;;  %s7462_s1 = inlined_call_operand.hbm [shape: f32[512,2048], index: 1, kind: input, shape index: {}]   ;;  %s7463_s2 = inlined_call_operand.hbm [shape: f32[1,2048], index: 2, kind: input, shape index: {}]   ;;  %s7464_s3 = inlined_call_operand.hbm [shape: f32[2048,512], index: 3, kind: input, shape index: {}]   ;;  %s7465_s4 = inlined_call_operand.hbm [shape: f32[1,512], index: 4, kind: input, shape index: {}]   ;;  %s7466_s5 = inlined_call_operand.hbm [shape: f32[16,512], index: 5, kind: output, shape index: {}]  }
   0x1   :  { %11 = vsyncpa [#allocation6], 0 }
   0x2   :  { %12 = vsyncpa [#allocation9], 0 }
   0x3   :  { %13 = vsyncpa [#allocation4], 0  ;;  %s7120_s18 = smov [#allocation5]   ;;  %s6980_s22 = scalar_lea.hbm %s7462_s1, 131072 }
   0x4   :  { %s31_s19 = sshll.u32 %s7120_s18, 4  ;;  %p6981_p0 = scmp.ne.s32.totalorder %s7462_s1, %s6980_s22  ;;  %s32_s19 = int_to_ptr.vmem [resolvable:$true] %s31_s19 }
   0x5   :  { %p6984_p1 = scmp.lt.u32.totalorder %s6980_s22, %s7462_s1 }
   0x7   :  { %p6986_p2 = pnand %p6984_p1, %p6981_p0 }
   0x9   :  { %6989 = shalt.err (!%p6986_p2)
}
   0xa   :  { %s6990_s27 = scalar_lea.vmem %s32_s19, 131072  ;;  %p6995_p4 = scmp.lt.s32.totalorder %s32_s19, %s32_s19 }
   0xb   :  { %p6991_p3 = scmp.ne.s32.totalorder %s32_s19, %s6990_s27  ;;  %p6996_p5 = scmp.lt.s32.totalorder %s6990_s27, %s6990_s27 }
   0xd   :  { %p6997_p6 = por %p6996_p5, %p6995_p4 }
   0xf   :  { %p6998_p7 = pnand %p6997_p6, %p6991_p3 }
  0x11   :  { %7001 = shalt.err (!%p6998_p7)
}
  0x12   :  { %s7121_s28 = smov 2048   ;;  %s7122_s29 = smov 128  }
  0x13   :  { %37 = dma.hbm_to_vmem [thread:$0]  %s7462_s1, 131072, %s32_s19, [#allocation6], %s7121_s28, %s7121_s28, %s7122_s29  }
  0x14   :  { %s7123_s7 = smov [#allocation8]   ;;  %s7124_s9 = smov [#allocation2]  }
  0x15   :  { %s53_s8 = sshll.u32 %s7123_s7, 4  ;;  %s19_s10 = sshll.u32 %s7124_s9, 4  ;;  %s54_s8 = int_to_ptr.vmem [resolvable:$true] %s53_s8  ;;  %s20_s10 = int_to_ptr.vmem [resolvable:$true] %s19_s10 }
  0x16   :  { %s7002_s13 = scalar_lea.hbm %s7464_s3, 131072 }
  0x17   :  { %p7003_p8 = scmp.ne.s32.totalorder %s7464_s3, %s7002_s13  ;;  %p7006_p9 = scmp.lt.u32.totalorder %s7002_s13, %s7464_s3 }
  0x19   :  { %p7008_p10 = pnand %p7006_p9, %p7003_p8 }
  0x1b   :  { %7011 = shalt.err (!%p7008_p10)
}
  0x1c   :  { %s7012_s1 = scalar_lea.vmem %s54_s8, 131072  ;;  %p7017_p12 = scmp.lt.s32.totalorder %s54_s8, %s54_s8 }
  0x1d   :  { %p7013_p11 = scmp.ne.s32.totalorder %s54_s8, %s7012_s1  ;;  %p7018_p13 = scmp.lt.s32.totalorder %s7012_s1, %s7012_s1 }
  0x1f   :  { %p7019_p0 = por %p7018_p13, %p7017_p12 }
  0x21   :  { %p7020_p1 = pnand %p7019_p0, %p7013_p11 }
  0x23   :  { %7023 = shalt.err (!%p7020_p1)
}
  0x24   :  { %s7125_s18 = smov 512   ;;  %s7126_s19 = smov 32  }
  0x25   :  { %59 = dma.hbm_to_vmem [thread:$0]  %s7464_s3, 131072, %s54_s8, [#allocation9], %s7125_s18, %s7125_s18, %s7126_s19  }
  0x26   :  { %s7024_s24 = scalar_lea.hbm %s7461_s0, 1024 }
  0x27   :  { %p7025_p2 = scmp.ne.s32.totalorder %s7461_s0, %s7024_s24  ;;  %p7028_p3 = scmp.lt.u32.totalorder %s7024_s24, %s7461_s0 }
  0x29   :  { %p7030_p4 = pnand %p7028_p3, %p7025_p2 }
  0x2b   :  { %7033 = shalt.err (!%p7030_p4)
}
  0x2c   :  { %s7034_s29 = scalar_lea.vmem %s20_s10, 1024  ;;  %p7039_p6 = scmp.lt.s32.totalorder %s20_s10, %s20_s10 }
  0x2d   :  { %p7035_p5 = scmp.ne.s32.totalorder %s20_s10, %s7034_s29  ;;  %p7040_p7 = scmp.lt.s32.totalorder %s7034_s29, %s7034_s29 }
  0x2f   :  { %p7041_p8 = por %p7040_p7, %p7039_p6 }
  0x31   :  { %p7042_p9 = pnand %p7041_p8, %p7035_p5 }
  0x33   :  { %7045 = shalt.err (!%p7042_p9)
}
  0x34   :  { %25 = dma.hbm_to_vmem [thread:$0]  %s7461_s0, 1024, %s20_s10, [#allocation3], %s7125_s18, %s7125_s18, %s7126_s19  }
  0x35   :  { %s7127_s6 = smov [#allocation7]   ;;  %s7128_s8 = smov [#allocation10]  }
  0x36   :  { %s44_s7 = sshll.u32 %s7127_s6, 4  ;;  %s66_s9 = sshll.u32 %s7128_s8, 4  ;;  %s45_s7 = int_to_ptr.vmem [resolvable:$true] %s44_s7  ;;  %s67_s9 = int_to_ptr.vmem [resolvable:$true] %s66_s9 }
  0x37   :  { %s7046_s13 = scalar_lea.hbm %s7463_s2, 256 }
  0x38   :  { %p7047_p10 = scmp.ne.s32.totalorder %s7463_s2, %s7046_s13  ;;  %p7050_p11 = scmp.lt.u32.totalorder %s7046_s13, %s7463_s2 }
  0x3a   :  { %p7052_p12 = pnand %p7050_p11, %p7047_p10 }
  0x3c   :  { %7055 = shalt.err (!%p7052_p12)
}
  0x3d   :  { %s7056_s0 = scalar_lea.vmem %s45_s7, 256  ;;  %p7061_p0 = scmp.lt.s32.totalorder %s45_s7, %s45_s7 }
  0x3e   :  { %p7057_p13 = scmp.ne.s32.totalorder %s45_s7, %s7056_s0  ;;  %p7062_p1 = scmp.lt.s32.totalorder %s7056_s0, %s7056_s0 }
  0x40   :  { %p7063_p2 = por %p7062_p1, %p7061_p0 }
  0x42   :  { %p7064_p3 = pnand %p7063_p2, %p7057_p13 }
  0x44   :  { %7067 = shalt.err (!%p7064_p3)
}
  0x45   :  { %47 = dma.hbm_to_vmem [thread:$0]  %s7463_s2, 256, %s45_s7, [#allocation6]  }
  0x46   :  { %s7068_s22 = scalar_lea.hbm %s7465_s4, 64 }
  0x47   :  { %p7069_p4 = scmp.ne.s32.totalorder %s7465_s4, %s7068_s22  ;;  %p7072_p5 = scmp.lt.u32.totalorder %s7068_s22, %s7465_s4 }
  0x49   :  { %p7074_p6 = pnand %p7072_p5, %p7069_p4 }
  0x4b   :  { %7077 = shalt.err (!%p7074_p6)
}
  0x4c   :  { %s7078_s27 = scalar_lea.vmem %s67_s9, 64  ;;  %p7083_p8 = scmp.lt.s32.totalorder %s67_s9, %s67_s9 }
  0x4d   :  { %p7079_p7 = scmp.ne.s32.totalorder %s67_s9, %s7078_s27  ;;  %p7084_p9 = scmp.lt.s32.totalorder %s7078_s27, %s7078_s27 }
  0x4f   :  { %p7085_p10 = por %p7084_p9, %p7083_p8 }
  0x51   :  { %p7086_p11 = pnand %p7085_p10, %p7079_p7 }
  0x53   :  { %7089 = shalt.err (!%p7086_p11)
}
  0x54   :  { %69 = dma.hbm_to_vmem [thread:$0]  %s7465_s4, 64, %s67_s9, [#allocation9]  }
  0x55   :  { %7112 = dma.done.wait [#allocation3], 1024  }
  0x56   :  { %7113 = vsyncadd [#allocation3], 4294966272 }
  0x57   :  { %7114 = dma.done.wait [#allocation6], 131328  }
  0x58   :  { %7115 = vsyncadd [#allocation6], 4294835968 }
  0x59   :  { %7116 = dma.done.wait [#allocation9], 131136  }
  0x5a   :  { %7117 = vsyncadd [#allocation9], 4294836160  ;;  %v94_v0 = vld [vmem:[#allocation5 + $0x8] sm:$0xff]  ;;  %v96_v2 = vld [vmem:[#allocation5 + $0x18] sm:$0xff]  ;;  %s7129_s4 = smov [#allocation11]  }
  0x5b   :  { %v110_v1 = vld [vmem:[#allocation5 + $0x88] sm:$0xff]  ;;  %v112_v4 = vld [vmem:[#allocation5 + $0x98] sm:$0xff]  ;;  %v93_v5 = vld [vmem:[#allocation5] sm:$0xff]  ;;  %s4756_s29 = sshll.u32 %s7129_s4, 4  ;;  %s4757_s29 = int_to_ptr.vmem [resolvable:$true] %s4756_s29 }
  0x5c   :  { %v4770_v3 = vpack.c.bf16 %v110_v1, %v94_v0  ;;  %v109_v6 = vld [vmem:[#allocation5 + $0x80] sm:$0xff]  ;;  %v4898_v7 = vpack.c.bf16 %v112_v4, %v96_v2  ;;  %v95_v9 = vld [vmem:[#allocation5 + $0x10] sm:$0xff]  ;;  %v126_v11 = vld [vmem:[#allocation5 + $0x108] sm:$0xff]  ;;  %s7090_s3 = scalar_lea.vmem %s4757_s29, 1024  ;;  %p7095_p13 = scmp.lt.s32.totalorder %s4757_s29, %s4757_s29 }
  0x5d   :  { %v4772_v8 = vpack.c.bf16 %v109_v6, %v93_v5  ;;  %v111_v10 = vld [vmem:[#allocation5 + $0x90] sm:$0xff]  ;;  %v142_v13 = vld [vmem:[#allocation5 + $0x188] sm:$0xff]  ;;  %v128_v14 = vld [vmem:[#allocation5 + $0x118] sm:$0xff]  ;;  %p7091_p12 = scmp.ne.s32.totalorder %s4757_s29, %s7090_s3  ;;  %p7096_p0 = scmp.lt.s32.totalorder %s7090_s3, %s7090_s3 }
  0x5e   :  { %4771 = vmatprep.subr.bf16.mxu0 %v4770_v3  ;;  %v4900_v12 = vpack.c.bf16 %v111_v10, %v95_v9  ;;  %v144_v15 = vld [vmem:[#allocation5 + $0x198] sm:$0xff]  ;;  %4899 = vmatprep.subr.bf16.mxu1 %v4898_v7  ;;  %v4774_v16 = vpack.c.bf16 %v142_v13, %v126_v11  ;;  %v125_v18 = vld [vmem:[#allocation5 + $0x100] sm:$0xff]  ;;  %v127_v20 = vld [vmem:[#allocation5 + $0x110] sm:$0xff] }
  0x5f   :  { %4773 = vmatpush1.bf16.msra.mxu0 %v4772_v8  ;;  %v4902_v17 = vpack.c.bf16 %v144_v15, %v128_v14  ;;  %v141_v19 = vld [vmem:[#allocation5 + $0x180] sm:$0xff]  ;;  %v143_v22 = vld [vmem:[#allocation5 + $0x190] sm:$0xff]  ;;  %v158_v23 = vld [vmem:[#allocation5 + $0x208] sm:$0xff]  ;;  %p7097_p1 = por %p7096_p0, %p7095_p13 }
  0x60   :  { %4901 = vmatpush1.bf16.msra.mxu1 %v4900_v12  ;;  %v4776_v21 = vpack.c.bf16 %v141_v19, %v125_v18  ;;  %v174_v24 = vld [vmem:[#allocation5 + $0x288] sm:$0xff]  ;;  %4775 = vmatprep.subr.bf16.mxu0 %v4774_v16  ;;  %v4904_v25 = vpack.c.bf16 %v143_v22, %v127_v20  ;;  %v160_v27 = vld [vmem:[#allocation5 + $0x218] sm:$0xff]  ;;  %v157_v29 = vld [vmem:[#allocation5 + $0x200] sm:$0xff] }
  0x61   :  { %4903 = vmatprep.subr.bf16.mxu1 %v4902_v17  ;;  %v4778_v26 = vpack.c.bf16 %v174_v24, %v158_v23  ;;  %v176_v28 = vld [vmem:[#allocation5 + $0x298] sm:$0xff]  ;;  %v173_v31 = vld [vmem:[#allocation5 + $0x280] sm:$0xff]  ;;  %v159_v32 = vld [vmem:[#allocation5 + $0x210] sm:$0xff]  ;;  %p7098_p2 = pnand %p7097_p1, %p7091_p12 }
  0x62   :  { %v4906_v30 = vpack.c.bf16 %v176_v28, %v160_v27  ;;  %v175_v33 = vld [vmem:[#allocation5 + $0x290] sm:$0xff]  ;;  %v4780_v34 = vpack.c.bf16 %v173_v31, %v157_v29  ;;  %v190_v35 = vld [vmem:[#allocation5 + $0x308] sm:$0xff]  ;;  %v192_v37 = vld [vmem:[#allocation5 + $0x318] sm:$0xff] }
  0x63   :  { %4777 = vmatpush1.bf16.msra.mxu0 %v4776_v21  ;;  %v206_v36 = vld [vmem:[#allocation5 + $0x388] sm:$0xff]  ;;  %v4908_v38 = vpack.c.bf16 %v175_v33, %v159_v32  ;;  %v208_v40 = vld [vmem:[#allocation5 + $0x398] sm:$0xff]  ;;  %v189_v41 = vld [vmem:[#allocation5 + $0x300] sm:$0xff] }
  0x64   :  { %4905 = vmatpush1.bf16.msra.mxu1 %v4904_v25  ;;  %4779 = vmatprep.subr.bf16.mxu0 %v4778_v26  ;;  %v4782_v39 = vpack.c.bf16 %v206_v36, %v190_v35  ;;  %v205_v42 = vld [vmem:[#allocation5 + $0x380] sm:$0xff]  ;;  %v4910_v43 = vpack.c.bf16 %v208_v40, %v192_v37  ;;  %v191_v44 = vld [vmem:[#allocation5 + $0x310] sm:$0xff]  ;;  %v222_v46 = vld [vmem:[#allocation5 + $0x408] sm:$0xff] }
  0x65   :  { %4907 = vmatprep.subr.bf16.mxu1 %v4906_v30  ;;  %v207_v45 = vld [vmem:[#allocation5 + $0x390] sm:$0xff]  ;;  %v238_v47 = vld [vmem:[#allocation5 + $0x488] sm:$0xff]  ;;  %v224_v48 = vld [vmem:[#allocation5 + $0x418] sm:$0xff]  ;;  %v4784_v50 = vpack.c.bf16 %v205_v42, %v189_v41 }
  0x66   :  { %v240_v49 = vld [vmem:[#allocation5 + $0x498] sm:$0xff]  ;;  %v4912_v51 = vpack.c.bf16 %v207_v45, %v191_v44  ;;  %v4786_v52 = vpack.c.bf16 %v238_v47, %v222_v46  ;;  %v221_v53 = vld [vmem:[#allocation5 + $0x400] sm:$0xff]  ;;  %v223_v55 = vld [vmem:[#allocation5 + $0x410] sm:$0xff] }
  0x67   :  { %4781 = vmatpush1.bf16.msra.mxu0 %v4780_v34  ;;  %v237_v54 = vld [vmem:[#allocation5 + $0x480] sm:$0xff]  ;;  %v4914_v56 = vpack.c.bf16 %v240_v49, %v224_v48  ;;  %v239_v57 = vld [vmem:[#allocation5 + $0x490] sm:$0xff]  ;;  %v254_v58 = vld [vmem:[#allocation5 + $0x508] sm:$0xff] }
  0x68   :  { %4909 = vmatpush1.bf16.msra.mxu1 %v4908_v38  ;;  %4783 = vmatprep.subr.bf16.mxu0 %v4782_v39  ;;  %v270_v59 = vld [vmem:[#allocation5 + $0x588] sm:$0xff]  ;;  %v256_v60 = vld [vmem:[#allocation5 + $0x518] sm:$0xff]  ;;  %v4788_v62 = vpack.c.bf16 %v237_v54, %v221_v53  ;;  %v4916_v63 = vpack.c.bf16 %v239_v57, %v223_v55  ;;  %v253_v1 = vld [vmem:[#allocation5 + $0x500] sm:$0xff] }
  0x69   :  { %4911 = vmatprep.subr.bf16.mxu1 %v4910_v43  ;;  %v272_v61 = vld [vmem:[#allocation5 + $0x598] sm:$0xff]  ;;  %v4790_v0 = vpack.c.bf16 %v270_v59, %v254_v58  ;;  %v269_v2 = vld [vmem:[#allocation5 + $0x580] sm:$0xff]  ;;  %v255_v3 = vld [vmem:[#allocation5 + $0x510] sm:$0xff] }
  0x6a   :  { %v4918_v4 = vpack.c.bf16 %v272_v61, %v256_v60  ;;  %v271_v5 = vld [vmem:[#allocation5 + $0x590] sm:$0xff]  ;;  %v286_v6 = vld [vmem:[#allocation5 + $0x608] sm:$0xff]  ;;  %v288_v8 = vld [vmem:[#allocation5 + $0x618] sm:$0xff]  ;;  %v4792_v10 = vpack.c.bf16 %v269_v2, %v253_v1 }
  0x6b   :  { %4785 = vmatpush1.bf16.msra.mxu0 %v4784_v50  ;;  %v302_v7 = vld [vmem:[#allocation5 + $0x688] sm:$0xff]  ;;  %v304_v9 = vld [vmem:[#allocation5 + $0x698] sm:$0xff]  ;;  %v4920_v11 = vpack.c.bf16 %v271_v5, %v255_v3  ;;  %v285_v13 = vld [vmem:[#allocation5 + $0x600] sm:$0xff] }
  0x6c   :  { %4913 = vmatpush1.bf16.msra.mxu1 %v4912_v51  ;;  %4787 = vmatprep.subr.bf16.mxu0 %v4786_v52  ;;  %v4794_v12 = vpack.c.bf16 %v302_v7, %v286_v6  ;;  %v301_v14 = vld [vmem:[#allocation5 + $0x680] sm:$0xff]  ;;  %v287_v15 = vld [vmem:[#allocation5 + $0x610] sm:$0xff]  ;;  %v4922_v16 = vpack.c.bf16 %v304_v9, %v288_v8  ;;  %v318_v18 = vld [vmem:[#allocation5 + $0x708] sm:$0xff] }
  0x6d   :  { %4915 = vmatprep.subr.bf16.mxu1 %v4914_v56  ;;  %v303_v17 = vld [vmem:[#allocation5 + $0x690] sm:$0xff]  ;;  %v334_v19 = vld [vmem:[#allocation5 + $0x788] sm:$0xff]  ;;  %v320_v20 = vld [vmem:[#allocation5 + $0x718] sm:$0xff]  ;;  %v4796_v22 = vpack.c.bf16 %v301_v14, %v285_v13 }
  0x6e   :  { %v336_v21 = vld [vmem:[#allocation5 + $0x798] sm:$0xff]  ;;  %v4924_v23 = vpack.c.bf16 %v303_v17, %v287_v15  ;;  %v4798_v24 = vpack.c.bf16 %v334_v19, %v318_v18  ;;  %v317_v25 = vld [vmem:[#allocation5 + $0x700] sm:$0xff]  ;;  %v319_v27 = vld [vmem:[#allocation5 + $0x710] sm:$0xff] }
  0x6f   :  { %4789 = vmatpush1.bf16.msra.mxu0 %v4788_v62  ;;  %v333_v26 = vld [vmem:[#allocation5 + $0x780] sm:$0xff]  ;;  %v4926_v28 = vpack.c.bf16 %v336_v21, %v320_v20  ;;  %v335_v29 = vld [vmem:[#allocation5 + $0x790] sm:$0xff]  ;;  %v350_v30 = vld [vmem:[#allocation5 + $0x808] sm:$0xff] }
  0x70   :  { %4917 = vmatpush1.bf16.msra.mxu1 %v4916_v63  ;;  %4791 = vmatprep.subr.bf16.mxu0 %v4790_v0  ;;  %v366_v31 = vld [vmem:[#allocation5 + $0x888] sm:$0xff]  ;;  %v352_v32 = vld [vmem:[#allocation5 + $0x818] sm:$0xff]  ;;  %v4800_v34 = vpack.c.bf16 %v333_v26, %v317_v25  ;;  %v4928_v35 = vpack.c.bf16 %v335_v29, %v319_v27  ;;  %v349_v37 = vld [vmem:[#allocation5 + $0x800] sm:$0xff] }
  0x71   :  { %4919 = vmatprep.subr.bf16.mxu1 %v4918_v4  ;;  %v368_v33 = vld [vmem:[#allocation5 + $0x898] sm:$0xff]  ;;  %v4802_v36 = vpack.c.bf16 %v366_v31, %v350_v30  ;;  %v365_v38 = vld [vmem:[#allocation5 + $0x880] sm:$0xff]  ;;  %v351_v39 = vld [vmem:[#allocation5 + $0x810] sm:$0xff] }
  0x72   :  { %v4930_v40 = vpack.c.bf16 %v368_v33, %v352_v32  ;;  %v367_v41 = vld [vmem:[#allocation5 + $0x890] sm:$0xff]  ;;  %v382_v42 = vld [vmem:[#allocation5 + $0x908] sm:$0xff]  ;;  %v384_v44 = vld [vmem:[#allocation5 + $0x918] sm:$0xff]  ;;  %v4804_v46 = vpack.c.bf16 %v365_v38, %v349_v37 }
  0x73   :  { %4793 = vmatpush1.bf16.msra.mxu0 %v4792_v10  ;;  %v398_v43 = vld [vmem:[#allocation5 + $0x988] sm:$0xff]  ;;  %v400_v45 = vld [vmem:[#allocation5 + $0x998] sm:$0xff]  ;;  %v4932_v47 = vpack.c.bf16 %v367_v41, %v351_v39  ;;  %v381_v49 = vld [vmem:[#allocation5 + $0x900] sm:$0xff] }
  0x74   :  { %4921 = vmatpush1.bf16.msra.mxu1 %v4920_v11  ;;  %4795 = vmatprep.subr.bf16.mxu0 %v4794_v12  ;;  %v4806_v48 = vpack.c.bf16 %v398_v43, %v382_v42  ;;  %v397_v50 = vld [vmem:[#allocation5 + $0x980] sm:$0xff]  ;;  %v383_v51 = vld [vmem:[#allocation5 + $0x910] sm:$0xff]  ;;  %v4934_v52 = vpack.c.bf16 %v400_v45, %v384_v44  ;;  %v414_v54 = vld [vmem:[#allocation5 + $0xa08] sm:$0xff] }
  0x75   :  { %4923 = vmatprep.subr.bf16.mxu1 %v4922_v16  ;;  %v399_v53 = vld [vmem:[#allocation5 + $0x990] sm:$0xff]  ;;  %v430_v55 = vld [vmem:[#allocation5 + $0xa88] sm:$0xff]  ;;  %v416_v56 = vld [vmem:[#allocation5 + $0xa18] sm:$0xff]  ;;  %v4808_v58 = vpack.c.bf16 %v397_v50, %v381_v49 }
  0x76   :  { %v432_v57 = vld [vmem:[#allocation5 + $0xa98] sm:$0xff]  ;;  %v4936_v59 = vpack.c.bf16 %v399_v53, %v383_v51  ;;  %v4810_v60 = vpack.c.bf16 %v430_v55, %v414_v54  ;;  %v413_v61 = vld [vmem:[#allocation5 + $0xa00] sm:$0xff]  ;;  %v415_v63 = vld [vmem:[#allocation5 + $0xa10] sm:$0xff] }
  0x77   :  { %4797 = vmatpush1.bf16.msra.mxu0 %v4796_v22  ;;  %v429_v62 = vld [vmem:[#allocation5 + $0xa80] sm:$0xff]  ;;  %v4938_v0 = vpack.c.bf16 %v432_v57, %v416_v56  ;;  %v431_v1 = vld [vmem:[#allocation5 + $0xa90] sm:$0xff]  ;;  %v446_v2 = vld [vmem:[#allocation5 + $0xb08] sm:$0xff] }
  0x78   :  { %4925 = vmatpush1.bf16.msra.mxu1 %v4924_v23  ;;  %4799 = vmatprep.subr.bf16.mxu0 %v4798_v24  ;;  %v462_v3 = vld [vmem:[#allocation5 + $0xb88] sm:$0xff]  ;;  %v448_v4 = vld [vmem:[#allocation5 + $0xb18] sm:$0xff]  ;;  %v4812_v6 = vpack.c.bf16 %v429_v62, %v413_v61  ;;  %v445_v7 = vld [vmem:[#allocation5 + $0xb00] sm:$0xff]  ;;  %v4940_v8 = vpack.c.bf16 %v431_v1, %v415_v63 }
  0x79   :  { %4927 = vmatprep.subr.bf16.mxu1 %v4926_v28  ;;  %v464_v5 = vld [vmem:[#allocation5 + $0xb98] sm:$0xff]  ;;  %v4814_v9 = vpack.c.bf16 %v462_v3, %v446_v2  ;;  %v461_v10 = vld [vmem:[#allocation5 + $0xb80] sm:$0xff]  ;;  %v447_v11 = vld [vmem:[#allocation5 + $0xb10] sm:$0xff] }
  0x7a   :  { %v463_v12 = vld [vmem:[#allocation5 + $0xb90] sm:$0xff]  ;;  %v4942_v13 = vpack.c.bf16 %v464_v5, %v448_v4  ;;  %v478_v14 = vld [vmem:[#allocation5 + $0xc08] sm:$0xff]  ;;  %v480_v17 = vld [vmem:[#allocation5 + $0xc18] sm:$0xff]  ;;  %v4816_v19 = vpack.c.bf16 %v461_v10, %v445_v7 }
  0x7b   :  { %4801 = vmatpush1.bf16.msra.mxu0 %v4800_v34  ;;  %v494_v15 = vld [vmem:[#allocation5 + $0xc88] sm:$0xff]  ;;  %v496_v18 = vld [vmem:[#allocation5 + $0xc98] sm:$0xff]  ;;  %v4944_v20 = vpack.c.bf16 %v463_v12, %v447_v11  ;;  %v477_v22 = vld [vmem:[#allocation5 + $0xc00] sm:$0xff] }
  0x7c   :  { %4929 = vmatpush1.bf16.msra.mxu1 %v4928_v35  ;;  %4803 = vmatprep.subr.bf16.mxu0 %v4802_v36  ;;  %v7226_v16 = vld [vmem:[#allocation2 + $0x8] sm:$0xff]  ;;  %v4818_v21 = vpack.c.bf16 %v494_v15, %v478_v14  ;;  %v493_v23 = vld [vmem:[#allocation5 + $0xc80] sm:$0xff]  ;;  %v479_v24 = vld [vmem:[#allocation5 + $0xc10] sm:$0xff]  ;;  %v4946_v25 = vpack.c.bf16 %v496_v18, %v480_v17 }
  0x7d   :  { %4931 = vmatprep.subr.bf16.mxu1 %v4930_v40  ;;  %1265 = vmatprep.mubr.f32.mxu0 %v7226_v16  ;;  %v495_v26 = vld [vmem:[#allocation5 + $0xc90] sm:$0xff]  ;;  %v510_v27 = vld [vmem:[#allocation5 + $0xd08] sm:$0xff]  ;;  %v512_v29 = vld [vmem:[#allocation5 + $0xd18] sm:$0xff]  ;;  %v4820_v31 = vpack.c.bf16 %v493_v23, %v477_v22 }
  0x7e   :  { %1419 = vmatprep.mubr.f32.mxu1 %v7226_v16  ;;  %v526_v28 = vld [vmem:[#allocation5 + $0xd88] sm:$0xff]  ;;  %v528_v30 = vld [vmem:[#allocation5 + $0xd98] sm:$0xff]  ;;  %v4948_v32 = vpack.c.bf16 %v495_v26, %v479_v24  ;;  %v509_v34 = vld [vmem:[#allocation5 + $0xd00] sm:$0xff] }
  0x7f   :  { %4805 = vmatpush1.bf16.msra.mxu0 %v4804_v46  ;;  %v4822_v33 = vpack.c.bf16 %v526_v28, %v510_v27  ;;  %v525_v35 = vld [vmem:[#allocation5 + $0xd80] sm:$0xff]  ;;  %v511_v36 = vld [vmem:[#allocation5 + $0xd10] sm:$0xff]  ;;  %v4950_v37 = vpack.c.bf16 %v528_v30, %v512_v29  ;;  %v542_v39 = vld [vmem:[#allocation5 + $0xe08] sm:$0xff] }
  0x80   :  { %4933 = vmatpush1.bf16.msra.mxu1 %v4932_v47  ;;  %4807 = vmatprep.subr.bf16.mxu0 %v4806_v48  ;;  %v527_v38 = vld [vmem:[#allocation5 + $0xd90] sm:$0xff]  ;;  %v558_v40 = vld [vmem:[#allocation5 + $0xe88] sm:$0xff]  ;;  %v544_v41 = vld [vmem:[#allocation5 + $0xe18] sm:$0xff]  ;;  %v4824_v43 = vpack.c.bf16 %v525_v35, %v509_v34 }
  0x81   :  { %4935 = vmatprep.subr.bf16.mxu1 %v4934_v52  ;;  %v560_v42 = vld [vmem:[#allocation5 + $0xe98] sm:$0xff]  ;;  %v4952_v44 = vpack.c.bf16 %v527_v38, %v511_v36  ;;  %v4826_v45 = vpack.c.bf16 %v558_v40, %v542_v39  ;;  %v541_v46 = vld [vmem:[#allocation5 + $0xe00] sm:$0xff]  ;;  %v543_v48 = vld [vmem:[#allocation5 + $0xe10] sm:$0xff] }
  0x82   :  { %v557_v47 = vld [vmem:[#allocation5 + $0xe80] sm:$0xff]  ;;  %v4954_v49 = vpack.c.bf16 %v560_v42, %v544_v41  ;;  %v559_v50 = vld [vmem:[#allocation5 + $0xe90] sm:$0xff]  ;;  %v574_v51 = vld [vmem:[#allocation5 + $0xf08] sm:$0xff] }
  0x83   :  { %4809 = vmatpush1.bf16.msra.mxu0 %v4808_v58  ;;  %v590_v52 = vld [vmem:[#allocation5 + $0xf88] sm:$0xff]  ;;  %v576_v53 = vld [vmem:[#allocation5 + $0xf18] sm:$0xff]  ;;  %v4828_v55 = vpack.c.bf16 %v557_v47, %v541_v46  ;;  %v4956_v56 = vpack.c.bf16 %v559_v50, %v543_v48  ;;  %v573_v58 = vld [vmem:[#allocation5 + $0xf00] sm:$0xff] }
  0x84   :  { %4937 = vmatpush1.bf16.msra.mxu1 %v4936_v59  ;;  %4811 = vmatprep.subr.bf16.mxu0 %v4810_v60  ;;  %v592_v54 = vld [vmem:[#allocation5 + $0xf98] sm:$0xff]  ;;  %v4830_v57 = vpack.c.bf16 %v590_v52, %v574_v51  ;;  %v589_v59 = vld [vmem:[#allocation5 + $0xf80] sm:$0xff]  ;;  %v575_v60 = vld [vmem:[#allocation5 + $0xf10] sm:$0xff] }
  0x85   :  { %4939 = vmatprep.subr.bf16.mxu1 %v4938_v0  ;;  %v4958_v61 = vpack.c.bf16 %v592_v54, %v576_v53  ;;  %v591_v62 = vld [vmem:[#allocation5 + $0xf90] sm:$0xff]  ;;  %v606_v63 = vld [vmem:[#allocation5 + $0x1008] sm:$0xff]  ;;  %v608_v1 = vld [vmem:[#allocation5 + $0x1018] sm:$0xff]  ;;  %v4832_v3 = vpack.c.bf16 %v589_v59, %v573_v58 }
  0x86   :  { %v622_v0 = vld [vmem:[#allocation5 + $0x1088] sm:$0xff]  ;;  %v624_v2 = vld [vmem:[#allocation5 + $0x1098] sm:$0xff]  ;;  %v4960_v4 = vpack.c.bf16 %v591_v62, %v575_v60  ;;  %v621_v7 = vld [vmem:[#allocation5 + $0x1080] sm:$0xff] }
  0x87   :  { %4813 = vmatpush1.bf16.msra.mxu0 %v4812_v6  ;;  %v4834_v5 = vpack.c.bf16 %v622_v0, %v606_v63  ;;  %v605_v6 = vld [vmem:[#allocation5 + $0x1000] sm:$0xff]  ;;  %v623_v10 = vld [vmem:[#allocation5 + $0x1090] sm:$0xff]  ;;  %v638_v11 = vld [vmem:[#allocation5 + $0x1108] sm:$0xff] }
  0x88   :  { %4941 = vmatpush1.bf16.msra.mxu1 %v4940_v8  ;;  %4815 = vmatprep.subr.bf16.mxu0 %v4814_v9  ;;  %v607_v8 = vld [vmem:[#allocation5 + $0x1010] sm:$0xff]  ;;  %v4962_v9 = vpack.c.bf16 %v624_v2, %v608_v1  ;;  %v654_v12 = vld [vmem:[#allocation5 + $0x1188] sm:$0xff]  ;;  %v656_v14 = vld [vmem:[#allocation5 + $0x1198] sm:$0xff]  ;;  %v4836_v17 = vpack.c.bf16 %v621_v7, %v605_v6 }
  0x89   :  { %4943 = vmatprep.subr.bf16.mxu1 %v4942_v13  ;;  %v640_v13 = vld [vmem:[#allocation5 + $0x1118] sm:$0xff]  ;;  %v85_v15 = vld [vmem:[#allocation2] sm:$0xff]  ;;  %v4964_v18 = vpack.c.bf16 %v623_v10, %v607_v8  ;;  %v639_v22 = vld [vmem:[#allocation5 + $0x1110] sm:$0xff] }
  0x8a   :  { %v4966_v23 = vpack.c.bf16 %v656_v14, %v640_v13  ;;  %v655_v24 = vld [vmem:[#allocation5 + $0x1190] sm:$0xff]  ;;  %v686_v26 = vld [vmem:[#allocation5 + $0x1288] sm:$0xff]  ;;  %v672_v27 = vld [vmem:[#allocation5 + $0x1218] sm:$0xff] }
  0x8b   :  { %4817 = vmatpush1.bf16.msra.mxu0 %v4816_v19  ;;  %v4838_v19 = vpack.c.bf16 %v654_v12, %v638_v11  ;;  %v688_v28 = vld [vmem:[#allocation5 + $0x1298] sm:$0xff]  ;;  %v4968_v30 = vpack.c.bf16 %v655_v24, %v639_v22  ;;  %v671_v34 = vld [vmem:[#allocation5 + $0x1210] sm:$0xff]  ;;  %v718_v38 = vld [vmem:[#allocation5 + $0x1388] sm:$0xff] }
  0x8c   :  { %4945 = vmatpush1.bf16.msra.mxu1 %v4944_v20  ;;  %4819 = vmatprep.subr.bf16.mxu0 %v4818_v21  ;;  %v637_v20 = vld [vmem:[#allocation5 + $0x1100] sm:$0xff]  ;;  %v4970_v35 = vpack.c.bf16 %v688_v28, %v672_v27  ;;  %v687_v36 = vld [vmem:[#allocation5 + $0x1290] sm:$0xff]  ;;  %v704_v39 = vld [vmem:[#allocation5 + $0x1318] sm:$0xff] }
  0x8d   :  { %4947 = vmatprep.subr.bf16.mxu1 %v4946_v25  ;;  %v653_v21 = vld [vmem:[#allocation5 + $0x1180] sm:$0xff]  ;;  %v670_v25 = vld [vmem:[#allocation5 + $0x1208] sm:$0xff]  ;;  %v720_v40 = vld [vmem:[#allocation5 + $0x1398] sm:$0xff]  ;;  %v4972_v42 = vpack.c.bf16 %v687_v36, %v671_v34 }
  0x8e   :  { %v4840_v29 = vpack.c.bf16 %v653_v21, %v637_v20  ;;  %v703_v46 = vld [vmem:[#allocation5 + $0x1310] sm:$0xff]  ;;  %v4974_v47 = vpack.c.bf16 %v720_v40, %v704_v39  ;;  %v750_v50 = vld [vmem:[#allocation5 + $0x1488] sm:$0xff]  ;;  %v736_v51 = vld [vmem:[#allocation5 + $0x1418] sm:$0xff] }
  0x8f   :  { %4821 = vmatpush1.bf16.msra.mxu0 %v4820_v31  ;;  %v4842_v31 = vpack.c.bf16 %v686_v26, %v670_v25  ;;  %v719_v48 = vld [vmem:[#allocation5 + $0x1390] sm:$0xff]  ;;  %v752_v52 = vld [vmem:[#allocation5 + $0x1498] sm:$0xff]  ;;  %v782_v62 = vld [vmem:[#allocation5 + $0x1588] sm:$0xff] }
  0x90   :  { %4949 = vmatpush1.bf16.msra.mxu1 %v4948_v32  ;;  %4823 = vmatprep.subr.bf16.mxu0 %v4822_v33  ;;  %v669_v32 = vld [vmem:[#allocation5 + $0x1200] sm:$0xff]  ;;  %v4976_v54 = vpack.c.bf16 %v719_v48, %v703_v46  ;;  %v735_v58 = vld [vmem:[#allocation5 + $0x1410] sm:$0xff]  ;;  %v4978_v59 = vpack.c.bf16 %v752_v52, %v736_v51  ;;  %v768_v63 = vld [vmem:[#allocation5 + $0x1518] sm:$0xff] }
  0x91   :  { %4951 = vmatprep.subr.bf16.mxu1 %v4950_v37  ;;  %v685_v33 = vld [vmem:[#allocation5 + $0x1280] sm:$0xff]  ;;  %v702_v37 = vld [vmem:[#allocation5 + $0x1308] sm:$0xff]  ;;  %v751_v60 = vld [vmem:[#allocation5 + $0x1490] sm:$0xff] }
  0x92   :  { %v4844_v41 = vpack.c.bf16 %v685_v33, %v669_v32  ;;  %v784_v0 = vld [vmem:[#allocation5 + $0x1598] sm:$0xff]  ;;  %v4980_v2 = vpack.c.bf16 %v751_v60, %v735_v58  ;;  %v767_v6 = vld [vmem:[#allocation5 + $0x1510] sm:$0xff]  ;;  %v814_v10 = vld [vmem:[#allocation5 + $0x1688] sm:$0xff] }
  0x93   :  { %4825 = vmatpush1.bf16.msra.mxu0 %v4824_v43  ;;  %v4846_v43 = vpack.c.bf16 %v718_v38, %v702_v37  ;;  %v4982_v7 = vpack.c.bf16 %v784_v0, %v768_v63  ;;  %v783_v8 = vld [vmem:[#allocation5 + $0x1590] sm:$0xff]  ;;  %v800_v11 = vld [vmem:[#allocation5 + $0x1618] sm:$0xff]  ;;  %v7230_v13 = vld [vmem:[#allocation2 + $0x28] sm:$0xff] }
  0x94   :  { %4953 = vmatpush1.bf16.msra.mxu1 %v4952_v44  ;;  %4827 = vmatprep.subr.bf16.mxu0 %v4826_v45  ;;  %v701_v44 = vld [vmem:[#allocation5 + $0x1300] sm:$0xff]  ;;  %v816_v12 = vld [vmem:[#allocation5 + $0x1698] sm:$0xff]  ;;  %v799_v21 = vld [vmem:[#allocation5 + $0x1610] sm:$0xff] }
  0x95   :  { %4955 = vmatprep.subr.bf16.mxu1 %v4954_v49  ;;  %v717_v45 = vld [vmem:[#allocation5 + $0x1380] sm:$0xff]  ;;  %v734_v49 = vld [vmem:[#allocation5 + $0x1408] sm:$0xff]  ;;  %v815_v22 = vld [vmem:[#allocation5 + $0x1690] sm:$0xff] }
  0x96   :  { %v4848_v53 = vpack.c.bf16 %v717_v45, %v701_v44  ;;  %v813_v20 = vld [vmem:[#allocation5 + $0x1680] sm:$0xff]  ;;  %v830_v24 = vld [vmem:[#allocation5 + $0x1708] sm:$0xff]  ;;  %v7236_v26 = vld [vmem:[#allocation2 + $0x18] sm:$0xff] }
  0x97   :  { %4829 = vmatpush1.bf16.msra.mxu0 %v4828_v55  ;;  %v4850_v55 = vpack.c.bf16 %v750_v50, %v734_v49  ;;  %v846_v25 = vld [vmem:[#allocation5 + $0x1788] sm:$0xff]  ;;  %v832_v27 = vld [vmem:[#allocation5 + $0x1718] sm:$0xff]  ;;  %v829_v32 = vld [vmem:[#allocation5 + $0x1700] sm:$0xff] }
  0x98   :  { %4957 = vmatpush1.bf16.msra.mxu1 %v4956_v56  ;;  %4831 = vmatprep.subr.bf16.mxu0 %v4830_v57  ;;  %v733_v56 = vld [vmem:[#allocation5 + $0x1400] sm:$0xff]  ;;  %v848_v28 = vld [vmem:[#allocation5 + $0x1798] sm:$0xff]  ;;  %v831_v34 = vld [vmem:[#allocation5 + $0x1710] sm:$0xff] }
  0x99   :  { %4959 = vmatprep.subr.bf16.mxu1 %v4958_v61  ;;  %v749_v57 = vld [vmem:[#allocation5 + $0x1480] sm:$0xff]  ;;  %v766_v61 = vld [vmem:[#allocation5 + $0x1508] sm:$0xff]  ;;  %v847_v36 = vld [vmem:[#allocation5 + $0x1790] sm:$0xff] }
  0x9a   :  { %v4852_v1 = vpack.c.bf16 %v749_v57, %v733_v56  ;;  %v845_v33 = vld [vmem:[#allocation5 + $0x1780] sm:$0xff]  ;;  %v862_v37 = vld [vmem:[#allocation5 + $0x1808] sm:$0xff]  ;;  %v864_v39 = vld [vmem:[#allocation5 + $0x1818] sm:$0xff] }
  0x9b   :  { %4833 = vmatpush1.bf16.msra.mxu0 %v4832_v3  ;;  %v4854_v3 = vpack.c.bf16 %v782_v62, %v766_v61  ;;  %v878_v38 = vld [vmem:[#allocation5 + $0x1888] sm:$0xff]  ;;  %v880_v40 = vld [vmem:[#allocation5 + $0x1898] sm:$0xff]  ;;  %v861_v44 = vld [vmem:[#allocation5 + $0x1800] sm:$0xff] }
  0x9c   :  { %4961 = vmatpush1.bf16.msra.mxu1 %v4960_v4  ;;  %4835 = vmatprep.subr.bf16.mxu0 %v4834_v5  ;;  %v765_v4 = vld [vmem:[#allocation5 + $0x1500] sm:$0xff]  ;;  %v863_v46 = vld [vmem:[#allocation5 + $0x1810] sm:$0xff]  ;;  %v894_v49 = vld [vmem:[#allocation5 + $0x1908] sm:$0xff] }
  0x9d   :  { %4963 = vmatprep.subr.bf16.mxu1 %v4962_v9  ;;  %v781_v5 = vld [vmem:[#allocation5 + $0x1580] sm:$0xff]  ;;  %v798_v9 = vld [vmem:[#allocation5 + $0x1608] sm:$0xff]  ;;  %v879_v48 = vld [vmem:[#allocation5 + $0x1890] sm:$0xff] }
  0x9e   :  { %1266 = vmatmul.mubr.f32.vlgmr.msra.gmra.mrb[0].mxu0 %v85_v15  ;;  %v4856_v14 = vpack.c.bf16 %v781_v5, %v765_v4  ;;  %v877_v45 = vld [vmem:[#allocation5 + $0x1880] sm:$0xff]  ;;  %v910_v50 = vld [vmem:[#allocation5 + $0x1988] sm:$0xff]  ;;  %v896_v51 = vld [vmem:[#allocation5 + $0x1918] sm:$0xff] }
  0x9f   :  { %4837 = vmatpush1.bf16.msra.mxu0 %v4836_v17  ;;  %1420 = vmatmul.mubr.f32.vlgmr.msra.gmra.mrb[0].mxu1 %v85_v15  ;;  %v797_v15 = vld [vmem:[#allocation5 + $0x1600] sm:$0xff]  ;;  %v912_v52 = vld [vmem:[#allocation5 + $0x1998] sm:$0xff]  ;;  %v895_v58 = vld [vmem:[#allocation5 + $0x1910] sm:$0xff] }
  0xa0   :  { %4965 = vmatpush1.bf16.msra.mxu1 %v4964_v18  ;;  %4839 = vmatprep.subr.bf16.mxu0 %v4838_v19  ;;  %v7233_v17 = vld [vmem:[#allocation2 + $0x20] sm:$0xff]  ;;  %v4984_v18 = vpack.c.bf16 %v783_v8, %v767_v6  ;;  %v4858_v19 = vpack.c.bf16 %v814_v10, %v798_v9  ;;  %v911_v60 = vld [vmem:[#allocation5 + $0x1990] sm:$0xff]  ;;  %v926_v61 = vld [vmem:[#allocation5 + $0x1a08] sm:$0xff] }
  0xa1   :  { %4967 = vmatprep.subr.bf16.mxu1 %v4966_v23  ;;  %1271 = vmatprep.mubr.f32.mxu0 %v7230_v13  ;;  %v4986_v23 = vpack.c.bf16 %v816_v12, %v800_v11  ;;  %v893_v56 = vld [vmem:[#allocation5 + $0x1900] sm:$0xff]  ;;  %v942_v62 = vld [vmem:[#allocation5 + $0x1a88] sm:$0xff]  ;;  %v928_v63 = vld [vmem:[#allocation5 + $0x1a18] sm:$0xff] }
  0xa2   :  { %1425 = vmatprep.mubr.f32.mxu1 %v7230_v13  ;;  %1272 = vmatmul.mubr.f32.gmra.mrb[2].mxu0 %v7233_v17  ;;  %v909_v57 = vld [vmem:[#allocation5 + $0x1980] sm:$0xff]  ;;  %v944_v0 = vld [vmem:[#allocation5 + $0x1a98] sm:$0xff]  ;;  %v927_v6 = vld [vmem:[#allocation5 + $0x1a10] sm:$0xff] }
  0xa3   :  { %4841 = vmatpush1.bf16.msra.mxu0 %v4840_v29  ;;  %1426 = vmatmul.mubr.f32.gmra.mrb[2].mxu1 %v7233_v17  ;;  %v4860_v29 = vpack.c.bf16 %v813_v20, %v797_v15  ;;  %v925_v4 = vld [vmem:[#allocation5 + $0x1a00] sm:$0xff]  ;;  %v943_v8 = vld [vmem:[#allocation5 + $0x1a90] sm:$0xff]  ;;  %v958_v9 = vld [vmem:[#allocation5 + $0x1b08] sm:$0xff] }
  0xa4   :  { %4969 = vmatpush1.bf16.msra.mxu1 %v4968_v30  ;;  %4843 = vmatprep.subr.bf16.mxu0 %v4842_v31  ;;  %v4988_v30 = vpack.c.bf16 %v815_v22, %v799_v21  ;;  %v4862_v31 = vpack.c.bf16 %v846_v25, %v830_v24  ;;  %v941_v5 = vld [vmem:[#allocation5 + $0x1a80] sm:$0xff]  ;;  %v974_v10 = vld [vmem:[#allocation5 + $0x1b88] sm:$0xff]  ;;  %v960_v11 = vld [vmem:[#allocation5 + $0x1b18] sm:$0xff]  ;;  %v5004_v15 = vpack.c.bf16 %v943_v8, %v927_v6 }
  0xa5   :  { %4971 = vmatprep.subr.bf16.mxu1 %v4970_v35  ;;  %1342 = vmatprep.mubr.f32.mxu0 %v7236_v26  ;;  %v4990_v35 = vpack.c.bf16 %v848_v28, %v832_v27  ;;  %v976_v12 = vld [vmem:[#allocation5 + $0x1b98] sm:$0xff]  ;;  %v973_v20 = vld [vmem:[#allocation5 + $0x1b80] sm:$0xff]  ;;  %v959_v21 = vld [vmem:[#allocation5 + $0x1b10] sm:$0xff] }
  0xa6   :  { %1496 = vmatprep.mubr.f32.mxu1 %v7236_v26  ;;  %v5006_v22 = vpack.c.bf16 %v976_v12, %v960_v11  ;;  %v990_v24 = vld [vmem:[#allocation5 + $0x1c08] sm:$0xff]  ;;  %v992_v27 = vld [vmem:[#allocation5 + $0x1c18] sm:$0xff]  ;;  %v1087_v6 = vld [vmem:[#allocation5 + $0x1f10] sm:$0xff] }
  0xa7   :  { %4845 = vmatpush1.bf16.msra.mxu0 %v4844_v41  ;;  %v4864_v41 = vpack.c.bf16 %v845_v33, %v829_v32  ;;  %v1006_v25 = vld [vmem:[#allocation5 + $0x1c88] sm:$0xff]  ;;  %v1008_v28 = vld [vmem:[#allocation5 + $0x1c98] sm:$0xff]  ;;  %v989_v32 = vld [vmem:[#allocation5 + $0x1c00] sm:$0xff] }
  0xa8   :  { %4973 = vmatpush1.bf16.msra.mxu1 %v4972_v42  ;;  %4847 = vmatprep.subr.bf16.mxu0 %v4846_v43  ;;  %v4992_v42 = vpack.c.bf16 %v847_v36, %v831_v34  ;;  %v4866_v43 = vpack.c.bf16 %v878_v38, %v862_v37  ;;  %v1005_v33 = vld [vmem:[#allocation5 + $0x1c80] sm:$0xff]  ;;  %v991_v34 = vld [vmem:[#allocation5 + $0x1c10] sm:$0xff]  ;;  %v1022_v37 = vld [vmem:[#allocation5 + $0x1d08] sm:$0xff] }
  0xa9   :  { %4975 = vmatprep.subr.bf16.mxu1 %v4974_v47  ;;  %v4994_v47 = vpack.c.bf16 %v880_v40, %v864_v39  ;;  %v1007_v36 = vld [vmem:[#allocation5 + $0x1c90] sm:$0xff]  ;;  %v1038_v38 = vld [vmem:[#allocation5 + $0x1d88] sm:$0xff]  ;;  %v1024_v39 = vld [vmem:[#allocation5 + $0x1d18] sm:$0xff] }
  0xaa   :  { %v1040_v40 = vld [vmem:[#allocation5 + $0x1d98] sm:$0xff]  ;;  %v1103_v8 = vld [vmem:[#allocation5 + $0x1f90] sm:$0xff] }
  0xab   :  { %4849 = vmatpush1.bf16.msra.mxu0 %v4848_v53  ;;  %v4868_v53 = vpack.c.bf16 %v877_v45, %v861_v44  ;;  %v1021_v44 = vld [vmem:[#allocation5 + $0x1d00] sm:$0xff]  ;;  %v100_v11 = vld [vmem:[#allocation5 + $0x38] sm:$0xff] }
  0xac   :  { %4977 = vmatpush1.bf16.msra.mxu1 %v4976_v54  ;;  %4851 = vmatprep.subr.bf16.mxu0 %v4850_v55  ;;  %v4996_v54 = vpack.c.bf16 %v879_v48, %v863_v46  ;;  %v4870_v55 = vpack.c.bf16 %v910_v50, %v894_v49  ;;  %v1037_v45 = vld [vmem:[#allocation5 + $0x1d80] sm:$0xff]  ;;  %v1023_v46 = vld [vmem:[#allocation5 + $0x1d10] sm:$0xff]  ;;  %v1054_v49 = vld [vmem:[#allocation5 + $0x1e08] sm:$0xff] }
  0xad   :  { %4979 = vmatprep.subr.bf16.mxu1 %v4978_v59  ;;  %v4998_v59 = vpack.c.bf16 %v912_v52, %v896_v51  ;;  %v1039_v48 = vld [vmem:[#allocation5 + $0x1d90] sm:$0xff]  ;;  %v1070_v50 = vld [vmem:[#allocation5 + $0x1e88] sm:$0xff]  ;;  %v1056_v51 = vld [vmem:[#allocation5 + $0x1e18] sm:$0xff] }
  0xae   :  { %v1072_v52 = vld [vmem:[#allocation5 + $0x1e98] sm:$0xff] }
  0xaf   :  { %4853 = vmatpush1.bf16.msra.mxu0 %v4852_v1  ;;  %v4872_v1 = vpack.c.bf16 %v909_v57, %v893_v56  ;;  %v1053_v56 = vld [vmem:[#allocation5 + $0x1e00] sm:$0xff]  ;;  %v116_v12 = vld [vmem:[#allocation5 + $0xb8] sm:$0xff] }
  0xb0   :  { %4981 = vmatpush1.bf16.msra.mxu1 %v4980_v2  ;;  %4855 = vmatprep.subr.bf16.mxu0 %v4854_v3  ;;  %v5000_v2 = vpack.c.bf16 %v911_v60, %v895_v58  ;;  %v4874_v3 = vpack.c.bf16 %v942_v62, %v926_v61  ;;  %v1069_v57 = vld [vmem:[#allocation5 + $0x1e80] sm:$0xff]  ;;  %v1055_v58 = vld [vmem:[#allocation5 + $0x1e10] sm:$0xff]  ;;  %v1086_v61 = vld [vmem:[#allocation5 + $0x1f08] sm:$0xff] }
  0xb1   :  { %4983 = vmatprep.subr.bf16.mxu1 %v4982_v7  ;;  %v5002_v7 = vpack.c.bf16 %v944_v0, %v928_v63  ;;  %v1071_v60 = vld [vmem:[#allocation5 + $0x1e90] sm:$0xff]  ;;  %v1102_v62 = vld [vmem:[#allocation5 + $0x1f88] sm:$0xff]  ;;  %v1088_v63 = vld [vmem:[#allocation5 + $0x1f18] sm:$0xff] }
  0xb2   :  { %v1104_v0 = vld [vmem:[#allocation5 + $0x1f98] sm:$0xff] }
  0xb3   :  { %4857 = vmatpush1.bf16.msra.mxu0 %v4856_v14  ;;  %v4876_v14 = vpack.c.bf16 %v941_v5, %v925_v4  ;;  %v1085_v4 = vld [vmem:[#allocation5 + $0x1f00] sm:$0xff] }
  0xb4   :  { %4985 = vmatpush1.bf16.msra.mxu1 %v4984_v18  ;;  %4859 = vmatprep.subr.bf16.mxu0 %v4858_v19  ;;  %v4878_v18 = vpack.c.bf16 %v974_v10, %v958_v9  ;;  %v957_v19 = vld [vmem:[#allocation5 + $0x1b00] sm:$0xff]  ;;  %v98_v9 = vld [vmem:[#allocation5 + $0x28] sm:$0xff] }
  0xb5   :  { %4987 = vmatprep.subr.bf16.mxu1 %v4986_v23  ;;  %v975_v23 = vld [vmem:[#allocation5 + $0x1b90] sm:$0xff]  ;;  %v1101_v5 = vld [vmem:[#allocation5 + $0x1f80] sm:$0xff]  ;;  %v114_v10 = vld [vmem:[#allocation5 + $0xa8] sm:$0xff] }
  0xb7   :  { %4861 = vmatpush1.bf16.msra.mxu0 %v4860_v29  ;;  %v4880_v29 = vpack.c.bf16 %v973_v20, %v957_v19  ;;  %v97_v19 = vld [vmem:[#allocation5 + $0x20] sm:$0xff] }
  0xb8   :  { %4989 = vmatpush1.bf16.msra.mxu1 %v4988_v30  ;;  %4863 = vmatprep.subr.bf16.mxu0 %v4862_v31  ;;  %v5008_v30 = vpack.c.bf16 %v975_v23, %v959_v21  ;;  %v4882_v31 = vpack.c.bf16 %v1006_v25, %v990_v24  ;;  %v113_v20 = vld [vmem:[#allocation5 + $0xa0] sm:$0xff]  ;;  %v5154_v21 = vpack.c.bf16 %v116_v12, %v100_v11  ;;  %v115_v23 = vld [vmem:[#allocation5 + $0xb0] sm:$0xff]  ;;  %v130_v25 = vld [vmem:[#allocation5 + $0x128] sm:$0xff] }
  0xb9   :  { %4991 = vmatprep.subr.bf16.mxu1 %v4990_v35  ;;  %v5010_v35 = vpack.c.bf16 %v1008_v28, %v992_v27  ;;  %v87_v24 = vld [vmem:[#allocation2 + $0x10] sm:$0xff]  ;;  %v146_v27 = vld [vmem:[#allocation5 + $0x1a8] sm:$0xff]  ;;  %v5028_v28 = vpack.c.bf16 %v113_v20, %v97_v19 }
  0xba   :  { %v243_v11 = vld [vmem:[#allocation5 + $0x4b0] sm:$0xff]  ;;  %v258_v12 = vld [vmem:[#allocation5 + $0x528] sm:$0xff] }
  0xbb   :  { %4865 = vmatpush1.bf16.msra.mxu0 %v4864_v41  ;;  %v4884_v41 = vpack.c.bf16 %v1005_v33, %v989_v32  ;;  %v129_v33 = vld [vmem:[#allocation5 + $0x120] sm:$0xff] }
  0xbc   :  { %4993 = vmatpush1.bf16.msra.mxu1 %v4992_v42  ;;  %4867 = vmatprep.subr.bf16.mxu0 %v4866_v43  ;;  %v5012_v42 = vpack.c.bf16 %v1007_v36, %v991_v34  ;;  %v4886_v43 = vpack.c.bf16 %v1038_v38, %v1022_v37  ;;  %v145_v34 = vld [vmem:[#allocation5 + $0x1a0] sm:$0xff]  ;;  %v5030_v36 = vpack.c.bf16 %v146_v27, %v130_v25  ;;  %v147_v37 = vld [vmem:[#allocation5 + $0x1b0] sm:$0xff]  ;;  %v162_v38 = vld [vmem:[#allocation5 + $0x228] sm:$0xff] }
  0xbd   :  { %4995 = vmatprep.subr.bf16.mxu1 %v4994_v47  ;;  %v5014_v47 = vpack.c.bf16 %v1040_v40, %v1024_v39  ;;  %v178_v39 = vld [vmem:[#allocation5 + $0x2a8] sm:$0xff]  ;;  %v275_v25 = vld [vmem:[#allocation5 + $0x5b0] sm:$0xff] }
  0xbe   :  { %v290_v27 = vld [vmem:[#allocation5 + $0x628] sm:$0xff] }
  0xbf   :  { %4869 = vmatpush1.bf16.msra.mxu0 %v4868_v53  ;;  %v4888_v53 = vpack.c.bf16 %v1037_v45, %v1021_v44  ;;  %v5032_v44 = vpack.c.bf16 %v145_v34, %v129_v33  ;;  %v289_v34 = vld [vmem:[#allocation5 + $0x620] sm:$0xff] }
  0xc0   :  { %4997 = vmatpush1.bf16.msra.mxu1 %v4996_v54  ;;  %4871 = vmatprep.subr.bf16.mxu0 %v4870_v55  ;;  %v5016_v54 = vpack.c.bf16 %v1039_v48, %v1023_v46  ;;  %v4890_v55 = vpack.c.bf16 %v1070_v50, %v1054_v49  ;;  %v5034_v46 = vpack.c.bf16 %v178_v39, %v162_v38  ;;  %v177_v48 = vld [vmem:[#allocation5 + $0x2a0] sm:$0xff]  ;;  %v163_v49 = vld [vmem:[#allocation5 + $0x230] sm:$0xff]  ;;  %v322_v39 = vld [vmem:[#allocation5 + $0x728] sm:$0xff] }
  0xc1   :  { %4999 = vmatprep.subr.bf16.mxu1 %v4998_v59  ;;  %v5018_v59 = vpack.c.bf16 %v1072_v52, %v1056_v51  ;;  %v179_v51 = vld [vmem:[#allocation5 + $0x2b0] sm:$0xff]  ;;  %v194_v52 = vld [vmem:[#allocation5 + $0x328] sm:$0xff] }
  0xc2   :  { %v307_v38 = vld [vmem:[#allocation5 + $0x6b0] sm:$0xff] }
  0xc3   :  { %4873 = vmatpush1.bf16.msra.mxu0 %v4872_v1  ;;  %v4892_v1 = vpack.c.bf16 %v1069_v57, %v1053_v56  ;;  %v5164_v57 = vpack.c.bf16 %v179_v51, %v163_v49  ;;  %v354_v51 = vld [vmem:[#allocation5 + $0x828] sm:$0xff] }
  0xc4   :  { %5001 = vmatpush1.bf16.msra.mxu1 %v5000_v2  ;;  %4875 = vmatprep.subr.bf16.mxu0 %v4874_v3  ;;  %v5020_v2 = vpack.c.bf16 %v1071_v60, %v1055_v58  ;;  %v4894_v3 = vpack.c.bf16 %v1102_v62, %v1086_v61  ;;  %v209_v60 = vld [vmem:[#allocation5 + $0x3a0] sm:$0xff]  ;;  %v195_v61 = vld [vmem:[#allocation5 + $0x330] sm:$0xff] }
  0xc5   :  { %5003 = vmatprep.subr.bf16.mxu1 %v5002_v7  ;;  %v5022_v7 = vpack.c.bf16 %v1104_v0, %v1088_v63  ;;  %v211_v63 = vld [vmem:[#allocation5 + $0x3b0] sm:$0xff]  ;;  %v226_v0 = vld [vmem:[#allocation5 + $0x428] sm:$0xff] }
  0xc7   :  { %4877 = vmatpush1.bf16.msra.mxu0 %v4876_v14  ;;  %v4896_v14 = vpack.c.bf16 %v1101_v5, %v1085_v4  ;;  %v5168_v5 = vpack.c.bf16 %v211_v63, %v195_v61  ;;  %v386_v63 = vld [vmem:[#allocation5 + $0x928] sm:$0xff] }
  0xc8   :  { %5005 = vmatpush1.bf16.msra.mxu1 %v5004_v15  ;;  %4879 = vmatprep.subr.bf16.mxu0 %v4878_v18  ;;  %v5024_v15 = vpack.c.bf16 %v1103_v8, %v1087_v6  ;;  %v5026_v18 = vpack.c.bf16 %v114_v10, %v98_v9  ;;  %v241_v8 = vld [vmem:[#allocation5 + $0x4a0] sm:$0xff]  ;;  %v227_v9 = vld [vmem:[#allocation5 + $0x430] sm:$0xff] }
  0xc9   :  { %5007 = vmatprep.subr.bf16.mxu1 %v5006_v22  ;;  %v99_v22 = vld [vmem:[#allocation5 + $0x30] sm:$0xff] }
  0xca   :  { %v5156_v32 = vpack.c.bf16 %v115_v23, %v99_v22  ;;  %v273_v22 = vld [vmem:[#allocation5 + $0x5a0] sm:$0xff]  ;;  %v259_v23 = vld [vmem:[#allocation5 + $0x530] sm:$0xff] }
  0xcb   :  { %4881 = vmatpush1.bf16.msra.mxu0 %v4880_v29  ;;  %v92_v29 = vld [vmem:[#allocation2 + $0x38] sm:$0xff] }
  0xcc   :  { %5009 = vmatpush1.bf16.msra.mxu1 %v5008_v30  ;;  %4883 = vmatprep.subr.bf16.mxu0 %v4882_v31  ;;  %v132_v30 = vld [vmem:[#allocation5 + $0x138] sm:$0xff] }
  0xcd   :  { %5011 = vmatprep.subr.bf16.mxu1 %v5010_v35  ;;  %v148_v31 = vld [vmem:[#allocation5 + $0x1b8] sm:$0xff]  ;;  %v131_v35 = vld [vmem:[#allocation5 + $0x130] sm:$0xff] }
  0xce   :  { %v5158_v40 = vpack.c.bf16 %v148_v31, %v132_v30  ;;  %v5160_v45 = vpack.c.bf16 %v147_v37, %v131_v35  ;;  %v308_v30 = vld [vmem:[#allocation5 + $0x6b8] sm:$0xff]  ;;  %v305_v35 = vld [vmem:[#allocation5 + $0x6a0] sm:$0xff] }
  0xcf   :  { %4885 = vmatpush1.bf16.msra.mxu0 %v4884_v41  ;;  %v164_v41 = vld [vmem:[#allocation5 + $0x238] sm:$0xff] }
  0xd0   :  { %5013 = vmatpush1.bf16.msra.mxu1 %v5012_v42  ;;  %4887 = vmatprep.subr.bf16.mxu0 %v4886_v43  ;;  %v180_v42 = vld [vmem:[#allocation5 + $0x2b8] sm:$0xff]  ;;  %v91_v43 = vld [vmem:[#allocation2 + $0x30] sm:$0xff] }
  0xd1   :  { %5015 = vmatprep.subr.bf16.mxu1 %v5014_v47  ;;  %v161_v47 = vld [vmem:[#allocation5 + $0x220] sm:$0xff]  ;;  %v5162_v50 = vpack.c.bf16 %v180_v42, %v164_v41  ;;  %v324_v41 = vld [vmem:[#allocation5 + $0x738] sm:$0xff] }
  0xd2   :  { %v5036_v56 = vpack.c.bf16 %v177_v48, %v161_v47  ;;  %v340_v42 = vld [vmem:[#allocation5 + $0x7b8] sm:$0xff]  ;;  %v337_v47 = vld [vmem:[#allocation5 + $0x7a0] sm:$0xff]  ;;  %v323_v48 = vld [vmem:[#allocation5 + $0x730] sm:$0xff] }
  0xd3   :  { %4889 = vmatpush1.bf16.msra.mxu0 %v4888_v53  ;;  %v210_v53 = vld [vmem:[#allocation5 + $0x3a8] sm:$0xff]  ;;  %v5182_v49 = vpack.c.bf16 %v340_v42, %v324_v41  ;;  %v500_v41 = vld [vmem:[#allocation5 + $0xcb8] sm:$0xff] }
  0xd4   :  { %5017 = vmatpush1.bf16.msra.mxu1 %v5016_v54  ;;  %4891 = vmatprep.subr.bf16.mxu0 %v4890_v55  ;;  %v196_v54 = vld [vmem:[#allocation5 + $0x338] sm:$0xff]  ;;  %v5038_v58 = vpack.c.bf16 %v210_v53, %v194_v52  ;;  %v370_v52 = vld [vmem:[#allocation5 + $0x8a8] sm:$0xff] }
  0xd5   :  { %5019 = vmatprep.subr.bf16.mxu1 %v5018_v59  ;;  %v212_v55 = vld [vmem:[#allocation5 + $0x3b8] sm:$0xff]  ;;  %v193_v59 = vld [vmem:[#allocation5 + $0x320] sm:$0xff] }
  0xd6   :  { %v5166_v62 = vpack.c.bf16 %v212_v55, %v196_v54  ;;  %v5040_v4 = vpack.c.bf16 %v209_v60, %v193_v59  ;;  %v356_v53 = vld [vmem:[#allocation5 + $0x838] sm:$0xff]  ;;  %v369_v59 = vld [vmem:[#allocation5 + $0x8a0] sm:$0xff]  ;;  %v355_v60 = vld [vmem:[#allocation5 + $0x830] sm:$0xff] }
  0xd7   :  { %4893 = vmatpush1.bf16.msra.mxu0 %v4892_v1  ;;  %v242_v1 = vld [vmem:[#allocation5 + $0x4a8] sm:$0xff]  ;;  %v372_v54 = vld [vmem:[#allocation5 + $0x8b8] sm:$0xff] }
  0xd8   :  { %5021 = vmatpush1.bf16.msra.mxu1 %v5020_v2  ;;  %4895 = vmatprep.subr.bf16.mxu0 %v4894_v3  ;;  %v228_v2 = vld [vmem:[#allocation5 + $0x438] sm:$0xff]  ;;  %v5042_v6 = vpack.c.bf16 %v242_v1, %v226_v0  ;;  %v5186_v61 = vpack.c.bf16 %v372_v54, %v356_v53  ;;  %v402_v0 = vld [vmem:[#allocation5 + $0x9a8] sm:$0xff] }
  0xd9   :  { %5023 = vmatprep.subr.bf16.mxu1 %v5022_v7  ;;  %v244_v3 = vld [vmem:[#allocation5 + $0x4b8] sm:$0xff]  ;;  %v225_v7 = vld [vmem:[#allocation5 + $0x420] sm:$0xff] }
  0xda   :  { %v5170_v10 = vpack.c.bf16 %v244_v3, %v228_v2  ;;  %v5044_v19 = vpack.c.bf16 %v241_v8, %v225_v7  ;;  %v388_v1 = vld [vmem:[#allocation5 + $0x938] sm:$0xff]  ;;  %v401_v7 = vld [vmem:[#allocation5 + $0x9a0] sm:$0xff]  ;;  %v387_v8 = vld [vmem:[#allocation5 + $0x930] sm:$0xff] }
  0xdb   :  { %4897 = vmatpush1.bf16.msra.mxu0 %v4896_v14  ;;  %v274_v14 = vld [vmem:[#allocation5 + $0x5a8] sm:$0xff]  ;;  %v404_v2 = vld [vmem:[#allocation5 + $0x9b8] sm:$0xff] }
  0xdc   :  { %5025 = vmatpush1.bf16.msra.mxu1 %v5024_v15  ;;  %5027 = vmatprep.subr.bf16.mxu0 %v5026_v18  ;;  %v260_v15 = vld [vmem:[#allocation5 + $0x538] sm:$0xff]  ;;  %v5046_v20 = vpack.c.bf16 %v274_v14, %v258_v12  ;;  %v434_v12 = vld [vmem:[#allocation5 + $0xaa8] sm:$0xff] }
  0xdd   :  { %5155 = vmatprep.subr.bf16.mxu1 %v5154_v21  ;;  %v276_v18 = vld [vmem:[#allocation5 + $0x5b8] sm:$0xff]  ;;  %v257_v21 = vld [vmem:[#allocation5 + $0x520] sm:$0xff] }
  0xde   :  { %1343 = vmatmul.mubr.f32.vlgmr.msra.gmra.mrb[0].mxu0 %v87_v24  ;;  %v5048_v31 = vpack.c.bf16 %v273_v22, %v257_v21  ;;  %v420_v14 = vld [vmem:[#allocation5 + $0xa38] sm:$0xff]  ;;  %v433_v21 = vld [vmem:[#allocation5 + $0xaa0] sm:$0xff]  ;;  %v419_v22 = vld [vmem:[#allocation5 + $0xa30] sm:$0xff] }
  0xdf   :  { %1497 = vmatmul.mubr.f32.vlgmr.msra.gmra.mrb[0].mxu1 %v87_v24  ;;  %5029 = vmatpush1.bf16.msra.mxu0 %v5028_v28  ;;  %v5174_v24 = vpack.c.bf16 %v276_v18, %v260_v15  ;;  %v306_v28 = vld [vmem:[#allocation5 + $0x6a8] sm:$0xff]  ;;  %v436_v15 = vld [vmem:[#allocation5 + $0xab8] sm:$0xff] }
  0xe0   :  { %5157 = vmatpush1.bf16.msra.mxu1 %v5156_v32  ;;  %1348 = vmatprep.mubr.f32.mxu0 %v92_v29  ;;  %v5176_v32 = vpack.c.bf16 %v275_v25, %v259_v23  ;;  %v5050_v33 = vpack.c.bf16 %v306_v28, %v290_v27  ;;  %v5194_v23 = vpack.c.bf16 %v436_v15, %v420_v14  ;;  %v450_v25 = vld [vmem:[#allocation5 + $0xb28] sm:$0xff]  ;;  %v452_v28 = vld [vmem:[#allocation5 + $0xb38] sm:$0xff] }
  0xe1   :  { %1502 = vmatprep.mubr.f32.mxu1 %v92_v29  ;;  %5031 = vmatprep.subr.bf16.mxu0 %v5030_v36  ;;  %v292_v29 = vld [vmem:[#allocation5 + $0x638] sm:$0xff]  ;;  %v291_v36 = vld [vmem:[#allocation5 + $0x630] sm:$0xff]  ;;  %v466_v27 = vld [vmem:[#allocation5 + $0xba8] sm:$0xff] }
  0xe2   :  { %1349 = vmatmul.mubr.f32.gmra.mrb[2].mxu0 %v91_v43  ;;  %5159 = vmatprep.subr.bf16.mxu1 %v5158_v40  ;;  %v5178_v37 = vpack.c.bf16 %v308_v30, %v292_v29  ;;  %v338_v40 = vld [vmem:[#allocation5 + $0x7a8] sm:$0xff]  ;;  %v468_v29 = vld [vmem:[#allocation5 + $0xbb8] sm:$0xff] }
  0xe3   :  { %1503 = vmatmul.mubr.f32.gmra.mrb[2].mxu1 %v91_v43  ;;  %5033 = vmatpush1.bf16.msra.mxu0 %v5032_v44  ;;  %v5052_v43 = vpack.c.bf16 %v305_v35, %v289_v34  ;;  %v5180_v44 = vpack.c.bf16 %v307_v38, %v291_v36  ;;  %v465_v34 = vld [vmem:[#allocation5 + $0xba0] sm:$0xff]  ;;  %v451_v35 = vld [vmem:[#allocation5 + $0xb30] sm:$0xff]  ;;  %v5198_v36 = vpack.c.bf16 %v468_v29, %v452_v28  ;;  %v482_v38 = vld [vmem:[#allocation5 + $0xc28] sm:$0xff] }
  0xe4   :  { %5161 = vmatpush1.bf16.msra.mxu1 %v5160_v45  ;;  %5035 = vmatprep.subr.bf16.mxu0 %v5034_v46  ;;  %v5054_v45 = vpack.c.bf16 %v338_v40, %v322_v39  ;;  %v321_v46 = vld [vmem:[#allocation5 + $0x720] sm:$0xff]  ;;  %v498_v39 = vld [vmem:[#allocation5 + $0xca8] sm:$0xff]  ;;  %v484_v40 = vld [vmem:[#allocation5 + $0xc38] sm:$0xff] }
  0xe5   :  { %5163 = vmatprep.subr.bf16.mxu1 %v5162_v50  ;;  %1573 = vmatprep.mubr.f32.mxu0 %v7226_v16  ;;  %v339_v50 = vld [vmem:[#allocation5 + $0x7b0] sm:$0xff]  ;;  %v5056_v55 = vpack.c.bf16 %v337_v47, %v321_v46  ;;  %v497_v46 = vld [vmem:[#allocation5 + $0xca0] sm:$0xff]  ;;  %v532_v53 = vld [vmem:[#allocation5 + $0xdb8] sm:$0xff] }
  0xe6   :  { %1727 = vmatprep.mubr.f32.mxu1 %v7226_v16  ;;  %v5172_v16 = vpack.c.bf16 %v243_v11, %v227_v9  ;;  %v5190_v9 = vpack.c.bf16 %v404_v2, %v388_v1  ;;  %v418_v11 = vld [vmem:[#allocation5 + $0xa28] sm:$0xff]  ;;  %v483_v47 = vld [vmem:[#allocation5 + $0xc30] sm:$0xff]  ;;  %v564_v1 = vld [vmem:[#allocation5 + $0xeb8] sm:$0xff] }
  0xe7   :  { %5037 = vmatpush1.bf16.msra.mxu0 %v5036_v56  ;;  %v5184_v56 = vpack.c.bf16 %v339_v50, %v323_v48  ;;  %v5202_v48 = vpack.c.bf16 %v500_v41, %v484_v40  ;;  %v514_v50 = vld [vmem:[#allocation5 + $0xd28] sm:$0xff]  ;;  %v596_v14 = vld [vmem:[#allocation5 + $0xfb8] sm:$0xff] }
  0xe8   :  { %5165 = vmatpush1.bf16.msra.mxu1 %v5164_v57  ;;  %5039 = vmatprep.subr.bf16.mxu0 %v5038_v58  ;;  %v5058_v57 = vpack.c.bf16 %v370_v52, %v354_v51  ;;  %v353_v58 = vld [vmem:[#allocation5 + $0x820] sm:$0xff]  ;;  %v530_v51 = vld [vmem:[#allocation5 + $0xda8] sm:$0xff]  ;;  %v516_v52 = vld [vmem:[#allocation5 + $0xd38] sm:$0xff] }
  0xe9   :  { %5167 = vmatprep.subr.bf16.mxu1 %v5166_v62  ;;  %v371_v62 = vld [vmem:[#allocation5 + $0x8b0] sm:$0xff]  ;;  %v5060_v3 = vpack.c.bf16 %v369_v59, %v353_v58  ;;  %v529_v58 = vld [vmem:[#allocation5 + $0xda0] sm:$0xff]  ;;  %v628_v28 = vld [vmem:[#allocation5 + $0x10b8] sm:$0xff] }
  0xea   :  { %v515_v59 = vld [vmem:[#allocation5 + $0xd30] sm:$0xff]  ;;  %v660_v40 = vld [vmem:[#allocation5 + $0x11b8] sm:$0xff] }
  0xeb   :  { %5041 = vmatpush1.bf16.msra.mxu0 %v5040_v4  ;;  %v5188_v4 = vpack.c.bf16 %v371_v62, %v355_v60  ;;  %v5206_v60 = vpack.c.bf16 %v532_v53, %v516_v52  ;;  %v546_v62 = vld [vmem:[#allocation5 + $0xe28] sm:$0xff]  ;;  %v676_v52 = vld [vmem:[#allocation5 + $0x1238] sm:$0xff] }
  0xec   :  { %5169 = vmatpush1.bf16.msra.mxu1 %v5168_v5  ;;  %5043 = vmatprep.subr.bf16.mxu0 %v5042_v6  ;;  %v5062_v5 = vpack.c.bf16 %v402_v0, %v386_v63  ;;  %v385_v6 = vld [vmem:[#allocation5 + $0x920] sm:$0xff]  ;;  %v562_v63 = vld [vmem:[#allocation5 + $0xea8] sm:$0xff]  ;;  %v548_v0 = vld [vmem:[#allocation5 + $0xe38] sm:$0xff] }
  0xed   :  { %5171 = vmatprep.subr.bf16.mxu1 %v5170_v10  ;;  %v403_v10 = vld [vmem:[#allocation5 + $0x9b0] sm:$0xff]  ;;  %v5064_v18 = vpack.c.bf16 %v401_v7, %v385_v6  ;;  %v561_v6 = vld [vmem:[#allocation5 + $0xea0] sm:$0xff]  ;;  %v692_v53 = vld [vmem:[#allocation5 + $0x12b8] sm:$0xff] }
  0xee   :  { %v547_v7 = vld [vmem:[#allocation5 + $0xe30] sm:$0xff] }
  0xef   :  { %5045 = vmatpush1.bf16.msra.mxu0 %v5044_v19  ;;  %v5192_v19 = vpack.c.bf16 %v403_v10, %v387_v8  ;;  %v5210_v8 = vpack.c.bf16 %v564_v1, %v548_v0  ;;  %v578_v10 = vld [vmem:[#allocation5 + $0xf28] sm:$0xff]  ;;  %v708_v0 = vld [vmem:[#allocation5 + $0x1338] sm:$0xff] }
  0xf0   :  { %5173 = vmatpush1.bf16.msra.mxu1 %v5172_v16  ;;  %5047 = vmatprep.subr.bf16.mxu0 %v5046_v20  ;;  %v5066_v16 = vpack.c.bf16 %v434_v12, %v418_v11  ;;  %v417_v20 = vld [vmem:[#allocation5 + $0xa20] sm:$0xff]  ;;  %v594_v11 = vld [vmem:[#allocation5 + $0xfa8] sm:$0xff]  ;;  %v580_v12 = vld [vmem:[#allocation5 + $0xf38] sm:$0xff] }
  0xf1   :  { %5175 = vmatprep.subr.bf16.mxu1 %v5174_v24  ;;  %v435_v24 = vld [vmem:[#allocation5 + $0xab0] sm:$0xff]  ;;  %v5068_v30 = vpack.c.bf16 %v433_v21, %v417_v20  ;;  %v593_v20 = vld [vmem:[#allocation5 + $0xfa0] sm:$0xff]  ;;  %v724_v1 = vld [vmem:[#allocation5 + $0x13b8] sm:$0xff] }
  0xf2   :  { %v579_v21 = vld [vmem:[#allocation5 + $0xf30] sm:$0xff] }
  0xf3   :  { %5049 = vmatpush1.bf16.msra.mxu0 %v5048_v31  ;;  %v5196_v31 = vpack.c.bf16 %v435_v24, %v419_v22  ;;  %v5214_v22 = vpack.c.bf16 %v596_v14, %v580_v12  ;;  %v610_v24 = vld [vmem:[#allocation5 + $0x1028] sm:$0xff]  ;;  %v756_v12 = vld [vmem:[#allocation5 + $0x14b8] sm:$0xff] }
  0xf4   :  { %5177 = vmatpush1.bf16.msra.mxu1 %v5176_v32  ;;  %5051 = vmatprep.subr.bf16.mxu0 %v5050_v33  ;;  %v5070_v32 = vpack.c.bf16 %v466_v27, %v450_v25  ;;  %v449_v33 = vld [vmem:[#allocation5 + $0xb20] sm:$0xff]  ;;  %v626_v25 = vld [vmem:[#allocation5 + $0x10a8] sm:$0xff]  ;;  %v612_v27 = vld [vmem:[#allocation5 + $0x1038] sm:$0xff] }
  0xf5   :  { %5179 = vmatprep.subr.bf16.mxu1 %v5178_v37  ;;  %v467_v37 = vld [vmem:[#allocation5 + $0xbb0] sm:$0xff]  ;;  %v5072_v42 = vpack.c.bf16 %v465_v34, %v449_v33  ;;  %v625_v33 = vld [vmem:[#allocation5 + $0x10a0] sm:$0xff] }
  0xf6   :  { %v611_v34 = vld [vmem:[#allocation5 + $0x1030] sm:$0xff] }
  0xf7   :  { %5053 = vmatpush1.bf16.msra.mxu0 %v5052_v43  ;;  %v5200_v43 = vpack.c.bf16 %v467_v37, %v451_v35  ;;  %v5218_v35 = vpack.c.bf16 %v628_v28, %v612_v27  ;;  %v642_v37 = vld [vmem:[#allocation5 + $0x1128] sm:$0xff] }
  0xf8   :  { %5181 = vmatpush1.bf16.msra.mxu1 %v5180_v44  ;;  %5055 = vmatprep.subr.bf16.mxu0 %v5054_v45  ;;  %v5074_v44 = vpack.c.bf16 %v498_v39, %v482_v38  ;;  %v481_v45 = vld [vmem:[#allocation5 + $0xc20] sm:$0xff]  ;;  %v658_v38 = vld [vmem:[#allocation5 + $0x11a8] sm:$0xff]  ;;  %v644_v39 = vld [vmem:[#allocation5 + $0x1138] sm:$0xff] }
  0xf9   :  { %5183 = vmatprep.subr.bf16.mxu1 %v5182_v49  ;;  %v499_v49 = vld [vmem:[#allocation5 + $0xcb0] sm:$0xff]  ;;  %v5076_v54 = vpack.c.bf16 %v497_v46, %v481_v45  ;;  %v657_v45 = vld [vmem:[#allocation5 + $0x11a0] sm:$0xff] }
  0xfa   :  { %v643_v46 = vld [vmem:[#allocation5 + $0x1130] sm:$0xff] }
  0xfb   :  { %5057 = vmatpush1.bf16.msra.mxu0 %v5056_v55  ;;  %v5204_v55 = vpack.c.bf16 %v499_v49, %v483_v47  ;;  %v5222_v47 = vpack.c.bf16 %v660_v40, %v644_v39  ;;  %v674_v49 = vld [vmem:[#allocation5 + $0x1228] sm:$0xff] }
  0xfc   :  { %5185 = vmatpush1.bf16.msra.mxu1 %v5184_v56  ;;  %5059 = vmatprep.subr.bf16.mxu0 %v5058_v57  ;;  %v5078_v56 = vpack.c.bf16 %v530_v51, %v514_v50  ;;  %v513_v57 = vld [vmem:[#allocation5 + $0xd20] sm:$0xff]  ;;  %v690_v50 = vld [vmem:[#allocation5 + $0x12a8] sm:$0xff] }
  0xfd   :  { %5187 = vmatprep.subr.bf16.mxu1 %v5186_v61  ;;  %v531_v61 = vld [vmem:[#allocation5 + $0xdb0] sm:$0xff]  ;;  %v5080_v2 = vpack.c.bf16 %v529_v58, %v513_v57  ;;  %v6956_v51 = vld [vmem:[#allocation2] sm:$0xff] }
  0xfe   :  { %v673_v57 = vld [vmem:[#allocation5 + $0x1220] sm:$0xff] }
  0xff   :  { %5061 = vmatpush1.bf16.msra.mxu0 %v5060_v3  ;;  %v5208_v3 = vpack.c.bf16 %v531_v61, %v515_v59  ;;  %v689_v58 = vld [vmem:[#allocation5 + $0x12a0] sm:$0xff]  ;;  %v675_v59 = vld [vmem:[#allocation5 + $0x1230] sm:$0xff] }
 0x100   :  { %5189 = vmatpush1.bf16.msra.mxu1 %v5188_v4  ;;  %5063 = vmatprep.subr.bf16.mxu0 %v5062_v5  ;;  %v5082_v4 = vpack.c.bf16 %v562_v63, %v546_v62  ;;  %v545_v5 = vld [vmem:[#allocation5 + $0xe20] sm:$0xff]  ;;  %v691_v61 = vld [vmem:[#allocation5 + $0x12b0] sm:$0xff]  ;;  %v706_v62 = vld [vmem:[#allocation5 + $0x1328] sm:$0xff] }
 0x101   :  { %5191 = vmatprep.subr.bf16.mxu1 %v5190_v9  ;;  %v563_v9 = vld [vmem:[#allocation5 + $0xeb0] sm:$0xff]  ;;  %v5084_v15 = vpack.c.bf16 %v561_v6, %v545_v5  ;;  %v722_v63 = vld [vmem:[#allocation5 + $0x13a8] sm:$0xff]  ;;  %v705_v5 = vld [vmem:[#allocation5 + $0x1320] sm:$0xff] }
 0x102   :  { %v721_v6 = vld [vmem:[#allocation5 + $0x13a0] sm:$0xff] }
 0x103   :  { %5065 = vmatpush1.bf16.msra.mxu0 %v5064_v18  ;;  %v5212_v18 = vpack.c.bf16 %v563_v9, %v547_v7  ;;  %v707_v7 = vld [vmem:[#allocation5 + $0x1330] sm:$0xff] }
 0x104   :  { %5193 = vmatpush1.bf16.msra.mxu1 %v5192_v19  ;;  %5067 = vmatprep.subr.bf16.mxu0 %v5066_v16  ;;  %v5086_v19 = vpack.c.bf16 %v594_v11, %v578_v10  ;;  %v577_v16 = vld [vmem:[#allocation5 + $0xf20] sm:$0xff]  ;;  %v723_v9 = vld [vmem:[#allocation5 + $0x13b0] sm:$0xff]  ;;  %v738_v10 = vld [vmem:[#allocation5 + $0x1428] sm:$0xff] }
 0x105   :  { %5195 = vmatprep.subr.bf16.mxu1 %v5194_v23  ;;  %v595_v23 = vld [vmem:[#allocation5 + $0xfb0] sm:$0xff]  ;;  %v5088_v29 = vpack.c.bf16 %v593_v20, %v577_v16  ;;  %v754_v11 = vld [vmem:[#allocation5 + $0x14a8] sm:$0xff]  ;;  %v5232_v14 = vpack.c.bf16 %v723_v9, %v707_v7  ;;  %v916_v9 = vld [vmem:[#allocation5 + $0x19b8] sm:$0xff] }
 0x106   :  { %v739_v16 = vld [vmem:[#allocation5 + $0x1430] sm:$0xff]  ;;  %v914_v7 = vld [vmem:[#allocation5 + $0x19a8] sm:$0xff] }
 0x107   :  { %5069 = vmatpush1.bf16.msra.mxu0 %v5068_v30  ;;  %v5216_v30 = vpack.c.bf16 %v595_v23, %v579_v21  ;;  %v755_v21 = vld [vmem:[#allocation5 + $0x14b0] sm:$0xff]  ;;  %v786_v23 = vld [vmem:[#allocation5 + $0x15a8] sm:$0xff] }
 0x108   :  { %5197 = vmatpush1.bf16.msra.mxu1 %v5196_v31  ;;  %5071 = vmatprep.subr.bf16.mxu0 %v5070_v32  ;;  %v5090_v31 = vpack.c.bf16 %v626_v25, %v610_v24  ;;  %v609_v32 = vld [vmem:[#allocation5 + $0x1020] sm:$0xff]  ;;  %v772_v24 = vld [vmem:[#allocation5 + $0x1538] sm:$0xff] }
 0x109   :  { %5199 = vmatprep.subr.bf16.mxu1 %v5198_v36  ;;  %v627_v36 = vld [vmem:[#allocation5 + $0x10b0] sm:$0xff]  ;;  %v5092_v41 = vpack.c.bf16 %v625_v33, %v609_v32  ;;  %v788_v25 = vld [vmem:[#allocation5 + $0x15b8] sm:$0xff] }
 0x10a   :  { %v5238_v32 = vpack.c.bf16 %v788_v25, %v772_v24  ;;  %v787_v33 = vld [vmem:[#allocation5 + $0x15b0] sm:$0xff]  ;;  %v929_v25 = vld [vmem:[#allocation5 + $0x1a20] sm:$0xff] }
 0x10b   :  { %5073 = vmatpush1.bf16.msra.mxu0 %v5072_v42  ;;  %v5220_v42 = vpack.c.bf16 %v627_v36, %v611_v34  ;;  %v802_v34 = vld [vmem:[#allocation5 + $0x1628] sm:$0xff]  ;;  %v804_v36 = vld [vmem:[#allocation5 + $0x1638] sm:$0xff] }
 0x10c   :  { %5201 = vmatpush1.bf16.msra.mxu1 %v5200_v43  ;;  %5075 = vmatprep.subr.bf16.mxu0 %v5074_v44  ;;  %v5094_v43 = vpack.c.bf16 %v658_v38, %v642_v37  ;;  %v641_v44 = vld [vmem:[#allocation5 + $0x1120] sm:$0xff]  ;;  %v820_v37 = vld [vmem:[#allocation5 + $0x16b8] sm:$0xff] }
 0x10d   :  { %5203 = vmatprep.subr.bf16.mxu1 %v5202_v48  ;;  %v659_v48 = vld [vmem:[#allocation5 + $0x11b0] sm:$0xff] }
 0x10f   :  { %5077 = vmatpush1.bf16.msra.mxu0 %v5076_v54  ;;  %v5096_v54 = vpack.c.bf16 %v657_v45, %v641_v44  ;;  %v5242_v44 = vpack.c.bf16 %v820_v37, %v804_v36  ;;  %v819_v45 = vld [vmem:[#allocation5 + $0x16b0] sm:$0xff]  ;;  %v961_v37 = vld [vmem:[#allocation5 + $0x1b20] sm:$0xff] }
 0x110   :  { %5205 = vmatpush1.bf16.msra.mxu1 %v5204_v55  ;;  %5079 = vmatprep.subr.bf16.mxu0 %v5078_v56  ;;  %v5224_v55 = vpack.c.bf16 %v659_v48, %v643_v46  ;;  %v5098_v56 = vpack.c.bf16 %v690_v50, %v674_v49  ;;  %v834_v46 = vld [vmem:[#allocation5 + $0x1728] sm:$0xff]  ;;  %v836_v48 = vld [vmem:[#allocation5 + $0x1738] sm:$0xff] }
 0x111   :  { %5207 = vmatprep.subr.bf16.mxu1 %v5206_v60  ;;  %v5226_v60 = vpack.c.bf16 %v692_v53, %v676_v52  ;;  %v852_v49 = vld [vmem:[#allocation5 + $0x17b8] sm:$0xff]  ;;  %v833_v53 = vld [vmem:[#allocation5 + $0x1720] sm:$0xff] }
 0x113   :  { %5081 = vmatpush1.bf16.msra.mxu0 %v5080_v2  ;;  %v5100_v2 = vpack.c.bf16 %v689_v58, %v673_v57  ;;  %v851_v57 = vld [vmem:[#allocation5 + $0x17b0] sm:$0xff]  ;;  %v866_v58 = vld [vmem:[#allocation5 + $0x1828] sm:$0xff] }
 0x114   :  { %5209 = vmatpush1.bf16.msra.mxu1 %v5208_v3  ;;  %5083 = vmatprep.subr.bf16.mxu0 %v5082_v4  ;;  %v5228_v3 = vpack.c.bf16 %v691_v61, %v675_v59  ;;  %v5102_v4 = vpack.c.bf16 %v722_v63, %v706_v62  ;;  %v882_v59 = vld [vmem:[#allocation5 + $0x18a8] sm:$0xff]  ;;  %v884_v61 = vld [vmem:[#allocation5 + $0x18b8] sm:$0xff] }
 0x115   :  { %5211 = vmatprep.subr.bf16.mxu1 %v5210_v8  ;;  %v5230_v8 = vpack.c.bf16 %v724_v1, %v708_v0  ;;  %v5122_v0 = vpack.c.bf16 %v882_v59, %v866_v58  ;;  %v865_v1 = vld [vmem:[#allocation5 + $0x1820] sm:$0xff] }
 0x117   :  { %5085 = vmatpush1.bf16.msra.mxu0 %v5084_v15  ;;  %v5106_v15 = vpack.c.bf16 %v754_v11, %v738_v10 }
 0x118   :  { %5213 = vmatpush1.bf16.msra.mxu1 %v5212_v18  ;;  %5087 = vmatprep.subr.bf16.mxu0 %v5086_v19  ;;  %v737_v18 = vld [vmem:[#allocation5 + $0x1420] sm:$0xff] }
 0x119   :  { %5215 = vmatprep.subr.bf16.mxu1 %v5214_v22  ;;  %v753_v19 = vld [vmem:[#allocation5 + $0x14a0] sm:$0xff]  ;;  %v770_v22 = vld [vmem:[#allocation5 + $0x1528] sm:$0xff] }
 0x11a   :  { %v5108_v27 = vpack.c.bf16 %v753_v19, %v737_v18  ;;  %v5110_v28 = vpack.c.bf16 %v786_v23, %v770_v22  ;;  %v915_v18 = vld [vmem:[#allocation5 + $0x19b0] sm:$0xff]  ;;  %v930_v19 = vld [vmem:[#allocation5 + $0x1a28] sm:$0xff] }
 0x11b   :  { %5089 = vmatpush1.bf16.msra.mxu0 %v5088_v29  ;;  %v769_v29 = vld [vmem:[#allocation5 + $0x1520] sm:$0xff] }
 0x11c   :  { %5217 = vmatpush1.bf16.msra.mxu1 %v5216_v30  ;;  %5091 = vmatprep.subr.bf16.mxu0 %v5090_v31  ;;  %v785_v30 = vld [vmem:[#allocation5 + $0x15a0] sm:$0xff]  ;;  %v771_v31 = vld [vmem:[#allocation5 + $0x1530] sm:$0xff] }
 0x11d   :  { %5219 = vmatprep.subr.bf16.mxu1 %v5218_v35  ;;  %v818_v35 = vld [vmem:[#allocation5 + $0x16a8] sm:$0xff]  ;;  %v5112_v38 = vpack.c.bf16 %v785_v30, %v769_v29  ;;  %v5240_v39 = vpack.c.bf16 %v787_v33, %v771_v31  ;;  %v947_v29 = vld [vmem:[#allocation5 + $0x1ab0] sm:$0xff]  ;;  %v980_v33 = vld [vmem:[#allocation5 + $0x1bb8] sm:$0xff] }
 0x11e   :  { %1574 = vmatmul.mubr.f32.vlgmr.msra.gmra.mrb[4].mxu0 %v6956_v51  ;;  %v5114_v40 = vpack.c.bf16 %v818_v35, %v802_v34  ;;  %v962_v30 = vld [vmem:[#allocation5 + $0x1b28] sm:$0xff] }
 0x11f   :  { %5093 = vmatpush1.bf16.msra.mxu0 %v5092_v41  ;;  %1728 = vmatmul.mubr.f32.vlgmr.msra.gmra.mrb[4].mxu1 %v6956_v51  ;;  %v801_v41 = vld [vmem:[#allocation5 + $0x1620] sm:$0xff]  ;;  %v978_v31 = vld [vmem:[#allocation5 + $0x1ba8] sm:$0xff] }
 0x120   :  { %5221 = vmatpush1.bf16.msra.mxu1 %v5220_v42  ;;  %5095 = vmatprep.subr.bf16.mxu0 %v5094_v43  ;;  %v817_v42 = vld [vmem:[#allocation5 + $0x16a0] sm:$0xff]  ;;  %v803_v43 = vld [vmem:[#allocation5 + $0x1630] sm:$0xff]  ;;  %v5134_v36 = vpack.c.bf16 %v978_v31, %v962_v30 }
 0x121   :  { %5223 = vmatprep.subr.bf16.mxu1 %v5222_v47  ;;  %1579 = vmatprep.mubr.f32.mxu0 %v7230_v13  ;;  %v850_v47 = vld [vmem:[#allocation5 + $0x17a8] sm:$0xff]  ;;  %v5116_v50 = vpack.c.bf16 %v817_v42, %v801_v41  ;;  %v5244_v51 = vpack.c.bf16 %v819_v45, %v803_v43  ;;  %v979_v41 = vld [vmem:[#allocation5 + $0x1bb0] sm:$0xff]  ;;  %v1012_v45 = vld [vmem:[#allocation5 + $0x1cb8] sm:$0xff] }
 0x122   :  { %1733 = vmatprep.mubr.f32.mxu1 %v7230_v13  ;;  %1580 = vmatmul.mubr.f32.gmra.mrb[6].mxu0 %v7233_v17  ;;  %v740_v13 = vld [vmem:[#allocation5 + $0x1438] sm:$0xff]  ;;  %v5118_v52 = vpack.c.bf16 %v850_v47, %v834_v46  ;;  %v994_v42 = vld [vmem:[#allocation5 + $0x1c28] sm:$0xff] }
 0x123   :  { %5097 = vmatpush1.bf16.msra.mxu0 %v5096_v54  ;;  %1734 = vmatmul.mubr.f32.gmra.mrb[6].mxu1 %v7233_v17  ;;  %v5104_v17 = vpack.c.bf16 %v721_v6, %v705_v5  ;;  %v5234_v20 = vpack.c.bf16 %v756_v12, %v740_v13  ;;  %v849_v54 = vld [vmem:[#allocation5 + $0x17a0] sm:$0xff]  ;;  %v883_v5 = vld [vmem:[#allocation5 + $0x18b0] sm:$0xff]  ;;  %v898_v6 = vld [vmem:[#allocation5 + $0x1928] sm:$0xff] }
 0x124   :  { %5225 = vmatpush1.bf16.msra.mxu1 %v5224_v55  ;;  %5099 = vmatprep.subr.bf16.mxu0 %v5098_v56  ;;  %v835_v55 = vld [vmem:[#allocation5 + $0x1730] sm:$0xff]  ;;  %v5246_v56 = vpack.c.bf16 %v852_v49, %v836_v48  ;;  %v5120_v62 = vpack.c.bf16 %v849_v54, %v833_v53  ;;  %v5126_v13 = vpack.c.bf16 %v914_v7, %v898_v6  ;;  %v897_v12 = vld [vmem:[#allocation5 + $0x1920] sm:$0xff]  ;;  %v1010_v43 = vld [vmem:[#allocation5 + $0x1ca8] sm:$0xff] }
 0x125   :  { %5227 = vmatprep.subr.bf16.mxu1 %v5226_v60  ;;  %1650 = vmatprep.mubr.f32.mxu0 %v7236_v26  ;;  %v868_v60 = vld [vmem:[#allocation5 + $0x1838] sm:$0xff]  ;;  %v5248_v63 = vpack.c.bf16 %v851_v57, %v835_v55  ;;  %v5138_v48 = vpack.c.bf16 %v1010_v43, %v994_v42  ;;  %v993_v49 = vld [vmem:[#allocation5 + $0x1c20] sm:$0xff]  ;;  %v1011_v53 = vld [vmem:[#allocation5 + $0x1cb0] sm:$0xff] }
 0x126   :  { %1804 = vmatprep.mubr.f32.mxu1 %v7236_v26  ;;  %v5236_v26 = vpack.c.bf16 %v755_v21, %v739_v16  ;;  %v946_v16 = vld [vmem:[#allocation5 + $0x1aa8] sm:$0xff]  ;;  %v948_v21 = vld [vmem:[#allocation5 + $0x1ab8] sm:$0xff] }
 0x127   :  { %5101 = vmatpush1.bf16.msra.mxu0 %v5100_v2  ;;  %v881_v2 = vld [vmem:[#allocation5 + $0x18a0] sm:$0xff]  ;;  %v5130_v24 = vpack.c.bf16 %v946_v16, %v930_v19  ;;  %v1026_v54 = vld [vmem:[#allocation5 + $0x1d28] sm:$0xff]  ;;  %v1044_v57 = vld [vmem:[#allocation5 + $0x1db8] sm:$0xff] }
 0x128   :  { %5229 = vmatpush1.bf16.msra.mxu1 %v5228_v3  ;;  %5103 = vmatprep.subr.bf16.mxu0 %v5102_v4  ;;  %v867_v3 = vld [vmem:[#allocation5 + $0x1830] sm:$0xff]  ;;  %v5250_v4 = vpack.c.bf16 %v884_v61, %v868_v60  ;;  %v5124_v10 = vpack.c.bf16 %v881_v2, %v865_v1  ;;  %v1042_v55 = vld [vmem:[#allocation5 + $0x1da8] sm:$0xff]  ;;  %v1025_v61 = vld [vmem:[#allocation5 + $0x1d20] sm:$0xff] }
 0x129   :  { %5231 = vmatprep.subr.bf16.mxu1 %v5230_v8  ;;  %v900_v8 = vld [vmem:[#allocation5 + $0x1938] sm:$0xff]  ;;  %v5252_v11 = vpack.c.bf16 %v883_v5, %v867_v3  ;;  %v5142_v60 = vpack.c.bf16 %v1042_v55, %v1026_v54  ;;  %v1043_v1 = vld [vmem:[#allocation5 + $0x1db0] sm:$0xff]  ;;  %v1058_v2 = vld [vmem:[#allocation5 + $0x1e28] sm:$0xff] }
 0x12a   :  { %v1074_v3 = vld [vmem:[#allocation5 + $0x1ea8] sm:$0xff]  ;;  %v1076_v5 = vld [vmem:[#allocation5 + $0x1eb8] sm:$0xff] }
 0x12b   :  { %5105 = vmatpush1.bf16.msra.mxu0 %v5104_v17  ;;  %v913_v17 = vld [vmem:[#allocation5 + $0x19a0] sm:$0xff]  ;;  %v152_v42 = vld [vmem:[#allocation5 + $0x1d8] sm:$0xff] }
 0x12c   :  { %5233 = vmatpush1.bf16.msra.mxu1 %v5232_v14  ;;  %5107 = vmatprep.subr.bf16.mxu0 %v5106_v15  ;;  %v899_v14 = vld [vmem:[#allocation5 + $0x1930] sm:$0xff]  ;;  %v5254_v15 = vpack.c.bf16 %v916_v9, %v900_v8  ;;  %v5128_v22 = vpack.c.bf16 %v913_v17, %v897_v12  ;;  %v5146_v8 = vpack.c.bf16 %v1074_v3, %v1058_v2  ;;  %v1057_v9 = vld [vmem:[#allocation5 + $0x1e20] sm:$0xff]  ;;  %v1090_v17 = vld [vmem:[#allocation5 + $0x1f28] sm:$0xff] }
 0x12d   :  { %5235 = vmatprep.subr.bf16.mxu1 %v5234_v20  ;;  %v932_v20 = vld [vmem:[#allocation5 + $0x1a38] sm:$0xff]  ;;  %v5256_v23 = vpack.c.bf16 %v915_v18, %v899_v14  ;;  %v1075_v12 = vld [vmem:[#allocation5 + $0x1eb0] sm:$0xff]  ;;  %v1106_v14 = vld [vmem:[#allocation5 + $0x1fa8] sm:$0xff] }
 0x12e   :  { %v1108_v18 = vld [vmem:[#allocation5 + $0x1fb8] sm:$0xff]  ;;  %v6959_v2 = vld [vmem:[#allocation2 + $0x30] sm:$0xff] }
 0x12f   :  { %5109 = vmatpush1.bf16.msra.mxu0 %v5108_v27  ;;  %v945_v27 = vld [vmem:[#allocation5 + $0x1aa0] sm:$0xff]  ;;  %v184_v54 = vld [vmem:[#allocation5 + $0x2d8] sm:$0xff] }
 0x130   :  { %5237 = vmatpush1.bf16.msra.mxu1 %v5236_v26  ;;  %5111 = vmatprep.subr.bf16.mxu0 %v5110_v28  ;;  %v931_v26 = vld [vmem:[#allocation5 + $0x1a30] sm:$0xff]  ;;  %v5258_v28 = vpack.c.bf16 %v948_v21, %v932_v20  ;;  %v5132_v34 = vpack.c.bf16 %v945_v27, %v929_v25  ;;  %v5150_v20 = vpack.c.bf16 %v1106_v14, %v1090_v17  ;;  %v1089_v21 = vld [vmem:[#allocation5 + $0x1f20] sm:$0xff]  ;;  %v102_v27 = vld [vmem:[#allocation5 + $0x48] sm:$0xff] }
 0x131   :  { %5239 = vmatprep.subr.bf16.mxu1 %v5238_v32  ;;  %v964_v32 = vld [vmem:[#allocation5 + $0x1b38] sm:$0xff]  ;;  %v5260_v35 = vpack.c.bf16 %v947_v29, %v931_v26  ;;  %v1107_v25 = vld [vmem:[#allocation5 + $0x1fb0] sm:$0xff]  ;;  %v118_v26 = vld [vmem:[#allocation5 + $0xc8] sm:$0xff] }
 0x132   :  { %v120_v29 = vld [vmem:[#allocation5 + $0xd8] sm:$0xff]  ;;  %v246_v17 = vld [vmem:[#allocation5 + $0x4c8] sm:$0xff] }
 0x133   :  { %5113 = vmatpush1.bf16.msra.mxu0 %v5112_v38  ;;  %v977_v38 = vld [vmem:[#allocation5 + $0x1ba0] sm:$0xff]  ;;  %v200_v3 = vld [vmem:[#allocation5 + $0x358] sm:$0xff]  ;;  %v6960_v14 = vld [vmem:[#allocation2 + $0x8] sm:$0xff] }
 0x134   :  { %5241 = vmatpush1.bf16.msra.mxu1 %v5240_v39  ;;  %5115 = vmatprep.subr.bf16.mxu0 %v5114_v40  ;;  %v963_v39 = vld [vmem:[#allocation5 + $0x1b30] sm:$0xff]  ;;  %v5262_v40 = vpack.c.bf16 %v980_v33, %v964_v32  ;;  %v5136_v46 = vpack.c.bf16 %v977_v38, %v961_v37  ;;  %v5282_v32 = vpack.c.bf16 %v118_v26, %v102_v27  ;;  %v101_v33 = vld [vmem:[#allocation5 + $0x40] sm:$0xff]  ;;  %v134_v38 = vld [vmem:[#allocation5 + $0x148] sm:$0xff] }
 0x135   :  { %5243 = vmatprep.subr.bf16.mxu1 %v5242_v44  ;;  %v996_v44 = vld [vmem:[#allocation5 + $0x1c38] sm:$0xff]  ;;  %v5264_v47 = vpack.c.bf16 %v979_v41, %v963_v39  ;;  %v119_v37 = vld [vmem:[#allocation5 + $0xd0] sm:$0xff]  ;;  %v150_v39 = vld [vmem:[#allocation5 + $0x1c8] sm:$0xff] }
 0x136   :  { %v136_v41 = vld [vmem:[#allocation5 + $0x158] sm:$0xff]  ;;  %v262_v27 = vld [vmem:[#allocation5 + $0x548] sm:$0xff] }
 0x137   :  { %5117 = vmatpush1.bf16.msra.mxu0 %v5116_v50  ;;  %v1009_v50 = vld [vmem:[#allocation5 + $0x1ca0] sm:$0xff]  ;;  %v278_v26 = vld [vmem:[#allocation5 + $0x5c8] sm:$0xff] }
 0x138   :  { %5245 = vmatpush1.bf16.msra.mxu1 %v5244_v51  ;;  %5119 = vmatprep.subr.bf16.mxu0 %v5118_v52  ;;  %v995_v51 = vld [vmem:[#allocation5 + $0x1c30] sm:$0xff]  ;;  %v5266_v52 = vpack.c.bf16 %v1012_v45, %v996_v44  ;;  %v5140_v58 = vpack.c.bf16 %v1009_v50, %v993_v49  ;;  %v133_v44 = vld [vmem:[#allocation5 + $0x140] sm:$0xff]  ;;  %v166_v49 = vld [vmem:[#allocation5 + $0x248] sm:$0xff] }
 0x139   :  { %5247 = vmatprep.subr.bf16.mxu1 %v5246_v56  ;;  %v1028_v56 = vld [vmem:[#allocation5 + $0x1d38] sm:$0xff]  ;;  %v5268_v59 = vpack.c.bf16 %v1011_v53, %v995_v51  ;;  %v149_v45 = vld [vmem:[#allocation5 + $0x1c0] sm:$0xff]  ;;  %v182_v50 = vld [vmem:[#allocation5 + $0x2c8] sm:$0xff] }
 0x13a   :  { %v6957_v51 = vld [vmem:[#allocation2 + $0x10] sm:$0xff]  ;;  %v168_v53 = vld [vmem:[#allocation5 + $0x258] sm:$0xff]  ;;  %v5288_v55 = vpack.c.bf16 %v149_v45, %v133_v44  ;;  %v293_v45 = vld [vmem:[#allocation5 + $0x640] sm:$0xff] }
 0x13b   :  { %5121 = vmatpush1.bf16.msra.mxu0 %v5120_v62  ;;  %v1041_v62 = vld [vmem:[#allocation5 + $0x1da0] sm:$0xff] }
 0x13c   :  { %5249 = vmatpush1.bf16.msra.mxu1 %v5248_v63  ;;  %5123 = vmatprep.subr.bf16.mxu0 %v5122_v0  ;;  %v1027_v63 = vld [vmem:[#allocation5 + $0x1d30] sm:$0xff]  ;;  %v5270_v0 = vpack.c.bf16 %v1044_v57, %v1028_v56  ;;  %v5144_v6 = vpack.c.bf16 %v1041_v62, %v1025_v61  ;;  %v6958_v56 = vld [vmem:[#allocation2 + $0x38] sm:$0xff]  ;;  %v5418_v62 = vpack.c.bf16 %v184_v54, %v168_v53 }
 0x13d   :  { %5251 = vmatprep.subr.bf16.mxu1 %v5250_v4  ;;  %v1060_v4 = vld [vmem:[#allocation5 + $0x1e38] sm:$0xff]  ;;  %v5272_v7 = vpack.c.bf16 %v1043_v1, %v1027_v63  ;;  %v167_v61 = vld [vmem:[#allocation5 + $0x250] sm:$0xff]  ;;  %v214_v1 = vld [vmem:[#allocation5 + $0x3c8] sm:$0xff] }
 0x13e   :  { %v183_v63 = vld [vmem:[#allocation5 + $0x2d0] sm:$0xff]  ;;  %v344_v53 = vld [vmem:[#allocation5 + $0x7d8] sm:$0xff] }
 0x13f   :  { %5125 = vmatpush1.bf16.msra.mxu0 %v5124_v10  ;;  %v1073_v10 = vld [vmem:[#allocation5 + $0x1ea0] sm:$0xff] }
 0x140   :  { %5253 = vmatpush1.bf16.msra.mxu1 %v5252_v11  ;;  %5127 = vmatprep.subr.bf16.mxu0 %v5126_v13  ;;  %v1059_v11 = vld [vmem:[#allocation5 + $0x1e30] sm:$0xff]  ;;  %v5274_v13 = vpack.c.bf16 %v1076_v5, %v1060_v4  ;;  %v5148_v19 = vpack.c.bf16 %v1073_v10, %v1057_v9  ;;  %v216_v4 = vld [vmem:[#allocation5 + $0x3d8] sm:$0xff]  ;;  %v213_v9 = vld [vmem:[#allocation5 + $0x3c0] sm:$0xff] }
 0x141   :  { %5255 = vmatprep.subr.bf16.mxu1 %v5254_v15  ;;  %v1092_v15 = vld [vmem:[#allocation5 + $0x1f38] sm:$0xff]  ;;  %v5276_v16 = vpack.c.bf16 %v1075_v12, %v1059_v11  ;;  %v199_v10 = vld [vmem:[#allocation5 + $0x350] sm:$0xff]  ;;  %v5422_v11 = vpack.c.bf16 %v216_v4, %v200_v3  ;;  %v230_v12 = vld [vmem:[#allocation5 + $0x448] sm:$0xff] }
 0x143   :  { %5129 = vmatpush1.bf16.msra.mxu0 %v5128_v22  ;;  %v1105_v22 = vld [vmem:[#allocation5 + $0x1fa0] sm:$0xff] }
 0x144   :  { %5257 = vmatpush1.bf16.msra.mxu1 %v5256_v23  ;;  %5131 = vmatprep.subr.bf16.mxu0 %v5130_v24  ;;  %v1091_v23 = vld [vmem:[#allocation5 + $0x1f30] sm:$0xff]  ;;  %v5278_v24 = vpack.c.bf16 %v1108_v18, %v1092_v15  ;;  %v5152_v30 = vpack.c.bf16 %v1105_v22, %v1089_v21  ;;  %v232_v15 = vld [vmem:[#allocation5 + $0x458] sm:$0xff]  ;;  %v229_v21 = vld [vmem:[#allocation5 + $0x440] sm:$0xff] }
 0x145   :  { %5259 = vmatprep.subr.bf16.mxu1 %v5258_v28  ;;  %v104_v28 = vld [vmem:[#allocation5 + $0x58] sm:$0xff]  ;;  %v5280_v31 = vpack.c.bf16 %v1107_v25, %v1091_v23  ;;  %v245_v22 = vld [vmem:[#allocation5 + $0x4c0] sm:$0xff]  ;;  %v231_v23 = vld [vmem:[#allocation5 + $0x450] sm:$0xff] }
 0x146   :  { %v248_v18 = vld [vmem:[#allocation5 + $0x4d8] sm:$0xff]  ;;  %v247_v25 = vld [vmem:[#allocation5 + $0x4d0] sm:$0xff] }
 0x147   :  { %5133 = vmatpush1.bf16.msra.mxu0 %v5132_v34  ;;  %v117_v34 = vld [vmem:[#allocation5 + $0xc0] sm:$0xff] }
 0x148   :  { %5261 = vmatpush1.bf16.msra.mxu1 %v5260_v35  ;;  %5135 = vmatprep.subr.bf16.mxu0 %v5134_v36  ;;  %v5410_v35 = vpack.c.bf16 %v120_v29, %v104_v28  ;;  %v103_v36 = vld [vmem:[#allocation5 + $0x50] sm:$0xff]  ;;  %v264_v28 = vld [vmem:[#allocation5 + $0x558] sm:$0xff] }
 0x149   :  { %5263 = vmatprep.subr.bf16.mxu1 %v5262_v40  ;;  %v5284_v40 = vpack.c.bf16 %v117_v34, %v101_v33  ;;  %v5412_v43 = vpack.c.bf16 %v119_v37, %v103_v36  ;;  %v280_v29 = vld [vmem:[#allocation5 + $0x5d8] sm:$0xff]  ;;  %v261_v33 = vld [vmem:[#allocation5 + $0x540] sm:$0xff]  ;;  %v279_v37 = vld [vmem:[#allocation5 + $0x5d0] sm:$0xff] }
 0x14a   :  { %v277_v34 = vld [vmem:[#allocation5 + $0x5c0] sm:$0xff]  ;;  %v5430_v36 = vpack.c.bf16 %v280_v29, %v264_v28 }
 0x14b   :  { %5137 = vmatpush1.bf16.msra.mxu0 %v5136_v46  ;;  %v135_v46 = vld [vmem:[#allocation5 + $0x150] sm:$0xff]  ;;  %v421_v29 = vld [vmem:[#allocation5 + $0xa40] sm:$0xff] }
 0x14c   :  { %5265 = vmatpush1.bf16.msra.mxu1 %v5264_v47  ;;  %5139 = vmatprep.subr.bf16.mxu0 %v5138_v48  ;;  %v5286_v47 = vpack.c.bf16 %v150_v39, %v134_v38  ;;  %v151_v48 = vld [vmem:[#allocation5 + $0x1d0] sm:$0xff]  ;;  %v294_v38 = vld [vmem:[#allocation5 + $0x648] sm:$0xff] }
 0x14d   :  { %5267 = vmatprep.subr.bf16.mxu1 %v5266_v52  ;;  %v5414_v52 = vpack.c.bf16 %v152_v42, %v136_v41  ;;  %v5416_v57 = vpack.c.bf16 %v151_v48, %v135_v46  ;;  %v310_v39 = vld [vmem:[#allocation5 + $0x6c8] sm:$0xff]  ;;  %v312_v41 = vld [vmem:[#allocation5 + $0x6d8] sm:$0xff]  ;;  %v5304_v42 = vpack.c.bf16 %v277_v34, %v261_v33  ;;  %v309_v46 = vld [vmem:[#allocation5 + $0x6c0] sm:$0xff] }
 0x14e   :  { %v5306_v44 = vpack.c.bf16 %v310_v39, %v294_v38  ;;  %v5308_v54 = vpack.c.bf16 %v309_v46, %v293_v45  ;;  %v439_v33 = vld [vmem:[#allocation5 + $0xad0] sm:$0xff]  ;;  %v454_v34 = vld [vmem:[#allocation5 + $0xb48] sm:$0xff] }
 0x14f   :  { %5141 = vmatpush1.bf16.msra.mxu0 %v5140_v58  ;;  %v5290_v58 = vpack.c.bf16 %v182_v50, %v166_v49  ;;  %v311_v49 = vld [vmem:[#allocation5 + $0x6d0] sm:$0xff]  ;;  %v326_v50 = vld [vmem:[#allocation5 + $0x748] sm:$0xff] }
 0x150   :  { %5269 = vmatpush1.bf16.msra.mxu1 %v5268_v59  ;;  %5143 = vmatprep.subr.bf16.mxu0 %v5142_v60  ;;  %v165_v59 = vld [vmem:[#allocation5 + $0x240] sm:$0xff]  ;;  %v471_v45 = vld [vmem:[#allocation5 + $0xbd0] sm:$0xff]  ;;  %v486_v46 = vld [vmem:[#allocation5 + $0xc48] sm:$0xff] }
 0x151   :  { %5271 = vmatprep.subr.bf16.mxu1 %v5270_v0  ;;  %v181_v60 = vld [vmem:[#allocation5 + $0x2c0] sm:$0xff]  ;;  %v198_v0 = vld [vmem:[#allocation5 + $0x348] sm:$0xff] }
 0x152   :  { %v5292_v5 = vpack.c.bf16 %v181_v60, %v165_v59  ;;  %v327_v59 = vld [vmem:[#allocation5 + $0x750] sm:$0xff] }
 0x153   :  { %5145 = vmatpush1.bf16.msra.mxu0 %v5144_v6  ;;  %v5420_v6 = vpack.c.bf16 %v183_v63, %v167_v61  ;;  %v343_v61 = vld [vmem:[#allocation5 + $0x7d0] sm:$0xff]  ;;  %v374_v63 = vld [vmem:[#allocation5 + $0x8c8] sm:$0xff] }
 0x154   :  { %5273 = vmatpush1.bf16.msra.mxu1 %v5272_v7  ;;  %5147 = vmatprep.subr.bf16.mxu0 %v5146_v8  ;;  %v5294_v7 = vpack.c.bf16 %v214_v1, %v198_v0  ;;  %v197_v8 = vld [vmem:[#allocation5 + $0x340] sm:$0xff]  ;;  %v360_v0 = vld [vmem:[#allocation5 + $0x858] sm:$0xff]  ;;  %v5440_v3 = vpack.c.bf16 %v343_v61, %v327_v59  ;;  %v534_v59 = vld [vmem:[#allocation5 + $0xdc8] sm:$0xff] }
 0x155   :  { %5275 = vmatprep.subr.bf16.mxu1 %v5274_v13  ;;  %v215_v13 = vld [vmem:[#allocation5 + $0x3d0] sm:$0xff]  ;;  %v376_v1 = vld [vmem:[#allocation5 + $0x8d8] sm:$0xff] }
 0x156   :  { %v536_v61 = vld [vmem:[#allocation5 + $0xdd8] sm:$0xff] }
 0x157   :  { %5149 = vmatpush1.bf16.msra.mxu0 %v5148_v19  ;;  %v5296_v19 = vpack.c.bf16 %v213_v9, %v197_v8  ;;  %v5442_v8 = vpack.c.bf16 %v376_v1, %v360_v0  ;;  %v375_v9 = vld [vmem:[#allocation5 + $0x8d0] sm:$0xff]  ;;  %v517_v1 = vld [vmem:[#allocation5 + $0xd40] sm:$0xff] }
 0x158   :  { %5277 = vmatpush1.bf16.msra.mxu1 %v5276_v16  ;;  %5151 = vmatprep.subr.bf16.mxu0 %v5150_v20  ;;  %v5424_v16 = vpack.c.bf16 %v215_v13, %v199_v10  ;;  %v5298_v20 = vpack.c.bf16 %v246_v17, %v230_v12  ;;  %v390_v10 = vld [vmem:[#allocation5 + $0x948] sm:$0xff]  ;;  %v392_v13 = vld [vmem:[#allocation5 + $0x958] sm:$0xff] }
 0x159   :  { %5279 = vmatprep.subr.bf16.mxu1 %v5278_v24  ;;  %v5426_v24 = vpack.c.bf16 %v248_v18, %v232_v15  ;;  %v408_v12 = vld [vmem:[#allocation5 + $0x9d8] sm:$0xff]  ;;  %v389_v18 = vld [vmem:[#allocation5 + $0x940] sm:$0xff] }
 0x15b   :  { %5153 = vmatpush1.bf16.msra.mxu0 %v5152_v30  ;;  %v5300_v30 = vpack.c.bf16 %v245_v22, %v229_v21  ;;  %v407_v21 = vld [vmem:[#allocation5 + $0x9d0] sm:$0xff]  ;;  %v422_v22 = vld [vmem:[#allocation5 + $0xa48] sm:$0xff] }
 0x15c   :  { %5281 = vmatpush1.bf16.msra.mxu1 %v5280_v31  ;;  %5283 = vmatprep.subr.bf16.mxu0 %v5282_v32  ;;  %v5428_v31 = vpack.c.bf16 %v247_v25, %v231_v23  ;;  %v5302_v32 = vpack.c.bf16 %v278_v26, %v262_v27  ;;  %v438_v23 = vld [vmem:[#allocation5 + $0xac8] sm:$0xff]  ;;  %v440_v25 = vld [vmem:[#allocation5 + $0xad8] sm:$0xff] }
 0x15d   :  { %5411 = vmatprep.subr.bf16.mxu1 %v5410_v35  ;;  %v263_v35 = vld [vmem:[#allocation5 + $0x550] sm:$0xff]  ;;  %v5322_v28 = vpack.c.bf16 %v438_v23, %v422_v22 }
 0x15e   :  { %1651 = vmatmul.mubr.f32.vlgmr.msra.gmra.mrb[4].mxu0 %v6957_v51 }
 0x15f   :  { %1805 = vmatmul.mubr.f32.vlgmr.msra.gmra.mrb[4].mxu1 %v6957_v51  ;;  %5285 = vmatpush1.bf16.msra.mxu0 %v5284_v40  ;;  %v296_v40 = vld [vmem:[#allocation5 + $0x658] sm:$0xff]  ;;  %v342_v51 = vld [vmem:[#allocation5 + $0x7c8] sm:$0xff] }
 0x160   :  { %5413 = vmatpush1.bf16.msra.mxu1 %v5412_v43  ;;  %1656 = vmatprep.mubr.f32.mxu0 %v6958_v56  ;;  %v5432_v43 = vpack.c.bf16 %v279_v37, %v263_v35  ;;  %v5434_v48 = vpack.c.bf16 %v312_v41, %v296_v40  ;;  %v470_v35 = vld [vmem:[#allocation5 + $0xbc8] sm:$0xff]  ;;  %v472_v37 = vld [vmem:[#allocation5 + $0xbd8] sm:$0xff]  ;;  %v453_v41 = vld [vmem:[#allocation5 + $0xb40] sm:$0xff] }
 0x161   :  { %1810 = vmatprep.mubr.f32.mxu1 %v6958_v56  ;;  %5287 = vmatprep.subr.bf16.mxu0 %v5286_v47  ;;  %v295_v47 = vld [vmem:[#allocation5 + $0x650] sm:$0xff]  ;;  %v5310_v56 = vpack.c.bf16 %v342_v51, %v326_v50  ;;  %v5326_v40 = vpack.c.bf16 %v470_v35, %v454_v34 }
 0x162   :  { %1657 = vmatmul.mubr.f32.gmra.mrb[6].mxu0 %v6959_v2  ;;  %5415 = vmatprep.subr.bf16.mxu1 %v5414_v52  ;;  %v328_v52 = vld [vmem:[#allocation5 + $0x758] sm:$0xff] }
 0x163   :  { %1811 = vmatmul.mubr.f32.gmra.mrb[6].mxu1 %v6959_v2  ;;  %5289 = vmatpush1.bf16.msra.mxu0 %v5288_v55  ;;  %v5436_v55 = vpack.c.bf16 %v311_v49, %v295_v47  ;;  %v5438_v60 = vpack.c.bf16 %v344_v53, %v328_v52  ;;  %v502_v47 = vld [vmem:[#allocation5 + $0xcc8] sm:$0xff]  ;;  %v504_v49 = vld [vmem:[#allocation5 + $0xcd8] sm:$0xff]  ;;  %v485_v53 = vld [vmem:[#allocation5 + $0xc40] sm:$0xff] }
 0x164   :  { %5417 = vmatpush1.bf16.msra.mxu1 %v5416_v57  ;;  %5291 = vmatprep.subr.bf16.mxu0 %v5290_v58  ;;  %v325_v57 = vld [vmem:[#allocation5 + $0x740] sm:$0xff]  ;;  %v5330_v52 = vpack.c.bf16 %v502_v47, %v486_v46 }
 0x165   :  { %5419 = vmatprep.subr.bf16.mxu1 %v5418_v62  ;;  %1881 = vmatprep.mubr.f32.mxu0 %v6960_v14  ;;  %v341_v58 = vld [vmem:[#allocation5 + $0x7c0] sm:$0xff]  ;;  %v358_v62 = vld [vmem:[#allocation5 + $0x848] sm:$0xff] }
 0x166   :  { %2035 = vmatprep.mubr.f32.mxu1 %v6960_v14  ;;  %v5312_v2 = vpack.c.bf16 %v341_v58, %v325_v57  ;;  %v5314_v4 = vpack.c.bf16 %v374_v63, %v358_v62  ;;  %v503_v57 = vld [vmem:[#allocation5 + $0xcd0] sm:$0xff]  ;;  %v518_v58 = vld [vmem:[#allocation5 + $0xd48] sm:$0xff] }
 0x167   :  { %5293 = vmatpush1.bf16.msra.mxu0 %v5292_v5  ;;  %v357_v5 = vld [vmem:[#allocation5 + $0x840] sm:$0xff]  ;;  %v5334_v0 = vpack.c.bf16 %v534_v59, %v518_v58  ;;  %v696_v58 = vld [vmem:[#allocation5 + $0x12d8] sm:$0xff] }
 0x168   :  { %5421 = vmatpush1.bf16.msra.mxu1 %v5420_v6  ;;  %5295 = vmatprep.subr.bf16.mxu0 %v5294_v7  ;;  %v373_v6 = vld [vmem:[#allocation5 + $0x8c0] sm:$0xff]  ;;  %v359_v7 = vld [vmem:[#allocation5 + $0x850] sm:$0xff] }
 0x169   :  { %5423 = vmatprep.subr.bf16.mxu1 %v5422_v11  ;;  %v406_v11 = vld [vmem:[#allocation5 + $0x9c8] sm:$0xff]  ;;  %v5316_v17 = vpack.c.bf16 %v373_v6, %v357_v5  ;;  %v5444_v14 = vpack.c.bf16 %v375_v9, %v359_v7  ;;  %v535_v5 = vld [vmem:[#allocation5 + $0xdd0] sm:$0xff]  ;;  %v568_v9 = vld [vmem:[#allocation5 + $0xed8] sm:$0xff] }
 0x16a   :  { %v5318_v15 = vpack.c.bf16 %v406_v11, %v390_v10  ;;  %v550_v6 = vld [vmem:[#allocation5 + $0xe48] sm:$0xff] }
 0x16b   :  { %5297 = vmatpush1.bf16.msra.mxu0 %v5296_v19  ;;  %v405_v19 = vld [vmem:[#allocation5 + $0x9c0] sm:$0xff]  ;;  %v566_v7 = vld [vmem:[#allocation5 + $0xec8] sm:$0xff] }
 0x16c   :  { %5425 = vmatpush1.bf16.msra.mxu1 %v5424_v16  ;;  %5299 = vmatprep.subr.bf16.mxu0 %v5298_v20  ;;  %v391_v16 = vld [vmem:[#allocation5 + $0x950] sm:$0xff]  ;;  %v5446_v20 = vpack.c.bf16 %v408_v12, %v392_v13  ;;  %v5320_v27 = vpack.c.bf16 %v405_v19, %v389_v18  ;;  %v5338_v13 = vpack.c.bf16 %v566_v7, %v550_v6  ;;  %v549_v12 = vld [vmem:[#allocation5 + $0xe40] sm:$0xff]  ;;  %v582_v19 = vld [vmem:[#allocation5 + $0xf48] sm:$0xff] }
 0x16d   :  { %5427 = vmatprep.subr.bf16.mxu1 %v5426_v24  ;;  %v424_v24 = vld [vmem:[#allocation5 + $0xa58] sm:$0xff]  ;;  %v5448_v26 = vpack.c.bf16 %v407_v21, %v391_v16  ;;  %v567_v18 = vld [vmem:[#allocation5 + $0xed0] sm:$0xff]  ;;  %v598_v16 = vld [vmem:[#allocation5 + $0xfc8] sm:$0xff] }
 0x16e   :  { %v600_v21 = vld [vmem:[#allocation5 + $0xfd8] sm:$0xff] }
 0x16f   :  { %5301 = vmatpush1.bf16.msra.mxu0 %v5300_v30  ;;  %v437_v30 = vld [vmem:[#allocation5 + $0xac0] sm:$0xff]  ;;  %v712_v6 = vld [vmem:[#allocation5 + $0x1358] sm:$0xff] }
 0x170   :  { %5429 = vmatpush1.bf16.msra.mxu1 %v5428_v31  ;;  %5303 = vmatprep.subr.bf16.mxu0 %v5302_v32  ;;  %v423_v31 = vld [vmem:[#allocation5 + $0xa50] sm:$0xff]  ;;  %v5450_v32 = vpack.c.bf16 %v440_v25, %v424_v24  ;;  %v5324_v38 = vpack.c.bf16 %v437_v30, %v421_v29  ;;  %v5342_v24 = vpack.c.bf16 %v598_v16, %v582_v19  ;;  %v581_v25 = vld [vmem:[#allocation5 + $0xf40] sm:$0xff]  ;;  %v614_v30 = vld [vmem:[#allocation5 + $0x1048] sm:$0xff] }
 0x171   :  { %5431 = vmatprep.subr.bf16.mxu1 %v5430_v36  ;;  %v456_v36 = vld [vmem:[#allocation5 + $0xb58] sm:$0xff]  ;;  %v5452_v39 = vpack.c.bf16 %v439_v33, %v423_v31  ;;  %v599_v29 = vld [vmem:[#allocation5 + $0xfd0] sm:$0xff]  ;;  %v630_v31 = vld [vmem:[#allocation5 + $0x10c8] sm:$0xff] }
 0x172   :  { %v632_v33 = vld [vmem:[#allocation5 + $0x10d8] sm:$0xff]  ;;  %v758_v19 = vld [vmem:[#allocation5 + $0x14c8] sm:$0xff] }
 0x173   :  { %5305 = vmatpush1.bf16.msra.mxu0 %v5304_v42  ;;  %v469_v42 = vld [vmem:[#allocation5 + $0xbc0] sm:$0xff]  ;;  %v728_v7 = vld [vmem:[#allocation5 + $0x13d8] sm:$0xff] }
 0x174   :  { %5433 = vmatpush1.bf16.msra.mxu1 %v5432_v43  ;;  %5307 = vmatprep.subr.bf16.mxu0 %v5306_v44  ;;  %v455_v43 = vld [vmem:[#allocation5 + $0xb50] sm:$0xff]  ;;  %v5454_v44 = vpack.c.bf16 %v472_v37, %v456_v36  ;;  %v5328_v50 = vpack.c.bf16 %v469_v42, %v453_v41  ;;  %v5346_v36 = vpack.c.bf16 %v630_v31, %v614_v30  ;;  %v613_v37 = vld [vmem:[#allocation5 + $0x1040] sm:$0xff]  ;;  %v646_v42 = vld [vmem:[#allocation5 + $0x1148] sm:$0xff] }
 0x175   :  { %5435 = vmatprep.subr.bf16.mxu1 %v5434_v48  ;;  %v488_v48 = vld [vmem:[#allocation5 + $0xc58] sm:$0xff]  ;;  %v5456_v51 = vpack.c.bf16 %v471_v45, %v455_v43  ;;  %v631_v41 = vld [vmem:[#allocation5 + $0x10d0] sm:$0xff]  ;;  %v662_v43 = vld [vmem:[#allocation5 + $0x11c8] sm:$0xff] }
 0x176   :  { %v664_v45 = vld [vmem:[#allocation5 + $0x11d8] sm:$0xff]  ;;  %v774_v30 = vld [vmem:[#allocation5 + $0x1548] sm:$0xff] }
 0x177   :  { %5309 = vmatpush1.bf16.msra.mxu0 %v5308_v54  ;;  %v501_v54 = vld [vmem:[#allocation5 + $0xcc0] sm:$0xff]  ;;  %v6964_v16 = vld [vmem:[#allocation2 + $0x18] sm:$0xff]  ;;  %v790_v31 = vld [vmem:[#allocation5 + $0x15c8] sm:$0xff] }
 0x178   :  { %5437 = vmatpush1.bf16.msra.mxu1 %v5436_v55  ;;  %5311 = vmatprep.subr.bf16.mxu0 %v5310_v56  ;;  %v487_v55 = vld [vmem:[#allocation5 + $0xc50] sm:$0xff]  ;;  %v5458_v56 = vpack.c.bf16 %v504_v49, %v488_v48  ;;  %v5332_v62 = vpack.c.bf16 %v501_v54, %v485_v53  ;;  %v5350_v48 = vpack.c.bf16 %v662_v43, %v646_v42  ;;  %v645_v49 = vld [vmem:[#allocation5 + $0x1140] sm:$0xff]  ;;  %v678_v54 = vld [vmem:[#allocation5 + $0x1248] sm:$0xff] }
 0x179   :  { %5439 = vmatprep.subr.bf16.mxu1 %v5438_v60  ;;  %v520_v60 = vld [vmem:[#allocation5 + $0xd58] sm:$0xff]  ;;  %v5460_v63 = vpack.c.bf16 %v503_v57, %v487_v55  ;;  %v663_v53 = vld [vmem:[#allocation5 + $0x11d0] sm:$0xff]  ;;  %v694_v55 = vld [vmem:[#allocation5 + $0x12c8] sm:$0xff] }
 0x17a   :  { %v680_v57 = vld [vmem:[#allocation5 + $0x1258] sm:$0xff]  ;;  %v806_v42 = vld [vmem:[#allocation5 + $0x1648] sm:$0xff] }
 0x17b   :  { %5313 = vmatpush1.bf16.msra.mxu0 %v5312_v2  ;;  %v533_v2 = vld [vmem:[#allocation5 + $0xdc0] sm:$0xff]  ;;  %v822_v43 = vld [vmem:[#allocation5 + $0x16c8] sm:$0xff] }
 0x17c   :  { %5441 = vmatpush1.bf16.msra.mxu1 %v5440_v3  ;;  %5315 = vmatprep.subr.bf16.mxu0 %v5314_v4  ;;  %v519_v3 = vld [vmem:[#allocation5 + $0xd50] sm:$0xff]  ;;  %v5462_v4 = vpack.c.bf16 %v536_v61, %v520_v60  ;;  %v5336_v10 = vpack.c.bf16 %v533_v2, %v517_v1  ;;  %v5354_v61 = vpack.c.bf16 %v694_v55, %v678_v54  ;;  %v838_v55 = vld [vmem:[#allocation5 + $0x1748] sm:$0xff] }
 0x17d   :  { %5443 = vmatprep.subr.bf16.mxu1 %v5442_v8  ;;  %v552_v8 = vld [vmem:[#allocation5 + $0xe58] sm:$0xff]  ;;  %v5464_v11 = vpack.c.bf16 %v535_v5, %v519_v3  ;;  %v5482_v1 = vpack.c.bf16 %v696_v58, %v680_v57  ;;  %v695_v2 = vld [vmem:[#allocation5 + $0x12d0] sm:$0xff]  ;;  %v710_v3 = vld [vmem:[#allocation5 + $0x1348] sm:$0xff] }
 0x17e   :  { %v6962_v5 = vld [vmem:[#allocation2 + $0x28] sm:$0xff]  ;;  %v823_v54 = vld [vmem:[#allocation5 + $0x16d0] sm:$0xff] }
 0x17f   :  { %5317 = vmatpush1.bf16.msra.mxu0 %v5316_v17  ;;  %v565_v17 = vld [vmem:[#allocation5 + $0xec0] sm:$0xff] }
 0x180   :  { %5445 = vmatpush1.bf16.msra.mxu1 %v5444_v14  ;;  %5319 = vmatprep.subr.bf16.mxu0 %v5318_v15  ;;  %v551_v14 = vld [vmem:[#allocation5 + $0xe50] sm:$0xff]  ;;  %v5466_v15 = vpack.c.bf16 %v568_v9, %v552_v8  ;;  %v5340_v22 = vpack.c.bf16 %v565_v17, %v549_v12  ;;  %v6963_v8 = vld [vmem:[#allocation2 + $0x20] sm:$0xff] }
 0x181   :  { %5447 = vmatprep.subr.bf16.mxu1 %v5446_v20  ;;  %v584_v20 = vld [vmem:[#allocation5 + $0xf58] sm:$0xff]  ;;  %v5468_v23 = vpack.c.bf16 %v567_v18, %v551_v14  ;;  %v725_v12 = vld [vmem:[#allocation5 + $0x13c0] sm:$0xff]  ;;  %v711_v17 = vld [vmem:[#allocation5 + $0x1350] sm:$0xff]  ;;  %v5486_v14 = vpack.c.bf16 %v728_v7, %v712_v6 }
 0x182   :  { %v742_v18 = vld [vmem:[#allocation5 + $0x1448] sm:$0xff]  ;;  %v855_v6 = vld [vmem:[#allocation5 + $0x17d0] sm:$0xff] }
 0x183   :  { %5321 = vmatpush1.bf16.msra.mxu0 %v5320_v27  ;;  %v597_v27 = vld [vmem:[#allocation5 + $0xfc0] sm:$0xff]  ;;  %v870_v7 = vld [vmem:[#allocation5 + $0x1848] sm:$0xff] }
 0x184   :  { %5449 = vmatpush1.bf16.msra.mxu1 %v5448_v26  ;;  %5323 = vmatprep.subr.bf16.mxu0 %v5322_v28  ;;  %v583_v26 = vld [vmem:[#allocation5 + $0xf50] sm:$0xff]  ;;  %v5470_v28 = vpack.c.bf16 %v600_v21, %v584_v20  ;;  %v5344_v34 = vpack.c.bf16 %v597_v27, %v581_v25  ;;  %v744_v20 = vld [vmem:[#allocation5 + $0x1458] sm:$0xff]  ;;  %v741_v25 = vld [vmem:[#allocation5 + $0x1440] sm:$0xff] }
 0x185   :  { %5451 = vmatprep.subr.bf16.mxu1 %v5450_v32  ;;  %v616_v32 = vld [vmem:[#allocation5 + $0x1058] sm:$0xff]  ;;  %v5472_v35 = vpack.c.bf16 %v599_v29, %v583_v26  ;;  %v757_v27 = vld [vmem:[#allocation5 + $0x14c0] sm:$0xff]  ;;  %v743_v26 = vld [vmem:[#allocation5 + $0x1450] sm:$0xff] }
 0x186   :  { %v760_v21 = vld [vmem:[#allocation5 + $0x14d8] sm:$0xff]  ;;  %v759_v29 = vld [vmem:[#allocation5 + $0x14d0] sm:$0xff] }
 0x187   :  { %5325 = vmatpush1.bf16.msra.mxu0 %v5324_v38  ;;  %v629_v38 = vld [vmem:[#allocation5 + $0x10c0] sm:$0xff] }
 0x188   :  { %5453 = vmatpush1.bf16.msra.mxu1 %v5452_v39  ;;  %5327 = vmatprep.subr.bf16.mxu0 %v5326_v40  ;;  %v615_v39 = vld [vmem:[#allocation5 + $0x1050] sm:$0xff]  ;;  %v5474_v40 = vpack.c.bf16 %v632_v33, %v616_v32  ;;  %v5348_v46 = vpack.c.bf16 %v629_v38, %v613_v37  ;;  %v776_v32 = vld [vmem:[#allocation5 + $0x1558] sm:$0xff]  ;;  %v773_v37 = vld [vmem:[#allocation5 + $0x1540] sm:$0xff] }
 0x189   :  { %5455 = vmatprep.subr.bf16.mxu1 %v5454_v44  ;;  %v648_v44 = vld [vmem:[#allocation5 + $0x1158] sm:$0xff]  ;;  %v5476_v47 = vpack.c.bf16 %v631_v41, %v615_v39  ;;  %v789_v38 = vld [vmem:[#allocation5 + $0x15c0] sm:$0xff]  ;;  %v775_v39 = vld [vmem:[#allocation5 + $0x1550] sm:$0xff] }
 0x18a   :  { %v792_v33 = vld [vmem:[#allocation5 + $0x15d8] sm:$0xff]  ;;  %v791_v41 = vld [vmem:[#allocation5 + $0x15d0] sm:$0xff] }
 0x18b   :  { %5329 = vmatpush1.bf16.msra.mxu0 %v5328_v50  ;;  %v661_v50 = vld [vmem:[#allocation5 + $0x11c0] sm:$0xff] }
 0x18c   :  { %5457 = vmatpush1.bf16.msra.mxu1 %v5456_v51  ;;  %5331 = vmatprep.subr.bf16.mxu0 %v5330_v52  ;;  %v647_v51 = vld [vmem:[#allocation5 + $0x1150] sm:$0xff]  ;;  %v5478_v52 = vpack.c.bf16 %v664_v45, %v648_v44  ;;  %v5352_v59 = vpack.c.bf16 %v661_v50, %v645_v49  ;;  %v808_v44 = vld [vmem:[#allocation5 + $0x1658] sm:$0xff]  ;;  %v805_v49 = vld [vmem:[#allocation5 + $0x1640] sm:$0xff] }
 0x18d   :  { %5459 = vmatprep.subr.bf16.mxu1 %v5458_v56  ;;  %v6961_v56 = vld [vmem:[#allocation2] sm:$0xff]  ;;  %v5480_v60 = vpack.c.bf16 %v663_v53, %v647_v51  ;;  %v824_v45 = vld [vmem:[#allocation5 + $0x16d8] sm:$0xff]  ;;  %v807_v51 = vld [vmem:[#allocation5 + $0x1650] sm:$0xff] }
 0x18e   :  { %v821_v50 = vld [vmem:[#allocation5 + $0x16c0] sm:$0xff]  ;;  %v5498_v53 = vpack.c.bf16 %v824_v45, %v808_v44  ;;  %v951_v45 = vld [vmem:[#allocation5 + $0x1ad0] sm:$0xff] }
 0x18f   :  { %5333 = vmatpush1.bf16.msra.mxu0 %v5332_v62  ;;  %v677_v62 = vld [vmem:[#allocation5 + $0x1240] sm:$0xff] }
 0x190   :  { %5461 = vmatpush1.bf16.msra.mxu1 %v5460_v63  ;;  %5335 = vmatprep.subr.bf16.mxu0 %v5334_v0  ;;  %v693_v63 = vld [vmem:[#allocation5 + $0x12c0] sm:$0xff]  ;;  %v679_v0 = vld [vmem:[#allocation5 + $0x1250] sm:$0xff] }
 0x191   :  { %5463 = vmatprep.subr.bf16.mxu1 %v5462_v4  ;;  %v726_v4 = vld [vmem:[#allocation5 + $0x13c8] sm:$0xff]  ;;  %v5356_v9 = vpack.c.bf16 %v693_v63, %v677_v62  ;;  %v5372_v62 = vpack.c.bf16 %v821_v50, %v805_v49  ;;  %v5500_v63 = vpack.c.bf16 %v823_v54, %v807_v51  ;;  %v984_v49 = vld [vmem:[#allocation5 + $0x1bd8] sm:$0xff]  ;;  %v965_v54 = vld [vmem:[#allocation5 + $0x1b40] sm:$0xff] }
 0x193   :  { %5337 = vmatpush1.bf16.msra.mxu0 %v5336_v10  ;;  %v5484_v10 = vpack.c.bf16 %v695_v2, %v679_v0  ;;  %v853_v2 = vld [vmem:[#allocation5 + $0x17c0] sm:$0xff] }
 0x194   :  { %5465 = vmatpush1.bf16.msra.mxu1 %v5464_v11  ;;  %5339 = vmatprep.subr.bf16.mxu0 %v5338_v13  ;;  %v5358_v11 = vpack.c.bf16 %v726_v4, %v710_v3  ;;  %v709_v13 = vld [vmem:[#allocation5 + $0x1340] sm:$0xff]  ;;  %v839_v3 = vld [vmem:[#allocation5 + $0x1750] sm:$0xff] }
 0x195   :  { %5467 = vmatprep.subr.bf16.mxu1 %v5466_v15  ;;  %v727_v15 = vld [vmem:[#allocation5 + $0x13d0] sm:$0xff] }
 0x197   :  { %5341 = vmatpush1.bf16.msra.mxu0 %v5340_v22  ;;  %v5360_v22 = vpack.c.bf16 %v725_v12, %v709_v13  ;;  %v888_v13 = vld [vmem:[#allocation5 + $0x18d8] sm:$0xff] }
 0x198   :  { %5469 = vmatpush1.bf16.msra.mxu1 %v5468_v23  ;;  %5343 = vmatprep.subr.bf16.mxu0 %v5342_v24  ;;  %v5488_v23 = vpack.c.bf16 %v727_v15, %v711_v17  ;;  %v5362_v24 = vpack.c.bf16 %v758_v19, %v742_v18  ;;  %v869_v18 = vld [vmem:[#allocation5 + $0x1840] sm:$0xff] }
 0x199   :  { %5471 = vmatprep.subr.bf16.mxu1 %v5470_v28  ;;  %v5490_v28 = vpack.c.bf16 %v760_v21, %v744_v20  ;;  %v885_v19 = vld [vmem:[#allocation5 + $0x18c0] sm:$0xff]  ;;  %v887_v21 = vld [vmem:[#allocation5 + $0x18d0] sm:$0xff] }
 0x19b   :  { %5345 = vmatpush1.bf16.msra.mxu0 %v5344_v34  ;;  %v5364_v34 = vpack.c.bf16 %v757_v27, %v741_v25  ;;  %v920_v25 = vld [vmem:[#allocation5 + $0x19d8] sm:$0xff]  ;;  %v5380_v27 = vpack.c.bf16 %v885_v19, %v869_v18 }
 0x19c   :  { %5473 = vmatpush1.bf16.msra.mxu1 %v5472_v35  ;;  %5347 = vmatprep.subr.bf16.mxu0 %v5346_v36  ;;  %v5492_v35 = vpack.c.bf16 %v759_v29, %v743_v26  ;;  %v5366_v36 = vpack.c.bf16 %v790_v31, %v774_v30  ;;  %v901_v29 = vld [vmem:[#allocation5 + $0x1940] sm:$0xff]  ;;  %v903_v31 = vld [vmem:[#allocation5 + $0x1950] sm:$0xff]  ;;  %v1048_v18 = vld [vmem:[#allocation5 + $0x1dd8] sm:$0xff] }
 0x19d   :  { %5475 = vmatprep.subr.bf16.mxu1 %v5474_v40  ;;  %v5494_v40 = vpack.c.bf16 %v792_v33, %v776_v32  ;;  %v917_v30 = vld [vmem:[#allocation5 + $0x19c0] sm:$0xff]  ;;  %v919_v33 = vld [vmem:[#allocation5 + $0x19d0] sm:$0xff] }
 0x19e   :  { %1882 = vmatmul.mubr.f32.vlgmr.msra.gmra.mrb[8].mxu0 %v6961_v56 }
 0x19f   :  { %5349 = vmatpush1.bf16.msra.mxu0 %v5348_v46  ;;  %2036 = vmatmul.mubr.f32.vlgmr.msra.gmra.mrb[8].mxu1 %v6961_v56  ;;  %v5368_v46 = vpack.c.bf16 %v789_v38, %v773_v37  ;;  %v854_v56 = vld [vmem:[#allocation5 + $0x17c8] sm:$0xff]  ;;  %v952_v37 = vld [vmem:[#allocation5 + $0x1ad8] sm:$0xff]  ;;  %v5384_v38 = vpack.c.bf16 %v917_v30, %v901_v29 }
 0x1a0   :  { %5477 = vmatpush1.bf16.msra.mxu1 %v5476_v47  ;;  %5351 = vmatprep.subr.bf16.mxu0 %v5350_v48  ;;  %v5496_v47 = vpack.c.bf16 %v791_v41, %v775_v39  ;;  %v5370_v48 = vpack.c.bf16 %v822_v43, %v806_v42  ;;  %v5374_v0 = vpack.c.bf16 %v854_v56, %v838_v55  ;;  %v933_v41 = vld [vmem:[#allocation5 + $0x1a40] sm:$0xff]  ;;  %v935_v43 = vld [vmem:[#allocation5 + $0x1a50] sm:$0xff]  ;;  %v1080_v29 = vld [vmem:[#allocation5 + $0x1ed8] sm:$0xff] }
 0x1a1   :  { %5479 = vmatprep.subr.bf16.mxu1 %v5478_v52  ;;  %1887 = vmatprep.mubr.f32.mxu0 %v6962_v5  ;;  %v5512_v39 = vpack.c.bf16 %v919_v33, %v903_v31  ;;  %v949_v42 = vld [vmem:[#allocation5 + $0x1ac0] sm:$0xff]  ;;  %v5516_v51 = vpack.c.bf16 %v951_v45, %v935_v43  ;;  %v967_v56 = vld [vmem:[#allocation5 + $0x1b50] sm:$0xff] }
 0x1a2   :  { %2041 = vmatprep.mubr.f32.mxu1 %v6962_v5  ;;  %1888 = vmatmul.mubr.f32.gmra.mrb[10].mxu0 %v6963_v8  ;;  %v5388_v50 = vpack.c.bf16 %v949_v42, %v933_v41  ;;  %v981_v55 = vld [vmem:[#allocation5 + $0x1bc0] sm:$0xff]  ;;  %v1112_v41 = vld [vmem:[#allocation5 + $0x1fd8] sm:$0xff] }
 0x1a3   :  { %5353 = vmatpush1.bf16.msra.mxu0 %v5352_v59  ;;  %2042 = vmatmul.mubr.f32.gmra.mrb[10].mxu1 %v6963_v8  ;;  %v840_v59 = vld [vmem:[#allocation5 + $0x1758] sm:$0xff]  ;;  %v886_v8 = vld [vmem:[#allocation5 + $0x18c8] sm:$0xff]  ;;  %v1061_v33 = vld [vmem:[#allocation5 + $0x1e40] sm:$0xff] }
 0x1a4   :  { %5481 = vmatpush1.bf16.msra.mxu1 %v5480_v60  ;;  %5355 = vmatprep.subr.bf16.mxu0 %v5354_v61  ;;  %v856_v60 = vld [vmem:[#allocation5 + $0x17d8] sm:$0xff]  ;;  %v5378_v15 = vpack.c.bf16 %v886_v8, %v870_v7  ;;  %v1013_v7 = vld [vmem:[#allocation5 + $0x1cc0] sm:$0xff]  ;;  %v999_v8 = vld [vmem:[#allocation5 + $0x1c50] sm:$0xff] }
 0x1a5   :  { %5483 = vmatprep.subr.bf16.mxu1 %v5482_v1  ;;  %1958 = vmatprep.mubr.f32.mxu0 %v6964_v16  ;;  %v837_v1 = vld [vmem:[#allocation5 + $0x1740] sm:$0xff]  ;;  %v5502_v5 = vpack.c.bf16 %v856_v60, %v840_v59  ;;  %v983_v60 = vld [vmem:[#allocation5 + $0x1bd0] sm:$0xff] }
 0x1a6   :  { %2112 = vmatprep.mubr.f32.mxu1 %v6964_v16  ;;  %v5376_v17 = vpack.c.bf16 %v853_v2, %v837_v1  ;;  %v871_v16 = vld [vmem:[#allocation5 + $0x1850] sm:$0xff]  ;;  %v1016_v1 = vld [vmem:[#allocation5 + $0x1cd8] sm:$0xff]  ;;  %v5392_v2 = vpack.c.bf16 %v981_v55, %v965_v54  ;;  %v1093_v45 = vld [vmem:[#allocation5 + $0x1f40] sm:$0xff] }
 0x1a7   :  { %5357 = vmatpush1.bf16.msra.mxu0 %v5356_v9  ;;  %v5508_v26 = vpack.c.bf16 %v887_v21, %v871_v16  ;;  %v1029_v21 = vld [vmem:[#allocation5 + $0x1d40] sm:$0xff]  ;;  %v124_v54 = vld [vmem:[#allocation5 + $0xf8] sm:$0xff] }
 0x1a8   :  { %5485 = vmatpush1.bf16.msra.mxu1 %v5484_v10  ;;  %5359 = vmatprep.subr.bf16.mxu0 %v5358_v11  ;;  %v872_v11 = vld [vmem:[#allocation5 + $0x1858] sm:$0xff] }
 0x1a9   :  { %5487 = vmatprep.subr.bf16.mxu1 %v5486_v14  ;;  %v5504_v14 = vpack.c.bf16 %v855_v6, %v839_v3  ;;  %v5506_v20 = vpack.c.bf16 %v888_v13, %v872_v11  ;;  %v5520_v3 = vpack.c.bf16 %v983_v60, %v967_v56  ;;  %v997_v6 = vld [vmem:[#allocation5 + $0x1c40] sm:$0xff]  ;;  %v1015_v13 = vld [vmem:[#allocation5 + $0x1cd0] sm:$0xff] }
 0x1aa   :  { %v5396_v19 = vpack.c.bf16 %v1013_v7, %v997_v6  ;;  %v5524_v16 = vpack.c.bf16 %v1015_v13, %v999_v8  ;;  %v105_v60 = vld [vmem:[#allocation5 + $0x60] sm:$0xff]  ;;  %v140_v6 = vld [vmem:[#allocation5 + $0x178] sm:$0xff] }
 0x1ab   :  { %5361 = vmatpush1.bf16.msra.mxu0 %v5360_v22  ;;  %v902_v22 = vld [vmem:[#allocation5 + $0x1948] sm:$0xff]  ;;  %v156_v7 = vld [vmem:[#allocation5 + $0x1f8] sm:$0xff]  ;;  %v153_v13 = vld [vmem:[#allocation5 + $0x1e0] sm:$0xff] }
 0x1ac   :  { %5489 = vmatpush1.bf16.msra.mxu1 %v5488_v23  ;;  %5363 = vmatprep.subr.bf16.mxu0 %v5362_v24  ;;  %v918_v23 = vld [vmem:[#allocation5 + $0x19c8] sm:$0xff]  ;;  %v904_v24 = vld [vmem:[#allocation5 + $0x1958] sm:$0xff] }
 0x1ad   :  { %5491 = vmatprep.subr.bf16.mxu1 %v5490_v28  ;;  %v5382_v28 = vpack.c.bf16 %v918_v23, %v902_v22  ;;  %v5510_v32 = vpack.c.bf16 %v920_v25, %v904_v24  ;;  %v1045_v22 = vld [vmem:[#allocation5 + $0x1dc0] sm:$0xff]  ;;  %v1031_v23 = vld [vmem:[#allocation5 + $0x1d50] sm:$0xff] }
 0x1ae   :  { %v1047_v25 = vld [vmem:[#allocation5 + $0x1dd0] sm:$0xff]  ;;  %v5400_v30 = vpack.c.bf16 %v1045_v22, %v1029_v21  ;;  %v172_v21 = vld [vmem:[#allocation5 + $0x278] sm:$0xff] }
 0x1af   :  { %5365 = vmatpush1.bf16.msra.mxu0 %v5364_v34  ;;  %v934_v34 = vld [vmem:[#allocation5 + $0x1a48] sm:$0xff]  ;;  %v5528_v31 = vpack.c.bf16 %v1047_v25, %v1031_v23  ;;  %v188_v22 = vld [vmem:[#allocation5 + $0x2f8] sm:$0xff] }
 0x1b0   :  { %5493 = vmatpush1.bf16.msra.mxu1 %v5492_v35  ;;  %5367 = vmatprep.subr.bf16.mxu0 %v5366_v36  ;;  %v950_v35 = vld [vmem:[#allocation5 + $0x1ac8] sm:$0xff]  ;;  %v936_v36 = vld [vmem:[#allocation5 + $0x1a58] sm:$0xff] }
 0x1b1   :  { %v7250_v52 = vpop.f32.mrb[0].mxu0  ;;  %5495 = vmatprep.subr.bf16.mxu1 %v5494_v40  ;;  %v5386_v40 = vpack.c.bf16 %v950_v35, %v934_v34  ;;  %v5514_v44 = vpack.c.bf16 %v952_v37, %v936_v36  ;;  %v1077_v34 = vld [vmem:[#allocation5 + $0x1ec0] sm:$0xff]  ;;  %v1063_v35 = vld [vmem:[#allocation5 + $0x1e50] sm:$0xff] }
 0x1b2   :  { %v7252_v57 = vpop.f32.mrb[0].mxu1  ;;  %v7254_v58 = vpop.f32.mrb[1].mxu0  ;;  %v1079_v37 = vld [vmem:[#allocation5 + $0x1ed0] sm:$0xff]  ;;  %v5404_v42 = vpack.c.bf16 %v1077_v34, %v1061_v33  ;;  %v218_v33 = vld [vmem:[#allocation5 + $0x3e8] sm:$0xff] }
 0x1b3   :  { %v7256_v61 = vpop.f32.mrb[1].mxu1  ;;  %5369 = vmatpush1.bf16.msra.mxu0 %v5368_v46  ;;  %v966_v46 = vld [vmem:[#allocation5 + $0x1b48] sm:$0xff]  ;;  %v5532_v43 = vpack.c.bf16 %v1079_v37, %v1063_v35  ;;  %v6967_v34 = vld [vmem:[#allocation2 + $0x30] sm:$0xff]  ;;  %v204_v35 = vld [vmem:[#allocation5 + $0x378] sm:$0xff] }
 0x1b4   :  { %5497 = vmatpush1.bf16.msra.mxu1 %v5496_v47  ;;  %5371 = vmatprep.subr.bf16.mxu0 %v5370_v48  ;;  %v982_v47 = vld [vmem:[#allocation5 + $0x1bc8] sm:$0xff]  ;;  %v968_v48 = vld [vmem:[#allocation5 + $0x1b58] sm:$0xff] }
 0x1b5   :  { %v7258_v4 = vpop.f32.mrb[2].mxu0  ;;  %5499 = vmatprep.subr.bf16.mxu1 %v5498_v53  ;;  %v5390_v53 = vpack.c.bf16 %v982_v47, %v966_v46  ;;  %v5518_v59 = vpack.c.bf16 %v984_v49, %v968_v48  ;;  %v1109_v46 = vld [vmem:[#allocation5 + $0x1fc0] sm:$0xff]  ;;  %v1095_v47 = vld [vmem:[#allocation5 + $0x1f50] sm:$0xff] }
 0x1b6   :  { %v7260_v9 = vpop.f32.mrb[2].mxu1  ;;  %v7262_v10 = vpop.f32.mrb[3].mxu0  ;;  %v1111_v49 = vld [vmem:[#allocation5 + $0x1fd0] sm:$0xff]  ;;  %v5408_v55 = vpack.c.bf16 %v1109_v46, %v1093_v45  ;;  %v234_v45 = vld [vmem:[#allocation5 + $0x468] sm:$0xff] }
 0x1b7   :  { %v7264_v12 = vpop.f32.mrb[3].mxu1  ;;  %5373 = vmatpush1.bf16.msra.mxu0 %v5372_v62  ;;  %v998_v62 = vld [vmem:[#allocation5 + $0x1c48] sm:$0xff]  ;;  %v5536_v56 = vpack.c.bf16 %v1111_v49, %v1095_v47  ;;  %v252_v49 = vld [vmem:[#allocation5 + $0x4f8] sm:$0xff] }
 0x1b8   :  { %5501 = vmatpush1.bf16.msra.mxu1 %v5500_v63  ;;  %5375 = vmatprep.subr.bf16.mxu0 %v5374_v0  ;;  %v1014_v63 = vld [vmem:[#allocation5 + $0x1cc8] sm:$0xff]  ;;  %v1000_v0 = vld [vmem:[#allocation5 + $0x1c58] sm:$0xff] }
 0x1b9   :  { %5503 = vmatprep.subr.bf16.mxu1 %v5502_v5  ;;  %v5394_v5 = vpack.c.bf16 %v1014_v63, %v998_v62  ;;  %v5522_v11 = vpack.c.bf16 %v1016_v1, %v1000_v0  ;;  %v121_v62 = vld [vmem:[#allocation5 + $0xe0] sm:$0xff]  ;;  %v107_v0 = vld [vmem:[#allocation5 + $0x70] sm:$0xff]  ;;  %v250_v46 = vld [vmem:[#allocation5 + $0x4e8] sm:$0xff] }
 0x1ba   :  { %v123_v1 = vld [vmem:[#allocation5 + $0xf0] sm:$0xff]  ;;  %v6968_v47 = vld [vmem:[#allocation2 + $0x8] sm:$0xff] }
 0x1bb   :  { %5377 = vmatpush1.bf16.msra.mxu0 %v5376_v17  ;;  %v1030_v17 = vld [vmem:[#allocation5 + $0x1d48] sm:$0xff]  ;;  %v5668_v8 = vpack.c.bf16 %v123_v1, %v107_v0  ;;  %v268_v0 = vld [vmem:[#allocation5 + $0x578] sm:$0xff] }
 0x1bc   :  { %5505 = vmatpush1.bf16.msra.mxu1 %v5504_v14  ;;  %5379 = vmatprep.subr.bf16.mxu0 %v5378_v15  ;;  %v1046_v14 = vld [vmem:[#allocation5 + $0x1dc8] sm:$0xff]  ;;  %v1032_v15 = vld [vmem:[#allocation5 + $0x1d58] sm:$0xff] }
 0x1bd   :  { %5507 = vmatprep.subr.bf16.mxu1 %v5506_v20  ;;  %v5398_v20 = vpack.c.bf16 %v1046_v14, %v1030_v17  ;;  %v5526_v24 = vpack.c.bf16 %v1048_v18, %v1032_v15  ;;  %v139_v17 = vld [vmem:[#allocation5 + $0x170] sm:$0xff]  ;;  %v170_v18 = vld [vmem:[#allocation5 + $0x268] sm:$0xff]  ;;  %v284_v1 = vld [vmem:[#allocation5 + $0x5f8] sm:$0xff] }
 0x1be   :  { %v155_v15 = vld [vmem:[#allocation5 + $0x1f0] sm:$0xff] }
 0x1bf   :  { %5381 = vmatpush1.bf16.msra.mxu0 %v5380_v27  ;;  %v1062_v27 = vld [vmem:[#allocation5 + $0x1e48] sm:$0xff]  ;;  %v5672_v25 = vpack.c.bf16 %v155_v15, %v139_v17  ;;  %v300_v15 = vld [vmem:[#allocation5 + $0x678] sm:$0xff] }
 0x1c0   :  { %5509 = vmatpush1.bf16.msra.mxu1 %v5508_v26  ;;  %5383 = vmatprep.subr.bf16.mxu0 %v5382_v28  ;;  %v1078_v26 = vld [vmem:[#allocation5 + $0x1ec8] sm:$0xff]  ;;  %v1064_v28 = vld [vmem:[#allocation5 + $0x1e58] sm:$0xff] }
 0x1c1   :  { %5511 = vmatprep.subr.bf16.mxu1 %v5510_v32  ;;  %v5402_v32 = vpack.c.bf16 %v1078_v26, %v1062_v27  ;;  %v5530_v36 = vpack.c.bf16 %v1080_v29, %v1064_v28  ;;  %v169_v26 = vld [vmem:[#allocation5 + $0x260] sm:$0xff]  ;;  %v171_v29 = vld [vmem:[#allocation5 + $0x270] sm:$0xff]  ;;  %v298_v17 = vld [vmem:[#allocation5 + $0x668] sm:$0xff] }
 0x1c2   :  { %v185_v28 = vld [vmem:[#allocation5 + $0x2e0] sm:$0xff] }
 0x1c3   :  { %5385 = vmatpush1.bf16.msra.mxu0 %v5384_v38  ;;  %v1094_v38 = vld [vmem:[#allocation5 + $0x1f48] sm:$0xff]  ;;  %v5548_v37 = vpack.c.bf16 %v185_v28, %v169_v26  ;;  %v332_v28 = vld [vmem:[#allocation5 + $0x778] sm:$0xff] }
 0x1c4   :  { %5513 = vmatpush1.bf16.msra.mxu1 %v5512_v39  ;;  %5387 = vmatprep.subr.bf16.mxu0 %v5386_v40  ;;  %v1110_v39 = vld [vmem:[#allocation5 + $0x1fc8] sm:$0xff]  ;;  %v1096_v40 = vld [vmem:[#allocation5 + $0x1f58] sm:$0xff] }
 0x1c5   :  { %5515 = vmatprep.subr.bf16.mxu1 %v5514_v44  ;;  %v5406_v44 = vpack.c.bf16 %v1110_v39, %v1094_v38  ;;  %v5534_v48 = vpack.c.bf16 %v1112_v41, %v1096_v40  ;;  %v201_v40 = vld [vmem:[#allocation5 + $0x360] sm:$0xff]  ;;  %v346_v26 = vld [vmem:[#allocation5 + $0x7e8] sm:$0xff] }
 0x1c6   :  { %v217_v41 = vld [vmem:[#allocation5 + $0x3e0] sm:$0xff] }
 0x1c7   :  { %5389 = vmatpush1.bf16.msra.mxu0 %v5388_v50  ;;  %v106_v50 = vld [vmem:[#allocation5 + $0x68] sm:$0xff] }
 0x1c8   :  { %5517 = vmatpush1.bf16.msra.mxu1 %v5516_v51  ;;  %5391 = vmatprep.subr.bf16.mxu0 %v5390_v53  ;;  %v122_v51 = vld [vmem:[#allocation5 + $0xe8] sm:$0xff]  ;;  %v108_v53 = vld [vmem:[#allocation5 + $0x78] sm:$0xff] }
 0x1c9   :  { %5519 = vmatprep.subr.bf16.mxu1 %v5518_v59  ;;  %v5538_v59 = vpack.c.bf16 %v122_v51, %v106_v50  ;;  %v5666_v63 = vpack.c.bf16 %v124_v54, %v108_v53  ;;  %v5552_v50 = vpack.c.bf16 %v217_v41, %v201_v40  ;;  %v5554_v53 = vpack.c.bf16 %v250_v46, %v234_v45  ;;  %v233_v54 = vld [vmem:[#allocation5 + $0x460] sm:$0xff]  ;;  %v364_v40 = vld [vmem:[#allocation5 + $0x878] sm:$0xff] }
 0x1ca   :  { %v380_v41 = vld [vmem:[#allocation5 + $0x8f8] sm:$0xff]  ;;  %v361_v45 = vld [vmem:[#allocation5 + $0x860] sm:$0xff] }
 0x1cb   :  { %5393 = vmatpush1.bf16.msra.mxu0 %v5392_v2  ;;  %v138_v2 = vld [vmem:[#allocation5 + $0x168] sm:$0xff]  ;;  %v377_v46 = vld [vmem:[#allocation5 + $0x8e0] sm:$0xff] }
 0x1cc   :  { %5521 = vmatpush1.bf16.msra.mxu1 %v5520_v3  ;;  %5395 = vmatprep.subr.bf16.mxu0 %v5394_v5  ;;  %v154_v3 = vld [vmem:[#allocation5 + $0x1e8] sm:$0xff]  ;;  %v5540_v5 = vpack.c.bf16 %v121_v62, %v105_v60  ;;  %v251_v60 = vld [vmem:[#allocation5 + $0x4f0] sm:$0xff] }
 0x1cd   :  { %5523 = vmatprep.subr.bf16.mxu1 %v5522_v11  ;;  %v137_v11 = vld [vmem:[#allocation5 + $0x160] sm:$0xff]  ;;  %v5542_v14 = vpack.c.bf16 %v154_v3, %v138_v2  ;;  %v266_v62 = vld [vmem:[#allocation5 + $0x568] sm:$0xff] }
 0x1ce   :  { %v5544_v23 = vpack.c.bf16 %v153_v13, %v137_v11  ;;  %v5686_v11 = vpack.c.bf16 %v284_v1, %v268_v0  ;;  %v283_v13 = vld [vmem:[#allocation5 + $0x5f0] sm:$0xff] }
 0x1cf   :  { %5397 = vmatpush1.bf16.msra.mxu0 %v5396_v19  ;;  %v186_v19 = vld [vmem:[#allocation5 + $0x2e8] sm:$0xff]  ;;  %v411_v1 = vld [vmem:[#allocation5 + $0x9f0] sm:$0xff] }
 0x1d0   :  { %5525 = vmatpush1.bf16.msra.mxu1 %v5524_v16  ;;  %5399 = vmatprep.subr.bf16.mxu0 %v5398_v20  ;;  %v6965_v16 = vld [vmem:[#allocation2 + $0x10] sm:$0xff]  ;;  %v5670_v20 = vpack.c.bf16 %v156_v7, %v140_v6  ;;  %v5546_v27 = vpack.c.bf16 %v186_v19, %v170_v18  ;;  %v265_v6 = vld [vmem:[#allocation5 + $0x560] sm:$0xff]  ;;  %v316_v18 = vld [vmem:[#allocation5 + $0x6f8] sm:$0xff] }
 0x1d1   :  { %5527 = vmatprep.subr.bf16.mxu1 %v5526_v24  ;;  %v6966_v24 = vld [vmem:[#allocation2 + $0x38] sm:$0xff]  ;;  %v281_v7 = vld [vmem:[#allocation5 + $0x5e0] sm:$0xff] }
 0x1d2   :  { %v5560_v19 = vpack.c.bf16 %v281_v7, %v265_v6  ;;  %v444_v6 = vld [vmem:[#allocation5 + $0xaf8] sm:$0xff] }
 0x1d3   :  { %5401 = vmatpush1.bf16.msra.mxu0 %v5400_v30  ;;  %v5674_v30 = vpack.c.bf16 %v188_v22, %v172_v21  ;;  %v297_v21 = vld [vmem:[#allocation5 + $0x660] sm:$0xff] }
 0x1d4   :  { %5529 = vmatpush1.bf16.msra.mxu1 %v5528_v31  ;;  %5403 = vmatprep.subr.bf16.mxu0 %v5402_v32  ;;  %v187_v31 = vld [vmem:[#allocation5 + $0x2f0] sm:$0xff]  ;;  %v202_v32 = vld [vmem:[#allocation5 + $0x368] sm:$0xff]  ;;  %v313_v22 = vld [vmem:[#allocation5 + $0x6e0] sm:$0xff] }
 0x1d5   :  { %5531 = vmatprep.subr.bf16.mxu1 %v5530_v36  ;;  %v220_v36 = vld [vmem:[#allocation5 + $0x3f8] sm:$0xff]  ;;  %v5676_v38 = vpack.c.bf16 %v187_v31, %v171_v29  ;;  %v5550_v39 = vpack.c.bf16 %v218_v33, %v202_v32  ;;  %v329_v33 = vld [vmem:[#allocation5 + $0x760] sm:$0xff] }
 0x1d6   :  { %v348_v29 = vld [vmem:[#allocation5 + $0x7f8] sm:$0xff] }
 0x1d7   :  { %5405 = vmatpush1.bf16.msra.mxu0 %v5404_v42  ;;  %v203_v42 = vld [vmem:[#allocation5 + $0x370] sm:$0xff] }
 0x1d8   :  { %5533 = vmatpush1.bf16.msra.mxu1 %v5532_v43  ;;  %5407 = vmatprep.subr.bf16.mxu0 %v5406_v44  ;;  %v5678_v43 = vpack.c.bf16 %v220_v36, %v204_v35  ;;  %v219_v44 = vld [vmem:[#allocation5 + $0x3f0] sm:$0xff]  ;;  %v5694_v36 = vpack.c.bf16 %v348_v29, %v332_v28 }
 0x1d9   :  { %5535 = vmatprep.subr.bf16.mxu1 %v5534_v48  ;;  %v236_v48 = vld [vmem:[#allocation5 + $0x478] sm:$0xff]  ;;  %v5680_v51 = vpack.c.bf16 %v219_v44, %v203_v42  ;;  %v331_v35 = vld [vmem:[#allocation5 + $0x770] sm:$0xff] }
 0x1da   :  { %v475_v29 = vld [vmem:[#allocation5 + $0xbf0] sm:$0xff] }
 0x1db   :  { %5409 = vmatpush1.bf16.msra.mxu0 %v5408_v55  ;;  %v249_v55 = vld [vmem:[#allocation5 + $0x4e0] sm:$0xff] }
 0x1dc   :  { %5537 = vmatpush1.bf16.msra.mxu1 %v5536_v56  ;;  %5539 = vmatprep.subr.bf16.mxu0 %v5538_v59  ;;  %v235_v56 = vld [vmem:[#allocation5 + $0x470] sm:$0xff]  ;;  %v5682_v59 = vpack.c.bf16 %v252_v49, %v236_v48  ;;  %v5556_v2 = vpack.c.bf16 %v249_v55, %v233_v54  ;;  %v5698_v48 = vpack.c.bf16 %v380_v41, %v364_v40  ;;  %v412_v54 = vld [vmem:[#allocation5 + $0x9f8] sm:$0xff] }
 0x1dd   :  { %5667 = vmatprep.subr.bf16.mxu1 %v5666_v63  ;;  %v282_v63 = vld [vmem:[#allocation5 + $0x5e8] sm:$0xff]  ;;  %v5684_v3 = vpack.c.bf16 %v251_v60, %v235_v56  ;;  %v379_v49 = vld [vmem:[#allocation5 + $0x8f0] sm:$0xff]  ;;  %v5572_v55 = vpack.c.bf16 %v377_v46, %v361_v45  ;;  %v393_v60 = vld [vmem:[#allocation5 + $0x960] sm:$0xff] }
 0x1de   :  { %1959 = vmatmul.mubr.f32.vlgmr.msra.gmra.mrb[8].mxu0 %v6965_v16  ;;  %v507_v41 = vld [vmem:[#allocation5 + $0xcf0] sm:$0xff]  ;;  %v540_v45 = vld [vmem:[#allocation5 + $0xdf8] sm:$0xff] }
 0x1df   :  { %2113 = vmatmul.mubr.f32.vlgmr.msra.gmra.mrb[8].mxu1 %v6965_v16  ;;  %5541 = vmatpush1.bf16.msra.mxu0 %v5540_v5  ;;  %v5558_v5 = vpack.c.bf16 %v282_v63, %v266_v62  ;;  %v409_v62 = vld [vmem:[#allocation5 + $0x9e0] sm:$0xff]  ;;  %v395_v63 = vld [vmem:[#allocation5 + $0x970] sm:$0xff] }
 0x1e0   :  { %5669 = vmatpush1.bf16.msra.mxu1 %v5668_v8  ;;  %1964 = vmatprep.mubr.f32.mxu0 %v6966_v24  ;;  %v267_v8 = vld [vmem:[#allocation5 + $0x570] sm:$0xff]  ;;  %v5576_v7 = vpack.c.bf16 %v409_v62, %v393_v60  ;;  %v572_v60 = vld [vmem:[#allocation5 + $0xef8] sm:$0xff] }
 0x1e1   :  { %2118 = vmatprep.mubr.f32.mxu1 %v6966_v24  ;;  %5543 = vmatprep.subr.bf16.mxu0 %v5542_v14  ;;  %v314_v14 = vld [vmem:[#allocation5 + $0x6e8] sm:$0xff]  ;;  %v5688_v16 = vpack.c.bf16 %v283_v13, %v267_v8  ;;  %v5690_v24 = vpack.c.bf16 %v316_v18, %v300_v15  ;;  %v5704_v8 = vpack.c.bf16 %v411_v1, %v395_v63  ;;  %v425_v13 = vld [vmem:[#allocation5 + $0xa60] sm:$0xff]  ;;  %v443_v18 = vld [vmem:[#allocation5 + $0xaf0] sm:$0xff] }
 0x1e2   :  { %1965 = vmatmul.mubr.f32.gmra.mrb[10].mxu0 %v6967_v34  ;;  %5671 = vmatprep.subr.bf16.mxu1 %v5670_v20  ;;  %v5562_v20 = vpack.c.bf16 %v314_v14, %v298_v17  ;;  %v441_v17 = vld [vmem:[#allocation5 + $0xae0] sm:$0xff]  ;;  %v427_v14 = vld [vmem:[#allocation5 + $0xa70] sm:$0xff] }
 0x1e3   :  { %2119 = vmatmul.mubr.f32.gmra.mrb[10].mxu1 %v6967_v34  ;;  %5545 = vmatpush1.bf16.msra.mxu0 %v5544_v23  ;;  %v299_v23 = vld [vmem:[#allocation5 + $0x670] sm:$0xff]  ;;  %v345_v34 = vld [vmem:[#allocation5 + $0x7e0] sm:$0xff] }
 0x1e4   :  { %5673 = vmatpush1.bf16.msra.mxu1 %v5672_v25  ;;  %5547 = vmatprep.subr.bf16.mxu0 %v5546_v27  ;;  %v315_v25 = vld [vmem:[#allocation5 + $0x6f0] sm:$0xff]  ;;  %v330_v27 = vld [vmem:[#allocation5 + $0x768] sm:$0xff]  ;;  %v5568_v42 = vpack.c.bf16 %v345_v34, %v329_v33  ;;  %v508_v33 = vld [vmem:[#allocation5 + $0xcf8] sm:$0xff] }
 0x1e5   :  { %5675 = vmatprep.subr.bf16.mxu1 %v5674_v30  ;;  %2189 = vmatprep.mubr.f32.mxu0 %v6968_v47  ;;  %v5564_v30 = vpack.c.bf16 %v313_v22, %v297_v21  ;;  %v5692_v31 = vpack.c.bf16 %v315_v25, %v299_v23  ;;  %v5566_v32 = vpack.c.bf16 %v346_v26, %v330_v27  ;;  %v476_v21 = vld [vmem:[#allocation5 + $0xbf8] sm:$0xff]  ;;  %v457_v25 = vld [vmem:[#allocation5 + $0xb60] sm:$0xff]  ;;  %v459_v26 = vld [vmem:[#allocation5 + $0xb70] sm:$0xff] }
 0x1e6   :  { %2343 = vmatprep.mubr.f32.mxu1 %v6968_v47  ;;  %v363_v47 = vld [vmem:[#allocation5 + $0x870] sm:$0xff]  ;;  %v5580_v22 = vpack.c.bf16 %v441_v17, %v425_v13  ;;  %v5708_v23 = vpack.c.bf16 %v443_v18, %v427_v14  ;;  %v473_v27 = vld [vmem:[#allocation5 + $0xbe0] sm:$0xff]  ;;  %v604_v13 = vld [vmem:[#allocation5 + $0xff8] sm:$0xff] }
 0x1e7   :  { %5549 = vmatpush1.bf16.msra.mxu0 %v5548_v37  ;;  %v347_v37 = vld [vmem:[#allocation5 + $0x7f0] sm:$0xff]  ;;  %v5700_v56 = vpack.c.bf16 %v379_v49, %v363_v47  ;;  %v5584_v34 = vpack.c.bf16 %v473_v27, %v457_v25  ;;  %v521_v49 = vld [vmem:[#allocation5 + $0xd60] sm:$0xff]  ;;  %v636_v25 = vld [vmem:[#allocation5 + $0x10f8] sm:$0xff] }
 0x1e8   :  { %5677 = vmatpush1.bf16.msra.mxu1 %v5676_v38  ;;  %5551 = vmatprep.subr.bf16.mxu0 %v5550_v39  ;;  %v362_v38 = vld [vmem:[#allocation5 + $0x868] sm:$0xff]  ;;  %v553_v1 = vld [vmem:[#allocation5 + $0xe60] sm:$0xff] }
 0x1e9   :  { %5679 = vmatprep.subr.bf16.mxu1 %v5678_v43  ;;  %v378_v39 = vld [vmem:[#allocation5 + $0x8e8] sm:$0xff]  ;;  %v5696_v43 = vpack.c.bf16 %v347_v37, %v331_v35  ;;  %v5712_v35 = vpack.c.bf16 %v475_v29, %v459_v26  ;;  %v489_v37 = vld [vmem:[#allocation5 + $0xc60] sm:$0xff] }
 0x1ea   :  { %v5570_v44 = vpack.c.bf16 %v378_v39, %v362_v38  ;;  %v505_v38 = vld [vmem:[#allocation5 + $0xce0] sm:$0xff]  ;;  %v491_v39 = vld [vmem:[#allocation5 + $0xc70] sm:$0xff] }
 0x1eb   :  { %5553 = vmatpush1.bf16.msra.mxu0 %v5552_v50  ;;  %v394_v50 = vld [vmem:[#allocation5 + $0x968] sm:$0xff]  ;;  %v5588_v46 = vpack.c.bf16 %v505_v38, %v489_v37  ;;  %v5716_v47 = vpack.c.bf16 %v507_v41, %v491_v39  ;;  %v585_v18 = vld [vmem:[#allocation5 + $0xf60] sm:$0xff]  ;;  %v668_v37 = vld [vmem:[#allocation5 + $0x11f8] sm:$0xff] }
 0x1ec   :  { %5681 = vmatpush1.bf16.msra.mxu1 %v5680_v51  ;;  %5555 = vmatprep.subr.bf16.mxu0 %v5554_v53  ;;  %v410_v51 = vld [vmem:[#allocation5 + $0x9e8] sm:$0xff]  ;;  %v396_v53 = vld [vmem:[#allocation5 + $0x978] sm:$0xff]  ;;  %v617_v29 = vld [vmem:[#allocation5 + $0x1060] sm:$0xff] }
 0x1ed   :  { %5683 = vmatprep.subr.bf16.mxu1 %v5682_v59  ;;  %v5574_v59 = vpack.c.bf16 %v410_v51, %v394_v50  ;;  %v5702_v0 = vpack.c.bf16 %v412_v54, %v396_v53  ;;  %v537_v50 = vld [vmem:[#allocation5 + $0xde0] sm:$0xff]  ;;  %v523_v51 = vld [vmem:[#allocation5 + $0xd70] sm:$0xff] }
 0x1ee   :  { %v539_v54 = vld [vmem:[#allocation5 + $0xdf0] sm:$0xff]  ;;  %v5592_v62 = vpack.c.bf16 %v537_v50, %v521_v49  ;;  %v649_v41 = vld [vmem:[#allocation5 + $0x1160] sm:$0xff]  ;;  %v684_v49 = vld [vmem:[#allocation5 + $0x1278] sm:$0xff] }
 0x1ef   :  { %5557 = vmatpush1.bf16.msra.mxu0 %v5556_v2  ;;  %v426_v2 = vld [vmem:[#allocation5 + $0xa68] sm:$0xff]  ;;  %v5720_v63 = vpack.c.bf16 %v539_v54, %v523_v51  ;;  %v700_v50 = vld [vmem:[#allocation5 + $0x12f8] sm:$0xff] }
 0x1f0   :  { %5685 = vmatpush1.bf16.msra.mxu1 %v5684_v3  ;;  %5559 = vmatprep.subr.bf16.mxu0 %v5558_v5  ;;  %v442_v3 = vld [vmem:[#allocation5 + $0xae8] sm:$0xff]  ;;  %v428_v5 = vld [vmem:[#allocation5 + $0xa78] sm:$0xff] }
 0x1f1   :  { %5687 = vmatprep.subr.bf16.mxu1 %v5686_v11  ;;  %v5578_v11 = vpack.c.bf16 %v442_v3, %v426_v2  ;;  %v5706_v15 = vpack.c.bf16 %v444_v6, %v428_v5  ;;  %v569_v2 = vld [vmem:[#allocation5 + $0xee0] sm:$0xff]  ;;  %v555_v3 = vld [vmem:[#allocation5 + $0xe70] sm:$0xff] }
 0x1f2   :  { %v571_v6 = vld [vmem:[#allocation5 + $0xef0] sm:$0xff]  ;;  %v5596_v17 = vpack.c.bf16 %v569_v2, %v553_v1  ;;  %v6970_v1 = vld [vmem:[#allocation2 + $0x28] sm:$0xff]  ;;  %v716_v2 = vld [vmem:[#allocation5 + $0x1378] sm:$0xff] }
 0x1f3   :  { %5561 = vmatpush1.bf16.msra.mxu0 %v5560_v19  ;;  %v458_v19 = vld [vmem:[#allocation5 + $0xb68] sm:$0xff]  ;;  %v5724_v14 = vpack.c.bf16 %v571_v6, %v555_v3  ;;  %v732_v3 = vld [vmem:[#allocation5 + $0x13f8] sm:$0xff] }
 0x1f4   :  { %5689 = vmatpush1.bf16.msra.mxu1 %v5688_v16  ;;  %5563 = vmatprep.subr.bf16.mxu0 %v5562_v20  ;;  %v474_v16 = vld [vmem:[#allocation5 + $0xbe8] sm:$0xff]  ;;  %v460_v20 = vld [vmem:[#allocation5 + $0xb78] sm:$0xff] }
 0x1f5   :  { %5691 = vmatprep.subr.bf16.mxu1 %v5690_v24  ;;  %v5582_v24 = vpack.c.bf16 %v474_v16, %v458_v19  ;;  %v5710_v28 = vpack.c.bf16 %v476_v21, %v460_v20  ;;  %v601_v19 = vld [vmem:[#allocation5 + $0xfe0] sm:$0xff]  ;;  %v587_v16 = vld [vmem:[#allocation5 + $0xf70] sm:$0xff] }
 0x1f6   :  { %v603_v21 = vld [vmem:[#allocation5 + $0xff0] sm:$0xff]  ;;  %v5600_v27 = vpack.c.bf16 %v601_v19, %v585_v18  ;;  %v746_v18 = vld [vmem:[#allocation5 + $0x1468] sm:$0xff] }
 0x1f7   :  { %5565 = vmatpush1.bf16.msra.mxu0 %v5564_v30  ;;  %v490_v30 = vld [vmem:[#allocation5 + $0xc68] sm:$0xff]  ;;  %v5728_v26 = vpack.c.bf16 %v603_v21, %v587_v16  ;;  %v6972_v16 = vld [vmem:[#allocation2 + $0x18] sm:$0xff] }
 0x1f8   :  { %5693 = vmatpush1.bf16.msra.mxu1 %v5692_v31  ;;  %5567 = vmatprep.subr.bf16.mxu0 %v5566_v32  ;;  %v506_v31 = vld [vmem:[#allocation5 + $0xce8] sm:$0xff]  ;;  %v492_v32 = vld [vmem:[#allocation5 + $0xc78] sm:$0xff] }
 0x1f9   :  { %5695 = vmatprep.subr.bf16.mxu1 %v5694_v36  ;;  %v5586_v36 = vpack.c.bf16 %v506_v31, %v490_v30  ;;  %v5714_v40 = vpack.c.bf16 %v508_v33, %v492_v32  ;;  %v633_v30 = vld [vmem:[#allocation5 + $0x10e0] sm:$0xff]  ;;  %v619_v31 = vld [vmem:[#allocation5 + $0x1070] sm:$0xff]  ;;  %v762_v19 = vld [vmem:[#allocation5 + $0x14e8] sm:$0xff] }
 0x1fa   :  { %v635_v33 = vld [vmem:[#allocation5 + $0x10f0] sm:$0xff]  ;;  %v5604_v38 = vpack.c.bf16 %v633_v30, %v617_v29  ;;  %v764_v21 = vld [vmem:[#allocation5 + $0x14f8] sm:$0xff]  ;;  %v778_v30 = vld [vmem:[#allocation5 + $0x1568] sm:$0xff] }
 0x1fb   :  { %5569 = vmatpush1.bf16.msra.mxu0 %v5568_v42  ;;  %v522_v42 = vld [vmem:[#allocation5 + $0xd68] sm:$0xff]  ;;  %v5732_v39 = vpack.c.bf16 %v635_v33, %v619_v31  ;;  %v763_v29 = vld [vmem:[#allocation5 + $0x14f0] sm:$0xff]  ;;  %v796_v33 = vld [vmem:[#allocation5 + $0x15f8] sm:$0xff] }
 0x1fc   :  { %5697 = vmatpush1.bf16.msra.mxu1 %v5696_v43  ;;  %5571 = vmatprep.subr.bf16.mxu0 %v5570_v44  ;;  %v538_v43 = vld [vmem:[#allocation5 + $0xde8] sm:$0xff]  ;;  %v524_v44 = vld [vmem:[#allocation5 + $0xd78] sm:$0xff] }
 0x1fd   :  { %5699 = vmatprep.subr.bf16.mxu1 %v5698_v48  ;;  %v5590_v48 = vpack.c.bf16 %v538_v43, %v522_v42  ;;  %v5718_v53 = vpack.c.bf16 %v540_v45, %v524_v44  ;;  %v665_v42 = vld [vmem:[#allocation5 + $0x11e0] sm:$0xff]  ;;  %v651_v43 = vld [vmem:[#allocation5 + $0x1170] sm:$0xff]  ;;  %v794_v31 = vld [vmem:[#allocation5 + $0x15e8] sm:$0xff] }
 0x1fe   :  { %v667_v45 = vld [vmem:[#allocation5 + $0x11f0] sm:$0xff]  ;;  %v5608_v51 = vpack.c.bf16 %v665_v42, %v649_v41  ;;  %v810_v42 = vld [vmem:[#allocation5 + $0x1668] sm:$0xff] }
 0x1ff   :  { %5573 = vmatpush1.bf16.msra.mxu0 %v5572_v55  ;;  %v554_v55 = vld [vmem:[#allocation5 + $0xe68] sm:$0xff]  ;;  %v795_v41 = vld [vmem:[#allocation5 + $0x15f0] sm:$0xff] }
 0x200   :  { %5701 = vmatpush1.bf16.msra.mxu1 %v5700_v56  ;;  %5575 = vmatprep.subr.bf16.mxu0 %v5574_v59  ;;  %v570_v56 = vld [vmem:[#allocation5 + $0xee8] sm:$0xff]  ;;  %v556_v59 = vld [vmem:[#allocation5 + $0xe78] sm:$0xff] }
 0x201   :  { %5703 = vmatprep.subr.bf16.mxu1 %v5702_v0  ;;  %v5594_v0 = vpack.c.bf16 %v570_v56, %v554_v55  ;;  %v5722_v5 = vpack.c.bf16 %v572_v60, %v556_v59  ;;  %v681_v55 = vld [vmem:[#allocation5 + $0x1260] sm:$0xff]  ;;  %v683_v59 = vld [vmem:[#allocation5 + $0x1270] sm:$0xff]  ;;  %v5738_v60 = vpack.c.bf16 %v700_v50, %v684_v49 }
 0x202   :  { %v697_v56 = vld [vmem:[#allocation5 + $0x12e0] sm:$0xff] }
 0x203   :  { %5577 = vmatpush1.bf16.msra.mxu0 %v5576_v7  ;;  %v586_v7 = vld [vmem:[#allocation5 + $0xf68] sm:$0xff]  ;;  %v5612_v6 = vpack.c.bf16 %v697_v56, %v681_v55  ;;  %v809_v49 = vld [vmem:[#allocation5 + $0x1660] sm:$0xff]  ;;  %v827_v55 = vld [vmem:[#allocation5 + $0x16f0] sm:$0xff] }
 0x204   :  { %5705 = vmatpush1.bf16.msra.mxu1 %v5704_v8  ;;  %5579 = vmatprep.subr.bf16.mxu0 %v5578_v11  ;;  %v602_v8 = vld [vmem:[#allocation5 + $0xfe8] sm:$0xff]  ;;  %v588_v11 = vld [vmem:[#allocation5 + $0xf78] sm:$0xff]  ;;  %v825_v50 = vld [vmem:[#allocation5 + $0x16e0] sm:$0xff] }
 0x205   :  { %5707 = vmatprep.subr.bf16.mxu1 %v5706_v15  ;;  %v5598_v15 = vpack.c.bf16 %v602_v8, %v586_v7  ;;  %v5726_v20 = vpack.c.bf16 %v604_v13, %v588_v11  ;;  %v713_v11 = vld [vmem:[#allocation5 + $0x1360] sm:$0xff]  ;;  %v842_v56 = vld [vmem:[#allocation5 + $0x1768] sm:$0xff] }
 0x206   :  { %v729_v13 = vld [vmem:[#allocation5 + $0x13e0] sm:$0xff] }
 0x207   :  { %5581 = vmatpush1.bf16.msra.mxu0 %v5580_v22  ;;  %v618_v22 = vld [vmem:[#allocation5 + $0x1068] sm:$0xff] }
 0x208   :  { %5709 = vmatpush1.bf16.msra.mxu1 %v5708_v23  ;;  %5583 = vmatprep.subr.bf16.mxu0 %v5582_v24  ;;  %v634_v23 = vld [vmem:[#allocation5 + $0x10e8] sm:$0xff]  ;;  %v620_v24 = vld [vmem:[#allocation5 + $0x1078] sm:$0xff] }
 0x209   :  { %5711 = vmatprep.subr.bf16.mxu1 %v5710_v28  ;;  %v5602_v28 = vpack.c.bf16 %v634_v23, %v618_v22  ;;  %v5730_v32 = vpack.c.bf16 %v636_v25, %v620_v24  ;;  %v5616_v22 = vpack.c.bf16 %v729_v13, %v713_v11  ;;  %v5618_v24 = vpack.c.bf16 %v762_v19, %v746_v18  ;;  %v745_v25 = vld [vmem:[#allocation5 + $0x1460] sm:$0xff] }
 0x20b   :  { %5585 = vmatpush1.bf16.msra.mxu0 %v5584_v34  ;;  %v650_v34 = vld [vmem:[#allocation5 + $0x1168] sm:$0xff] }
 0x20c   :  { %5713 = vmatpush1.bf16.msra.mxu1 %v5712_v35  ;;  %5587 = vmatprep.subr.bf16.mxu0 %v5586_v36  ;;  %v666_v35 = vld [vmem:[#allocation5 + $0x11e8] sm:$0xff]  ;;  %v652_v36 = vld [vmem:[#allocation5 + $0x1178] sm:$0xff] }
 0x20d   :  { %5715 = vmatprep.subr.bf16.mxu1 %v5714_v40  ;;  %v5606_v40 = vpack.c.bf16 %v666_v35, %v650_v34  ;;  %v5734_v44 = vpack.c.bf16 %v668_v37, %v652_v36  ;;  %v5622_v36 = vpack.c.bf16 %v794_v31, %v778_v30  ;;  %v777_v37 = vld [vmem:[#allocation5 + $0x1560] sm:$0xff]  ;;  %v906_v30 = vld [vmem:[#allocation5 + $0x1968] sm:$0xff] }
 0x20e   :  { %v922_v31 = vld [vmem:[#allocation5 + $0x19e8] sm:$0xff] }
 0x20f   :  { %5589 = vmatpush1.bf16.msra.mxu0 %v5588_v46  ;;  %v682_v46 = vld [vmem:[#allocation5 + $0x1268] sm:$0xff] }
 0x210   :  { %5717 = vmatpush1.bf16.msra.mxu1 %v5716_v47  ;;  %5591 = vmatprep.subr.bf16.mxu0 %v5590_v48  ;;  %v698_v47 = vld [vmem:[#allocation5 + $0x12e8] sm:$0xff]  ;;  %v6969_v48 = vld [vmem:[#allocation2] sm:$0xff] }
 0x211   :  { %5719 = vmatprep.subr.bf16.mxu1 %v5718_v53  ;;  %v5736_v53 = vpack.c.bf16 %v667_v45, %v651_v43  ;;  %v5610_v54 = vpack.c.bf16 %v698_v47, %v682_v46  ;;  %v826_v43 = vld [vmem:[#allocation5 + $0x16e8] sm:$0xff]  ;;  %v828_v45 = vld [vmem:[#allocation5 + $0x16f8] sm:$0xff] }
 0x213   :  { %5593 = vmatpush1.bf16.msra.mxu0 %v5592_v62  ;;  %v699_v62 = vld [vmem:[#allocation5 + $0x12f0] sm:$0xff] }
 0x214   :  { %5721 = vmatpush1.bf16.msra.mxu1 %v5720_v63  ;;  %5595 = vmatprep.subr.bf16.mxu0 %v5594_v0  ;;  %v714_v63 = vld [vmem:[#allocation5 + $0x1368] sm:$0xff]  ;;  %v5740_v7 = vpack.c.bf16 %v699_v62, %v683_v59 }
 0x215   :  { %5723 = vmatprep.subr.bf16.mxu1 %v5722_v5  ;;  %v730_v0 = vld [vmem:[#allocation5 + $0x13e8] sm:$0xff]  ;;  %v6971_v5 = vld [vmem:[#allocation2 + $0x20] sm:$0xff] }
 0x216   :  { %v5614_v8 = vpack.c.bf16 %v730_v0, %v714_v63  ;;  %v858_v59 = vld [vmem:[#allocation5 + $0x17e8] sm:$0xff]  ;;  %v844_v63 = vld [vmem:[#allocation5 + $0x1778] sm:$0xff] }
 0x217   :  { %5597 = vmatpush1.bf16.msra.mxu0 %v5596_v17  ;;  %v715_v17 = vld [vmem:[#allocation5 + $0x1370] sm:$0xff]  ;;  %v860_v0 = vld [vmem:[#allocation5 + $0x17f8] sm:$0xff] }
 0x218   :  { %5725 = vmatpush1.bf16.msra.mxu1 %v5724_v14  ;;  %5599 = vmatprep.subr.bf16.mxu0 %v5598_v15  ;;  %v5742_v14 = vpack.c.bf16 %v732_v3, %v716_v2  ;;  %v731_v15 = vld [vmem:[#allocation5 + $0x13f0] sm:$0xff]  ;;  %v5628_v2 = vpack.c.bf16 %v825_v50, %v809_v49  ;;  %v5758_v13 = vpack.c.bf16 %v860_v0, %v844_v63  ;;  %v937_v49 = vld [vmem:[#allocation5 + $0x1a60] sm:$0xff]  ;;  %v972_v63 = vld [vmem:[#allocation5 + $0x1b78] sm:$0xff] }
 0x219   :  { %5727 = vmatprep.subr.bf16.mxu1 %v5726_v20  ;;  %v748_v20 = vld [vmem:[#allocation5 + $0x1478] sm:$0xff]  ;;  %v5744_v23 = vpack.c.bf16 %v731_v15, %v715_v17  ;;  %v859_v17 = vld [vmem:[#allocation5 + $0x17f0] sm:$0xff]  ;;  %v890_v15 = vld [vmem:[#allocation5 + $0x18e8] sm:$0xff] }
 0x21a   :  { %v953_v50 = vld [vmem:[#allocation5 + $0x1ae0] sm:$0xff]  ;;  %v988_v0 = vld [vmem:[#allocation5 + $0x1bf8] sm:$0xff] }
 0x21b   :  { %5601 = vmatpush1.bf16.msra.mxu0 %v5600_v27  ;;  %v761_v27 = vld [vmem:[#allocation5 + $0x14e0] sm:$0xff] }
 0x21c   :  { %5729 = vmatpush1.bf16.msra.mxu1 %v5728_v26  ;;  %5603 = vmatprep.subr.bf16.mxu0 %v5602_v28  ;;  %v747_v26 = vld [vmem:[#allocation5 + $0x1470] sm:$0xff]  ;;  %v5746_v28 = vpack.c.bf16 %v764_v21, %v748_v20  ;;  %v5620_v34 = vpack.c.bf16 %v761_v27, %v745_v25  ;;  %v892_v20 = vld [vmem:[#allocation5 + $0x18f8] sm:$0xff]  ;;  %v873_v25 = vld [vmem:[#allocation5 + $0x1860] sm:$0xff] }
 0x21d   :  { %5731 = vmatprep.subr.bf16.mxu1 %v5730_v32  ;;  %v780_v32 = vld [vmem:[#allocation5 + $0x1578] sm:$0xff]  ;;  %v5748_v35 = vpack.c.bf16 %v763_v29, %v747_v26  ;;  %v889_v27 = vld [vmem:[#allocation5 + $0x18e0] sm:$0xff]  ;;  %v875_v26 = vld [vmem:[#allocation5 + $0x1870] sm:$0xff] }
 0x21e   :  { %2190 = vmatmul.mubr.f32.vlgmr.msra.gmra.mrb[12].mxu0 %v6969_v48  ;;  %v891_v29 = vld [vmem:[#allocation5 + $0x18f0] sm:$0xff] }
 0x21f   :  { %5605 = vmatpush1.bf16.msra.mxu0 %v5604_v38  ;;  %2344 = vmatmul.mubr.f32.vlgmr.msra.gmra.mrb[12].mxu1 %v6969_v48  ;;  %v793_v38 = vld [vmem:[#allocation5 + $0x15e0] sm:$0xff]  ;;  %v5626_v48 = vpack.c.bf16 %v826_v43, %v810_v42  ;;  %v938_v42 = vld [vmem:[#allocation5 + $0x1a68] sm:$0xff] }
 0x220   :  { %5733 = vmatpush1.bf16.msra.mxu1 %v5732_v39  ;;  %5607 = vmatprep.subr.bf16.mxu0 %v5606_v40  ;;  %v779_v39 = vld [vmem:[#allocation5 + $0x1570] sm:$0xff]  ;;  %v5750_v40 = vpack.c.bf16 %v796_v33, %v780_v32  ;;  %v5624_v46 = vpack.c.bf16 %v793_v38, %v777_v37  ;;  %v908_v32 = vld [vmem:[#allocation5 + $0x1978] sm:$0xff]  ;;  %v905_v37 = vld [vmem:[#allocation5 + $0x1960] sm:$0xff] }
 0x221   :  { %5735 = vmatprep.subr.bf16.mxu1 %v5734_v44  ;;  %2195 = vmatprep.mubr.f32.mxu0 %v6970_v1  ;;  %v812_v44 = vld [vmem:[#allocation5 + $0x1678] sm:$0xff]  ;;  %v5752_v47 = vpack.c.bf16 %v795_v41, %v779_v39  ;;  %v921_v38 = vld [vmem:[#allocation5 + $0x19e0] sm:$0xff]  ;;  %v907_v39 = vld [vmem:[#allocation5 + $0x1970] sm:$0xff] }
 0x222   :  { %2349 = vmatprep.mubr.f32.mxu1 %v6970_v1  ;;  %2196 = vmatmul.mubr.f32.gmra.mrb[14].mxu0 %v6971_v5  ;;  %v924_v33 = vld [vmem:[#allocation5 + $0x19f8] sm:$0xff]  ;;  %v923_v41 = vld [vmem:[#allocation5 + $0x19f0] sm:$0xff]  ;;  %v954_v43 = vld [vmem:[#allocation5 + $0x1ae8] sm:$0xff] }
 0x223   :  { %5609 = vmatpush1.bf16.msra.mxu0 %v5608_v51  ;;  %2350 = vmatmul.mubr.f32.gmra.mrb[14].mxu1 %v6971_v5  ;;  %v811_v51 = vld [vmem:[#allocation5 + $0x1670] sm:$0xff]  ;;  %v5630_v5 = vpack.c.bf16 %v858_v59, %v842_v56  ;;  %v970_v56 = vld [vmem:[#allocation5 + $0x1b68] sm:$0xff] }
 0x224   :  { %5737 = vmatpush1.bf16.msra.mxu1 %v5736_v53  ;;  %5611 = vmatprep.subr.bf16.mxu0 %v5610_v54  ;;  %v5754_v54 = vpack.c.bf16 %v828_v45, %v812_v44  ;;  %v5756_v3 = vpack.c.bf16 %v827_v55, %v811_v51  ;;  %v940_v44 = vld [vmem:[#allocation5 + $0x1a78] sm:$0xff]  ;;  %v939_v51 = vld [vmem:[#allocation5 + $0x1a70] sm:$0xff]  ;;  %v986_v59 = vld [vmem:[#allocation5 + $0x1be8] sm:$0xff] }
 0x225   :  { %5739 = vmatprep.subr.bf16.mxu1 %v5738_v60  ;;  %2266 = vmatprep.mubr.f32.mxu0 %v6972_v16  ;;  %v956_v45 = vld [vmem:[#allocation5 + $0x1af8] sm:$0xff]  ;;  %v955_v55 = vld [vmem:[#allocation5 + $0x1af0] sm:$0xff] }
 0x226   :  { %2420 = vmatprep.mubr.f32.mxu1 %v6972_v16  ;;  %v876_v16 = vld [vmem:[#allocation5 + $0x1878] sm:$0xff] }
 0x227   :  { %5613 = vmatpush1.bf16.msra.mxu0 %v5612_v6  ;;  %v841_v6 = vld [vmem:[#allocation5 + $0x1760] sm:$0xff] }
 0x228   :  { %5741 = vmatpush1.bf16.msra.mxu1 %v5740_v7  ;;  %5615 = vmatprep.subr.bf16.mxu0 %v5614_v8  ;;  %v857_v7 = vld [vmem:[#allocation5 + $0x17e0] sm:$0xff]  ;;  %v843_v8 = vld [vmem:[#allocation5 + $0x1770] sm:$0xff] }
 0x229   :  { %5743 = vmatprep.subr.bf16.mxu1 %v5742_v14  ;;  %v874_v14 = vld [vmem:[#allocation5 + $0x1868] sm:$0xff] }
 0x22b   :  { %5617 = vmatpush1.bf16.msra.mxu0 %v5616_v22  ;;  %v5632_v22 = vpack.c.bf16 %v857_v7, %v841_v6  ;;  %v969_v6 = vld [vmem:[#allocation5 + $0x1b60] sm:$0xff] }
 0x22c   :  { %5745 = vmatpush1.bf16.msra.mxu1 %v5744_v23  ;;  %5619 = vmatprep.subr.bf16.mxu0 %v5618_v24  ;;  %v5760_v23 = vpack.c.bf16 %v859_v17, %v843_v8  ;;  %v5634_v24 = vpack.c.bf16 %v890_v15, %v874_v14  ;;  %v985_v7 = vld [vmem:[#allocation5 + $0x1be0] sm:$0xff]  ;;  %v971_v8 = vld [vmem:[#allocation5 + $0x1b70] sm:$0xff]  ;;  %v1002_v14 = vld [vmem:[#allocation5 + $0x1c68] sm:$0xff] }
 0x22d   :  { %5747 = vmatprep.subr.bf16.mxu1 %v5746_v28  ;;  %v5762_v28 = vpack.c.bf16 %v892_v20, %v876_v16  ;;  %v987_v17 = vld [vmem:[#allocation5 + $0x1bf0] sm:$0xff]  ;;  %v1018_v15 = vld [vmem:[#allocation5 + $0x1ce8] sm:$0xff]  ;;  %v1004_v16 = vld [vmem:[#allocation5 + $0x1c78] sm:$0xff] }
 0x22e   :  { %v1020_v20 = vld [vmem:[#allocation5 + $0x1cf8] sm:$0xff] }
 0x22f   :  { %5621 = vmatpush1.bf16.msra.mxu0 %v5620_v34  ;;  %v5636_v34 = vpack.c.bf16 %v889_v27, %v873_v25  ;;  %v1001_v25 = vld [vmem:[#allocation5 + $0x1c60] sm:$0xff] }
 0x230   :  { %5749 = vmatpush1.bf16.msra.mxu1 %v5748_v35  ;;  %5623 = vmatprep.subr.bf16.mxu0 %v5622_v36  ;;  %v5764_v35 = vpack.c.bf16 %v891_v29, %v875_v26  ;;  %v5638_v36 = vpack.c.bf16 %v922_v31, %v906_v30  ;;  %v1017_v27 = vld [vmem:[#allocation5 + $0x1ce0] sm:$0xff]  ;;  %v1003_v26 = vld [vmem:[#allocation5 + $0x1c70] sm:$0xff]  ;;  %v1034_v30 = vld [vmem:[#allocation5 + $0x1d68] sm:$0xff] }
 0x231   :  { %v7266_v53 = vpop.f32.mrb[4].mxu0  ;;  %5751 = vmatprep.subr.bf16.mxu1 %v5750_v40  ;;  %v5766_v40 = vpack.c.bf16 %v924_v33, %v908_v32  ;;  %v1019_v29 = vld [vmem:[#allocation5 + $0x1cf0] sm:$0xff]  ;;  %v1050_v31 = vld [vmem:[#allocation5 + $0x1de8] sm:$0xff]  ;;  %v1036_v32 = vld [vmem:[#allocation5 + $0x1d78] sm:$0xff] }
 0x232   :  { %v7268_v60 = vpop.f32.mrb[4].mxu1  ;;  %v7270_v62 = vpop.f32.mrb[5].mxu0  ;;  %v1052_v33 = vld [vmem:[#allocation5 + $0x1df8] sm:$0xff] }
 0x233   :  { %v7272_v1 = vpop.f32.mrb[5].mxu1  ;;  %5625 = vmatpush1.bf16.msra.mxu0 %v5624_v46  ;;  %v5640_v46 = vpack.c.bf16 %v921_v38, %v905_v37  ;;  %v1033_v37 = vld [vmem:[#allocation5 + $0x1d60] sm:$0xff] }
 0x234   :  { %5753 = vmatpush1.bf16.msra.mxu1 %v5752_v47  ;;  %5627 = vmatprep.subr.bf16.mxu0 %v5626_v48  ;;  %v5768_v47 = vpack.c.bf16 %v923_v41, %v907_v39  ;;  %v5642_v48 = vpack.c.bf16 %v954_v43, %v938_v42  ;;  %v1049_v38 = vld [vmem:[#allocation5 + $0x1de0] sm:$0xff]  ;;  %v1035_v39 = vld [vmem:[#allocation5 + $0x1d70] sm:$0xff]  ;;  %v1066_v42 = vld [vmem:[#allocation5 + $0x1e68] sm:$0xff] }
 0x235   :  { %v7274_v11 = vpop.f32.mrb[6].mxu0  ;;  %5755 = vmatprep.subr.bf16.mxu1 %v5754_v54  ;;  %v5770_v54 = vpack.c.bf16 %v956_v45, %v940_v44  ;;  %v1051_v41 = vld [vmem:[#allocation5 + $0x1df0] sm:$0xff]  ;;  %v1082_v43 = vld [vmem:[#allocation5 + $0x1ee8] sm:$0xff]  ;;  %v1121_v44 = vlaneseq  ;;  %v1068_v45 = vld [vmem:[#allocation5 + $0x1e78] sm:$0xff] }
 0x236   :  { %v7276_v18 = vpop.f32.mrb[6].mxu1  ;;  %v7278_v19 = vpop.f32.mrb[7].mxu0 }
 0x237   :  { %v7280_v21 = vpop.f32.mrb[7].mxu1  ;;  %5629 = vmatpush1.bf16.msra.mxu0 %v5628_v2  ;;  %v5644_v2 = vpack.c.bf16 %v953_v50, %v937_v49  ;;  %v5658_v49 = vpack.c.bf16 %v1082_v43, %v1066_v42  ;;  %v1065_v50 = vld [vmem:[#allocation5 + $0x1e60] sm:$0xff]  ;;  %v2477_v42 = vld [vmem:[#allocation8 + $0x60] sm:$0xff] }
 0x238   :  { %5757 = vmatpush1.bf16.msra.mxu1 %v5756_v3  ;;  %5631 = vmatprep.subr.bf16.mxu0 %v5630_v5  ;;  %v5772_v3 = vpack.c.bf16 %v955_v55, %v939_v51  ;;  %v5646_v5 = vpack.c.bf16 %v986_v59, %v970_v56  ;;  %v1081_v51 = vld [vmem:[#allocation5 + $0x1ee0] sm:$0xff]  ;;  %v1083_v56 = vld [vmem:[#allocation5 + $0x1ef0] sm:$0xff]  ;;  %v1098_v59 = vld [vmem:[#allocation5 + $0x1f68] sm:$0xff] }
 0x239   :  { %5759 = vmatprep.subr.bf16.mxu1 %v5758_v13  ;;  %v5774_v13 = vpack.c.bf16 %v988_v0, %v972_v63  ;;  %v1114_v63 = vld [vmem:[#allocation5 + $0x1fe8] sm:$0xff]  ;;  %v7282_v0 = vshrl.u32 %v1121_v44, 7  ;;  %v2475_v44 = vld [vmem:[#allocation8 + $0x50] sm:$0xff] }
 0x23b   :  { %5633 = vmatpush1.bf16.msra.mxu0 %v5632_v22  ;;  %v5648_v22 = vpack.c.bf16 %v985_v7, %v969_v6  ;;  %v5662_v7 = vpack.c.bf16 %v1114_v63, %v1098_v59  ;;  %v2481_v63 = vld [vmem:[#allocation8 + $0x80] sm:$0xff] }
 0x23c   :  { %5761 = vmatpush1.bf16.msra.mxu1 %v5760_v23  ;;  %5635 = vmatprep.subr.bf16.mxu0 %v5634_v24  ;;  %v5776_v23 = vpack.c.bf16 %v987_v17, %v971_v8  ;;  %v5650_v24 = vpack.c.bf16 %v1018_v15, %v1002_v14  ;;  %v1097_v8 = vld [vmem:[#allocation5 + $0x1f60] sm:$0xff]  ;;  %v1099_v17 = vld [vmem:[#allocation5 + $0x1f70] sm:$0xff] }
 0x23d   :  { %5763 = vmatprep.subr.bf16.mxu1 %v5762_v28  ;;  %v5778_v28 = vpack.c.bf16 %v1020_v20, %v1004_v16  ;;  %v1115_v15 = vld [vmem:[#allocation5 + $0x1ff0] sm:$0xff]  ;;  %v2466_v16 = vld [vmem:[#allocation8 + $0x8] sm:$0xff] }
 0x23e   :  { %v2470_v20 = vld [vmem:[#allocation8 + $0x28] sm:$0xff] }
 0x23f   :  { %5637 = vmatpush1.bf16.msra.mxu0 %v5636_v34  ;;  %v5652_v34 = vpack.c.bf16 %v1017_v27, %v1001_v25  ;;  %v7287_v25 = vld [vmem:[#allocation7] sm:$0xff] }
 0x240   :  { %5765 = vmatpush1.bf16.msra.mxu1 %v5764_v35  ;;  %5639 = vmatprep.subr.bf16.mxu0 %v5638_v36  ;;  %v5780_v35 = vpack.c.bf16 %v1019_v29, %v1003_v26  ;;  %v5654_v36 = vpack.c.bf16 %v1050_v31, %v1034_v30  ;;  %v5792_v26 = vpack.c.bf16 %v1115_v15, %v1099_v17  ;;  %v2465_v29 = vld [vmem:[#allocation8] sm:$0xff]  ;;  %v2496_v15 = vld [vmem:[#allocation8 + $0xf8] sm:$0xff] }
 0x241   :  { %5767 = vmatprep.subr.bf16.mxu1 %v5766_v40  ;;  %v5782_v40 = vpack.c.bf16 %v1052_v33, %v1036_v32  ;;  %v2469_v30 = vld [vmem:[#allocation8 + $0x20] sm:$0xff]  ;;  %v2467_v32 = vld [vmem:[#allocation8 + $0x10] sm:$0xff] }
 0x242   :  { %v2471_v33 = vld [vmem:[#allocation8 + $0x30] sm:$0xff] }
 0x243   :  { %5641 = vmatpush1.bf16.msra.mxu0 %v5640_v46  ;;  %v1084_v46 = vld [vmem:[#allocation5 + $0x1ef8] sm:$0xff] }
 0x244   :  { %5769 = vmatpush1.bf16.msra.mxu1 %v5768_v47  ;;  %5643 = vmatprep.subr.bf16.mxu0 %v5642_v48  ;;  %v5656_v47 = vpack.c.bf16 %v1049_v38, %v1033_v37  ;;  %v5784_v48 = vpack.c.bf16 %v1051_v41, %v1035_v39  ;;  %v5786_v55 = vpack.c.bf16 %v1084_v46, %v1068_v45  ;;  %v2476_v38 = vld [vmem:[#allocation8 + $0x58] sm:$0xff]  ;;  %v2473_v41 = vld [vmem:[#allocation8 + $0x40] sm:$0xff]  ;;  %v2479_v45 = vld [vmem:[#allocation8 + $0x70] sm:$0xff] }
 0x245   :  { %5771 = vmatprep.subr.bf16.mxu1 %v5770_v54  ;;  %v1067_v54 = vld [vmem:[#allocation5 + $0x1e70] sm:$0xff]  ;;  %v5796_v37 = vpack.c.bf16 %v2469_v30, %v2465_v29  ;;  %v2480_v39 = vld [vmem:[#allocation8 + $0x78] sm:$0xff]  ;;  %v6312_v59 = vpack.c.bf16 %v2479_v45, %v2475_v44  ;;  %v2495_v29 = vld [vmem:[#allocation8 + $0xf0] sm:$0xff] }
 0x246   :  { %v5788_v6 = vpack.c.bf16 %v1083_v56, %v1067_v54  ;;  %v2484_v54 = vld [vmem:[#allocation8 + $0x98] sm:$0xff]  ;;  %v6974_v56 = vld [vmem:[#allocation2 + $0x38] sm:$0xff] }
 0x247   :  { %5645 = vmatpush1.bf16.msra.mxu0 %v5644_v2  ;;  %v1100_v2 = vld [vmem:[#allocation5 + $0x1f78] sm:$0xff]  ;;  %v2508_v45 = vld [vmem:[#allocation8 + $0x158] sm:$0xff] }
 0x248   :  { %5773 = vmatpush1.bf16.msra.mxu1 %v5772_v3  ;;  %5647 = vmatprep.subr.bf16.mxu0 %v5646_v5  ;;  %v1116_v3 = vld [vmem:[#allocation5 + $0x1ff8] sm:$0xff]  ;;  %v5660_v5 = vpack.c.bf16 %v1081_v51, %v1065_v50  ;;  %v5800_v51 = vpack.c.bf16 %v2477_v42, %v2473_v41  ;;  %v2503_v42 = vld [vmem:[#allocation8 + $0x130] sm:$0xff] }
 0x249   :  { %5775 = vmatprep.subr.bf16.mxu1 %v5774_v13  ;;  %v1113_v13 = vld [vmem:[#allocation5 + $0x1fe0] sm:$0xff]  ;;  %v5790_v14 = vpack.c.bf16 %v1116_v3, %v1100_v2  ;;  %v2486_v50 = vld [vmem:[#allocation8 + $0xa8] sm:$0xff]  ;;  %v2485_v2 = vld [vmem:[#allocation8 + $0xa0] sm:$0xff] }
 0x24a   :  { %v5664_v27 = vpack.c.bf16 %v1113_v13, %v1097_v8  ;;  %v2483_v3 = vld [vmem:[#allocation8 + $0x90] sm:$0xff]  ;;  %v6975_v13 = vld [vmem:[#allocation2 + $0x30] sm:$0xff]  ;;  %v2498_v30 = vld [vmem:[#allocation8 + $0x108] sm:$0xff] }
 0x24b   :  { %5649 = vmatpush1.bf16.msra.mxu0 %v5648_v22  ;;  %v7285_v22 = vsub.s32 1, %v7282_v0  ;;  %v2510_v44 = vld [vmem:[#allocation8 + $0x168] sm:$0xff] }
 0x24c   :  { %5777 = vmatpush1.bf16.msra.mxu1 %v5776_v23  ;;  %5651 = vmatprep.subr.bf16.mxu0 %v5650_v24  ;;  %v2468_v23 = vld [vmem:[#allocation8 + $0x18] sm:$0xff] }
 0x24d   :  { %5779 = vmatprep.subr.bf16.mxu1 %v5778_v28  ;;  %v2472_v24 = vld [vmem:[#allocation8 + $0x38] sm:$0xff]  ;;  %v5794_v28 = vpack.c.bf16 %v2470_v20, %v2466_v16  ;;  %v5804_v16 = vpack.c.bf16 %v2485_v2, %v2481_v63  ;;  %v2518_v63 = vld [vmem:[#allocation8 + $0x1a8] sm:$0xff] }
 0x24e   :  { %v6306_v31 = vpack.c.bf16 %v2472_v24, %v2468_v23  ;;  %v2489_v24 = vld [vmem:[#allocation8 + $0xc0] sm:$0xff]  ;;  %v2516_v2 = vld [vmem:[#allocation8 + $0x198] sm:$0xff] }
 0x24f   :  { %5653 = vmatpush1.bf16.msra.mxu0 %v5652_v34  ;;  %v7291_v34 = vrot.slane %v7287_v25, %v7285_v22 }
 0x250   :  { %5781 = vmatpush1.bf16.msra.mxu1 %v5780_v35  ;;  %5655 = vmatprep.subr.bf16.mxu0 %v5654_v36  ;;  %v2474_v35 = vld [vmem:[#allocation8 + $0x48] sm:$0xff] }
 0x251   :  { %5783 = vmatprep.subr.bf16.mxu1 %v5782_v40  ;;  %v2478_v36 = vld [vmem:[#allocation8 + $0x68] sm:$0xff]  ;;  %v6308_v40 = vpack.c.bf16 %v2471_v33, %v2467_v32  ;;  %v6819_v46 = vadd.f32 %v7254_v58, %v7291_v34  ;;  %v2500_v32 = vld [vmem:[#allocation8 + $0x118] sm:$0xff] }
 0x252   :  { %v5798_v43 = vpack.c.bf16 %v2478_v36, %v2474_v35  ;;  %v2504_v33 = vld [vmem:[#allocation8 + $0x138] sm:$0xff] }
 0x253   :  { %5657 = vmatpush1.bf16.msra.mxu0 %v5656_v47  ;;  %v6973_v47 = vld [vmem:[#allocation2 + $0x10] sm:$0xff]  ;;  %v2434_v8 = vmax.f32 %v6819_v46, 0.0  ;;  %v6322_v41 = vpack.c.bf16 %v2504_v33, %v2500_v32  ;;  %v2512_v46 = vld [vmem:[#allocation8 + $0x178] sm:$0xff]  ;;  %v2527_v32 = vld [vmem:[#allocation8 + $0x1f0] sm:$0xff] }
 0x254   :  { %5785 = vmatpush1.bf16.msra.mxu1 %v5784_v48  ;;  %5659 = vmatprep.subr.bf16.mxu0 %v5658_v49  ;;  %v6310_v48 = vpack.c.bf16 %v2480_v39, %v2476_v38  ;;  %v2482_v49 = vld [vmem:[#allocation8 + $0x88] sm:$0xff]  ;;  %v2497_v38 = vld [vmem:[#allocation8 + $0x100] sm:$0xff] }
 0x255   :  { %5787 = vmatprep.subr.bf16.mxu1 %v5786_v55  ;;  %v2488_v55 = vld [vmem:[#allocation8 + $0xb8] sm:$0xff]  ;;  %v5802_v58 = vpack.c.bf16 %v2486_v50, %v2482_v49  ;;  %v2501_v39 = vld [vmem:[#allocation8 + $0x120] sm:$0xff]  ;;  %v2530_v33 = vld [vmem:[#allocation8 + $0x208] sm:$0xff] }
 0x256   :  { %v6314_v17 = vpack.c.bf16 %v2488_v55, %v2484_v54  ;;  %v2505_v50 = vld [vmem:[#allocation8 + $0x140] sm:$0xff]  ;;  %v2507_v54 = vld [vmem:[#allocation8 + $0x150] sm:$0xff]  ;;  %v6326_v55 = vpack.c.bf16 %v2512_v46, %v2508_v45  ;;  %v2538_v46 = vld [vmem:[#allocation8 + $0x248] sm:$0xff] }
 0x257   :  { %5661 = vmatpush1.bf16.msra.mxu0 %v5660_v5  ;;  %v2487_v5 = vld [vmem:[#allocation8 + $0xb0] sm:$0xff] }
 0x258   :  { %5789 = vmatpush1.bf16.msra.mxu1 %v5788_v6  ;;  %5663 = vmatprep.subr.bf16.mxu0 %v5662_v7  ;;  %v2490_v6 = vld [vmem:[#allocation8 + $0xc8] sm:$0xff]  ;;  %v6316_v20 = vpack.c.bf16 %v2487_v5, %v2483_v3  ;;  %v2520_v3 = vld [vmem:[#allocation8 + $0x1b8] sm:$0xff]  ;;  %v2535_v45 = vld [vmem:[#allocation8 + $0x230] sm:$0xff] }
 0x259   :  { %5791 = vmatprep.subr.bf16.mxu1 %v5790_v14  ;;  %v2494_v7 = vld [vmem:[#allocation8 + $0xe8] sm:$0xff]  ;;  %v2492_v14 = vld [vmem:[#allocation8 + $0xd8] sm:$0xff] }
 0x25a   :  { %v5806_v23 = vpack.c.bf16 %v2494_v7, %v2490_v6  ;;  %v2513_v7 = vld [vmem:[#allocation8 + $0x180] sm:$0xff] }
 0x25b   :  { %5665 = vmatpush1.bf16.msra.mxu0 %v5664_v27  ;;  %v2493_v27 = vld [vmem:[#allocation8 + $0xe0] sm:$0xff] }
 0x25c   :  { %5793 = vmatpush1.bf16.msra.mxu1 %v5792_v26  ;;  %5795 = vmatprep.subr.bf16.mxu0 %v5794_v28  ;;  %v2491_v26 = vld [vmem:[#allocation8 + $0xd0] sm:$0xff]  ;;  %v6318_v28 = vpack.c.bf16 %v2496_v15, %v2492_v14  ;;  %v5808_v35 = vpack.c.bf16 %v2493_v27, %v2489_v24  ;;  %v2522_v15 = vld [vmem:[#allocation8 + $0x1c8] sm:$0xff] }
 0x25d   :  { %6307 = vmatprep.subr.bf16.mxu1 %v6306_v31  ;;  %v2502_v31 = vld [vmem:[#allocation8 + $0x128] sm:$0xff]  ;;  %v6320_v36 = vpack.c.bf16 %v2495_v29, %v2491_v26  ;;  %v2519_v14 = vld [vmem:[#allocation8 + $0x1b0] sm:$0xff]  ;;  %v2525_v29 = vld [vmem:[#allocation8 + $0x1e0] sm:$0xff] }
 0x25e   :  { %2267 = vmatmul.mubr.f32.vlgmr.msra.gmra.mrb[12].mxu0 %v6973_v47 }
 0x25f   :  { %2421 = vmatmul.mubr.f32.vlgmr.msra.gmra.mrb[12].mxu1 %v6973_v47  ;;  %5797 = vmatpush1.bf16.msra.mxu0 %v5796_v37  ;;  %v5810_v37 = vpack.c.bf16 %v2502_v31, %v2498_v30  ;;  %v5812_v47 = vpack.c.bf16 %v2501_v39, %v2497_v38  ;;  %v2523_v30 = vld [vmem:[#allocation8 + $0x1d0] sm:$0xff] }
 0x260   :  { %6309 = vmatpush1.bf16.msra.mxu1 %v6308_v40  ;;  %2272 = vmatprep.mubr.f32.mxu0 %v6974_v56  ;;  %v2499_v40 = vld [vmem:[#allocation8 + $0x110] sm:$0xff]  ;;  %v6336_v39 = vpack.c.bf16 %v2527_v32, %v2523_v30  ;;  %v2557_v32 = vld [vmem:[#allocation8 + $0x2e0] sm:$0xff] }
 0x261   :  { %2426 = vmatprep.mubr.f32.mxu1 %v6974_v56  ;;  %5799 = vmatprep.subr.bf16.mxu0 %v5798_v43  ;;  %v2506_v43 = vld [vmem:[#allocation8 + $0x148] sm:$0xff]  ;;  %v2511_v56 = vld [vmem:[#allocation8 + $0x170] sm:$0xff] }
 0x262   :  { %2273 = vmatmul.mubr.f32.gmra.mrb[14].mxu0 %v6975_v13  ;;  %6311 = vmatprep.subr.bf16.mxu1 %v6310_v48  ;;  %v6324_v48 = vpack.c.bf16 %v2503_v42, %v2499_v40  ;;  %v5814_v49 = vpack.c.bf16 %v2510_v44, %v2506_v43  ;;  %v6328_v5 = vpack.c.bf16 %v2511_v56, %v2507_v54  ;;  %v2533_v42 = vld [vmem:[#allocation8 + $0x220] sm:$0xff]  ;;  %v2531_v43 = vld [vmem:[#allocation8 + $0x210] sm:$0xff] }
 0x263   :  { %2427 = vmatmul.mubr.f32.gmra.mrb[14].mxu1 %v6975_v13  ;;  %5801 = vmatpush1.bf16.msra.mxu0 %v5800_v51  ;;  %v2509_v51 = vld [vmem:[#allocation8 + $0x160] sm:$0xff]  ;;  %v2515_v13 = vld [vmem:[#allocation8 + $0x190] sm:$0xff] }
 0x264   :  { %3575 = vmatprep.mubr.f32.mxu0 %v2434_v8  ;;  %6313 = vmatpush1.bf16.msra.mxu1 %v6312_v59  ;;  %v2514_v59 = vld [vmem:[#allocation8 + $0x188] sm:$0xff]  ;;  %v6332_v27 = vpack.c.bf16 %v2519_v14, %v2515_v13  ;;  %v2541_v56 = vld [vmem:[#allocation8 + $0x260] sm:$0xff] }
 0x265   :  { %4191 = vmatprep.mubr.f32.mxu1 %v2434_v8  ;;  %5803 = vmatprep.subr.bf16.mxu0 %v5802_v58  ;;  %v5816_v58 = vpack.c.bf16 %v2509_v51, %v2505_v50  ;;  %v5818_v6 = vpack.c.bf16 %v2518_v63, %v2514_v59  ;;  %v2517_v8 = vld [vmem:[#allocation8 + $0x1a0] sm:$0xff]  ;;  %v6340_v51 = vpack.c.bf16 %v2535_v45, %v2531_v43  ;;  %v2539_v59 = vld [vmem:[#allocation8 + $0x250] sm:$0xff] }
 0x266   :  { %6315 = vmatprep.subr.bf16.mxu1 %v6314_v17  ;;  %v6330_v17 = vpack.c.bf16 %v2520_v3, %v2516_v2  ;;  %v5820_v24 = vpack.c.bf16 %v2517_v8, %v2513_v7  ;;  %v2543_v2 = vld [vmem:[#allocation8 + $0x270] sm:$0xff]  ;;  %v2546_v3 = vld [vmem:[#allocation8 + $0x288] sm:$0xff]  ;;  %v2549_v14 = vld [vmem:[#allocation8 + $0x2a0] sm:$0xff] }
 0x267   :  { %5805 = vmatpush1.bf16.msra.mxu0 %v5804_v16  ;;  %v2526_v16 = vld [vmem:[#allocation8 + $0x1e8] sm:$0xff]  ;;  %v6344_v8 = vpack.c.bf16 %v2543_v2, %v2539_v59  ;;  %v2565_v45 = vld [vmem:[#allocation8 + $0x320] sm:$0xff] }
 0x268   :  { %6317 = vmatpush1.bf16.msra.mxu1 %v6316_v20  ;;  %5807 = vmatprep.subr.bf16.mxu0 %v5806_v23  ;;  %v2524_v20 = vld [vmem:[#allocation8 + $0x1d8] sm:$0xff]  ;;  %v5822_v26 = vpack.c.bf16 %v2526_v16, %v2522_v15  ;;  %v2547_v15 = vld [vmem:[#allocation8 + $0x290] sm:$0xff]  ;;  %v2573_v2 = vld [vmem:[#allocation8 + $0x360] sm:$0xff] }
 0x269   :  { %6319 = vmatprep.subr.bf16.mxu1 %v6318_v28  ;;  %v2528_v23 = vld [vmem:[#allocation8 + $0x1f8] sm:$0xff]  ;;  %v2521_v28 = vld [vmem:[#allocation8 + $0x1c0] sm:$0xff] }
 0x26a   :  { %v6334_v31 = vpack.c.bf16 %v2528_v23, %v2524_v20  ;;  %v5824_v38 = vpack.c.bf16 %v2525_v29, %v2521_v28  ;;  %v2551_v20 = vld [vmem:[#allocation8 + $0x2b0] sm:$0xff]  ;;  %v2554_v23 = vld [vmem:[#allocation8 + $0x2c8] sm:$0xff] }
 0x26b   :  { %5809 = vmatpush1.bf16.msra.mxu0 %v5808_v35  ;;  %v2534_v35 = vld [vmem:[#allocation8 + $0x228] sm:$0xff]  ;;  %v6348_v29 = vpack.c.bf16 %v2551_v20, %v2547_v15  ;;  %v2577_v20 = vld [vmem:[#allocation8 + $0x380] sm:$0xff] }
 0x26c   :  { %6321 = vmatpush1.bf16.msra.mxu1 %v6320_v36  ;;  %5811 = vmatprep.subr.bf16.mxu0 %v5810_v37  ;;  %v2532_v36 = vld [vmem:[#allocation8 + $0x218] sm:$0xff]  ;;  %v5826_v40 = vpack.c.bf16 %v2534_v35, %v2530_v33  ;;  %v2555_v33 = vld [vmem:[#allocation8 + $0x2d0] sm:$0xff] }
 0x26d   :  { %6323 = vmatprep.subr.bf16.mxu1 %v6322_v41  ;;  %v2536_v37 = vld [vmem:[#allocation8 + $0x238] sm:$0xff]  ;;  %v2529_v41 = vld [vmem:[#allocation8 + $0x200] sm:$0xff] }
 0x26e   :  { %v6338_v44 = vpack.c.bf16 %v2536_v37, %v2532_v36  ;;  %v5828_v50 = vpack.c.bf16 %v2533_v42, %v2529_v41  ;;  %v2559_v36 = vld [vmem:[#allocation8 + $0x2f0] sm:$0xff]  ;;  %v2562_v37 = vld [vmem:[#allocation8 + $0x308] sm:$0xff] }
 0x26f   :  { %5813 = vmatpush1.bf16.msra.mxu0 %v5812_v47  ;;  %v2542_v47 = vld [vmem:[#allocation8 + $0x268] sm:$0xff]  ;;  %v6352_v42 = vpack.c.bf16 %v2559_v36, %v2555_v33 }
 0x270   :  { %6325 = vmatpush1.bf16.msra.mxu1 %v6324_v48  ;;  %5815 = vmatprep.subr.bf16.mxu0 %v5814_v49  ;;  %v2540_v48 = vld [vmem:[#allocation8 + $0x258] sm:$0xff]  ;;  %v5830_v54 = vpack.c.bf16 %v2542_v47, %v2538_v46  ;;  %v2563_v46 = vld [vmem:[#allocation8 + $0x310] sm:$0xff] }
 0x271   :  { %6327 = vmatprep.subr.bf16.mxu1 %v6326_v55  ;;  %v2544_v49 = vld [vmem:[#allocation8 + $0x278] sm:$0xff]  ;;  %v2537_v55 = vld [vmem:[#allocation8 + $0x240] sm:$0xff] }
 0x272   :  { %v6342_v63 = vpack.c.bf16 %v2544_v49, %v2540_v48  ;;  %v5832_v7 = vpack.c.bf16 %v2541_v56, %v2537_v55  ;;  %v2567_v48 = vld [vmem:[#allocation8 + $0x330] sm:$0xff]  ;;  %v2570_v49 = vld [vmem:[#allocation8 + $0x348] sm:$0xff] }
 0x273   :  { %5817 = vmatpush1.bf16.msra.mxu0 %v5816_v58  ;;  %v2550_v58 = vld [vmem:[#allocation8 + $0x2a8] sm:$0xff]  ;;  %v6356_v56 = vpack.c.bf16 %v2567_v48, %v2563_v46  ;;  %v2600_v46 = vld [vmem:[#allocation8 + $0x438] sm:$0xff] }
 0x274   :  { %6329 = vmatpush1.bf16.msra.mxu1 %v6328_v5  ;;  %5819 = vmatprep.subr.bf16.mxu0 %v5818_v6  ;;  %v2548_v5 = vld [vmem:[#allocation8 + $0x298] sm:$0xff]  ;;  %v5834_v13 = vpack.c.bf16 %v2550_v58, %v2546_v3  ;;  %v2571_v3 = vld [vmem:[#allocation8 + $0x350] sm:$0xff] }
 0x275   :  { %6331 = vmatprep.subr.bf16.mxu1 %v6330_v17  ;;  %v2552_v6 = vld [vmem:[#allocation8 + $0x2b8] sm:$0xff]  ;;  %v2545_v17 = vld [vmem:[#allocation8 + $0x280] sm:$0xff] }
 0x276   :  { %v6346_v16 = vpack.c.bf16 %v2552_v6, %v2548_v5  ;;  %v5836_v28 = vpack.c.bf16 %v2549_v14, %v2545_v17  ;;  %v2575_v5 = vld [vmem:[#allocation8 + $0x370] sm:$0xff]  ;;  %v2578_v6 = vld [vmem:[#allocation8 + $0x388] sm:$0xff]  ;;  %v7296_v14 = vsub.s32 0, %v7282_v0 }
 0x277   :  { %5821 = vmatpush1.bf16.msra.mxu0 %v5820_v24  ;;  %v2558_v24 = vld [vmem:[#allocation8 + $0x2e8] sm:$0xff]  ;;  %v6360_v15 = vpack.c.bf16 %v2575_v5, %v2571_v3  ;;  %v2608_v5 = vld [vmem:[#allocation8 + $0x478] sm:$0xff] }
 0x278   :  { %6333 = vmatpush1.bf16.msra.mxu1 %v6332_v27  ;;  %5823 = vmatprep.subr.bf16.mxu0 %v5822_v26  ;;  %v2556_v27 = vld [vmem:[#allocation8 + $0x2d8] sm:$0xff]  ;;  %v5838_v30 = vpack.c.bf16 %v2558_v24, %v2554_v23  ;;  %v2581_v23 = vld [vmem:[#allocation8 + $0x3a0] sm:$0xff]  ;;  %v2579_v24 = vld [vmem:[#allocation8 + $0x390] sm:$0xff]  ;;  %v1124_v33 = vrot.slane %v7287_v25, %v7296_v14 }
 0x279   :  { %6335 = vmatprep.subr.bf16.mxu1 %v6334_v31  ;;  %v2560_v26 = vld [vmem:[#allocation8 + $0x2f8] sm:$0xff]  ;;  %v2553_v31 = vld [vmem:[#allocation8 + $0x2c0] sm:$0xff]  ;;  %v2602_v3 = vld [vmem:[#allocation8 + $0x448] sm:$0xff] }
 0x27a   :  { %v6350_v35 = vpack.c.bf16 %v2560_v26, %v2556_v27  ;;  %v5840_v41 = vpack.c.bf16 %v2557_v32, %v2553_v31  ;;  %v2583_v26 = vld [vmem:[#allocation8 + $0x3b0] sm:$0xff]  ;;  %v2592_v31 = vld [vmem:[#allocation8 + $0x3f8] sm:$0xff]  ;;  %v5852_v32 = vpack.c.bf16 %v2581_v23, %v2577_v20  ;;  %v6818_v48 = vadd.f32 %v7250_v52, %v1124_v33 }
 0x27b   :  { %5825 = vmatpush1.bf16.msra.mxu0 %v5824_v38  ;;  %v2566_v38 = vld [vmem:[#allocation8 + $0x328] sm:$0xff]  ;;  %v2604_v52 = vld [vmem:[#allocation8 + $0x458] sm:$0xff]  ;;  %v2607_v23 = vld [vmem:[#allocation8 + $0x470] sm:$0xff] }
 0x27c   :  { %6337 = vmatpush1.bf16.msra.mxu1 %v6336_v39  ;;  %5827 = vmatprep.subr.bf16.mxu0 %v5826_v40  ;;  %v2564_v39 = vld [vmem:[#allocation8 + $0x318] sm:$0xff]  ;;  %v5842_v43 = vpack.c.bf16 %v2566_v38, %v2562_v37  ;;  %v2585_v37 = vld [vmem:[#allocation8 + $0x3c0] sm:$0xff]  ;;  %v6374_v20 = vpack.c.bf16 %v2608_v5, %v2604_v52  ;;  %v2627_v5 = vld [vmem:[#allocation8 + $0x510] sm:$0xff] }
 0x27d   :  { %6339 = vmatprep.subr.bf16.mxu1 %v6338_v44  ;;  %v2568_v40 = vld [vmem:[#allocation8 + $0x338] sm:$0xff]  ;;  %v2561_v44 = vld [vmem:[#allocation8 + $0x300] sm:$0xff] }
 0x27e   :  { %v6354_v47 = vpack.c.bf16 %v2568_v40, %v2564_v39  ;;  %v5844_v55 = vpack.c.bf16 %v2565_v45, %v2561_v44  ;;  %v2589_v38 = vld [vmem:[#allocation8 + $0x3e0] sm:$0xff]  ;;  %v2587_v39 = vld [vmem:[#allocation8 + $0x3d0] sm:$0xff]  ;;  %v7301_v40 = vsub.s32 3, %v7282_v0  ;;  %v2598_v44 = vld [vmem:[#allocation8 + $0x428] sm:$0xff] }
 0x27f   :  { %5829 = vmatpush1.bf16.msra.mxu0 %v5828_v50  ;;  %v2574_v50 = vld [vmem:[#allocation8 + $0x368] sm:$0xff]  ;;  %v2596_v45 = vld [vmem:[#allocation8 + $0x418] sm:$0xff]  ;;  %v2629_v52 = vld [vmem:[#allocation8 + $0x520] sm:$0xff] }
 0x280   :  { %6341 = vmatpush1.bf16.msra.mxu1 %v6340_v51  ;;  %5831 = vmatprep.subr.bf16.mxu0 %v5830_v54  ;;  %v2572_v51 = vld [vmem:[#allocation8 + $0x358] sm:$0xff]  ;;  %v5846_v59 = vpack.c.bf16 %v2574_v50, %v2570_v49 }
 0x281   :  { %6343 = vmatprep.subr.bf16.mxu1 %v6342_v63  ;;  %v2576_v54 = vld [vmem:[#allocation8 + $0x378] sm:$0xff]  ;;  %v2569_v63 = vld [vmem:[#allocation8 + $0x340] sm:$0xff] }
 0x282   :  { %v6358_v58 = vpack.c.bf16 %v2576_v54, %v2572_v51  ;;  %v5848_v17 = vpack.c.bf16 %v2573_v2, %v2569_v63  ;;  %v7306_v51 = vrot.slane %v7287_v25, %v7301_v40  ;;  %v6821_v54 = vadd.f32 %v7262_v10, %v7291_v34  ;;  %v2595_v63 = vld [vmem:[#allocation8 + $0x410] sm:$0xff] }
 0x283   :  { %5833 = vmatpush1.bf16.msra.mxu0 %v5832_v7  ;;  %v2582_v7 = vld [vmem:[#allocation8 + $0x3a8] sm:$0xff]  ;;  %v2599_v2 = vld [vmem:[#allocation8 + $0x430] sm:$0xff] }
 0x284   :  { %6345 = vmatpush1.bf16.msra.mxu1 %v6344_v8  ;;  %5835 = vmatprep.subr.bf16.mxu0 %v5834_v13  ;;  %v2580_v8 = vld [vmem:[#allocation8 + $0x398] sm:$0xff]  ;;  %v6823_v10 = vadd.f32 %v7256_v61, %v7306_v51  ;;  %v2450_v34 = vmax.f32 %v6821_v54, 0.0  ;;  %v2626_v54 = vld [vmem:[#allocation8 + $0x508] sm:$0xff] }
 0x285   :  { %6347 = vmatprep.subr.bf16.mxu1 %v6346_v16  ;;  %v2584_v13 = vld [vmem:[#allocation8 + $0x3b8] sm:$0xff]  ;;  %v5850_v16 = vpack.c.bf16 %v2582_v7, %v2578_v6  ;;  %v2433_v6 = vmax.f32 %v6818_v48, 0.0  ;;  %v6820_v7 = vadd.f32 %v7258_v4, %v1124_v33  ;;  %v2613_v33 = vld [vmem:[#allocation8 + $0x4a0] sm:$0xff]  ;;  %v2619_v48 = vld [vmem:[#allocation8 + $0x4d0] sm:$0xff] }
 0x286   :  { %v6362_v27 = vpack.c.bf16 %v2584_v13, %v2580_v8  ;;  %v6372_v8 = vpack.c.bf16 %v2599_v2, %v2595_v63  ;;  %v2612_v4 = vld [vmem:[#allocation8 + $0x498] sm:$0xff] }
 0x287   :  { %5837 = vmatpush1.bf16.msra.mxu0 %v5836_v28  ;;  %v2586_v28 = vld [vmem:[#allocation8 + $0x3c8] sm:$0xff] }
 0x288   :  { %6349 = vmatpush1.bf16.msra.mxu1 %v6348_v29  ;;  %5839 = vmatprep.subr.bf16.mxu0 %v5838_v30  ;;  %v2590_v29 = vld [vmem:[#allocation8 + $0x3e8] sm:$0xff]  ;;  %v2588_v30 = vld [vmem:[#allocation8 + $0x3d8] sm:$0xff] }
 0x289   :  { %6351 = vmatprep.subr.bf16.mxu1 %v6350_v35  ;;  %v6364_v35 = vpack.c.bf16 %v2583_v26, %v2579_v24  ;;  %v5854_v36 = vpack.c.bf16 %v2590_v29, %v2586_v28  ;;  %v2610_v24 = vld [vmem:[#allocation8 + $0x488] sm:$0xff]  ;;  %v2616_v26 = vld [vmem:[#allocation8 + $0x4b8] sm:$0xff]  ;;  %v2449_v28 = vmax.f32 %v6820_v7, 0.0  ;;  %v2436_v29 = vmax.f32 %v6823_v10, 0.0  ;;  %v2631_v7 = vld [vmem:[#allocation8 + $0x530] sm:$0xff] }
 0x28a   :  { %v2638_v10 = vld [vmem:[#allocation8 + $0x568] sm:$0xff] }
 0x28b   :  { %5841 = vmatpush1.bf16.msra.mxu0 %v5840_v41  ;;  %v6366_v41 = vpack.c.bf16 %v2592_v31, %v2588_v30 }
 0x28c   :  { %6353 = vmatpush1.bf16.msra.mxu1 %v6352_v42  ;;  %5843 = vmatprep.subr.bf16.mxu0 %v5842_v43  ;;  %v2591_v42 = vld [vmem:[#allocation8 + $0x3f0] sm:$0xff]  ;;  %v2594_v43 = vld [vmem:[#allocation8 + $0x408] sm:$0xff] }
 0x28d   :  { %6355 = vmatprep.subr.bf16.mxu1 %v6354_v47  ;;  %v5856_v47 = vpack.c.bf16 %v2589_v38, %v2585_v37  ;;  %v6368_v49 = vpack.c.bf16 %v2591_v42, %v2587_v39  ;;  %v5858_v50 = vpack.c.bf16 %v2598_v44, %v2594_v43  ;;  %v2615_v37 = vld [vmem:[#allocation8 + $0x4b0] sm:$0xff]  ;;  %v2618_v38 = vld [vmem:[#allocation8 + $0x4c8] sm:$0xff]  ;;  %v2624_v42 = vld [vmem:[#allocation8 + $0x4f8] sm:$0xff] }
 0x28e   :  { %v2622_v39 = vld [vmem:[#allocation8 + $0x4e8] sm:$0xff] }
 0x28f   :  { %5845 = vmatpush1.bf16.msra.mxu0 %v5844_v55  ;;  %v6370_v55 = vpack.c.bf16 %v2600_v46, %v2596_v45  ;;  %v5870_v45 = vpack.c.bf16 %v2622_v39, %v2618_v38  ;;  %v2617_v46 = vld [vmem:[#allocation8 + $0x4c0] sm:$0xff] }
 0x290   :  { %6357 = vmatpush1.bf16.msra.mxu1 %v6356_v56  ;;  %5847 = vmatprep.subr.bf16.mxu0 %v5846_v59  ;;  %v2593_v56 = vld [vmem:[#allocation8 + $0x400] sm:$0xff] }
 0x291   :  { %6359 = vmatprep.subr.bf16.mxu1 %v6358_v58  ;;  %v2597_v59 = vld [vmem:[#allocation8 + $0x420] sm:$0xff]  ;;  %v2606_v58 = vld [vmem:[#allocation8 + $0x468] sm:$0xff] }
 0x292   :  { %v5860_v25 = vpack.c.bf16 %v2597_v59, %v2593_v56  ;;  %v5862_v13 = vpack.c.bf16 %v2606_v58, %v2602_v3  ;;  %v2628_v56 = vld [vmem:[#allocation8 + $0x518] sm:$0xff]  ;;  %v2625_v58 = vld [vmem:[#allocation8 + $0x500] sm:$0xff] }
 0x293   :  { %5849 = vmatpush1.bf16.msra.mxu0 %v5848_v17  ;;  %v2601_v17 = vld [vmem:[#allocation8 + $0x440] sm:$0xff]  ;;  %v2632_v59 = vld [vmem:[#allocation8 + $0x538] sm:$0xff] }
 0x294   :  { %6361 = vmatpush1.bf16.msra.mxu1 %v6360_v15  ;;  %5851 = vmatprep.subr.bf16.mxu0 %v5850_v16  ;;  %v2605_v15 = vld [vmem:[#allocation8 + $0x460] sm:$0xff]  ;;  %v2603_v16 = vld [vmem:[#allocation8 + $0x450] sm:$0xff] }
 0x295   :  { %6363 = vmatprep.subr.bf16.mxu1 %v6362_v27  ;;  %v2614_v27 = vld [vmem:[#allocation8 + $0x4a8] sm:$0xff]  ;;  %v5864_v61 = vpack.c.bf16 %v2605_v15, %v2601_v17  ;;  %v6376_v30 = vpack.c.bf16 %v2607_v23, %v2603_v16  ;;  %v6388_v17 = vpack.c.bf16 %v2631_v7, %v2627_v5  ;;  %v2633_v16 = vld [vmem:[#allocation8 + $0x540] sm:$0xff]  ;;  %v2635_v23 = vld [vmem:[#allocation8 + $0x550] sm:$0xff] }
 0x296   :  { %v5866_v31 = vpack.c.bf16 %v2614_v27, %v2610_v24  ;;  %v2639_v27 = vld [vmem:[#allocation8 + $0x570] sm:$0xff]  ;;  %v2664_v7 = vld [vmem:[#allocation8 + $0x638] sm:$0xff] }
 0x297   :  { %5853 = vmatpush1.bf16.msra.mxu0 %v5852_v32  ;;  %v2609_v32 = vld [vmem:[#allocation8 + $0x480] sm:$0xff] }
 0x298   :  { %6365 = vmatpush1.bf16.msra.mxu1 %v6364_v35  ;;  %5855 = vmatprep.subr.bf16.mxu0 %v5854_v36  ;;  %v2611_v35 = vld [vmem:[#allocation8 + $0x490] sm:$0xff]  ;;  %v6378_v36 = vpack.c.bf16 %v2616_v26, %v2612_v4  ;;  %v5868_v43 = vpack.c.bf16 %v2613_v33, %v2609_v32  ;;  %v2642_v4 = vld [vmem:[#allocation8 + $0x588] sm:$0xff]  ;;  %v2641_v33 = vld [vmem:[#allocation8 + $0x580] sm:$0xff] }
 0x299   :  { %6367 = vmatprep.subr.bf16.mxu1 %v6366_v41  ;;  %v2620_v41 = vld [vmem:[#allocation8 + $0x4d8] sm:$0xff]  ;;  %v6380_v44 = vpack.c.bf16 %v2615_v37, %v2611_v35  ;;  %v2646_v26 = vld [vmem:[#allocation8 + $0x5a8] sm:$0xff]  ;;  %v2645_v35 = vld [vmem:[#allocation8 + $0x5a0] sm:$0xff] }
 0x29a   :  { %v5882_v32 = vpack.c.bf16 %v2646_v26, %v2642_v4 }
 0x29b   :  { %5857 = vmatpush1.bf16.msra.mxu0 %v5856_v47  ;;  %v2621_v47 = vld [vmem:[#allocation8 + $0x4e0] sm:$0xff] }
 0x29c   :  { %6369 = vmatpush1.bf16.msra.mxu1 %v6368_v49  ;;  %5859 = vmatprep.subr.bf16.mxu0 %v5858_v50  ;;  %v6382_v49 = vpack.c.bf16 %v2624_v42, %v2620_v41  ;;  %v2623_v50 = vld [vmem:[#allocation8 + $0x4f0] sm:$0xff]  ;;  %v5872_v63 = vpack.c.bf16 %v2621_v47, %v2617_v46  ;;  %v2650_v42 = vld [vmem:[#allocation8 + $0x5c8] sm:$0xff]  ;;  %v2656_v46 = vld [vmem:[#allocation8 + $0x5f8] sm:$0xff]  ;;  %v5884_v47 = vpack.c.bf16 %v2645_v35, %v2641_v33 }
 0x29d   :  { %6371 = vmatprep.subr.bf16.mxu1 %v6370_v55  ;;  %v2630_v55 = vld [vmem:[#allocation8 + $0x528] sm:$0xff]  ;;  %v6384_v2 = vpack.c.bf16 %v2623_v50, %v2619_v48  ;;  %v2647_v41 = vld [vmem:[#allocation8 + $0x5b0] sm:$0xff] }
 0x29e   :  { %3576 = vmatmul.mubr.f32.vlgmr.msra.gmra.mrb[16].mxu0 %v2433_v6  ;;  %v5874_v3 = vpack.c.bf16 %v2630_v55, %v2626_v54  ;;  %v2649_v54 = vld [vmem:[#allocation8 + $0x5c0] sm:$0xff]  ;;  %v2671_v33 = vld [vmem:[#allocation8 + $0x670] sm:$0xff]  ;;  %v2674_v35 = vld [vmem:[#allocation8 + $0x688] sm:$0xff] }
 0x29f   :  { %4192 = vmatmul.mubr.f32.vlgmr.msra.gmra.mrb[16].mxu1 %v2433_v6  ;;  %3581 = vmatprep.mubr.f32.mxu0 %v2450_v34  ;;  %v6386_v6 = vpack.c.bf16 %v2632_v59, %v2628_v56  ;;  %v2653_v55 = vld [vmem:[#allocation8 + $0x5e0] sm:$0xff]  ;;  %v2651_v56 = vld [vmem:[#allocation8 + $0x5d0] sm:$0xff] }
 0x2a0   :  { %5861 = vmatpush1.bf16.msra.mxu0 %v5860_v25  ;;  %4197 = vmatprep.mubr.f32.mxu1 %v2450_v34  ;;  %v2634_v25 = vld [vmem:[#allocation8 + $0x548] sm:$0xff]  ;;  %v2636_v34 = vld [vmem:[#allocation8 + $0x558] sm:$0xff] }
 0x2a1   :  { %6373 = vmatpush1.bf16.msra.mxu1 %v6372_v8  ;;  %5863 = vmatprep.subr.bf16.mxu0 %v5862_v13  ;;  %v2640_v8 = vld [vmem:[#allocation8 + $0x578] sm:$0xff]  ;;  %v5876_v13 = vpack.c.bf16 %v2629_v52, %v2625_v58  ;;  %v5878_v15 = vpack.c.bf16 %v2638_v10, %v2634_v25  ;;  %v2658_v58 = vld [vmem:[#allocation8 + $0x608] sm:$0xff]  ;;  %v5888_v25 = vpack.c.bf16 %v2653_v55, %v2649_v54  ;;  %v2679_v54 = vld [vmem:[#allocation8 + $0x6b0] sm:$0xff] }
 0x2a2   :  { %3582 = vmatmul.mubr.f32.gmra.mrb[18].mxu0 %v2449_v28  ;;  %6375 = vmatprep.subr.bf16.mxu1 %v6374_v20  ;;  %v2637_v20 = vld [vmem:[#allocation8 + $0x560] sm:$0xff]  ;;  %v6390_v24 = vpack.c.bf16 %v2640_v8, %v2636_v34  ;;  %v2662_v52 = vld [vmem:[#allocation8 + $0x628] sm:$0xff] }
 0x2a3   :  { %4198 = vmatmul.mubr.f32.gmra.mrb[18].mxu1 %v2449_v28  ;;  %3652 = vmatprep.mubr.f32.mxu0 %v2436_v29  ;;  %v2644_v28 = vld [vmem:[#allocation8 + $0x598] sm:$0xff]  ;;  %v5890_v34 = vpack.c.bf16 %v2662_v52, %v2658_v58  ;;  %v2657_v8 = vld [vmem:[#allocation8 + $0x600] sm:$0xff]  ;;  %v2682_v55 = vld [vmem:[#allocation8 + $0x6c8] sm:$0xff] }
 0x2a4   :  { %5865 = vmatpush1.bf16.msra.mxu0 %v5864_v61  ;;  %4268 = vmatprep.mubr.f32.mxu1 %v2436_v29  ;;  %v2648_v61 = vld [vmem:[#allocation8 + $0x5b8] sm:$0xff]  ;;  %v5880_v29 = vpack.c.bf16 %v2637_v20, %v2633_v16  ;;  %v2663_v16 = vld [vmem:[#allocation8 + $0x630] sm:$0xff]  ;;  %v2666_v20 = vld [vmem:[#allocation8 + $0x648] sm:$0xff] }
 0x2a5   :  { %6377 = vmatpush1.bf16.msra.mxu1 %v6376_v30  ;;  %5867 = vmatprep.subr.bf16.mxu0 %v5866_v31  ;;  %v6392_v31 = vpack.c.bf16 %v2639_v27, %v2635_v23  ;;  %v6394_v39 = vpack.c.bf16 %v2648_v61, %v2644_v28  ;;  %v2670_v23 = vld [vmem:[#allocation8 + $0x668] sm:$0xff]  ;;  %v2672_v27 = vld [vmem:[#allocation8 + $0x678] sm:$0xff]  ;;  %v2665_v61 = vld [vmem:[#allocation8 + $0x640] sm:$0xff] }
 0x2a6   :  { %6379 = vmatprep.subr.bf16.mxu1 %v6378_v36  ;;  %v2643_v36 = vld [vmem:[#allocation8 + $0x590] sm:$0xff]  ;;  %v5894_v28 = vpack.c.bf16 %v2670_v23, %v2666_v20 }
 0x2a8   :  { %5869 = vmatpush1.bf16.msra.mxu0 %v5868_v43  ;;  %v2654_v43 = vld [vmem:[#allocation8 + $0x5e8] sm:$0xff] }
 0x2a9   :  { %6381 = vmatpush1.bf16.msra.mxu1 %v6380_v44  ;;  %5871 = vmatprep.subr.bf16.mxu0 %v5870_v45  ;;  %v2652_v45 = vld [vmem:[#allocation8 + $0x5d8] sm:$0xff]  ;;  %v5886_v50 = vpack.c.bf16 %v2654_v43, %v2650_v42 }
 0x2aa   :  { %6383 = vmatprep.subr.bf16.mxu1 %v6382_v49  ;;  %v6396_v49 = vpack.c.bf16 %v2647_v41, %v2643_v36  ;;  %v2678_v36 = vld [vmem:[#allocation8 + $0x6a8] sm:$0xff]  ;;  %v2680_v41 = vld [vmem:[#allocation8 + $0x6b8] sm:$0xff] }
 0x2ac   :  { %5873 = vmatpush1.bf16.msra.mxu0 %v5872_v63 }
 0x2ad   :  { %6385 = vmatpush1.bf16.msra.mxu1 %v6384_v2  ;;  %5875 = vmatprep.subr.bf16.mxu0 %v5874_v3  ;;  %v6398_v2 = vpack.c.bf16 %v2656_v46, %v2652_v45  ;;  %v2655_v3 = vld [vmem:[#allocation8 + $0x5f0] sm:$0xff]  ;;  %v5898_v45 = vpack.c.bf16 %v2678_v36, %v2674_v35  ;;  %v2673_v46 = vld [vmem:[#allocation8 + $0x680] sm:$0xff] }
 0x2ae   :  { %6387 = vmatprep.subr.bf16.mxu1 %v6386_v6  ;;  %v2660_v6 = vld [vmem:[#allocation8 + $0x618] sm:$0xff]  ;;  %v6400_v10 = vpack.c.bf16 %v2655_v3, %v2651_v56  ;;  %v2686_v56 = vld [vmem:[#allocation8 + $0x6e8] sm:$0xff] }
 0x2af   :  { %v2688_v3 = vld [vmem:[#allocation8 + $0x6f8] sm:$0xff] }
 0x2b0   :  { %5877 = vmatpush1.bf16.msra.mxu0 %v5876_v13  ;;  %v2661_v13 = vld [vmem:[#allocation8 + $0x620] sm:$0xff] }
 0x2b1   :  { %6389 = vmatpush1.bf16.msra.mxu1 %v6388_v17  ;;  %v7313_v30 = vpop.f32.mrb[8].mxu0  ;;  %5879 = vmatprep.subr.bf16.mxu0 %v5878_v15  ;;  %v2659_v17 = vld [vmem:[#allocation8 + $0x610] sm:$0xff]  ;;  %v6402_v15 = vpack.c.bf16 %v2664_v7, %v2660_v6  ;;  %v5892_v4 = vpack.c.bf16 %v2661_v13, %v2657_v8  ;;  %v5902_v6 = vpack.c.bf16 %v2686_v56, %v2682_v55  ;;  %v2681_v7 = vld [vmem:[#allocation8 + $0x6c0] sm:$0xff]  ;;  %v2690_v13 = vld [vmem:[#allocation8 + $0x708] sm:$0xff]  ;;  %v7330_v56 = vsub.s32 2, %v7282_v0 }
 0x2b2   :  { %v7315_v37 = vpop.f32.mrb[8].mxu1  ;;  %v7317_v38 = vpop.f32.mrb[9].mxu0  ;;  %6391 = vmatprep.subr.bf16.mxu1 %v6390_v24  ;;  %v2668_v24 = vld [vmem:[#allocation8 + $0x658] sm:$0xff]  ;;  %v6404_v26 = vpack.c.bf16 %v2663_v16, %v2659_v17  ;;  %v2687_v8 = vld [vmem:[#allocation8 + $0x6f0] sm:$0xff]  ;;  %v2694_v17 = vld [vmem:[#allocation8 + $0x728] sm:$0xff] }
 0x2b3   :  { %v7319_v44 = vpop.f32.mrb[9].mxu1  ;;  %v2696_v16 = vld [vmem:[#allocation8 + $0x738] sm:$0xff] }
 0x2b4   :  { %5881 = vmatpush1.bf16.msra.mxu0 %v5880_v29  ;;  %v2669_v29 = vld [vmem:[#allocation8 + $0x660] sm:$0xff] }
 0x2b5   :  { %6393 = vmatpush1.bf16.msra.mxu1 %v6392_v31  ;;  %v7321_v48 = vpop.f32.mrb[10].mxu0  ;;  %5883 = vmatprep.subr.bf16.mxu0 %v5882_v32  ;;  %v2667_v31 = vld [vmem:[#allocation8 + $0x650] sm:$0xff]  ;;  %v6406_v32 = vpack.c.bf16 %v2672_v27, %v2668_v24  ;;  %v5896_v42 = vpack.c.bf16 %v2669_v29, %v2665_v61  ;;  %v5906_v24 = vpack.c.bf16 %v2694_v17, %v2690_v13  ;;  %v2689_v27 = vld [vmem:[#allocation8 + $0x700] sm:$0xff]  ;;  %v2698_v29 = vld [vmem:[#allocation8 + $0x748] sm:$0xff] }
 0x2b6   :  { %v7323_v59 = vpop.f32.mrb[10].mxu1  ;;  %v7325_v63 = vpop.f32.mrb[11].mxu0  ;;  %6395 = vmatprep.subr.bf16.mxu1 %v6394_v39  ;;  %v2676_v39 = vld [vmem:[#allocation8 + $0x698] sm:$0xff]  ;;  %v6408_v43 = vpack.c.bf16 %v2671_v33, %v2667_v31  ;;  %v2695_v61 = vld [vmem:[#allocation8 + $0x730] sm:$0xff]  ;;  %v2702_v31 = vld [vmem:[#allocation8 + $0x768] sm:$0xff] }
 0x2b7   :  { %v7327_v5 = vpop.f32.mrb[11].mxu1  ;;  %v2704_v33 = vld [vmem:[#allocation8 + $0x778] sm:$0xff] }
 0x2b8   :  { %5885 = vmatpush1.bf16.msra.mxu0 %v5884_v47  ;;  %v2677_v47 = vld [vmem:[#allocation8 + $0x6a0] sm:$0xff]  ;;  %v2720_v13 = vld [vmem:[#allocation8 + $0x7f8] sm:$0xff] }
 0x2b9   :  { %6397 = vmatpush1.bf16.msra.mxu1 %v6396_v49  ;;  %5887 = vmatprep.subr.bf16.mxu0 %v5886_v50  ;;  %v2675_v49 = vld [vmem:[#allocation8 + $0x690] sm:$0xff]  ;;  %v6410_v50 = vpack.c.bf16 %v2680_v41, %v2676_v39  ;;  %v5900_v58 = vpack.c.bf16 %v2677_v47, %v2673_v46  ;;  %v5910_v39 = vpack.c.bf16 %v2702_v31, %v2698_v29  ;;  %v2697_v41 = vld [vmem:[#allocation8 + $0x740] sm:$0xff]  ;;  %v2706_v47 = vld [vmem:[#allocation8 + $0x788] sm:$0xff] }
 0x2ba   :  { %6399 = vmatprep.subr.bf16.mxu1 %v6398_v2  ;;  %v2684_v2 = vld [vmem:[#allocation8 + $0x6d8] sm:$0xff]  ;;  %v6412_v52 = vpack.c.bf16 %v2679_v54, %v2675_v49  ;;  %v2703_v46 = vld [vmem:[#allocation8 + $0x770] sm:$0xff]  ;;  %v2710_v49 = vld [vmem:[#allocation8 + $0x7a8] sm:$0xff] }
 0x2bb   :  { %v2712_v54 = vld [vmem:[#allocation8 + $0x7b8] sm:$0xff]  ;;  %v2722_v29 = vld [vmem:[#allocation8 + $0x808] sm:$0xff] }
 0x2bc   :  { %5889 = vmatpush1.bf16.msra.mxu0 %v5888_v25  ;;  %v2685_v25 = vld [vmem:[#allocation8 + $0x6e0] sm:$0xff]  ;;  %v2726_v31 = vld [vmem:[#allocation8 + $0x828] sm:$0xff] }
 0x2bd   :  { %6401 = vmatpush1.bf16.msra.mxu1 %v6400_v10  ;;  %5891 = vmatprep.subr.bf16.mxu0 %v5890_v34  ;;  %v2683_v10 = vld [vmem:[#allocation8 + $0x6d0] sm:$0xff]  ;;  %v6414_v34 = vpack.c.bf16 %v2688_v3, %v2684_v2  ;;  %v5904_v20 = vpack.c.bf16 %v2685_v25, %v2681_v7  ;;  %v5914_v3 = vpack.c.bf16 %v2710_v49, %v2706_v47  ;;  %v2725_v47 = vld [vmem:[#allocation8 + $0x820] sm:$0xff] }
 0x2be   :  { %6403 = vmatprep.subr.bf16.mxu1 %v6402_v15  ;;  %v2692_v15 = vld [vmem:[#allocation8 + $0x718] sm:$0xff]  ;;  %v6416_v23 = vpack.c.bf16 %v2687_v8, %v2683_v10  ;;  %v2711_v25 = vld [vmem:[#allocation8 + $0x7b0] sm:$0xff]  ;;  %v2714_v10 = vld [vmem:[#allocation8 + $0x7c8] sm:$0xff] }
 0x2bf   :  { %v2716_v8 = vld [vmem:[#allocation8 + $0x7d8] sm:$0xff]  ;;  %v2723_v49 = vld [vmem:[#allocation8 + $0x810] sm:$0xff] }
 0x2c0   :  { %5893 = vmatpush1.bf16.msra.mxu0 %v5892_v4  ;;  %v2693_v4 = vld [vmem:[#allocation8 + $0x720] sm:$0xff] }
 0x2c1   :  { %6405 = vmatpush1.bf16.msra.mxu1 %v6404_v26  ;;  %5895 = vmatprep.subr.bf16.mxu0 %v5894_v28  ;;  %v2691_v26 = vld [vmem:[#allocation8 + $0x710] sm:$0xff]  ;;  %v6418_v28 = vpack.c.bf16 %v2696_v16, %v2692_v15  ;;  %v5908_v35 = vpack.c.bf16 %v2693_v4, %v2689_v27  ;;  %v2717_v27 = vld [vmem:[#allocation8 + $0x7e0] sm:$0xff] }
 0x2c2   :  { %6407 = vmatprep.subr.bf16.mxu1 %v6406_v32  ;;  %v2700_v32 = vld [vmem:[#allocation8 + $0x758] sm:$0xff]  ;;  %v6420_v36 = vpack.c.bf16 %v2695_v61, %v2691_v26  ;;  %v7332_v15 = vld [vmem:[#allocation7] sm:$0xff]  ;;  %v1143_v26 = vsub.s32 5, %v7282_v0 }
 0x2c3   :  { %v1132_v16 = vrot.slane %v7332_v15, %v7330_v56  ;;  %v2715_v4 = vld [vmem:[#allocation8 + $0x7d0] sm:$0xff] }
 0x2c4   :  { %5897 = vmatpush1.bf16.msra.mxu0 %v5896_v42  ;;  %v2701_v42 = vld [vmem:[#allocation8 + $0x760] sm:$0xff]  ;;  %v2719_v61 = vld [vmem:[#allocation8 + $0x7f0] sm:$0xff] }
 0x2c5   :  { %6409 = vmatpush1.bf16.msra.mxu1 %v6408_v43  ;;  %5899 = vmatprep.subr.bf16.mxu0 %v5898_v45  ;;  %v2699_v43 = vld [vmem:[#allocation8 + $0x750] sm:$0xff]  ;;  %v6422_v45 = vpack.c.bf16 %v2704_v33, %v2700_v32  ;;  %v5912_v55 = vpack.c.bf16 %v2701_v42, %v2697_v41  ;;  %v2724_v32 = vld [vmem:[#allocation8 + $0x818] sm:$0xff]  ;;  %v5922_v41 = vpack.c.bf16 %v2726_v31, %v2722_v29 }
 0x2c6   :  { %6411 = vmatprep.subr.bf16.mxu1 %v6410_v50  ;;  %v2708_v50 = vld [vmem:[#allocation8 + $0x798] sm:$0xff]  ;;  %v6424_v2 = vpack.c.bf16 %v2703_v46, %v2699_v43  ;;  %v6825_v42 = vadd.f32 %v7264_v12, %v7306_v51  ;;  %v7343_v43 = vrot.slane %v7332_v15, %v1143_v26  ;;  %v2721_v46 = vld [vmem:[#allocation8 + $0x800] sm:$0xff]  ;;  %v2739_v29 = vld [vmem:[#allocation8 + $0x890] sm:$0xff] }
 0x2c7   :  { %v6426_v7 = vpack.c.bf16 %v2712_v54, %v2708_v50  ;;  %v2728_v33 = vld [vmem:[#allocation8 + $0x838] sm:$0xff]  ;;  %v2727_v50 = vld [vmem:[#allocation8 + $0x830] sm:$0xff]  ;;  %v2730_v54 = vld [vmem:[#allocation8 + $0x848] sm:$0xff]  ;;  %v5924_v12 = vpack.c.bf16 %v2725_v47, %v2721_v46 }
 0x2c8   :  { %5901 = vmatpush1.bf16.msra.mxu0 %v5900_v58  ;;  %v2705_v58 = vld [vmem:[#allocation8 + $0x780] sm:$0xff]  ;;  %v2452_v51 = vmax.f32 %v6825_v42, 0.0 }
 0x2c9   :  { %6413 = vmatpush1.bf16.msra.mxu1 %v6412_v52  ;;  %5903 = vmatprep.subr.bf16.mxu0 %v5902_v6  ;;  %v2709_v52 = vld [vmem:[#allocation8 + $0x7a0] sm:$0xff]  ;;  %v2707_v6 = vld [vmem:[#allocation8 + $0x790] sm:$0xff] }
 0x2ca   :  { %6415 = vmatprep.subr.bf16.mxu1 %v6414_v34  ;;  %v2718_v34 = vld [vmem:[#allocation8 + $0x7e8] sm:$0xff]  ;;  %v5916_v17 = vpack.c.bf16 %v2709_v52, %v2705_v58  ;;  %v6824_v58 = vadd.f32 %v7260_v9, %v1132_v16  ;;  %v6827_v52 = vadd.f32 %v7270_v62, %v7343_v43  ;;  %v2740_v9 = vld [vmem:[#allocation8 + $0x898] sm:$0xff]  ;;  %v2745_v46 = vld [vmem:[#allocation8 + $0x8c0] sm:$0xff] }
 0x2cb   :  { %v2749_v47 = vld [vmem:[#allocation8 + $0x8e0] sm:$0xff] }
 0x2cc   :  { %5905 = vmatpush1.bf16.msra.mxu0 %v5904_v20  ;;  %v6428_v20 = vpack.c.bf16 %v2711_v25, %v2707_v6  ;;  %v6436_v6 = vpack.c.bf16 %v2727_v50, %v2723_v49  ;;  %v2729_v25 = vld [vmem:[#allocation8 + $0x840] sm:$0xff]  ;;  %v2438_v62 = vmax.f32 %v6827_v52, 0.0  ;;  %v2747_v49 = vld [vmem:[#allocation8 + $0x8d0] sm:$0xff] }
 0x2cd   :  { %6417 = vmatpush1.bf16.msra.mxu1 %v6416_v23  ;;  %5907 = vmatprep.subr.bf16.mxu0 %v5906_v24  ;;  %v5918_v23 = vpack.c.bf16 %v2718_v34, %v2714_v10  ;;  %v2713_v24 = vld [vmem:[#allocation8 + $0x7c0] sm:$0xff]  ;;  %v2731_v34 = vld [vmem:[#allocation8 + $0x850] sm:$0xff] }
 0x2ce   :  { %6419 = vmatprep.subr.bf16.mxu1 %v6418_v28  ;;  %v6430_v28 = vpack.c.bf16 %v2720_v13, %v2716_v8  ;;  %v2733_v10 = vld [vmem:[#allocation8 + $0x860] sm:$0xff]  ;;  %v2735_v13 = vld [vmem:[#allocation8 + $0x870] sm:$0xff] }
 0x2cf   :  { %v2753_v52 = vld [vmem:[#allocation8 + $0x900] sm:$0xff] }
 0x2d0   :  { %5909 = vmatpush1.bf16.msra.mxu0 %v5908_v35  ;;  %v5920_v35 = vpack.c.bf16 %v2717_v27, %v2713_v24  ;;  %v5928_v24 = vpack.c.bf16 %v2733_v10, %v2729_v25  ;;  %v6440_v27 = vpack.c.bf16 %v2735_v13, %v2731_v34  ;;  %v2759_v10 = vld [vmem:[#allocation8 + $0x930] sm:$0xff]  ;;  %v2762_v34 = vld [vmem:[#allocation8 + $0x948] sm:$0xff]  ;;  %v2764_v13 = vld [vmem:[#allocation8 + $0x958] sm:$0xff] }
 0x2d1   :  { %6421 = vmatpush1.bf16.msra.mxu1 %v6420_v36  ;;  %5911 = vmatprep.subr.bf16.mxu0 %v5910_v39  ;;  %v6822_v36 = vadd.f32 %v7252_v57, %v1132_v16  ;;  %v6432_v39 = vpack.c.bf16 %v2719_v61, %v2715_v4  ;;  %v2734_v57 = vld [vmem:[#allocation8 + $0x868] sm:$0xff]  ;;  %v2744_v16 = vld [vmem:[#allocation8 + $0x8b8] sm:$0xff]  ;;  %v2741_v61 = vld [vmem:[#allocation8 + $0x8a0] sm:$0xff] }
 0x2d2   :  { %6423 = vmatprep.subr.bf16.mxu1 %v6422_v45  ;;  %v6434_v45 = vpack.c.bf16 %v2728_v33, %v2724_v32  ;;  %v6442_v31 = vpack.c.bf16 %v2744_v16, %v2740_v9  ;;  %v2743_v32 = vld [vmem:[#allocation8 + $0x8b0] sm:$0xff]  ;;  %v2746_v33 = vld [vmem:[#allocation8 + $0x8c8] sm:$0xff] }
 0x2d3   :  { %v6444_v42 = vpack.c.bf16 %v2743_v32, %v2739_v29  ;;  %v2772_v29 = vld [vmem:[#allocation8 + $0x998] sm:$0xff] }
 0x2d4   :  { %5913 = vmatpush1.bf16.msra.mxu0 %v5912_v55  ;;  %v2732_v55 = vld [vmem:[#allocation8 + $0x858] sm:$0xff] }
 0x2d5   :  { %6425 = vmatpush1.bf16.msra.mxu1 %v6424_v2  ;;  %5915 = vmatprep.subr.bf16.mxu0 %v5914_v3  ;;  %v2736_v2 = vld [vmem:[#allocation8 + $0x878] sm:$0xff]  ;;  %v2435_v3 = vmax.f32 %v6822_v36, 0.0 }
 0x2d6   :  { %6427 = vmatprep.subr.bf16.mxu1 %v6426_v7  ;;  %v5926_v7 = vpack.c.bf16 %v2734_v57, %v2730_v54  ;;  %v6438_v8 = vpack.c.bf16 %v2736_v2, %v2732_v55  ;;  %v2748_v36 = vld [vmem:[#allocation8 + $0x8d8] sm:$0xff]  ;;  %v2751_v54 = vld [vmem:[#allocation8 + $0x8f0] sm:$0xff]  ;;  %v2754_v57 = vld [vmem:[#allocation8 + $0x908] sm:$0xff] }
 0x2d7   :  { %v2758_v55 = vld [vmem:[#allocation8 + $0x928] sm:$0xff]  ;;  %v2756_v2 = vld [vmem:[#allocation8 + $0x918] sm:$0xff] }
 0x2d8   :  { %5917 = vmatpush1.bf16.msra.mxu0 %v5916_v17  ;;  %v2738_v17 = vld [vmem:[#allocation8 + $0x888] sm:$0xff] }
 0x2d9   :  { %6429 = vmatpush1.bf16.msra.mxu1 %v6428_v20  ;;  %5919 = vmatprep.subr.bf16.mxu0 %v5918_v23  ;;  %v2742_v20 = vld [vmem:[#allocation8 + $0x8a8] sm:$0xff]  ;;  %v2451_v23 = vmax.f32 %v6824_v58, 0.0  ;;  %v5936_v58 = vpack.c.bf16 %v2749_v47, %v2745_v46 }
 0x2da   :  { %6431 = vmatprep.subr.bf16.mxu1 %v6430_v28  ;;  %v5930_v4 = vpack.c.bf16 %v2742_v20, %v2738_v17  ;;  %v2737_v28 = vld [vmem:[#allocation8 + $0x880] sm:$0xff]  ;;  %v2768_v17 = vld [vmem:[#allocation8 + $0x978] sm:$0xff]  ;;  %v2778_v46 = vld [vmem:[#allocation8 + $0x9c8] sm:$0xff] }
 0x2db   :  { %v2782_v47 = vld [vmem:[#allocation8 + $0x9e8] sm:$0xff] }
 0x2dc   :  { %5921 = vmatpush1.bf16.msra.mxu0 %v5920_v35  ;;  %v2750_v35 = vld [vmem:[#allocation8 + $0x8e8] sm:$0xff] }
 0x2dd   :  { %6433 = vmatpush1.bf16.msra.mxu1 %v6432_v39  ;;  %5923 = vmatprep.subr.bf16.mxu0 %v5922_v41  ;;  %v2752_v39 = vld [vmem:[#allocation8 + $0x8f8] sm:$0xff]  ;;  %v5932_v41 = vpack.c.bf16 %v2741_v61, %v2737_v28  ;;  %v2770_v28 = vld [vmem:[#allocation8 + $0x988] sm:$0xff] }
 0x2de   :  { %6435 = vmatprep.subr.bf16.mxu1 %v6434_v45  ;;  %v5934_v45 = vpack.c.bf16 %v2750_v35, %v2746_v33  ;;  %v6446_v50 = vpack.c.bf16 %v2752_v39, %v2748_v36  ;;  %v2774_v61 = vld [vmem:[#allocation8 + $0x9a8] sm:$0xff]  ;;  %v2769_v36 = vld [vmem:[#allocation8 + $0x980] sm:$0xff] }
 0x2df   :  { %3653 = vmatmul.mubr.f32.vlgmr.msra.gmra.mrb[16].mxu0 %v2435_v3  ;;  %v5946_v35 = vpack.c.bf16 %v2774_v61, %v2770_v28  ;;  %v2773_v39 = vld [vmem:[#allocation8 + $0x9a0] sm:$0xff] }
 0x2e0   :  { %4269 = vmatmul.mubr.f32.vlgmr.msra.gmra.mrb[16].mxu1 %v2435_v3  ;;  %3658 = vmatprep.mubr.f32.mxu0 %v2452_v51  ;;  %v2760_v3 = vld [vmem:[#allocation8 + $0x938] sm:$0xff] }
 0x2e1   :  { %5925 = vmatpush1.bf16.msra.mxu0 %v5924_v12  ;;  %4274 = vmatprep.mubr.f32.mxu1 %v2452_v51  ;;  %v6448_v12 = vpack.c.bf16 %v2751_v54, %v2747_v49  ;;  %v5938_v51 = vpack.c.bf16 %v2758_v55, %v2754_v57  ;;  %v6450_v25 = vpack.c.bf16 %v2760_v3, %v2756_v2  ;;  %v2780_v49 = vld [vmem:[#allocation8 + $0x9d8] sm:$0xff]  ;;  %v2777_v2 = vld [vmem:[#allocation8 + $0x9c0] sm:$0xff] }
 0x2e2   :  { %6437 = vmatpush1.bf16.msra.mxu1 %v6436_v6  ;;  %5927 = vmatprep.subr.bf16.mxu0 %v5926_v7  ;;  %v2757_v6 = vld [vmem:[#allocation8 + $0x920] sm:$0xff]  ;;  %v2755_v7 = vld [vmem:[#allocation8 + $0x910] sm:$0xff]  ;;  %v5948_v54 = vpack.c.bf16 %v2773_v39, %v2769_v36  ;;  %v5950_v55 = vpack.c.bf16 %v2782_v47, %v2778_v46  ;;  %v2802_v36 = vld [vmem:[#allocation8 + $0xa88] sm:$0xff] }
 0x2e3   :  { %3659 = vmatmul.mubr.f32.gmra.mrb[18].mxu0 %v2451_v23  ;;  %6439 = vmatprep.subr.bf16.mxu1 %v6438_v8  ;;  %v2766_v8 = vld [vmem:[#allocation8 + $0x968] sm:$0xff]  ;;  %v5940_v20 = vpack.c.bf16 %v2757_v6, %v2753_v52  ;;  %v6452_v9 = vpack.c.bf16 %v2759_v10, %v2755_v7  ;;  %v2781_v3 = vld [vmem:[#allocation8 + $0x9e0] sm:$0xff]  ;;  %v2788_v7 = vld [vmem:[#allocation8 + $0xa18] sm:$0xff] }
 0x2e4   :  { %4275 = vmatmul.mubr.f32.gmra.mrb[18].mxu1 %v2451_v23  ;;  %3729 = vmatprep.mubr.f32.mxu0 %v2438_v62  ;;  %v5942_v16 = vpack.c.bf16 %v2766_v8, %v2762_v34  ;;  %v2761_v23 = vld [vmem:[#allocation8 + $0x940] sm:$0xff]  ;;  %v2786_v52 = vld [vmem:[#allocation8 + $0xa08] sm:$0xff]  ;;  %v5952_v10 = vpack.c.bf16 %v2781_v3, %v2777_v2 }
 0x2e5   :  { %5929 = vmatpush1.bf16.msra.mxu0 %v5928_v24  ;;  %4345 = vmatprep.mubr.f32.mxu1 %v2438_v62  ;;  %v2765_v24 = vld [vmem:[#allocation8 + $0x960] sm:$0xff]  ;;  %v2763_v62 = vld [vmem:[#allocation8 + $0x950] sm:$0xff]  ;;  %v2790_v6 = vld [vmem:[#allocation8 + $0xa28] sm:$0xff] }
 0x2e6   :  { %6441 = vmatpush1.bf16.msra.mxu1 %v6440_v27  ;;  %5931 = vmatprep.subr.bf16.mxu0 %v5930_v4  ;;  %v6454_v27 = vpack.c.bf16 %v2768_v17, %v2764_v13  ;;  %v2767_v4 = vld [vmem:[#allocation8 + $0x970] sm:$0xff]  ;;  %v5944_v32 = vpack.c.bf16 %v2765_v24, %v2761_v23  ;;  %v5954_v8 = vpack.c.bf16 %v2790_v6, %v2786_v52  ;;  %v2785_v13 = vld [vmem:[#allocation8 + $0xa00] sm:$0xff]  ;;  %v2794_v23 = vld [vmem:[#allocation8 + $0xa48] sm:$0xff] }
 0x2e7   :  { %6443 = vmatprep.subr.bf16.mxu1 %v6442_v31  ;;  %v2776_v31 = vld [vmem:[#allocation8 + $0x9b8] sm:$0xff]  ;;  %v6456_v33 = vpack.c.bf16 %v2767_v4, %v2763_v62  ;;  %v2789_v17 = vld [vmem:[#allocation8 + $0xa20] sm:$0xff]  ;;  %v2798_v24 = vld [vmem:[#allocation8 + $0xa68] sm:$0xff] }
 0x2e8   :  { %v2796_v62 = vld [vmem:[#allocation8 + $0xa58] sm:$0xff]  ;;  %v5956_v4 = vpack.c.bf16 %v2789_v17, %v2785_v13  ;;  %v5958_v61 = vpack.c.bf16 %v2798_v24, %v2794_v23  ;;  %v2806_v39 = vld [vmem:[#allocation8 + $0xaa8] sm:$0xff] }
 0x2e9   :  { %5933 = vmatpush1.bf16.msra.mxu0 %v5932_v41  ;;  %v2771_v41 = vld [vmem:[#allocation8 + $0x990] sm:$0xff]  ;;  %v5962_v47 = vpack.c.bf16 %v2806_v39, %v2802_v36  ;;  %v2810_v2 = vld [vmem:[#allocation8 + $0xac8] sm:$0xff] }
 0x2ea   :  { %6445 = vmatpush1.bf16.msra.mxu1 %v6444_v42  ;;  %5935 = vmatprep.subr.bf16.mxu0 %v5934_v45  ;;  %v6458_v42 = vpack.c.bf16 %v2776_v31, %v2772_v29  ;;  %v2775_v45 = vld [vmem:[#allocation8 + $0x9b0] sm:$0xff]  ;;  %v2793_v29 = vld [vmem:[#allocation8 + $0xa40] sm:$0xff]  ;;  %v2814_v3 = vld [vmem:[#allocation8 + $0xae8] sm:$0xff] }
 0x2eb   :  { %6447 = vmatprep.subr.bf16.mxu1 %v6446_v50  ;;  %v2784_v50 = vld [vmem:[#allocation8 + $0x9f8] sm:$0xff]  ;;  %v6460_v57 = vpack.c.bf16 %v2775_v45, %v2771_v41  ;;  %v2797_v31 = vld [vmem:[#allocation8 + $0xa60] sm:$0xff]  ;;  %v5966_v6 = vpack.c.bf16 %v2814_v3, %v2810_v2  ;;  %v2818_v13 = vld [vmem:[#allocation8 + $0xb08] sm:$0xff]  ;;  %v1139_v2 = vsub.s32 4, %v7282_v0 }
 0x2ec   :  { %v2804_v41 = vld [vmem:[#allocation8 + $0xa98] sm:$0xff]  ;;  %v5960_v45 = vpack.c.bf16 %v2797_v31, %v2793_v29  ;;  %v2822_v17 = vld [vmem:[#allocation8 + $0xb28] sm:$0xff] }
 0x2ed   :  { %5937 = vmatpush1.bf16.msra.mxu0 %v5936_v58  ;;  %v2779_v58 = vld [vmem:[#allocation8 + $0x9d0] sm:$0xff]  ;;  %v5970_v24 = vpack.c.bf16 %v2822_v17, %v2818_v13  ;;  %v2826_v29 = vld [vmem:[#allocation8 + $0xb48] sm:$0xff]  ;;  %v1140_v17 = vrot.slane %v7332_v15, %v1139_v2 }
 0x2ee   :  { %6449 = vmatpush1.bf16.msra.mxu1 %v6448_v12  ;;  %5939 = vmatprep.subr.bf16.mxu0 %v5938_v51  ;;  %v6462_v12 = vpack.c.bf16 %v2784_v50, %v2780_v49  ;;  %v2783_v51 = vld [vmem:[#allocation8 + $0x9f0] sm:$0xff]  ;;  %v2801_v49 = vld [vmem:[#allocation8 + $0xa80] sm:$0xff]  ;;  %v2830_v31 = vld [vmem:[#allocation8 + $0xb68] sm:$0xff] }
 0x2ef   :  { %6451 = vmatprep.subr.bf16.mxu1 %v6450_v25  ;;  %v2792_v25 = vld [vmem:[#allocation8 + $0xa38] sm:$0xff]  ;;  %v6464_v34 = vpack.c.bf16 %v2783_v51, %v2779_v58  ;;  %v2805_v50 = vld [vmem:[#allocation8 + $0xaa0] sm:$0xff]  ;;  %v5974_v39 = vpack.c.bf16 %v2830_v31, %v2826_v29 }
 0x2f0   :  { %v2812_v58 = vld [vmem:[#allocation8 + $0xad8] sm:$0xff]  ;;  %v5964_v51 = vpack.c.bf16 %v2805_v50, %v2801_v49  ;;  %v2834_v49 = vld [vmem:[#allocation8 + $0xb88] sm:$0xff] }
 0x2f1   :  { %5941 = vmatpush1.bf16.msra.mxu0 %v5940_v20  ;;  %v2787_v20 = vld [vmem:[#allocation8 + $0xa10] sm:$0xff]  ;;  %v2838_v50 = vld [vmem:[#allocation8 + $0xba8] sm:$0xff]  ;;  %v2852_v29 = vld [vmem:[#allocation8 + $0xc18] sm:$0xff] }
 0x2f2   :  { %6453 = vmatpush1.bf16.msra.mxu1 %v6452_v9  ;;  %5943 = vmatprep.subr.bf16.mxu0 %v5942_v16  ;;  %v6466_v9 = vpack.c.bf16 %v2792_v25, %v2788_v7  ;;  %v2791_v16 = vld [vmem:[#allocation8 + $0xa30] sm:$0xff]  ;;  %v2809_v7 = vld [vmem:[#allocation8 + $0xac0] sm:$0xff]  ;;  %v2856_v31 = vld [vmem:[#allocation8 + $0xc38] sm:$0xff] }
 0x2f3   :  { %6455 = vmatprep.subr.bf16.mxu1 %v6454_v27  ;;  %v2800_v27 = vld [vmem:[#allocation8 + $0xa78] sm:$0xff]  ;;  %v6468_v28 = vpack.c.bf16 %v2791_v16, %v2787_v20  ;;  %v2813_v25 = vld [vmem:[#allocation8 + $0xae0] sm:$0xff] }
 0x2f4   :  { %v2820_v20 = vld [vmem:[#allocation8 + $0xb18] sm:$0xff]  ;;  %v5968_v16 = vpack.c.bf16 %v2813_v25, %v2809_v7  ;;  %v2839_v7 = vld [vmem:[#allocation8 + $0xbb0] sm:$0xff]  ;;  %v2842_v25 = vld [vmem:[#allocation8 + $0xbc8] sm:$0xff] }
 0x2f5   :  { %5945 = vmatpush1.bf16.msra.mxu0 %v5944_v32  ;;  %v2795_v32 = vld [vmem:[#allocation8 + $0xa50] sm:$0xff] }
 0x2f6   :  { %6457 = vmatpush1.bf16.msra.mxu1 %v6456_v33  ;;  %5947 = vmatprep.subr.bf16.mxu0 %v5946_v35  ;;  %v6470_v33 = vpack.c.bf16 %v2800_v27, %v2796_v62  ;;  %v2799_v35 = vld [vmem:[#allocation8 + $0xa70] sm:$0xff]  ;;  %v2817_v62 = vld [vmem:[#allocation8 + $0xb00] sm:$0xff] }
 0x2f7   :  { %6459 = vmatprep.subr.bf16.mxu1 %v6458_v42  ;;  %v2808_v42 = vld [vmem:[#allocation8 + $0xab8] sm:$0xff]  ;;  %v6472_v46 = vpack.c.bf16 %v2799_v35, %v2795_v32  ;;  %v2821_v27 = vld [vmem:[#allocation8 + $0xb20] sm:$0xff] }
 0x2f8   :  { %v2828_v32 = vld [vmem:[#allocation8 + $0xb58] sm:$0xff]  ;;  %v5972_v35 = vpack.c.bf16 %v2821_v27, %v2817_v62  ;;  %v1151_v62 = vsub.s32 7, %v7282_v0 }
 0x2f9   :  { %5949 = vmatpush1.bf16.msra.mxu0 %v5948_v54  ;;  %v2803_v54 = vld [vmem:[#allocation8 + $0xa90] sm:$0xff] }
 0x2fa   :  { %6461 = vmatpush1.bf16.msra.mxu1 %v6460_v57  ;;  %5951 = vmatprep.subr.bf16.mxu0 %v5950_v55  ;;  %v6474_v57 = vpack.c.bf16 %v2808_v42, %v2804_v41  ;;  %v2807_v55 = vld [vmem:[#allocation8 + $0xab0] sm:$0xff]  ;;  %v2825_v41 = vld [vmem:[#allocation8 + $0xb40] sm:$0xff] }
 0x2fb   :  { %6463 = vmatprep.subr.bf16.mxu1 %v6462_v12  ;;  %v2816_v12 = vld [vmem:[#allocation8 + $0xaf8] sm:$0xff]  ;;  %v6476_v52 = vpack.c.bf16 %v2807_v55, %v2803_v54  ;;  %v2829_v42 = vld [vmem:[#allocation8 + $0xb60] sm:$0xff] }
 0x2fc   :  { %v2836_v54 = vld [vmem:[#allocation8 + $0xb98] sm:$0xff]  ;;  %v5976_v55 = vpack.c.bf16 %v2829_v42, %v2825_v41  ;;  %v6829_v41 = vadd.f32 %v7278_v19, %v7343_v43  ;;  %v6498_v42 = vpack.c.bf16 %v2856_v31, %v2852_v29 }
 0x2fd   :  { %5953 = vmatpush1.bf16.msra.mxu0 %v5952_v10  ;;  %v2811_v10 = vld [vmem:[#allocation8 + $0xad0] sm:$0xff]  ;;  %v2876_v29 = vld [vmem:[#allocation8 + $0xcd8] sm:$0xff] }
 0x2fe   :  { %6465 = vmatpush1.bf16.msra.mxu1 %v6464_v34  ;;  %5955 = vmatprep.subr.bf16.mxu0 %v5954_v8  ;;  %v6478_v34 = vpack.c.bf16 %v2816_v12, %v2812_v58  ;;  %v2815_v8 = vld [vmem:[#allocation8 + $0xaf0] sm:$0xff]  ;;  %v5978_v58 = vpack.c.bf16 %v2838_v50, %v2834_v49  ;;  %v2833_v12 = vld [vmem:[#allocation8 + $0xb80] sm:$0xff]  ;;  %v2858_v50 = vld [vmem:[#allocation8 + $0xc48] sm:$0xff]  ;;  %v2454_v43 = vmax.f32 %v6829_v41, 0.0 }
 0x2ff   :  { %6467 = vmatprep.subr.bf16.mxu1 %v6466_v9  ;;  %v2824_v9 = vld [vmem:[#allocation8 + $0xb38] sm:$0xff]  ;;  %v6480_v23 = vpack.c.bf16 %v2815_v8, %v2811_v10  ;;  %v2846_v10 = vld [vmem:[#allocation8 + $0xbe8] sm:$0xff]  ;;  %v2855_v49 = vld [vmem:[#allocation8 + $0xc30] sm:$0xff] }
 0x300   :  { %v2848_v8 = vld [vmem:[#allocation8 + $0xbf8] sm:$0xff]  ;;  %v2877_v41 = vld [vmem:[#allocation8 + $0xce0] sm:$0xff] }
 0x301   :  { %5957 = vmatpush1.bf16.msra.mxu0 %v5956_v4  ;;  %v2819_v4 = vld [vmem:[#allocation8 + $0xb10] sm:$0xff]  ;;  %v2880_v31 = vld [vmem:[#allocation8 + $0xcf8] sm:$0xff] }
 0x302   :  { %6469 = vmatpush1.bf16.msra.mxu1 %v6468_v28  ;;  %5959 = vmatprep.subr.bf16.mxu0 %v5958_v61  ;;  %v6482_v28 = vpack.c.bf16 %v2824_v9, %v2820_v20  ;;  %v2823_v61 = vld [vmem:[#allocation8 + $0xb30] sm:$0xff]  ;;  %v5982_v9 = vpack.c.bf16 %v2846_v10, %v2842_v25  ;;  %v2866_v10 = vld [vmem:[#allocation8 + $0xc88] sm:$0xff] }
 0x303   :  { %6471 = vmatprep.subr.bf16.mxu1 %v6470_v33  ;;  %v2832_v33 = vld [vmem:[#allocation8 + $0xb78] sm:$0xff]  ;;  %v6484_v36 = vpack.c.bf16 %v2823_v61, %v2819_v4  ;;  %v2847_v4 = vld [vmem:[#allocation8 + $0xbf0] sm:$0xff]  ;;  %v2854_v61 = vld [vmem:[#allocation8 + $0xc28] sm:$0xff] }
 0x304   :  { %v2863_v25 = vld [vmem:[#allocation8 + $0xc70] sm:$0xff] }
 0x305   :  { %5961 = vmatpush1.bf16.msra.mxu0 %v5960_v45  ;;  %v2827_v45 = vld [vmem:[#allocation8 + $0xb50] sm:$0xff] }
 0x306   :  { %6473 = vmatpush1.bf16.msra.mxu1 %v6472_v46  ;;  %5963 = vmatprep.subr.bf16.mxu0 %v5962_v47  ;;  %v6486_v46 = vpack.c.bf16 %v2832_v33, %v2828_v32  ;;  %v2831_v47 = vld [vmem:[#allocation8 + $0xb70] sm:$0xff]  ;;  %v6826_v33 = vadd.f32 %v7266_v53, %v1140_v17  ;;  %v2862_v53 = vld [vmem:[#allocation8 + $0xc68] sm:$0xff] }
 0x307   :  { %6475 = vmatprep.subr.bf16.mxu1 %v6474_v57  ;;  %v2840_v57 = vld [vmem:[#allocation8 + $0xbb8] sm:$0xff]  ;;  %v6488_v3 = vpack.c.bf16 %v2831_v47, %v2827_v45  ;;  %v2849_v45 = vld [vmem:[#allocation8 + $0xc00] sm:$0xff]  ;;  %v2851_v47 = vld [vmem:[#allocation8 + $0xc10] sm:$0xff] }
 0x309   :  { %5965 = vmatpush1.bf16.msra.mxu0 %v5964_v51  ;;  %v2837_v51 = vld [vmem:[#allocation8 + $0xba0] sm:$0xff] }
 0x30a   :  { %6477 = vmatpush1.bf16.msra.mxu1 %v6476_v52  ;;  %5967 = vmatprep.subr.bf16.mxu0 %v5966_v6  ;;  %v2835_v52 = vld [vmem:[#allocation8 + $0xb90] sm:$0xff]  ;;  %v6490_v6 = vpack.c.bf16 %v2840_v57, %v2836_v54  ;;  %v5980_v13 = vpack.c.bf16 %v2837_v51, %v2833_v12  ;;  %v2860_v54 = vld [vmem:[#allocation8 + $0xc58] sm:$0xff]  ;;  %v5990_v12 = vpack.c.bf16 %v2862_v53, %v2858_v50  ;;  %v2857_v51 = vld [vmem:[#allocation8 + $0xc40] sm:$0xff] }
 0x30b   :  { %6479 = vmatprep.subr.bf16.mxu1 %v6478_v34  ;;  %v2844_v34 = vld [vmem:[#allocation8 + $0xbd8] sm:$0xff]  ;;  %v6492_v20 = vpack.c.bf16 %v2839_v7, %v2835_v52  ;;  %v2861_v52 = vld [vmem:[#allocation8 + $0xc60] sm:$0xff] }
 0x30c   :  { %v6494_v27 = vpack.c.bf16 %v2848_v8, %v2844_v34  ;;  %v2864_v57 = vld [vmem:[#allocation8 + $0xc78] sm:$0xff]  ;;  %v2870_v34 = vld [vmem:[#allocation8 + $0xca8] sm:$0xff] }
 0x30d   :  { %5969 = vmatpush1.bf16.msra.mxu0 %v5968_v16  ;;  %v2841_v16 = vld [vmem:[#allocation8 + $0xbc0] sm:$0xff]  ;;  %v6502_v7 = vpack.c.bf16 %v2864_v57, %v2860_v54  ;;  %v2872_v8 = vld [vmem:[#allocation8 + $0xcb8] sm:$0xff] }
 0x30e   :  { %6481 = vmatpush1.bf16.msra.mxu1 %v6480_v23  ;;  %5971 = vmatprep.subr.bf16.mxu0 %v5970_v24  ;;  %v2845_v23 = vld [vmem:[#allocation8 + $0xbe0] sm:$0xff]  ;;  %v2843_v24 = vld [vmem:[#allocation8 + $0xbd0] sm:$0xff]  ;;  %v2884_v50 = vld [vmem:[#allocation8 + $0xd18] sm:$0xff] }
 0x30f   :  { %6483 = vmatprep.subr.bf16.mxu1 %v6482_v28  ;;  %v2850_v28 = vld [vmem:[#allocation8 + $0xc08] sm:$0xff]  ;;  %v5984_v32 = vpack.c.bf16 %v2845_v23, %v2841_v16  ;;  %v2865_v16 = vld [vmem:[#allocation8 + $0xc80] sm:$0xff]  ;;  %v2888_v53 = vld [vmem:[#allocation8 + $0xd38] sm:$0xff] }
 0x310   :  { %v2869_v23 = vld [vmem:[#allocation8 + $0xca0] sm:$0xff] }
 0x311   :  { %5973 = vmatpush1.bf16.msra.mxu0 %v5972_v35  ;;  %v6496_v35 = vpack.c.bf16 %v2847_v4, %v2843_v24  ;;  %v2867_v24 = vld [vmem:[#allocation8 + $0xc90] sm:$0xff] }
 0x312   :  { %6485 = vmatpush1.bf16.msra.mxu1 %v6484_v36  ;;  %5975 = vmatprep.subr.bf16.mxu0 %v5974_v39  ;;  %v5986_v36 = vpack.c.bf16 %v2854_v61, %v2850_v28  ;;  %v7357_v39 = vrot.slane %v7332_v15, %v1151_v62  ;;  %v2871_v4 = vld [vmem:[#allocation8 + $0xcb0] sm:$0xff]  ;;  %v2874_v28 = vld [vmem:[#allocation8 + $0xcc8] sm:$0xff] }
 0x313   :  { %6487 = vmatprep.subr.bf16.mxu1 %v6486_v46  ;;  %v2853_v46 = vld [vmem:[#allocation8 + $0xc20] sm:$0xff]  ;;  %v2878_v61 = vld [vmem:[#allocation8 + $0xce8] sm:$0xff] }
 0x314   :  { %v5988_v15 = vpack.c.bf16 %v2853_v46, %v2849_v45  ;;  %v6831_v19 = vadd.f32 %v7272_v1, %v7357_v39  ;;  %v5992_v1 = vpack.c.bf16 %v2861_v52, %v2857_v51  ;;  %v6510_v45 = vpack.c.bf16 %v2880_v31, %v2876_v29  ;;  %v2879_v46 = vld [vmem:[#allocation8 + $0xcf0] sm:$0xff]  ;;  %v2894_v51 = vld [vmem:[#allocation8 + $0xd68] sm:$0xff]  ;;  %v2892_v52 = vld [vmem:[#allocation8 + $0xd58] sm:$0xff] }
 0x315   :  { %5977 = vmatpush1.bf16.msra.mxu0 %v5976_v55  ;;  %v2437_v55 = vmax.f32 %v6826_v33, 0.0  ;;  %v6508_v33 = vpack.c.bf16 %v2871_v4, %v2867_v24  ;;  %v2897_v31 = vld [vmem:[#allocation8 + $0xd80] sm:$0xff] }
 0x316   :  { %6489 = vmatpush1.bf16.msra.mxu1 %v6488_v3  ;;  %5979 = vmatprep.subr.bf16.mxu0 %v5978_v58  ;;  %v6828_v3 = vadd.f32 %v7274_v11, %v1140_v17  ;;  %v6500_v58 = vpack.c.bf16 %v2855_v49, %v2851_v47  ;;  %v2868_v11 = vld [vmem:[#allocation8 + $0xc98] sm:$0xff]  ;;  %v2440_v17 = vmax.f32 %v6831_v19, 0.0  ;;  %v2882_v47 = vld [vmem:[#allocation8 + $0xd08] sm:$0xff]  ;;  %v2883_v19 = vld [vmem:[#allocation8 + $0xd10] sm:$0xff] }
 0x317   :  { %6491 = vmatprep.subr.bf16.mxu1 %v6490_v6  ;;  %v2859_v6 = vld [vmem:[#allocation8 + $0xc50] sm:$0xff]  ;;  %v2886_v49 = vld [vmem:[#allocation8 + $0xd28] sm:$0xff] }
 0x319   :  { %5981 = vmatpush1.bf16.msra.mxu0 %v5980_v13  ;;  %v2453_v13 = vmax.f32 %v6828_v3, 0.0  ;;  %v2881_v3 = vld [vmem:[#allocation8 + $0xd00] sm:$0xff] }
 0x31a   :  { %6493 = vmatpush1.bf16.msra.mxu1 %v6492_v20  ;;  %5983 = vmatprep.subr.bf16.mxu0 %v5982_v9  ;;  %v6504_v20 = vpack.c.bf16 %v2863_v25, %v2859_v6  ;;  %v5994_v9 = vpack.c.bf16 %v2870_v34, %v2866_v10  ;;  %v2896_v6 = vld [vmem:[#allocation8 + $0xd78] sm:$0xff]  ;;  %v2889_v34 = vld [vmem:[#allocation8 + $0xd40] sm:$0xff] }
 0x31b   :  { %6495 = vmatprep.subr.bf16.mxu1 %v6494_v27  ;;  %v6506_v27 = vpack.c.bf16 %v2872_v8, %v2868_v11  ;;  %v2893_v11 = vld [vmem:[#allocation8 + $0xd60] sm:$0xff]  ;;  %v2891_v8 = vld [vmem:[#allocation8 + $0xd50] sm:$0xff] }
 0x31c   :  { %v6008_v4 = vpack.c.bf16 %v2893_v11, %v2889_v34  ;;  %v2913_v34 = vld [vmem:[#allocation8 + $0xe00] sm:$0xff] }
 0x31d   :  { %5985 = vmatpush1.bf16.msra.mxu0 %v5984_v32  ;;  %v5996_v32 = vpack.c.bf16 %v2869_v23, %v2865_v16  ;;  %v2900_v16 = vld [vmem:[#allocation8 + $0xd98] sm:$0xff]  ;;  %v2917_v11 = vld [vmem:[#allocation8 + $0xe20] sm:$0xff] }
 0x31e   :  { %6497 = vmatpush1.bf16.msra.mxu1 %v6496_v35  ;;  %5987 = vmatprep.subr.bf16.mxu0 %v5986_v36  ;;  %v5998_v35 = vpack.c.bf16 %v2878_v61, %v2874_v28  ;;  %v2873_v36 = vld [vmem:[#allocation8 + $0xcc0] sm:$0xff]  ;;  %v2904_v23 = vld [vmem:[#allocation8 + $0xdb8] sm:$0xff] }
 0x31f   :  { %6499 = vmatprep.subr.bf16.mxu1 %v6498_v42  ;;  %v2875_v42 = vld [vmem:[#allocation8 + $0xcd0] sm:$0xff]  ;;  %v6000_v54 = vpack.c.bf16 %v2877_v41, %v2873_v36  ;;  %v2906_v41 = vld [vmem:[#allocation8 + $0xdc8] sm:$0xff] }
 0x320   :  { %3730 = vmatmul.mubr.f32.vlgmr.msra.gmra.mrb[16].mxu0 %v2437_v55  ;;  %v6512_v57 = vpack.c.bf16 %v2879_v46, %v2875_v42  ;;  %v2903_v36 = vld [vmem:[#allocation8 + $0xdb0] sm:$0xff]  ;;  %v2910_v42 = vld [vmem:[#allocation8 + $0xde8] sm:$0xff]  ;;  %v2908_v46 = vld [vmem:[#allocation8 + $0xdd8] sm:$0xff] }
 0x321   :  { %4346 = vmatmul.mubr.f32.vlgmr.msra.gmra.mrb[16].mxu1 %v2437_v55  ;;  %3735 = vmatprep.mubr.f32.mxu0 %v2454_v43  ;;  %v6002_v55 = vpack.c.bf16 %v2886_v49, %v2882_v47  ;;  %v2912_v47 = vld [vmem:[#allocation8 + $0xdf8] sm:$0xff] }
 0x322   :  { %5989 = vmatpush1.bf16.msra.mxu0 %v5988_v15  ;;  %4351 = vmatprep.mubr.f32.mxu1 %v2454_v43  ;;  %v2885_v15 = vld [vmem:[#allocation8 + $0xd20] sm:$0xff]  ;;  %v6514_v43 = vpack.c.bf16 %v2888_v53, %v2884_v50 }
 0x323   :  { %6501 = vmatpush1.bf16.msra.mxu1 %v6500_v58  ;;  %5991 = vmatprep.subr.bf16.mxu0 %v5990_v12  ;;  %v2887_v58 = vld [vmem:[#allocation8 + $0xd30] sm:$0xff]  ;;  %v2890_v12 = vld [vmem:[#allocation8 + $0xd48] sm:$0xff] }
 0x324   :  { %3736 = vmatmul.mubr.f32.gmra.mrb[18].mxu0 %v2453_v13  ;;  %6503 = vmatprep.subr.bf16.mxu1 %v6502_v7  ;;  %v6004_v7 = vpack.c.bf16 %v2885_v15, %v2881_v3  ;;  %v6516_v25 = vpack.c.bf16 %v2887_v58, %v2883_v19  ;;  %v6006_v10 = vpack.c.bf16 %v2894_v51, %v2890_v12  ;;  %v2905_v3 = vld [vmem:[#allocation8 + $0xdc0] sm:$0xff]  ;;  %v2907_v19 = vld [vmem:[#allocation8 + $0xdd0] sm:$0xff]  ;;  %v2914_v12 = vld [vmem:[#allocation8 + $0xe08] sm:$0xff] }
 0x325   :  { %4352 = vmatmul.mubr.f32.gmra.mrb[18].mxu1 %v2453_v13  ;;  %3806 = vmatprep.mubr.f32.mxu0 %v2440_v17  ;;  %v6518_v13 = vpack.c.bf16 %v2896_v6, %v2892_v52  ;;  %v2909_v15 = vld [vmem:[#allocation8 + $0xde0] sm:$0xff]  ;;  %v2911_v58 = vld [vmem:[#allocation8 + $0xdf0] sm:$0xff]  ;;  %v2918_v51 = vld [vmem:[#allocation8 + $0xe28] sm:$0xff] }
 0x326   :  { %5993 = vmatpush1.bf16.msra.mxu0 %v5992_v1  ;;  %4422 = vmatprep.mubr.f32.mxu1 %v2440_v17  ;;  %v2895_v1 = vld [vmem:[#allocation8 + $0xd70] sm:$0xff]  ;;  %v2898_v17 = vld [vmem:[#allocation8 + $0xd88] sm:$0xff]  ;;  %v2916_v52 = vld [vmem:[#allocation8 + $0xe18] sm:$0xff] }
 0x327   :  { %6505 = vmatpush1.bf16.msra.mxu1 %v6504_v20  ;;  %5995 = vmatprep.subr.bf16.mxu0 %v5994_v9  ;;  %v2902_v20 = vld [vmem:[#allocation8 + $0xda8] sm:$0xff]  ;;  %v6520_v61 = vpack.c.bf16 %v2895_v1, %v2891_v8  ;;  %v2920_v6 = vld [vmem:[#allocation8 + $0xe38] sm:$0xff]  ;;  %v2915_v8 = vld [vmem:[#allocation8 + $0xe10] sm:$0xff] }
 0x328   :  { %6507 = vmatprep.subr.bf16.mxu1 %v6506_v27  ;;  %v6010_v29 = vpack.c.bf16 %v2902_v20, %v2898_v17  ;;  %v2919_v1 = vld [vmem:[#allocation8 + $0xe30] sm:$0xff]  ;;  %v2922_v17 = vld [vmem:[#allocation8 + $0xe48] sm:$0xff] }
 0x329   :  { %v2926_v20 = vld [vmem:[#allocation8 + $0xe68] sm:$0xff] }
 0x32a   :  { %5997 = vmatpush1.bf16.msra.mxu0 %v5996_v32  ;;  %v2901_v32 = vld [vmem:[#allocation8 + $0xda0] sm:$0xff] }
 0x32b   :  { %6509 = vmatpush1.bf16.msra.mxu1 %v6508_v33  ;;  %5999 = vmatprep.subr.bf16.mxu0 %v5998_v35  ;;  %v2899_v33 = vld [vmem:[#allocation8 + $0xd90] sm:$0xff]  ;;  %v6522_v35 = vpack.c.bf16 %v2904_v23, %v2900_v16  ;;  %v6012_v53 = vpack.c.bf16 %v2901_v32, %v2897_v31  ;;  %v2924_v16 = vld [vmem:[#allocation8 + $0xe58] sm:$0xff]  ;;  %v2921_v31 = vld [vmem:[#allocation8 + $0xe40] sm:$0xff] }
 0x32c   :  { %6511 = vmatprep.subr.bf16.mxu1 %v6510_v45  ;;  %v2928_v23 = vld [vmem:[#allocation8 + $0xe78] sm:$0xff]  ;;  %v2925_v32 = vld [vmem:[#allocation8 + $0xe60] sm:$0xff] }
 0x32e   :  { %6001 = vmatpush1.bf16.msra.mxu0 %v6000_v54 }
 0x32f   :  { %6513 = vmatpush1.bf16.msra.mxu1 %v6512_v57  ;;  %6003 = vmatprep.subr.bf16.mxu0 %v6002_v55  ;;  %v6524_v57 = vpack.c.bf16 %v2903_v36, %v2899_v33  ;;  %v6014_v55 = vpack.c.bf16 %v2910_v42, %v2906_v41  ;;  %v2923_v33 = vld [vmem:[#allocation8 + $0xe50] sm:$0xff]  ;;  %v2930_v41 = vld [vmem:[#allocation8 + $0xe88] sm:$0xff] }
 0x330   :  { %6515 = vmatprep.subr.bf16.mxu1 %v6514_v43  ;;  %v6526_v43 = vpack.c.bf16 %v2912_v47, %v2908_v46  ;;  %v2927_v36 = vld [vmem:[#allocation8 + $0xe70] sm:$0xff]  ;;  %v2934_v42 = vld [vmem:[#allocation8 + $0xea8] sm:$0xff]  ;;  %v2932_v46 = vld [vmem:[#allocation8 + $0xe98] sm:$0xff] }
 0x331   :  { %v7364_v9 = vpop.f32.mrb[12].mxu0  ;;  %v2936_v47 = vld [vmem:[#allocation8 + $0xeb8] sm:$0xff] }
 0x332   :  { %6005 = vmatpush1.bf16.msra.mxu0 %v6004_v7  ;;  %v7366_v24 = vpop.f32.mrb[12].mxu1  ;;  %v7368_v27 = vpop.f32.mrb[13].mxu0  ;;  %v6016_v7 = vpack.c.bf16 %v2909_v15, %v2905_v3  ;;  %v2929_v3 = vld [vmem:[#allocation8 + $0xe80] sm:$0xff] }
 0x333   :  { %6517 = vmatpush1.bf16.msra.mxu1 %v6516_v25  ;;  %v7370_v28 = vpop.f32.mrb[13].mxu1  ;;  %6007 = vmatprep.subr.bf16.mxu0 %v6006_v10  ;;  %v6528_v25 = vpack.c.bf16 %v2911_v58, %v2907_v19  ;;  %v6018_v10 = vpack.c.bf16 %v2918_v51, %v2914_v12  ;;  %v2933_v15 = vld [vmem:[#allocation8 + $0xea0] sm:$0xff]  ;;  %v2931_v19 = vld [vmem:[#allocation8 + $0xe90] sm:$0xff]  ;;  %v2938_v12 = vld [vmem:[#allocation8 + $0xec8] sm:$0xff] }
 0x334   :  { %6519 = vmatprep.subr.bf16.mxu1 %v6518_v13  ;;  %v6530_v13 = vpack.c.bf16 %v2920_v6, %v2916_v52  ;;  %v2935_v58 = vld [vmem:[#allocation8 + $0xeb0] sm:$0xff]  ;;  %v2942_v51 = vld [vmem:[#allocation8 + $0xee8] sm:$0xff]  ;;  %v2940_v52 = vld [vmem:[#allocation8 + $0xed8] sm:$0xff] }
 0x335   :  { %v7372_v45 = vpop.f32.mrb[14].mxu0  ;;  %v2944_v6 = vld [vmem:[#allocation8 + $0xef8] sm:$0xff] }
 0x336   :  { %6009 = vmatpush1.bf16.msra.mxu0 %v6008_v4  ;;  %v7374_v49 = vpop.f32.mrb[14].mxu1  ;;  %v7376_v50 = vpop.f32.mrb[15].mxu0  ;;  %v6020_v4 = vpack.c.bf16 %v2917_v11, %v2913_v34  ;;  %v2937_v34 = vld [vmem:[#allocation8 + $0xec0] sm:$0xff] }
 0x337   :  { %6521 = vmatpush1.bf16.msra.mxu1 %v6520_v61  ;;  %v7378_v54 = vpop.f32.mrb[15].mxu1  ;;  %6011 = vmatprep.subr.bf16.mxu0 %v6010_v29  ;;  %v6532_v61 = vpack.c.bf16 %v2919_v1, %v2915_v8  ;;  %v6022_v29 = vpack.c.bf16 %v2926_v20, %v2922_v17  ;;  %v2941_v11 = vld [vmem:[#allocation8 + $0xee0] sm:$0xff]  ;;  %v2939_v8 = vld [vmem:[#allocation8 + $0xed0] sm:$0xff]  ;;  %v2946_v17 = vld [vmem:[#allocation8 + $0xf08] sm:$0xff] }
 0x338   :  { %6523 = vmatprep.subr.bf16.mxu1 %v6522_v35  ;;  %v6534_v35 = vpack.c.bf16 %v2928_v23, %v2924_v16  ;;  %v2943_v1 = vld [vmem:[#allocation8 + $0xef0] sm:$0xff]  ;;  %v2950_v20 = vld [vmem:[#allocation8 + $0xf28] sm:$0xff]  ;;  %v2948_v16 = vld [vmem:[#allocation8 + $0xf18] sm:$0xff] }
 0x339   :  { %v2952_v23 = vld [vmem:[#allocation8 + $0xf38] sm:$0xff] }
 0x33a   :  { %6013 = vmatpush1.bf16.msra.mxu0 %v6012_v53  ;;  %v6024_v53 = vpack.c.bf16 %v2925_v32, %v2921_v31  ;;  %v2945_v31 = vld [vmem:[#allocation8 + $0xf00] sm:$0xff] }
 0x33b   :  { %6525 = vmatpush1.bf16.msra.mxu1 %v6524_v57  ;;  %6015 = vmatprep.subr.bf16.mxu0 %v6014_v55  ;;  %v6536_v57 = vpack.c.bf16 %v2927_v36, %v2923_v33  ;;  %v6026_v55 = vpack.c.bf16 %v2934_v42, %v2930_v41  ;;  %v2949_v32 = vld [vmem:[#allocation8 + $0xf20] sm:$0xff]  ;;  %v2947_v33 = vld [vmem:[#allocation8 + $0xf10] sm:$0xff]  ;;  %v2954_v41 = vld [vmem:[#allocation8 + $0xf48] sm:$0xff] }
 0x33c   :  { %6527 = vmatprep.subr.bf16.mxu1 %v6526_v43  ;;  %v6538_v43 = vpack.c.bf16 %v2936_v47, %v2932_v46  ;;  %v2951_v36 = vld [vmem:[#allocation8 + $0xf30] sm:$0xff]  ;;  %v2958_v42 = vld [vmem:[#allocation8 + $0xf68] sm:$0xff]  ;;  %v2956_v46 = vld [vmem:[#allocation8 + $0xf58] sm:$0xff] }
 0x33d   :  { %v2960_v47 = vld [vmem:[#allocation8 + $0xf78] sm:$0xff] }
 0x33e   :  { %6017 = vmatpush1.bf16.msra.mxu0 %v6016_v7  ;;  %v6028_v7 = vpack.c.bf16 %v2933_v15, %v2929_v3  ;;  %v2953_v3 = vld [vmem:[#allocation8 + $0xf40] sm:$0xff] }
 0x33f   :  { %6529 = vmatpush1.bf16.msra.mxu1 %v6528_v25  ;;  %6019 = vmatprep.subr.bf16.mxu0 %v6018_v10  ;;  %v6540_v25 = vpack.c.bf16 %v2935_v58, %v2931_v19  ;;  %v6030_v10 = vpack.c.bf16 %v2942_v51, %v2938_v12  ;;  %v2957_v15 = vld [vmem:[#allocation8 + $0xf60] sm:$0xff]  ;;  %v2955_v19 = vld [vmem:[#allocation8 + $0xf50] sm:$0xff]  ;;  %v2962_v12 = vld [vmem:[#allocation8 + $0xf88] sm:$0xff] }
 0x340   :  { %6531 = vmatprep.subr.bf16.mxu1 %v6530_v13  ;;  %v6542_v13 = vpack.c.bf16 %v2944_v6, %v2940_v52  ;;  %v2959_v58 = vld [vmem:[#allocation8 + $0xf70] sm:$0xff]  ;;  %v2966_v51 = vld [vmem:[#allocation8 + $0xfa8] sm:$0xff]  ;;  %v2964_v52 = vld [vmem:[#allocation8 + $0xf98] sm:$0xff] }
 0x341   :  { %v2968_v6 = vld [vmem:[#allocation8 + $0xfb8] sm:$0xff] }
 0x342   :  { %6021 = vmatpush1.bf16.msra.mxu0 %v6020_v4  ;;  %v6032_v4 = vpack.c.bf16 %v2941_v11, %v2937_v34  ;;  %v6042_v34 = vpack.c.bf16 %v2966_v51, %v2962_v12  ;;  %v2961_v11 = vld [vmem:[#allocation8 + $0xf80] sm:$0xff]  ;;  %v6833_v12 = vadd.f32 %v7280_v21, %v7357_v39 }
 0x343   :  { %6533 = vmatpush1.bf16.msra.mxu1 %v6532_v61  ;;  %6023 = vmatprep.subr.bf16.mxu0 %v6022_v29  ;;  %v6544_v61 = vpack.c.bf16 %v2943_v1, %v2939_v8  ;;  %v6034_v29 = vpack.c.bf16 %v2950_v20, %v2946_v17  ;;  %v2965_v8 = vld [vmem:[#allocation8 + $0xfa0] sm:$0xff]  ;;  %v6554_v1 = vpack.c.bf16 %v2968_v6, %v2964_v52  ;;  %v2967_v17 = vld [vmem:[#allocation8 + $0xfb0] sm:$0xff]  ;;  %v2970_v20 = vld [vmem:[#allocation8 + $0xfc8] sm:$0xff] }
 0x344   :  { %6535 = vmatprep.subr.bf16.mxu1 %v6534_v35  ;;  %v6546_v35 = vpack.c.bf16 %v2952_v23, %v2948_v16  ;;  %v2974_v16 = vld [vmem:[#allocation8 + $0xfe8] sm:$0xff]  ;;  %v2972_v23 = vld [vmem:[#allocation8 + $0xfd8] sm:$0xff]  ;;  %v2977_v6 = vld [vmem:[#allocation8 + $0x1000] sm:$0xff]  ;;  %v2456_v39 = vmax.f32 %v6833_v12, 0.0 }
 0x345   :  { %v3004_v12 = vld [vmem:[#allocation8 + $0x10d8] sm:$0xff] }
 0x346   :  { %6025 = vmatpush1.bf16.msra.mxu0 %v6024_v53  ;;  %v6036_v53 = vpack.c.bf16 %v2949_v32, %v2945_v31 }
 0x347   :  { %6537 = vmatpush1.bf16.msra.mxu1 %v6536_v57  ;;  %6027 = vmatprep.subr.bf16.mxu0 %v6026_v55  ;;  %v6548_v57 = vpack.c.bf16 %v2951_v36, %v2947_v33  ;;  %v6038_v55 = vpack.c.bf16 %v2958_v42, %v2954_v41  ;;  %v6046_v33 = vpack.c.bf16 %v2974_v16, %v2970_v20  ;;  %v2973_v36 = vld [vmem:[#allocation8 + $0xfe0] sm:$0xff]  ;;  %v2971_v41 = vld [vmem:[#allocation8 + $0xfd0] sm:$0xff] }
 0x348   :  { %6539 = vmatprep.subr.bf16.mxu1 %v6538_v43  ;;  %v6550_v43 = vpack.c.bf16 %v2960_v47, %v2956_v46  ;;  %v2975_v46 = vld [vmem:[#allocation8 + $0xff0] sm:$0xff]  ;;  %v2978_v47 = vld [vmem:[#allocation8 + $0x1008] sm:$0xff] }
 0x34a   :  { %6029 = vmatpush1.bf16.msra.mxu0 %v6028_v7  ;;  %v6040_v7 = vpack.c.bf16 %v2957_v15, %v2953_v3  ;;  %v2984_v3 = vld [vmem:[#allocation8 + $0x1038] sm:$0xff] }
 0x34b   :  { %6541 = vmatpush1.bf16.msra.mxu1 %v6540_v25  ;;  %6031 = vmatprep.subr.bf16.mxu0 %v6030_v10  ;;  %v1147_v25 = vsub.s32 6, %v7282_v0  ;;  %v6552_v10 = vpack.c.bf16 %v2959_v58, %v2955_v19 }
 0x34c   :  { %6543 = vmatprep.subr.bf16.mxu1 %v6542_v13  ;;  %v2963_v13 = vld [vmem:[#allocation8 + $0xf90] sm:$0xff] }
 0x34d   :  { %v6556_v32 = vpack.c.bf16 %v2967_v17, %v2963_v13  ;;  %v2992_v13 = vld [vmem:[#allocation8 + $0x1078] sm:$0xff] }
 0x34e   :  { %6033 = vmatpush1.bf16.msra.mxu0 %v6032_v4  ;;  %v2976_v4 = vld [vmem:[#allocation8 + $0xff8] sm:$0xff] }
 0x34f   :  { %6545 = vmatpush1.bf16.msra.mxu1 %v6544_v61  ;;  %6035 = vmatprep.subr.bf16.mxu0 %v6034_v29  ;;  %v6044_v61 = vpack.c.bf16 %v2965_v8, %v2961_v11  ;;  %v6977_v29 = vld [vmem:[#allocation7] sm:$0xff]  ;;  %v6558_v42 = vpack.c.bf16 %v2976_v4, %v2972_v23  ;;  %v2986_v11 = vld [vmem:[#allocation8 + $0x1048] sm:$0xff]  ;;  %v2985_v4 = vld [vmem:[#allocation8 + $0x1040] sm:$0xff] }
 0x350   :  { %6547 = vmatprep.subr.bf16.mxu1 %v6546_v35  ;;  %v1148_v31 = vrot.slane %v6977_v29, %v1147_v25  ;;  %v2969_v35 = vld [vmem:[#allocation8 + $0xfc0] sm:$0xff]  ;;  %v2990_v8 = vld [vmem:[#allocation8 + $0x1068] sm:$0xff]  ;;  %v2987_v29 = vld [vmem:[#allocation8 + $0x1050] sm:$0xff] }
 0x351   :  { %v6048_v15 = vpack.c.bf16 %v2973_v36, %v2969_v35  ;;  %v6054_v23 = vpack.c.bf16 %v2990_v8, %v2986_v11  ;;  %v2994_v35 = vld [vmem:[#allocation8 + $0x1088] sm:$0xff]  ;;  %v3005_v11 = vld [vmem:[#allocation8 + $0x10e0] sm:$0xff]  ;;  %v3003_v8 = vld [vmem:[#allocation8 + $0x10d0] sm:$0xff] }
 0x352   :  { %6037 = vmatpush1.bf16.msra.mxu0 %v6036_v53  ;;  %v2982_v53 = vld [vmem:[#allocation8 + $0x1028] sm:$0xff]  ;;  %v6830_v19 = vadd.f32 %v7268_v60, %v1148_v31  ;;  %v2988_v60 = vld [vmem:[#allocation8 + $0x1058] sm:$0xff]  ;;  %v6832_v17 = vadd.f32 %v7276_v18, %v1148_v31 }
 0x353   :  { %6549 = vmatpush1.bf16.msra.mxu1 %v6548_v57  ;;  %6039 = vmatprep.subr.bf16.mxu0 %v6038_v55  ;;  %v7383_v57 = vld [vmem:[#allocation7 + $0x8] sm:$0xff]  ;;  %v6050_v58 = vpack.c.bf16 %v2982_v53, %v2978_v47  ;;  %v2998_v36 = vld [vmem:[#allocation8 + $0x10a8] sm:$0xff]  ;;  %v2993_v53 = vld [vmem:[#allocation8 + $0x1080] sm:$0xff] }
 0x354   :  { %6551 = vmatprep.subr.bf16.mxu1 %v6550_v43  ;;  %v2980_v55 = vld [vmem:[#allocation8 + $0x1018] sm:$0xff]  ;;  %v6560_v43 = vpack.c.bf16 %v2975_v46, %v2971_v41  ;;  %v7390_v51 = vrot.slane %v7383_v57, %v7285_v22  ;;  %v2455_v41 = vmax.f32 %v6832_v17, 0.0  ;;  %v6058_v47 = vpack.c.bf16 %v2998_v36, %v2994_v35  ;;  %v3014_v17 = vld [vmem:[#allocation8 + $0x1128] sm:$0xff] }
 0x355   :  { %v6562_v52 = vpack.c.bf16 %v2984_v3, %v2980_v55  ;;  %v2996_v18 = vld [vmem:[#allocation8 + $0x1098] sm:$0xff]  ;;  %v2997_v55 = vld [vmem:[#allocation8 + $0x10a0] sm:$0xff]  ;;  %v2995_v3 = vld [vmem:[#allocation8 + $0x1090] sm:$0xff] }
 0x356   :  { %6041 = vmatpush1.bf16.msra.mxu0 %v6040_v7  ;;  %v2981_v7 = vld [vmem:[#allocation8 + $0x1020] sm:$0xff]  ;;  %v6835_v20 = vadd.f32 %v7317_v38, %v7390_v51  ;;  %v3000_v31 = vld [vmem:[#allocation8 + $0x10b8] sm:$0xff]  ;;  %v3018_v35 = vld [vmem:[#allocation8 + $0x1148] sm:$0xff] }
 0x357   :  { %6553 = vmatpush1.bf16.msra.mxu1 %v6552_v10  ;;  %6043 = vmatprep.subr.bf16.mxu0 %v6042_v34  ;;  %v2979_v10 = vld [vmem:[#allocation8 + $0x1010] sm:$0xff]  ;;  %v6052_v21 = vpack.c.bf16 %v2981_v7, %v2977_v6  ;;  %v6060_v6 = vpack.c.bf16 %v2997_v55, %v2993_v53  ;;  %v3022_v36 = vld [vmem:[#allocation8 + $0x1168] sm:$0xff] }
 0x358   :  { %6555 = vmatprep.subr.bf16.mxu1 %v6554_v1  ;;  %v2983_v34 = vld [vmem:[#allocation8 + $0x1030] sm:$0xff]  ;;  %v2439_v1 = vmax.f32 %v6830_v19, 0.0  ;;  %v2442_v38 = vmax.f32 %v6835_v20, 0.0 }
 0x359   :  { %v6564_v16 = vpack.c.bf16 %v2983_v34, %v2979_v10  ;;  %v2999_v19 = vld [vmem:[#allocation8 + $0x10b0] sm:$0xff]  ;;  %v3001_v34 = vld [vmem:[#allocation8 + $0x10c0] sm:$0xff] }
 0x35a   :  { %6045 = vmatpush1.bf16.msra.mxu0 %v6044_v61  ;;  %v2989_v61 = vld [vmem:[#allocation8 + $0x1060] sm:$0xff]  ;;  %v6572_v7 = vpack.c.bf16 %v2999_v19, %v2995_v3  ;;  %v6064_v20 = vpack.c.bf16 %v3005_v11, %v3001_v34  ;;  %v3019_v53 = vld [vmem:[#allocation8 + $0x1150] sm:$0xff]  ;;  %v3030_v19 = vld [vmem:[#allocation8 + $0x11a8] sm:$0xff] }
 0x35b   :  { %6557 = vmatpush1.bf16.msra.mxu1 %v6556_v32  ;;  %6047 = vmatprep.subr.bf16.mxu0 %v6046_v33  ;;  %v6566_v32 = vpack.c.bf16 %v2992_v13, %v2988_v60  ;;  %v2991_v33 = vld [vmem:[#allocation8 + $0x1070] sm:$0xff] }
 0x35c   :  { %6559 = vmatprep.subr.bf16.mxu1 %v6558_v42  ;;  %v6056_v42 = vpack.c.bf16 %v2989_v61, %v2985_v4  ;;  %v6568_v46 = vpack.c.bf16 %v2991_v33, %v2987_v29  ;;  %v3007_v13 = vld [vmem:[#allocation8 + $0x10f0] sm:$0xff]  ;;  %v3009_v4 = vld [vmem:[#allocation8 + $0x1100] sm:$0xff] }
 0x35d   :  { %v3013_v61 = vld [vmem:[#allocation8 + $0x1120] sm:$0xff]  ;;  %v3011_v29 = vld [vmem:[#allocation8 + $0x1110] sm:$0xff] }
 0x35e   :  { %6049 = vmatpush1.bf16.msra.mxu0 %v6048_v15  ;;  %v6570_v15 = vpack.c.bf16 %v3000_v31, %v2996_v18  ;;  %v3015_v33 = vld [vmem:[#allocation8 + $0x1130] sm:$0xff]  ;;  %v3020_v18 = vld [vmem:[#allocation8 + $0x1158] sm:$0xff] }
 0x35f   :  { %6561 = vmatpush1.bf16.msra.mxu1 %v6560_v43  ;;  %6051 = vmatprep.subr.bf16.mxu0 %v6050_v58  ;;  %v3002_v43 = vld [vmem:[#allocation8 + $0x10c8] sm:$0xff]  ;;  %v3024_v31 = vld [vmem:[#allocation8 + $0x1178] sm:$0xff]  ;;  %v3023_v3 = vld [vmem:[#allocation8 + $0x1170] sm:$0xff] }
 0x360   :  { %6563 = vmatprep.subr.bf16.mxu1 %v6562_v52  ;;  %v3006_v58 = vld [vmem:[#allocation8 + $0x10e8] sm:$0xff]  ;;  %v3008_v52 = vld [vmem:[#allocation8 + $0x10f8] sm:$0xff]  ;;  %v6582_v55 = vpack.c.bf16 %v3024_v31, %v3020_v18  ;;  %v3027_v34 = vld [vmem:[#allocation8 + $0x1190] sm:$0xff] }
 0x361   :  { %3807 = vmatmul.mubr.f32.vlgmr.msra.gmra.mrb[16].mxu0 %v2439_v1  ;;  %v6062_v10 = vpack.c.bf16 %v3006_v58, %v3002_v43  ;;  %v6574_v60 = vpack.c.bf16 %v3008_v52, %v3004_v12  ;;  %v3028_v43 = vld [vmem:[#allocation8 + $0x1198] sm:$0xff]  ;;  %v6584_v52 = vpack.c.bf16 %v3023_v3, %v3019_v53  ;;  %v3047_v53 = vld [vmem:[#allocation8 + $0x1230] sm:$0xff]  ;;  %v3054_v3 = vld [vmem:[#allocation8 + $0x1268] sm:$0xff] }
 0x362   :  { %4423 = vmatmul.mubr.f32.vlgmr.msra.gmra.mrb[16].mxu1 %v2439_v1  ;;  %3812 = vmatprep.mubr.f32.mxu0 %v2456_v39  ;;  %v3010_v1 = vld [vmem:[#allocation8 + $0x1108] sm:$0xff]  ;;  %v3032_v58 = vld [vmem:[#allocation8 + $0x11b8] sm:$0xff] }
 0x363   :  { %6053 = vmatpush1.bf16.msra.mxu0 %v6052_v21  ;;  %4428 = vmatprep.mubr.f32.mxu1 %v2456_v39  ;;  %v3012_v21 = vld [vmem:[#allocation8 + $0x1118] sm:$0xff]  ;;  %v6586_v11 = vpack.c.bf16 %v3032_v58, %v3028_v43 }
 0x364   :  { %6565 = vmatpush1.bf16.msra.mxu1 %v6564_v16  ;;  %6055 = vmatprep.subr.bf16.mxu0 %v6054_v23  ;;  %v3016_v39 = vld [vmem:[#allocation8 + $0x1138] sm:$0xff]  ;;  %v6576_v16 = vpack.c.bf16 %v3007_v13, %v3003_v8  ;;  %v6066_v23 = vpack.c.bf16 %v3014_v17, %v3010_v1  ;;  %v3031_v8 = vld [vmem:[#allocation8 + $0x11b0] sm:$0xff]  ;;  %v3038_v13 = vld [vmem:[#allocation8 + $0x11e8] sm:$0xff] }
 0x365   :  { %3813 = vmatmul.mubr.f32.gmra.mrb[18].mxu0 %v2455_v41  ;;  %6567 = vmatprep.subr.bf16.mxu1 %v6566_v32  ;;  %v6578_v32 = vpack.c.bf16 %v3016_v39, %v3012_v21  ;;  %v3036_v1 = vld [vmem:[#allocation8 + $0x11d8] sm:$0xff]  ;;  %v6588_v39 = vpack.c.bf16 %v3031_v8, %v3027_v34  ;;  %v3055_v34 = vld [vmem:[#allocation8 + $0x1270] sm:$0xff]  ;;  %v3062_v8 = vld [vmem:[#allocation8 + $0x12a8] sm:$0xff] }
 0x366   :  { %4429 = vmatmul.mubr.f32.gmra.mrb[18].mxu1 %v2455_v41  ;;  %3883 = vmatprep.mubr.f32.mxu0 %v2442_v38  ;;  %v6068_v41 = vpack.c.bf16 %v3013_v61, %v3009_v4  ;;  %v3040_v17 = vld [vmem:[#allocation8 + $0x11f8] sm:$0xff]  ;;  %v3035_v4 = vld [vmem:[#allocation8 + $0x11d0] sm:$0xff] }
 0x367   :  { %6057 = vmatpush1.bf16.msra.mxu0 %v6056_v42  ;;  %4499 = vmatprep.mubr.f32.mxu1 %v2442_v38  ;;  %v6580_v42 = vpack.c.bf16 %v3015_v33, %v3011_v29  ;;  %v6070_v38 = vpack.c.bf16 %v3022_v36, %v3018_v35  ;;  %v6590_v61 = vpack.c.bf16 %v3040_v17, %v3036_v1  ;;  %v3039_v29 = vld [vmem:[#allocation8 + $0x11f0] sm:$0xff]  ;;  %v3046_v33 = vld [vmem:[#allocation8 + $0x1228] sm:$0xff]  ;;  %v3044_v35 = vld [vmem:[#allocation8 + $0x1218] sm:$0xff] }
 0x368   :  { %6569 = vmatpush1.bf16.msra.mxu1 %v6568_v46  ;;  %6059 = vmatprep.subr.bf16.mxu0 %v6058_v47  ;;  %v3017_v46 = vld [vmem:[#allocation8 + $0x1140] sm:$0xff]  ;;  %v3048_v36 = vld [vmem:[#allocation8 + $0x1238] sm:$0xff]  ;;  %v6592_v31 = vpack.c.bf16 %v3039_v29, %v3035_v4  ;;  %v3063_v4 = vld [vmem:[#allocation8 + $0x12b0] sm:$0xff] }
 0x369   :  { %6571 = vmatprep.subr.bf16.mxu1 %v6570_v15  ;;  %v3021_v47 = vld [vmem:[#allocation8 + $0x1160] sm:$0xff]  ;;  %v3026_v15 = vld [vmem:[#allocation8 + $0x1188] sm:$0xff] }
 0x36a   :  { %v6072_v12 = vpack.c.bf16 %v3021_v47, %v3017_v46  ;;  %v3043_v46 = vld [vmem:[#allocation8 + $0x1210] sm:$0xff]  ;;  %v6594_v47 = vpack.c.bf16 %v3048_v36, %v3044_v35  ;;  %v3070_v29 = vld [vmem:[#allocation8 + $0x12e8] sm:$0xff] }
 0x36b   :  { %6061 = vmatpush1.bf16.msra.mxu0 %v6060_v6  ;;  %v6074_v6 = vpack.c.bf16 %v3030_v19, %v3026_v15  ;;  %v3052_v15 = vld [vmem:[#allocation8 + $0x1258] sm:$0xff]  ;;  %v6596_v58 = vpack.c.bf16 %v3047_v53, %v3043_v46  ;;  %v3071_v46 = vld [vmem:[#allocation8 + $0x12f0] sm:$0xff]  ;;  %v3078_v53 = vld [vmem:[#allocation8 + $0x1328] sm:$0xff] }
 0x36c   :  { %6573 = vmatpush1.bf16.msra.mxu1 %v6572_v7  ;;  %6063 = vmatprep.subr.bf16.mxu0 %v6062_v10  ;;  %v3025_v7 = vld [vmem:[#allocation8 + $0x1180] sm:$0xff]  ;;  %v3056_v19 = vld [vmem:[#allocation8 + $0x1278] sm:$0xff] }
 0x36d   :  { %6575 = vmatprep.subr.bf16.mxu1 %v6574_v60  ;;  %v3029_v10 = vld [vmem:[#allocation8 + $0x11a0] sm:$0xff]  ;;  %v3034_v60 = vld [vmem:[#allocation8 + $0x11c8] sm:$0xff] }
 0x36e   :  { %v6076_v21 = vpack.c.bf16 %v3029_v10, %v3025_v7  ;;  %v3051_v7 = vld [vmem:[#allocation8 + $0x1250] sm:$0xff]  ;;  %v6598_v10 = vpack.c.bf16 %v3056_v19, %v3052_v15 }
 0x36f   :  { %6065 = vmatpush1.bf16.msra.mxu0 %v6064_v20  ;;  %v6078_v20 = vpack.c.bf16 %v3038_v13, %v3034_v60  ;;  %v3060_v60 = vld [vmem:[#allocation8 + $0x1298] sm:$0xff]  ;;  %v6600_v17 = vpack.c.bf16 %v3055_v34, %v3051_v7  ;;  %v3079_v7 = vld [vmem:[#allocation8 + $0x1330] sm:$0xff]  ;;  %v3086_v34 = vld [vmem:[#allocation8 + $0x1368] sm:$0xff] }
 0x370   :  { %6577 = vmatpush1.bf16.msra.mxu1 %v6576_v16  ;;  %6067 = vmatprep.subr.bf16.mxu0 %v6066_v23  ;;  %v3033_v16 = vld [vmem:[#allocation8 + $0x11c0] sm:$0xff]  ;;  %v3064_v13 = vld [vmem:[#allocation8 + $0x12b8] sm:$0xff] }
 0x371   :  { %6579 = vmatprep.subr.bf16.mxu1 %v6578_v32  ;;  %v3037_v23 = vld [vmem:[#allocation8 + $0x11e0] sm:$0xff]  ;;  %v3042_v32 = vld [vmem:[#allocation8 + $0x1208] sm:$0xff] }
 0x372   :  { %v6080_v18 = vpack.c.bf16 %v3037_v23, %v3033_v16  ;;  %v3059_v16 = vld [vmem:[#allocation8 + $0x1290] sm:$0xff]  ;;  %v6602_v23 = vpack.c.bf16 %v3064_v13, %v3060_v60 }
 0x373   :  { %6069 = vmatpush1.bf16.msra.mxu0 %v6068_v41  ;;  %v6082_v41 = vpack.c.bf16 %v3046_v33, %v3042_v32  ;;  %v3068_v32 = vld [vmem:[#allocation8 + $0x12d8] sm:$0xff]  ;;  %v6604_v36 = vpack.c.bf16 %v3063_v4, %v3059_v16  ;;  %v3087_v16 = vld [vmem:[#allocation8 + $0x1370] sm:$0xff]  ;;  %v3094_v4 = vld [vmem:[#allocation8 + $0x13a8] sm:$0xff] }
 0x374   :  { %6581 = vmatpush1.bf16.msra.mxu1 %v6580_v42  ;;  %6071 = vmatprep.subr.bf16.mxu0 %v6070_v38  ;;  %v3041_v42 = vld [vmem:[#allocation8 + $0x1200] sm:$0xff]  ;;  %v3072_v33 = vld [vmem:[#allocation8 + $0x12f8] sm:$0xff] }
 0x375   :  { %6583 = vmatprep.subr.bf16.mxu1 %v6582_v55  ;;  %v3045_v38 = vld [vmem:[#allocation8 + $0x1220] sm:$0xff]  ;;  %v3050_v55 = vld [vmem:[#allocation8 + $0x1248] sm:$0xff] }
 0x376   :  { %v6084_v43 = vpack.c.bf16 %v3045_v38, %v3041_v42  ;;  %v3067_v42 = vld [vmem:[#allocation8 + $0x12d0] sm:$0xff]  ;;  %v6606_v38 = vpack.c.bf16 %v3072_v33, %v3068_v32 }
 0x377   :  { %6073 = vmatpush1.bf16.msra.mxu0 %v6072_v12  ;;  %v6086_v12 = vpack.c.bf16 %v3054_v3, %v3050_v55  ;;  %v3076_v55 = vld [vmem:[#allocation8 + $0x1318] sm:$0xff]  ;;  %v6608_v19 = vpack.c.bf16 %v3071_v46, %v3067_v42  ;;  %v3095_v42 = vld [vmem:[#allocation8 + $0x13b0] sm:$0xff]  ;;  %v3102_v46 = vld [vmem:[#allocation8 + $0x13e8] sm:$0xff] }
 0x378   :  { %6585 = vmatpush1.bf16.msra.mxu1 %v6584_v52  ;;  %6075 = vmatprep.subr.bf16.mxu0 %v6074_v6  ;;  %v3049_v52 = vld [vmem:[#allocation8 + $0x1240] sm:$0xff]  ;;  %v3080_v3 = vld [vmem:[#allocation8 + $0x1338] sm:$0xff] }
 0x379   :  { %6587 = vmatprep.subr.bf16.mxu1 %v6586_v11  ;;  %v3053_v6 = vld [vmem:[#allocation8 + $0x1260] sm:$0xff]  ;;  %v3058_v11 = vld [vmem:[#allocation8 + $0x1288] sm:$0xff] }
 0x37a   :  { %v6088_v1 = vpack.c.bf16 %v3053_v6, %v3049_v52  ;;  %v3075_v52 = vld [vmem:[#allocation8 + $0x1310] sm:$0xff]  ;;  %v6610_v6 = vpack.c.bf16 %v3080_v3, %v3076_v55  ;;  %v1156_v3 = vrot.slane %v7383_v57, %v7296_v14 }
 0x37b   :  { %6077 = vmatpush1.bf16.msra.mxu0 %v6076_v21  ;;  %v6090_v21 = vpack.c.bf16 %v3062_v8, %v3058_v11  ;;  %v3084_v11 = vld [vmem:[#allocation8 + $0x1358] sm:$0xff]  ;;  %v6612_v13 = vpack.c.bf16 %v3079_v7, %v3075_v52  ;;  %v3106_v7 = vld [vmem:[#allocation8 + $0x1408] sm:$0xff] }
 0x37c   :  { %6589 = vmatpush1.bf16.msra.mxu1 %v6588_v39  ;;  %6079 = vmatprep.subr.bf16.mxu0 %v6078_v20  ;;  %v3057_v39 = vld [vmem:[#allocation8 + $0x1280] sm:$0xff]  ;;  %v3088_v8 = vld [vmem:[#allocation8 + $0x1378] sm:$0xff] }
 0x37d   :  { %6591 = vmatprep.subr.bf16.mxu1 %v6590_v61  ;;  %v3061_v20 = vld [vmem:[#allocation8 + $0x12a0] sm:$0xff]  ;;  %v3066_v61 = vld [vmem:[#allocation8 + $0x12c8] sm:$0xff] }
 0x37e   :  { %v6092_v35 = vpack.c.bf16 %v3061_v20, %v3057_v39  ;;  %v3083_v39 = vld [vmem:[#allocation8 + $0x1350] sm:$0xff]  ;;  %v6614_v20 = vpack.c.bf16 %v3088_v8, %v3084_v11  ;;  %v3112_v11 = vld [vmem:[#allocation8 + $0x1438] sm:$0xff] }
 0x37f   :  { %6081 = vmatpush1.bf16.msra.mxu0 %v6080_v18  ;;  %v6094_v18 = vpack.c.bf16 %v3070_v29, %v3066_v61  ;;  %v3092_v61 = vld [vmem:[#allocation8 + $0x1398] sm:$0xff]  ;;  %v6616_v33 = vpack.c.bf16 %v3087_v16, %v3083_v39  ;;  %v3109_v16 = vld [vmem:[#allocation8 + $0x1420] sm:$0xff] }
 0x380   :  { %6593 = vmatpush1.bf16.msra.mxu1 %v6592_v31  ;;  %6083 = vmatprep.subr.bf16.mxu0 %v6082_v41  ;;  %v3065_v31 = vld [vmem:[#allocation8 + $0x12c0] sm:$0xff]  ;;  %v3096_v29 = vld [vmem:[#allocation8 + $0x13b8] sm:$0xff] }
 0x381   :  { %6595 = vmatprep.subr.bf16.mxu1 %v6594_v47  ;;  %v3069_v41 = vld [vmem:[#allocation8 + $0x12e0] sm:$0xff]  ;;  %v3074_v47 = vld [vmem:[#allocation8 + $0x1308] sm:$0xff] }
 0x382   :  { %v6096_v15 = vpack.c.bf16 %v3069_v41, %v3065_v31  ;;  %v3091_v31 = vld [vmem:[#allocation8 + $0x1390] sm:$0xff]  ;;  %v6618_v41 = vpack.c.bf16 %v3096_v29, %v3092_v61  ;;  %v3114_v61 = vld [vmem:[#allocation8 + $0x1448] sm:$0xff] }
 0x383   :  { %6085 = vmatpush1.bf16.msra.mxu0 %v6084_v43  ;;  %v6098_v43 = vpack.c.bf16 %v3078_v53, %v3074_v47  ;;  %v3100_v47 = vld [vmem:[#allocation8 + $0x13d8] sm:$0xff]  ;;  %v3118_v29 = vld [vmem:[#allocation8 + $0x1468] sm:$0xff] }
 0x384   :  { %6597 = vmatpush1.bf16.msra.mxu1 %v6596_v58  ;;  %6087 = vmatprep.subr.bf16.mxu0 %v6086_v12  ;;  %v3073_v58 = vld [vmem:[#allocation8 + $0x1300] sm:$0xff]  ;;  %v3104_v53 = vld [vmem:[#allocation8 + $0x13f8] sm:$0xff] }
 0x385   :  { %6599 = vmatprep.subr.bf16.mxu1 %v6598_v10  ;;  %v3077_v12 = vld [vmem:[#allocation8 + $0x1320] sm:$0xff]  ;;  %v3082_v10 = vld [vmem:[#allocation8 + $0x1348] sm:$0xff]  ;;  %v6622_v52 = vpack.c.bf16 %v3104_v53, %v3100_v47 }
 0x386   :  { %v6100_v60 = vpack.c.bf16 %v3077_v12, %v3073_v58  ;;  %v3101_v58 = vld [vmem:[#allocation8 + $0x13e0] sm:$0xff]  ;;  %v3099_v12 = vld [vmem:[#allocation8 + $0x13d0] sm:$0xff]  ;;  %v3122_v47 = vld [vmem:[#allocation8 + $0x1488] sm:$0xff] }
 0x387   :  { %6089 = vmatpush1.bf16.msra.mxu0 %v6088_v1  ;;  %v6102_v1 = vpack.c.bf16 %v3086_v34, %v3082_v10  ;;  %v3110_v10 = vld [vmem:[#allocation8 + $0x1428] sm:$0xff]  ;;  %v3108_v34 = vld [vmem:[#allocation8 + $0x1418] sm:$0xff] }
 0x388   :  { %6601 = vmatpush1.bf16.msra.mxu1 %v6600_v17  ;;  %6091 = vmatprep.subr.bf16.mxu0 %v6090_v21  ;;  %v3081_v17 = vld [vmem:[#allocation8 + $0x1340] sm:$0xff]  ;;  %v6626_v39 = vpack.c.bf16 %v3112_v11, %v3108_v34  ;;  %v3126_v53 = vld [vmem:[#allocation8 + $0x14a8] sm:$0xff]  ;;  %v3132_v11 = vld [vmem:[#allocation8 + $0x14d8] sm:$0xff] }
 0x389   :  { %6603 = vmatprep.subr.bf16.mxu1 %v6602_v23  ;;  %v3085_v21 = vld [vmem:[#allocation8 + $0x1360] sm:$0xff]  ;;  %v3090_v23 = vld [vmem:[#allocation8 + $0x1388] sm:$0xff] }
 0x38a   :  { %v6104_v32 = vpack.c.bf16 %v3085_v21, %v3081_v17  ;;  %v7400_v17 = vrot.slane %v7383_v57, %v7301_v40  ;;  %v6837_v21 = vadd.f32 %v7325_v63, %v7390_v51  ;;  %v3134_v34 = vld [vmem:[#allocation8 + $0x14e8] sm:$0xff] }
 0x38b   :  { %6093 = vmatpush1.bf16.msra.mxu0 %v6092_v35  ;;  %v6106_v35 = vpack.c.bf16 %v3094_v4, %v3090_v23  ;;  %v3107_v23 = vld [vmem:[#allocation8 + $0x1410] sm:$0xff] }
 0x38c   :  { %6605 = vmatpush1.bf16.msra.mxu1 %v6604_v36  ;;  %6095 = vmatprep.subr.bf16.mxu0 %v6094_v18  ;;  %v3089_v36 = vld [vmem:[#allocation8 + $0x1380] sm:$0xff]  ;;  %v3111_v4 = vld [vmem:[#allocation8 + $0x1430] sm:$0xff]  ;;  %v6839_v63 = vadd.f32 %v7319_v44, %v7400_v17  ;;  %v2458_v51 = vmax.f32 %v6837_v21, 0.0 }
 0x38d   :  { %6607 = vmatprep.subr.bf16.mxu1 %v6606_v38  ;;  %v3093_v18 = vld [vmem:[#allocation8 + $0x13a0] sm:$0xff]  ;;  %v3098_v38 = vld [vmem:[#allocation8 + $0x13c8] sm:$0xff] }
 0x38e   :  { %v6108_v55 = vpack.c.bf16 %v3093_v18, %v3089_v36  ;;  %v6628_v36 = vpack.c.bf16 %v3111_v4, %v3107_v23  ;;  %v6118_v18 = vpack.c.bf16 %v3118_v29, %v3114_v61  ;;  %v3129_v21 = vld [vmem:[#allocation8 + $0x14c0] sm:$0xff]  ;;  %v3135_v23 = vld [vmem:[#allocation8 + $0x14f0] sm:$0xff]  ;;  %v3138_v4 = vld [vmem:[#allocation8 + $0x1508] sm:$0xff] }
 0x38f   :  { %6097 = vmatpush1.bf16.msra.mxu0 %v6096_v15  ;;  %v6620_v15 = vpack.c.bf16 %v3095_v42, %v3091_v31  ;;  %v3113_v31 = vld [vmem:[#allocation8 + $0x1440] sm:$0xff]  ;;  %v3115_v42 = vld [vmem:[#allocation8 + $0x1450] sm:$0xff]  ;;  %v3142_v61 = vld [vmem:[#allocation8 + $0x1528] sm:$0xff] }
 0x390   :  { %6609 = vmatpush1.bf16.msra.mxu1 %v6608_v19  ;;  %6099 = vmatprep.subr.bf16.mxu0 %v6098_v43  ;;  %v6110_v19 = vpack.c.bf16 %v3102_v46, %v3098_v38  ;;  %v3097_v43 = vld [vmem:[#allocation8 + $0x13c0] sm:$0xff]  ;;  %v3119_v46 = vld [vmem:[#allocation8 + $0x1470] sm:$0xff]  ;;  %v3140_v29 = vld [vmem:[#allocation8 + $0x1518] sm:$0xff] }
 0x391   :  { %6611 = vmatprep.subr.bf16.mxu1 %v6610_v6  ;;  %v3103_v6 = vld [vmem:[#allocation8 + $0x13f0] sm:$0xff]  ;;  %v6112_v8 = vpack.c.bf16 %v3101_v58, %v3097_v43  ;;  %v6122_v43 = vpack.c.bf16 %v3126_v53, %v3122_v47  ;;  %v3121_v58 = vld [vmem:[#allocation8 + $0x1480] sm:$0xff] }
 0x393   :  { %6101 = vmatpush1.bf16.msra.mxu0 %v6100_v60  ;;  %v6834_v60 = vadd.f32 %v7313_v30, %v1156_v3  ;;  %v3116_v30 = vld [vmem:[#allocation8 + $0x1458] sm:$0xff] }
 0x394   :  { %6613 = vmatpush1.bf16.msra.mxu1 %v6612_v13  ;;  %6103 = vmatprep.subr.bf16.mxu0 %v6102_v1  ;;  %v6624_v13 = vpack.c.bf16 %v3103_v6, %v3099_v12  ;;  %v6114_v1 = vpack.c.bf16 %v3110_v10, %v3106_v7  ;;  %v3125_v12 = vld [vmem:[#allocation8 + $0x14a0] sm:$0xff]  ;;  %v3127_v7 = vld [vmem:[#allocation8 + $0x14b0] sm:$0xff]  ;;  %v3130_v10 = vld [vmem:[#allocation8 + $0x14c8] sm:$0xff] }
 0x395   :  { %6615 = vmatprep.subr.bf16.mxu1 %v6614_v20  ;;  %v3105_v20 = vld [vmem:[#allocation8 + $0x1400] sm:$0xff] }
 0x396   :  { %v6116_v57 = vpack.c.bf16 %v3109_v16, %v3105_v20  ;;  %v3131_v20 = vld [vmem:[#allocation8 + $0x14d0] sm:$0xff] }
 0x397   :  { %6105 = vmatpush1.bf16.msra.mxu0 %v6104_v32  ;;  %v3120_v32 = vld [vmem:[#allocation8 + $0x1478] sm:$0xff] }
 0x398   :  { %6617 = vmatpush1.bf16.msra.mxu1 %v6616_v33  ;;  %6107 = vmatprep.subr.bf16.mxu0 %v6106_v35  ;;  %v2441_v33 = vmax.f32 %v6834_v60, 0.0  ;;  %v6836_v35 = vadd.f32 %v7321_v48, %v1156_v3  ;;  %v6630_v38 = vpack.c.bf16 %v3120_v32, %v3116_v30  ;;  %v3124_v48 = vld [vmem:[#allocation8 + $0x1498] sm:$0xff]  ;;  %v6124_v60 = vpack.c.bf16 %v3125_v12, %v3121_v58 }
 0x399   :  { %6619 = vmatprep.subr.bf16.mxu1 %v6618_v41  ;;  %v3117_v41 = vld [vmem:[#allocation8 + $0x1460] sm:$0xff]  ;;  %v3144_v30 = vld [vmem:[#allocation8 + $0x1538] sm:$0xff] }
 0x39a   :  { %v2457_v3 = vmax.f32 %v6836_v35, 0.0  ;;  %v6120_v44 = vpack.c.bf16 %v3117_v41, %v3113_v31  ;;  %v6130_v35 = vpack.c.bf16 %v3142_v61, %v3138_v4  ;;  %v3146_v31 = vld [vmem:[#allocation8 + $0x1548] sm:$0xff]  ;;  %v3156_v58 = vld [vmem:[#allocation8 + $0x1598] sm:$0xff]  ;;  %v3161_v4 = vld [vmem:[#allocation8 + $0x15c0] sm:$0xff] }
 0x39b   :  { %6109 = vmatpush1.bf16.msra.mxu0 %v6108_v55  ;;  %v3128_v55 = vld [vmem:[#allocation8 + $0x14b8] sm:$0xff]  ;;  %v3150_v41 = vld [vmem:[#allocation8 + $0x1568] sm:$0xff]  ;;  %v3165_v61 = vld [vmem:[#allocation8 + $0x15e0] sm:$0xff] }
 0x39c   :  { %6621 = vmatpush1.bf16.msra.mxu1 %v6620_v15  ;;  %6111 = vmatprep.subr.bf16.mxu0 %v6110_v19  ;;  %v2444_v15 = vmax.f32 %v6839_v63, 0.0  ;;  %v6632_v19 = vpack.c.bf16 %v3119_v46, %v3115_v42  ;;  %v6634_v6 = vpack.c.bf16 %v3128_v55, %v3124_v48  ;;  %v3141_v63 = vld [vmem:[#allocation8 + $0x1520] sm:$0xff]  ;;  %v3148_v42 = vld [vmem:[#allocation8 + $0x1558] sm:$0xff]  ;;  %v6134_v53 = vpack.c.bf16 %v3150_v41, %v3146_v31 }
 0x39d   :  { %6623 = vmatprep.subr.bf16.mxu1 %v6622_v52  ;;  %v3123_v52 = vld [vmem:[#allocation8 + $0x1490] sm:$0xff]  ;;  %v3145_v48 = vld [vmem:[#allocation8 + $0x1540] sm:$0xff]  ;;  %v3160_v12 = vld [vmem:[#allocation8 + $0x15b8] sm:$0xff] }
 0x39e   :  { %v3149_v55 = vld [vmem:[#allocation8 + $0x1560] sm:$0xff] }
 0x39f   :  { %6113 = vmatpush1.bf16.msra.mxu0 %v6112_v8  ;;  %v3136_v8 = vld [vmem:[#allocation8 + $0x14f8] sm:$0xff]  ;;  %v3169_v31 = vld [vmem:[#allocation8 + $0x1600] sm:$0xff] }
 0x3a0   :  { %6625 = vmatpush1.bf16.msra.mxu1 %v6624_v13  ;;  %6115 = vmatprep.subr.bf16.mxu0 %v6114_v1  ;;  %v6636_v13 = vpack.c.bf16 %v3127_v7, %v3123_v52  ;;  %v6126_v1 = vpack.c.bf16 %v3134_v34, %v3130_v10  ;;  %v6638_v16 = vpack.c.bf16 %v3136_v8, %v3132_v11  ;;  %v3153_v10 = vld [vmem:[#allocation8 + $0x1580] sm:$0xff]  ;;  %v3155_v11 = vld [vmem:[#allocation8 + $0x1590] sm:$0xff] }
 0x3a1   :  { %6627 = vmatprep.subr.bf16.mxu1 %v6626_v39  ;;  %v3133_v39 = vld [vmem:[#allocation8 + $0x14e0] sm:$0xff]  ;;  %v6136_v52 = vpack.c.bf16 %v3149_v55, %v3145_v48  ;;  %v6650_v8 = vpack.c.bf16 %v3160_v12, %v3156_v58  ;;  %v3180_v48 = vld [vmem:[#allocation8 + $0x1658] sm:$0xff]  ;;  %v3179_v58 = vld [vmem:[#allocation8 + $0x1650] sm:$0xff] }
 0x3a2   :  { %3884 = vmatmul.mubr.f32.vlgmr.msra.gmra.mrb[16].mxu0 %v2441_v33  ;;  %v6128_v32 = vpack.c.bf16 %v3133_v39, %v3129_v21  ;;  %v3157_v34 = vld [vmem:[#allocation8 + $0x15a0] sm:$0xff]  ;;  %v3164_v21 = vld [vmem:[#allocation8 + $0x15d8] sm:$0xff] }
 0x3a3   :  { %4500 = vmatmul.mubr.f32.vlgmr.msra.gmra.mrb[16].mxu1 %v2441_v33  ;;  %3889 = vmatprep.mubr.f32.mxu0 %v2458_v51  ;;  %v6640_v33 = vpack.c.bf16 %v3135_v23, %v3131_v20  ;;  %v3168_v39 = vld [vmem:[#allocation8 + $0x15f8] sm:$0xff]  ;;  %v6140_v20 = vpack.c.bf16 %v3157_v34, %v3153_v10  ;;  %v3173_v41 = vld [vmem:[#allocation8 + $0x1620] sm:$0xff] }
 0x3a4   :  { %6117 = vmatpush1.bf16.msra.mxu0 %v6116_v57  ;;  %4505 = vmatprep.mubr.f32.mxu1 %v2458_v51  ;;  %v3137_v57 = vld [vmem:[#allocation8 + $0x1500] sm:$0xff]  ;;  %v3139_v51 = vld [vmem:[#allocation8 + $0x1510] sm:$0xff]  ;;  %v3184_v55 = vld [vmem:[#allocation8 + $0x1678] sm:$0xff] }
 0x3a5   :  { %6629 = vmatpush1.bf16.msra.mxu1 %v6628_v36  ;;  %6119 = vmatprep.subr.bf16.mxu0 %v6118_v18  ;;  %v6642_v36 = vpack.c.bf16 %v3144_v30, %v3140_v29  ;;  %v3143_v18 = vld [vmem:[#allocation8 + $0x1530] sm:$0xff]  ;;  %v6132_v46 = vpack.c.bf16 %v3141_v63, %v3137_v57  ;;  %v6654_v30 = vpack.c.bf16 %v3168_v39, %v3164_v21  ;;  %v3172_v57 = vld [vmem:[#allocation8 + $0x1618] sm:$0xff] }
 0x3a6   :  { %3890 = vmatmul.mubr.f32.gmra.mrb[18].mxu0 %v2457_v3  ;;  %6631 = vmatprep.subr.bf16.mxu1 %v6630_v38  ;;  %v3152_v38 = vld [vmem:[#allocation8 + $0x1578] sm:$0xff]  ;;  %v6644_v47 = vpack.c.bf16 %v3143_v18, %v3139_v51  ;;  %v3163_v29 = vld [vmem:[#allocation8 + $0x15d0] sm:$0xff]  ;;  %v6144_v51 = vpack.c.bf16 %v3165_v61, %v3161_v4  ;;  %v6662_v12 = vpack.c.bf16 %v3184_v55, %v3180_v48 }
 0x3a7   :  { %4506 = vmatmul.mubr.f32.gmra.mrb[18].mxu1 %v2457_v3  ;;  %3960 = vmatprep.mubr.f32.mxu0 %v2444_v15  ;;  %v3147_v3 = vld [vmem:[#allocation8 + $0x1550] sm:$0xff]  ;;  %v3176_v63 = vld [vmem:[#allocation8 + $0x1638] sm:$0xff] }
 0x3a8   :  { %6121 = vmatpush1.bf16.msra.mxu0 %v6120_v44  ;;  %4576 = vmatprep.mubr.f32.mxu1 %v2444_v15  ;;  %v6646_v44 = vpack.c.bf16 %v3152_v38, %v3148_v42  ;;  %v3151_v15 = vld [vmem:[#allocation8 + $0x1570] sm:$0xff]  ;;  %v6658_v38 = vpack.c.bf16 %v3176_v63, %v3172_v57  ;;  %v3188_v10 = vld [vmem:[#allocation8 + $0x1698] sm:$0xff] }
 0x3a9   :  { %6633 = vmatpush1.bf16.msra.mxu1 %v6632_v19  ;;  %6123 = vmatprep.subr.bf16.mxu0 %v6122_v43  ;;  %v3154_v19 = vld [vmem:[#allocation8 + $0x1588] sm:$0xff]  ;;  %v3171_v42 = vld [vmem:[#allocation8 + $0x1610] sm:$0xff]  ;;  %v3192_v34 = vld [vmem:[#allocation8 + $0x16b8] sm:$0xff] }
 0x3aa   :  { %6635 = vmatprep.subr.bf16.mxu1 %v6634_v6  ;;  %v3158_v43 = vld [vmem:[#allocation8 + $0x15a8] sm:$0xff]  ;;  %v6648_v6 = vpack.c.bf16 %v3151_v15, %v3147_v3  ;;  %v6148_v3 = vpack.c.bf16 %v3173_v41, %v3169_v31  ;;  %v3187_v21 = vld [vmem:[#allocation8 + $0x1690] sm:$0xff]  ;;  %v6666_v39 = vpack.c.bf16 %v3192_v34, %v3188_v10  ;;  %v3196_v4 = vld [vmem:[#allocation8 + $0x16d8] sm:$0xff] }
 0x3ab   :  { %v6138_v7 = vpack.c.bf16 %v3158_v43, %v3154_v19  ;;  %v3177_v19 = vld [vmem:[#allocation8 + $0x1640] sm:$0xff]  ;;  %v3200_v61 = vld [vmem:[#allocation8 + $0x16f8] sm:$0xff]  ;;  %v3195_v57 = vld [vmem:[#allocation8 + $0x16d0] sm:$0xff] }
 0x3ac   :  { %6125 = vmatpush1.bf16.msra.mxu0 %v6124_v60  ;;  %v3159_v60 = vld [vmem:[#allocation8 + $0x15b0] sm:$0xff]  ;;  %v3181_v43 = vld [vmem:[#allocation8 + $0x1660] sm:$0xff]  ;;  %v6670_v63 = vpack.c.bf16 %v3200_v61, %v3196_v4  ;;  %v3204_v31 = vld [vmem:[#allocation8 + $0x1718] sm:$0xff] }
 0x3ad   :  { %6637 = vmatpush1.bf16.msra.mxu1 %v6636_v13  ;;  %6127 = vmatprep.subr.bf16.mxu0 %v6126_v1  ;;  %v3162_v13 = vld [vmem:[#allocation8 + $0x15c8] sm:$0xff]  ;;  %v3208_v41 = vld [vmem:[#allocation8 + $0x1738] sm:$0xff]  ;;  %v3203_v48 = vld [vmem:[#allocation8 + $0x1710] sm:$0xff] }
 0x3ae   :  { %6639 = vmatprep.subr.bf16.mxu1 %v6638_v16  ;;  %v3166_v1 = vld [vmem:[#allocation8 + $0x15e8] sm:$0xff]  ;;  %v6652_v16 = vpack.c.bf16 %v3159_v60, %v3155_v11  ;;  %v6152_v11 = vpack.c.bf16 %v3181_v43, %v3177_v19  ;;  %v6674_v55 = vpack.c.bf16 %v3208_v41, %v3204_v31  ;;  %v3212_v19 = vld [vmem:[#allocation8 + $0x1758] sm:$0xff]  ;;  %v3211_v10 = vld [vmem:[#allocation8 + $0x1750] sm:$0xff] }
 0x3af   :  { %v6142_v23 = vpack.c.bf16 %v3166_v1, %v3162_v13  ;;  %v3185_v13 = vld [vmem:[#allocation8 + $0x1680] sm:$0xff]  ;;  %v3216_v43 = vld [vmem:[#allocation8 + $0x1778] sm:$0xff]  ;;  %v3219_v4 = vld [vmem:[#allocation8 + $0x1790] sm:$0xff] }
 0x3b0   :  { %6129 = vmatpush1.bf16.msra.mxu0 %v6128_v32  ;;  %v3167_v32 = vld [vmem:[#allocation8 + $0x15f0] sm:$0xff]  ;;  %v3189_v1 = vld [vmem:[#allocation8 + $0x16a0] sm:$0xff]  ;;  %v6678_v34 = vpack.c.bf16 %v3216_v43, %v3212_v19  ;;  %v6841_v43 = vadd.f32 %v7327_v5, %v7400_v17 }
 0x3b1   :  { %6641 = vmatpush1.bf16.msra.mxu1 %v6640_v33  ;;  %6131 = vmatprep.subr.bf16.mxu0 %v6130_v35  ;;  %v3170_v33 = vld [vmem:[#allocation8 + $0x1608] sm:$0xff]  ;;  %v3225_v31 = vld [vmem:[#allocation8 + $0x17c0] sm:$0xff] }
 0x3b2   :  { %6643 = vmatprep.subr.bf16.mxu1 %v6642_v36  ;;  %v3174_v35 = vld [vmem:[#allocation8 + $0x1628] sm:$0xff]  ;;  %v6656_v36 = vpack.c.bf16 %v3167_v32, %v3163_v29  ;;  %v6156_v29 = vpack.c.bf16 %v3189_v1, %v3185_v13  ;;  %v3220_v13 = vld [vmem:[#allocation8 + $0x1798] sm:$0xff]  ;;  %v3229_v41 = vld [vmem:[#allocation8 + $0x17e0] sm:$0xff]  ;;  %v2460_v17 = vmax.f32 %v6841_v43, 0.0 }
 0x3b3   :  { %v6146_v18 = vpack.c.bf16 %v3174_v35, %v3170_v33  ;;  %v3193_v33 = vld [vmem:[#allocation8 + $0x16c0] sm:$0xff]  ;;  %v3224_v1 = vld [vmem:[#allocation8 + $0x17b8] sm:$0xff]  ;;  %v3263_v43 = vld [vmem:[#allocation8 + $0x18f0] sm:$0xff] }
 0x3b4   :  { %6133 = vmatpush1.bf16.msra.mxu0 %v6132_v46  ;;  %v3175_v46 = vld [vmem:[#allocation8 + $0x1630] sm:$0xff]  ;;  %v3197_v35 = vld [vmem:[#allocation8 + $0x16e0] sm:$0xff]  ;;  %v6682_v61 = vpack.c.bf16 %v3224_v1, %v3220_v13 }
 0x3b5   :  { %6645 = vmatpush1.bf16.msra.mxu1 %v6644_v47  ;;  %6135 = vmatprep.subr.bf16.mxu0 %v6134_v53  ;;  %v3178_v47 = vld [vmem:[#allocation8 + $0x1648] sm:$0xff] }
 0x3b6   :  { %6647 = vmatprep.subr.bf16.mxu1 %v6646_v44  ;;  %v3182_v53 = vld [vmem:[#allocation8 + $0x1668] sm:$0xff]  ;;  %v6660_v44 = vpack.c.bf16 %v3175_v46, %v3171_v42  ;;  %v6160_v42 = vpack.c.bf16 %v3197_v35, %v3193_v33  ;;  %v3228_v33 = vld [vmem:[#allocation8 + $0x17d8] sm:$0xff] }
 0x3b7   :  { %v6150_v15 = vpack.c.bf16 %v3182_v53, %v3178_v47  ;;  %v3201_v47 = vld [vmem:[#allocation8 + $0x1700] sm:$0xff]  ;;  %v3232_v35 = vld [vmem:[#allocation8 + $0x17f8] sm:$0xff] }
 0x3b8   :  { %6137 = vmatpush1.bf16.msra.mxu0 %v6136_v52  ;;  %v3183_v52 = vld [vmem:[#allocation8 + $0x1670] sm:$0xff]  ;;  %v3205_v53 = vld [vmem:[#allocation8 + $0x1720] sm:$0xff] }
 0x3b9   :  { %6649 = vmatpush1.bf16.msra.mxu1 %v6648_v6  ;;  %6139 = vmatprep.subr.bf16.mxu0 %v6138_v7  ;;  %v3186_v6 = vld [vmem:[#allocation8 + $0x1688] sm:$0xff] }
 0x3ba   :  { %6651 = vmatprep.subr.bf16.mxu1 %v6650_v8  ;;  %v3190_v7 = vld [vmem:[#allocation8 + $0x16a8] sm:$0xff]  ;;  %v6664_v8 = vpack.c.bf16 %v3183_v52, %v3179_v58  ;;  %v6164_v58 = vpack.c.bf16 %v3205_v53, %v3201_v47 }
 0x3bb   :  { %v6154_v60 = vpack.c.bf16 %v3190_v7, %v3186_v6  ;;  %v3209_v6 = vld [vmem:[#allocation8 + $0x1740] sm:$0xff]  ;;  %v3234_v47 = vld [vmem:[#allocation8 + $0x1808] sm:$0xff] }
 0x3bc   :  { %6141 = vmatpush1.bf16.msra.mxu0 %v6140_v20  ;;  %v3191_v20 = vld [vmem:[#allocation8 + $0x16b0] sm:$0xff]  ;;  %v3213_v7 = vld [vmem:[#allocation8 + $0x1760] sm:$0xff]  ;;  %v3238_v53 = vld [vmem:[#allocation8 + $0x1828] sm:$0xff] }
 0x3bd   :  { %6653 = vmatpush1.bf16.msra.mxu1 %v6652_v16  ;;  %6143 = vmatprep.subr.bf16.mxu0 %v6142_v23  ;;  %v3194_v16 = vld [vmem:[#allocation8 + $0x16c8] sm:$0xff]  ;;  %v6178_v19 = vpack.c.bf16 %v3238_v53, %v3234_v47  ;;  %v3264_v47 = vld [vmem:[#allocation8 + $0x18f8] sm:$0xff] }
 0x3be   :  { %6655 = vmatprep.subr.bf16.mxu1 %v6654_v30  ;;  %v3198_v23 = vld [vmem:[#allocation8 + $0x16e8] sm:$0xff]  ;;  %v6668_v30 = vpack.c.bf16 %v3191_v20, %v3187_v21  ;;  %v6168_v21 = vpack.c.bf16 %v3213_v7, %v3209_v6  ;;  %v3237_v6 = vld [vmem:[#allocation8 + $0x1820] sm:$0xff]  ;;  %v3235_v7 = vld [vmem:[#allocation8 + $0x1810] sm:$0xff] }
 0x3bf   :  { %v6158_v32 = vpack.c.bf16 %v3198_v23, %v3194_v16  ;;  %v3217_v16 = vld [vmem:[#allocation8 + $0x1780] sm:$0xff] }
 0x3c0   :  { %6145 = vmatpush1.bf16.msra.mxu0 %v6144_v51  ;;  %v3199_v51 = vld [vmem:[#allocation8 + $0x16f0] sm:$0xff]  ;;  %v3221_v23 = vld [vmem:[#allocation8 + $0x17a0] sm:$0xff] }
 0x3c1   :  { %6657 = vmatpush1.bf16.msra.mxu1 %v6656_v36  ;;  %6147 = vmatprep.subr.bf16.mxu0 %v6146_v18  ;;  %v3202_v36 = vld [vmem:[#allocation8 + $0x1708] sm:$0xff] }
 0x3c2   :  { %6659 = vmatprep.subr.bf16.mxu1 %v6658_v38  ;;  %v3206_v18 = vld [vmem:[#allocation8 + $0x1728] sm:$0xff]  ;;  %v6672_v38 = vpack.c.bf16 %v3199_v51, %v3195_v57  ;;  %v6172_v57 = vpack.c.bf16 %v3221_v23, %v3217_v16  ;;  %v3243_v16 = vld [vmem:[#allocation8 + $0x1850] sm:$0xff] }
 0x3c3   :  { %v6162_v46 = vpack.c.bf16 %v3206_v18, %v3202_v36 }
 0x3c4   :  { %6149 = vmatpush1.bf16.msra.mxu0 %v6148_v3  ;;  %v3207_v3 = vld [vmem:[#allocation8 + $0x1730] sm:$0xff] }
 0x3c5   :  { %6661 = vmatpush1.bf16.msra.mxu1 %v6660_v44  ;;  %6151 = vmatprep.subr.bf16.mxu0 %v6150_v15  ;;  %v3210_v44 = vld [vmem:[#allocation8 + $0x1748] sm:$0xff] }
 0x3c6   :  { %6663 = vmatprep.subr.bf16.mxu1 %v6662_v12  ;;  %v3214_v15 = vld [vmem:[#allocation8 + $0x1768] sm:$0xff]  ;;  %v6676_v12 = vpack.c.bf16 %v3207_v3, %v3203_v48  ;;  %v3236_v48 = vld [vmem:[#allocation8 + $0x1818] sm:$0xff]  ;;  %v6176_v3 = vpack.c.bf16 %v3229_v41, %v3225_v31  ;;  %v3255_v41 = vld [vmem:[#allocation8 + $0x18b0] sm:$0xff] }
 0x3c7   :  { %v6166_v52 = vpack.c.bf16 %v3214_v15, %v3210_v44 }
 0x3c8   :  { %6153 = vmatpush1.bf16.msra.mxu0 %v6152_v11  ;;  %v3215_v11 = vld [vmem:[#allocation8 + $0x1770] sm:$0xff] }
 0x3c9   :  { %6665 = vmatpush1.bf16.msra.mxu1 %v6664_v8  ;;  %6155 = vmatprep.subr.bf16.mxu0 %v6154_v60  ;;  %v3218_v8 = vld [vmem:[#allocation8 + $0x1788] sm:$0xff] }
 0x3ca   :  { %6667 = vmatprep.subr.bf16.mxu1 %v6666_v39  ;;  %v3222_v60 = vld [vmem:[#allocation8 + $0x17a8] sm:$0xff]  ;;  %v6680_v39 = vpack.c.bf16 %v3215_v11, %v3211_v10  ;;  %v3239_v10 = vld [vmem:[#allocation8 + $0x1830] sm:$0xff]  ;;  %v3244_v11 = vld [vmem:[#allocation8 + $0x1858] sm:$0xff] }
 0x3cb   :  { %v6170_v20 = vpack.c.bf16 %v3222_v60, %v3218_v8  ;;  %v3248_v8 = vld [vmem:[#allocation8 + $0x1878] sm:$0xff]  ;;  %v6692_v1 = vpack.c.bf16 %v3239_v10, %v3235_v7 }
 0x3cc   :  { %6157 = vmatpush1.bf16.msra.mxu0 %v6156_v29  ;;  %v3223_v29 = vld [vmem:[#allocation8 + $0x17b0] sm:$0xff]  ;;  %v6694_v23 = vpack.c.bf16 %v3248_v8, %v3244_v11  ;;  %v3272_v7 = vld [vmem:[#allocation8 + $0x1938] sm:$0xff]  ;;  %v3265_v11 = vld [vmem:[#allocation8 + $0x1900] sm:$0xff] }
 0x3cd   :  { %6669 = vmatpush1.bf16.msra.mxu1 %v6668_v30  ;;  %6159 = vmatprep.subr.bf16.mxu0 %v6158_v32  ;;  %v3226_v30 = vld [vmem:[#allocation8 + $0x17c8] sm:$0xff]  ;;  %v6684_v36 = vpack.c.bf16 %v3223_v29, %v3219_v4  ;;  %v3247_v4 = vld [vmem:[#allocation8 + $0x1870] sm:$0xff]  ;;  %v3269_v8 = vld [vmem:[#allocation8 + $0x1920] sm:$0xff] }
 0x3ce   :  { %6671 = vmatprep.subr.bf16.mxu1 %v6670_v63  ;;  %v3230_v32 = vld [vmem:[#allocation8 + $0x17e8] sm:$0xff]  ;;  %v7407_v63 = vld [vmem:[#allocation7 + $0x8] sm:$0xff] }
 0x3cf   :  { %v1164_v51 = vrot.slane %v7407_v63, %v7330_v56  ;;  %v6174_v18 = vpack.c.bf16 %v3230_v32, %v3226_v30  ;;  %v3254_v29 = vld [vmem:[#allocation8 + $0x18a8] sm:$0xff]  ;;  %v3256_v30 = vld [vmem:[#allocation8 + $0x18b8] sm:$0xff] }
 0x3d0   :  { %6161 = vmatpush1.bf16.msra.mxu0 %v6160_v42  ;;  %v3227_v42 = vld [vmem:[#allocation8 + $0x17d0] sm:$0xff] }
 0x3d1   :  { %6673 = vmatpush1.bf16.msra.mxu1 %v6672_v38  ;;  %6163 = vmatprep.subr.bf16.mxu0 %v6162_v46  ;;  %v6686_v38 = vpack.c.bf16 %v3232_v35, %v3228_v33  ;;  %v3231_v46 = vld [vmem:[#allocation8 + $0x17f0] sm:$0xff]  ;;  %v6838_v44 = vadd.f32 %v7315_v37, %v1164_v51  ;;  %v3246_v37 = vld [vmem:[#allocation8 + $0x1868] sm:$0xff]  ;;  %v6840_v13 = vadd.f32 %v7323_v59, %v1164_v51  ;;  %v3252_v59 = vld [vmem:[#allocation8 + $0x1898] sm:$0xff] }
 0x3d2   :  { %6675 = vmatprep.subr.bf16.mxu1 %v6674_v55  ;;  %v3240_v55 = vld [vmem:[#allocation8 + $0x1838] sm:$0xff]  ;;  %v6688_v15 = vpack.c.bf16 %v3231_v46, %v3227_v42  ;;  %v6696_v35 = vpack.c.bf16 %v3247_v4, %v3243_v16  ;;  %v3249_v51 = vld [vmem:[#allocation8 + $0x1880] sm:$0xff]  ;;  %v6698_v31 = vpack.c.bf16 %v3256_v30, %v3252_v59  ;;  %v3258_v42 = vld [vmem:[#allocation8 + $0x18c8] sm:$0xff] }
 0x3d3   :  { %v2443_v60 = vmax.f32 %v6838_v44, 0.0  ;;  %v2459_v32 = vmax.f32 %v6840_v13, 0.0  ;;  %v3260_v46 = vld [vmem:[#allocation8 + $0x18d8] sm:$0xff]  ;;  %v3261_v44 = vld [vmem:[#allocation8 + $0x18e0] sm:$0xff]  ;;  %v3279_v59 = vld [vmem:[#allocation8 + $0x1970] sm:$0xff] }
 0x3d4   :  { %6165 = vmatpush1.bf16.msra.mxu0 %v6164_v58  ;;  %v7417_v58 = vrot.slane %v7407_v63, %v1143_v26  ;;  %v3277_v4 = vld [vmem:[#allocation8 + $0x1960] sm:$0xff]  ;;  %v3282_v30 = vld [vmem:[#allocation8 + $0x1988] sm:$0xff] }
 0x3d5   :  { %6677 = vmatpush1.bf16.msra.mxu1 %v6676_v12  ;;  %6167 = vmatprep.subr.bf16.mxu0 %v6166_v52  ;;  %v6690_v12 = vpack.c.bf16 %v3240_v55, %v3236_v48  ;;  %v3233_v52 = vld [vmem:[#allocation8 + $0x1800] sm:$0xff] }
 0x3d6   :  { %6679 = vmatprep.subr.bf16.mxu1 %v6678_v34  ;;  %v3242_v34 = vld [vmem:[#allocation8 + $0x1848] sm:$0xff]  ;;  %v6180_v5 = vpack.c.bf16 %v3237_v6, %v3233_v52  ;;  %v6843_v26 = vadd.f32 %v7368_v27, %v7417_v58  ;;  %v3268_v6 = vld [vmem:[#allocation8 + $0x1918] sm:$0xff] }
 0x3d7   :  { %v3270_v52 = vld [vmem:[#allocation8 + $0x1928] sm:$0xff]  ;;  %v6706_v13 = vpack.c.bf16 %v3272_v7, %v3268_v6  ;;  %v3300_v7 = vld [vmem:[#allocation8 + $0x1a18] sm:$0xff] }
 0x3d8   :  { %6169 = vmatpush1.bf16.msra.mxu0 %v6168_v21  ;;  %v6182_v21 = vpack.c.bf16 %v3246_v37, %v3242_v34  ;;  %v2446_v27 = vmax.f32 %v6843_v26, 0.0  ;;  %v3278_v26 = vld [vmem:[#allocation8 + $0x1968] sm:$0xff] }
 0x3d9   :  { %6681 = vmatpush1.bf16.msra.mxu1 %v6680_v39  ;;  %6171 = vmatprep.subr.bf16.mxu0 %v6170_v20  ;;  %v3241_v39 = vld [vmem:[#allocation8 + $0x1840] sm:$0xff]  ;;  %v3302_v6 = vld [vmem:[#allocation8 + $0x1a28] sm:$0xff] }
 0x3da   :  { %6683 = vmatprep.subr.bf16.mxu1 %v6682_v61  ;;  %v3245_v20 = vld [vmem:[#allocation8 + $0x1860] sm:$0xff]  ;;  %v3250_v61 = vld [vmem:[#allocation8 + $0x1888] sm:$0xff] }
 0x3db   :  { %v6184_v33 = vpack.c.bf16 %v3245_v20, %v3241_v39  ;;  %v6196_v39 = vpack.c.bf16 %v3269_v8, %v3265_v11  ;;  %v3297_v8 = vld [vmem:[#allocation8 + $0x1a00] sm:$0xff] }
 0x3dc   :  { %6173 = vmatpush1.bf16.msra.mxu0 %v6172_v57  ;;  %v6186_v57 = vpack.c.bf16 %v3254_v29, %v3250_v61  ;;  %v3275_v61 = vld [vmem:[#allocation8 + $0x1950] sm:$0xff] }
 0x3dd   :  { %6685 = vmatpush1.bf16.msra.mxu1 %v6684_v36  ;;  %6175 = vmatprep.subr.bf16.mxu0 %v6174_v18  ;;  %v3253_v36 = vld [vmem:[#allocation8 + $0x18a0] sm:$0xff]  ;;  %v3251_v18 = vld [vmem:[#allocation8 + $0x1890] sm:$0xff] }
 0x3de   :  { %6687 = vmatprep.subr.bf16.mxu1 %v6686_v38  ;;  %v3262_v38 = vld [vmem:[#allocation8 + $0x18e8] sm:$0xff]  ;;  %v6188_v53 = vpack.c.bf16 %v3253_v36, %v3249_v51  ;;  %v6700_v48 = vpack.c.bf16 %v3255_v41, %v3251_v18  ;;  %v3281_v36 = vld [vmem:[#allocation8 + $0x1980] sm:$0xff] }
 0x3df   :  { %v6190_v55 = vpack.c.bf16 %v3262_v38, %v3258_v42  ;;  %v3285_v18 = vld [vmem:[#allocation8 + $0x19a0] sm:$0xff]  ;;  %v3287_v42 = vld [vmem:[#allocation8 + $0x19b0] sm:$0xff]  ;;  %v3290_v38 = vld [vmem:[#allocation8 + $0x19c8] sm:$0xff] }
 0x3e0   :  { %6177 = vmatpush1.bf16.msra.mxu0 %v6176_v3  ;;  %v3257_v3 = vld [vmem:[#allocation8 + $0x18c0] sm:$0xff] }
 0x3e1   :  { %6689 = vmatpush1.bf16.msra.mxu1 %v6688_v15  ;;  %6179 = vmatprep.subr.bf16.mxu0 %v6178_v19  ;;  %v3259_v15 = vld [vmem:[#allocation8 + $0x18d0] sm:$0xff]  ;;  %v6702_v19 = vpack.c.bf16 %v3264_v47, %v3260_v46  ;;  %v6192_v10 = vpack.c.bf16 %v3261_v44, %v3257_v3  ;;  %v3294_v46 = vld [vmem:[#allocation8 + $0x19e8] sm:$0xff]  ;;  %v3292_v47 = vld [vmem:[#allocation8 + $0x19d8] sm:$0xff] }
 0x3e2   :  { %6691 = vmatprep.subr.bf16.mxu1 %v6690_v12  ;;  %v3266_v12 = vld [vmem:[#allocation8 + $0x1908] sm:$0xff]  ;;  %v6704_v34 = vpack.c.bf16 %v3263_v43, %v3259_v15  ;;  %v6206_v3 = vpack.c.bf16 %v3294_v46, %v3290_v38  ;;  %v3289_v44 = vld [vmem:[#allocation8 + $0x19c0] sm:$0xff]  ;;  %v3319_v38 = vld [vmem:[#allocation8 + $0x1ab0] sm:$0xff] }
 0x3e3   :  { %3961 = vmatmul.mubr.f32.vlgmr.msra.gmra.mrb[16].mxu0 %v2443_v60  ;;  %v6194_v37 = vpack.c.bf16 %v3270_v52, %v3266_v12  ;;  %v3293_v15 = vld [vmem:[#allocation8 + $0x19e0] sm:$0xff]  ;;  %v3295_v12 = vld [vmem:[#allocation8 + $0x19f0] sm:$0xff]  ;;  %v3298_v52 = vld [vmem:[#allocation8 + $0x1a08] sm:$0xff] }
 0x3e4   :  { %4577 = vmatmul.mubr.f32.vlgmr.msra.gmra.mrb[16].mxu1 %v2443_v60  ;;  %3966 = vmatprep.mubr.f32.mxu0 %v2460_v17  ;;  %v3267_v60 = vld [vmem:[#allocation8 + $0x1910] sm:$0xff]  ;;  %v6210_v11 = vpack.c.bf16 %v3302_v6, %v3298_v52  ;;  %v3322_v46 = vld [vmem:[#allocation8 + $0x1ac8] sm:$0xff] }
 0x3e5   :  { %6181 = vmatpush1.bf16.msra.mxu0 %v6180_v5  ;;  %4582 = vmatprep.mubr.f32.mxu1 %v2460_v17  ;;  %v3271_v5 = vld [vmem:[#allocation8 + $0x1930] sm:$0xff]  ;;  %v3274_v17 = vld [vmem:[#allocation8 + $0x1948] sm:$0xff] }
 0x3e6   :  { %6693 = vmatpush1.bf16.msra.mxu1 %v6692_v1  ;;  %6183 = vmatprep.subr.bf16.mxu0 %v6182_v21  ;;  %v3276_v1 = vld [vmem:[#allocation8 + $0x1958] sm:$0xff]  ;;  %v6708_v20 = vpack.c.bf16 %v3271_v5, %v3267_v60  ;;  %v6198_v16 = vpack.c.bf16 %v3278_v26, %v3274_v17  ;;  %v3301_v60 = vld [vmem:[#allocation8 + $0x1a20] sm:$0xff]  ;;  %v3303_v17 = vld [vmem:[#allocation8 + $0x1a30] sm:$0xff] }
 0x3e7   :  { %3967 = vmatmul.mubr.f32.gmra.mrb[18].mxu0 %v2459_v32  ;;  %6695 = vmatprep.subr.bf16.mxu1 %v6694_v23  ;;  %v3280_v21 = vld [vmem:[#allocation8 + $0x1978] sm:$0xff]  ;;  %v3273_v23 = vld [vmem:[#allocation8 + $0x1940] sm:$0xff]  ;;  %v3306_v26 = vld [vmem:[#allocation8 + $0x1a48] sm:$0xff] }
 0x3e8   :  { %4583 = vmatmul.mubr.f32.gmra.mrb[18].mxu1 %v2459_v32  ;;  %4037 = vmatprep.mubr.f32.mxu0 %v2446_v27  ;;  %v6710_v29 = vpack.c.bf16 %v3280_v21, %v3276_v1  ;;  %v3286_v32 = vld [vmem:[#allocation8 + $0x19a8] sm:$0xff]  ;;  %v3308_v21 = vld [vmem:[#allocation8 + $0x1a58] sm:$0xff]  ;;  %v3327_v52 = vld [vmem:[#allocation8 + $0x1af0] sm:$0xff] }
 0x3e9   :  { %6185 = vmatpush1.bf16.msra.mxu0 %v6184_v33  ;;  %4653 = vmatprep.mubr.f32.mxu1 %v2446_v27  ;;  %v3284_v33 = vld [vmem:[#allocation8 + $0x1998] sm:$0xff]  ;;  %v6202_v51 = vpack.c.bf16 %v3286_v32, %v3282_v30  ;;  %v3310_v1 = vld [vmem:[#allocation8 + $0x1a68] sm:$0xff]  ;;  %v3311_v30 = vld [vmem:[#allocation8 + $0x1a70] sm:$0xff] }
 0x3ea   :  { %6697 = vmatpush1.bf16.msra.mxu1 %v6696_v35  ;;  %6187 = vmatprep.subr.bf16.mxu0 %v6186_v57  ;;  %v3288_v27 = vld [vmem:[#allocation8 + $0x19b8] sm:$0xff]  ;;  %v6200_v35 = vpack.c.bf16 %v3277_v4, %v3273_v23  ;;  %v6712_v57 = vpack.c.bf16 %v3279_v59, %v3275_v61  ;;  %v6214_v23 = vpack.c.bf16 %v3310_v1, %v3306_v26  ;;  %v3305_v4 = vld [vmem:[#allocation8 + $0x1a40] sm:$0xff]  ;;  %v3314_v32 = vld [vmem:[#allocation8 + $0x1a88] sm:$0xff] }
 0x3eb   :  { %6699 = vmatprep.subr.bf16.mxu1 %v6698_v31  ;;  %v3283_v31 = vld [vmem:[#allocation8 + $0x1990] sm:$0xff]  ;;  %v6714_v41 = vpack.c.bf16 %v3288_v27, %v3284_v33  ;;  %v3309_v61 = vld [vmem:[#allocation8 + $0x1a60] sm:$0xff]  ;;  %v3318_v33 = vld [vmem:[#allocation8 + $0x1aa8] sm:$0xff] }
 0x3ec   :  { %v3316_v27 = vld [vmem:[#allocation8 + $0x1a98] sm:$0xff]  ;;  %v3330_v6 = vld [vmem:[#allocation8 + $0x1b08] sm:$0xff]  ;;  %v3335_v26 = vld [vmem:[#allocation8 + $0x1b30] sm:$0xff] }
 0x3ed   :  { %6189 = vmatpush1.bf16.msra.mxu0 %v6188_v53  ;;  %v3296_v53 = vld [vmem:[#allocation8 + $0x19f8] sm:$0xff]  ;;  %v3338_v1 = vld [vmem:[#allocation8 + $0x1b48] sm:$0xff] }
 0x3ee   :  { %6701 = vmatpush1.bf16.msra.mxu1 %v6700_v48  ;;  %6191 = vmatprep.subr.bf16.mxu0 %v6190_v55  ;;  %v6204_v48 = vpack.c.bf16 %v3285_v18, %v3281_v36  ;;  %v6716_v55 = vpack.c.bf16 %v3287_v42, %v3283_v31  ;;  %v6718_v43 = vpack.c.bf16 %v3296_v53, %v3292_v47  ;;  %v3313_v18 = vld [vmem:[#allocation8 + $0x1a80] sm:$0xff]  ;;  %v3326_v47 = vld [vmem:[#allocation8 + $0x1ae8] sm:$0xff]  ;;  %v3324_v53 = vld [vmem:[#allocation8 + $0x1ad8] sm:$0xff] }
 0x3ef   :  { %6703 = vmatprep.subr.bf16.mxu1 %v6702_v19  ;;  %v3291_v19 = vld [vmem:[#allocation8 + $0x19d0] sm:$0xff]  ;;  %v6218_v36 = vpack.c.bf16 %v3318_v33, %v3314_v32  ;;  %v3317_v31 = vld [vmem:[#allocation8 + $0x1aa0] sm:$0xff]  ;;  %v3346_v33 = vld [vmem:[#allocation8 + $0x1b88] sm:$0xff] }
 0x3f0   :  { %v3343_v32 = vld [vmem:[#allocation8 + $0x1b70] sm:$0xff] }
 0x3f1   :  { %6193 = vmatpush1.bf16.msra.mxu0 %v6192_v10  ;;  %v3304_v10 = vld [vmem:[#allocation8 + $0x1a38] sm:$0xff] }
 0x3f2   :  { %6705 = vmatpush1.bf16.msra.mxu1 %v6704_v34  ;;  %6195 = vmatprep.subr.bf16.mxu0 %v6194_v37  ;;  %v6208_v34 = vpack.c.bf16 %v3293_v15, %v3289_v44  ;;  %v6720_v37 = vpack.c.bf16 %v3295_v12, %v3291_v19  ;;  %v6722_v5 = vpack.c.bf16 %v3304_v10, %v3300_v7  ;;  %v3321_v15 = vld [vmem:[#allocation8 + $0x1ac0] sm:$0xff]  ;;  %v3334_v7 = vld [vmem:[#allocation8 + $0x1b28] sm:$0xff]  ;;  %v3332_v10 = vld [vmem:[#allocation8 + $0x1b18] sm:$0xff] }
 0x3f3   :  { %6707 = vmatprep.subr.bf16.mxu1 %v6706_v13  ;;  %v3299_v13 = vld [vmem:[#allocation8 + $0x1a10] sm:$0xff]  ;;  %v6222_v44 = vpack.c.bf16 %v3326_v47, %v3322_v46  ;;  %v3325_v19 = vld [vmem:[#allocation8 + $0x1ae0] sm:$0xff]  ;;  %v3354_v47 = vld [vmem:[#allocation8 + $0x1bc8] sm:$0xff] }
 0x3f4   :  { %v3351_v46 = vld [vmem:[#allocation8 + $0x1bb0] sm:$0xff] }
 0x3f5   :  { %6197 = vmatpush1.bf16.msra.mxu0 %v6196_v39  ;;  %v3312_v39 = vld [vmem:[#allocation8 + $0x1a78] sm:$0xff] }
 0x3f6   :  { %6709 = vmatpush1.bf16.msra.mxu1 %v6708_v20  ;;  %6199 = vmatprep.subr.bf16.mxu0 %v6198_v16  ;;  %v6212_v20 = vpack.c.bf16 %v3301_v60, %v3297_v8  ;;  %v6724_v16 = vpack.c.bf16 %v3303_v17, %v3299_v13  ;;  %v6726_v59 = vpack.c.bf16 %v3312_v39, %v3308_v21  ;;  %v3329_v60 = vld [vmem:[#allocation8 + $0x1b00] sm:$0xff]  ;;  %v3342_v21 = vld [vmem:[#allocation8 + $0x1b68] sm:$0xff]  ;;  %v3340_v39 = vld [vmem:[#allocation8 + $0x1b58] sm:$0xff] }
 0x3f7   :  { %6711 = vmatprep.subr.bf16.mxu1 %v6710_v29  ;;  %v3307_v29 = vld [vmem:[#allocation8 + $0x1a50] sm:$0xff]  ;;  %v6226_v8 = vpack.c.bf16 %v3334_v7, %v3330_v6  ;;  %v3333_v13 = vld [vmem:[#allocation8 + $0x1b20] sm:$0xff] }
 0x3f8   :  { %v3359_v7 = vld [vmem:[#allocation8 + $0x1bf0] sm:$0xff] }
 0x3f9   :  { %6201 = vmatpush1.bf16.msra.mxu0 %v6200_v35  ;;  %v3320_v35 = vld [vmem:[#allocation8 + $0x1ab8] sm:$0xff] }
 0x3fa   :  { %6713 = vmatpush1.bf16.msra.mxu1 %v6712_v57  ;;  %6203 = vmatprep.subr.bf16.mxu0 %v6202_v51  ;;  %v6216_v57 = vpack.c.bf16 %v3309_v61, %v3305_v4  ;;  %v6728_v51 = vpack.c.bf16 %v3311_v30, %v3307_v29  ;;  %v6730_v42 = vpack.c.bf16 %v3320_v35, %v3316_v27  ;;  %v3337_v61 = vld [vmem:[#allocation8 + $0x1b40] sm:$0xff]  ;;  %v3350_v27 = vld [vmem:[#allocation8 + $0x1ba8] sm:$0xff]  ;;  %v3348_v35 = vld [vmem:[#allocation8 + $0x1b98] sm:$0xff] }
 0x3fb   :  { %6715 = vmatprep.subr.bf16.mxu1 %v6714_v41  ;;  %v3315_v41 = vld [vmem:[#allocation8 + $0x1a90] sm:$0xff]  ;;  %v6230_v4 = vpack.c.bf16 %v3342_v21, %v3338_v1  ;;  %v3341_v29 = vld [vmem:[#allocation8 + $0x1b60] sm:$0xff] }
 0x3fc   :  { %v3361_v1 = vld [vmem:[#allocation8 + $0x1c00] sm:$0xff] }
 0x3fd   :  { %6205 = vmatpush1.bf16.msra.mxu0 %v6204_v48  ;;  %v3328_v48 = vld [vmem:[#allocation8 + $0x1af8] sm:$0xff]  ;;  %v3365_v21 = vld [vmem:[#allocation8 + $0x1c20] sm:$0xff] }
 0x3fe   :  { %6717 = vmatpush1.bf16.msra.mxu1 %v6716_v55  ;;  %6207 = vmatprep.subr.bf16.mxu0 %v6206_v3  ;;  %v6220_v55 = vpack.c.bf16 %v3317_v31, %v3313_v18  ;;  %v6732_v3 = vpack.c.bf16 %v3319_v38, %v3315_v41  ;;  %v6734_v12 = vpack.c.bf16 %v3328_v48, %v3324_v53  ;;  %v3345_v31 = vld [vmem:[#allocation8 + $0x1b80] sm:$0xff]  ;;  %v3358_v53 = vld [vmem:[#allocation8 + $0x1be8] sm:$0xff]  ;;  %v3356_v48 = vld [vmem:[#allocation8 + $0x1bd8] sm:$0xff] }
 0x3ff   :  { %6719 = vmatprep.subr.bf16.mxu1 %v6718_v43  ;;  %v3323_v43 = vld [vmem:[#allocation8 + $0x1ad0] sm:$0xff]  ;;  %v6234_v18 = vpack.c.bf16 %v3350_v27, %v3346_v33  ;;  %v3349_v41 = vld [vmem:[#allocation8 + $0x1ba0] sm:$0xff] }
 0x400   :  { %v3371_v33 = vld [vmem:[#allocation8 + $0x1c50] sm:$0xff] }
 0x401   :  { %6209 = vmatpush1.bf16.msra.mxu0 %v6208_v34  ;;  %v3336_v34 = vld [vmem:[#allocation8 + $0x1b38] sm:$0xff] }
 0x402   :  { %6721 = vmatpush1.bf16.msra.mxu1 %v6720_v37  ;;  %6211 = vmatprep.subr.bf16.mxu0 %v6210_v11  ;;  %v6224_v37 = vpack.c.bf16 %v3325_v19, %v3321_v15  ;;  %v6736_v11 = vpack.c.bf16 %v3327_v52, %v3323_v43  ;;  %v6738_v17 = vpack.c.bf16 %v3336_v34, %v3332_v10  ;;  %v3353_v43 = vld [vmem:[#allocation8 + $0x1bc0] sm:$0xff]  ;;  %v3355_v52 = vld [vmem:[#allocation8 + $0x1bd0] sm:$0xff]  ;;  %v3362_v10 = vld [vmem:[#allocation8 + $0x1c08] sm:$0xff] }
 0x403   :  { %6723 = vmatprep.subr.bf16.mxu1 %v6722_v5  ;;  %v3331_v5 = vld [vmem:[#allocation8 + $0x1b10] sm:$0xff]  ;;  %v6238_v19 = vpack.c.bf16 %v3358_v53, %v3354_v47  ;;  %v3366_v34 = vld [vmem:[#allocation8 + $0x1c28] sm:$0xff] }
 0x404   :  { %v3379_v47 = vld [vmem:[#allocation8 + $0x1c90] sm:$0xff] }
 0x405   :  { %6213 = vmatpush1.bf16.msra.mxu0 %v6212_v20  ;;  %v3344_v20 = vld [vmem:[#allocation8 + $0x1b78] sm:$0xff] }
 0x406   :  { %6725 = vmatpush1.bf16.msra.mxu1 %v6724_v16  ;;  %6215 = vmatprep.subr.bf16.mxu0 %v6214_v23  ;;  %v6228_v16 = vpack.c.bf16 %v3333_v13, %v3329_v60  ;;  %v6740_v23 = vpack.c.bf16 %v3335_v26, %v3331_v5  ;;  %v6742_v30 = vpack.c.bf16 %v3344_v20, %v3340_v39  ;;  %v3363_v39 = vld [vmem:[#allocation8 + $0x1c10] sm:$0xff] }
 0x407   :  { %6727 = vmatprep.subr.bf16.mxu1 %v6726_v59  ;;  %v3339_v59 = vld [vmem:[#allocation8 + $0x1b50] sm:$0xff]  ;;  %v6242_v13 = vpack.c.bf16 %v3366_v34, %v3362_v10  ;;  %v7429_v5 = vrot.slane %v7407_v63, %v1151_v62  ;;  %v6244_v62 = vpack.c.bf16 %v3365_v21, %v3361_v1  ;;  %v3397_v1 = vld [vmem:[#allocation8 + $0x1d20] sm:$0xff] }
 0x408   :  { %v3367_v20 = vld [vmem:[#allocation8 + $0x1c30] sm:$0xff] }
 0x409   :  { %6217 = vmatpush1.bf16.msra.mxu0 %v6216_v57  ;;  %v3352_v57 = vld [vmem:[#allocation8 + $0x1bb8] sm:$0xff]  ;;  %v3391_v34 = vld [vmem:[#allocation8 + $0x1cf0] sm:$0xff]  ;;  %v6849_v0 = vadd.f32 %v7378_v54, %v7429_v5 }
 0x40a   :  { %6729 = vmatpush1.bf16.msra.mxu1 %v6728_v51  ;;  %6219 = vmatprep.subr.bf16.mxu0 %v6218_v36  ;;  %v6232_v51 = vpack.c.bf16 %v3341_v29, %v3337_v61  ;;  %v6744_v36 = vpack.c.bf16 %v3343_v32, %v3339_v59  ;;  %v6746_v38 = vpack.c.bf16 %v3352_v57, %v3348_v35  ;;  %v3373_v32 = vld [vmem:[#allocation8 + $0x1c60] sm:$0xff]  ;;  %v3375_v35 = vld [vmem:[#allocation8 + $0x1c70] sm:$0xff]  ;;  %v3378_v57 = vld [vmem:[#allocation8 + $0x1c88] sm:$0xff] }
 0x40b   :  { %6731 = vmatprep.subr.bf16.mxu1 %v6730_v42  ;;  %v3347_v42 = vld [vmem:[#allocation8 + $0x1b90] sm:$0xff] }
 0x40c   :  { %v6748_v15 = vpack.c.bf16 %v3351_v46, %v3347_v42  ;;  %v3381_v46 = vld [vmem:[#allocation8 + $0x1ca0] sm:$0xff]  ;;  %v3395_v21 = vld [vmem:[#allocation8 + $0x1d10] sm:$0xff] }
 0x40d   :  { %6221 = vmatpush1.bf16.msra.mxu0 %v6220_v55  ;;  %v3360_v55 = vld [vmem:[#allocation8 + $0x1bf8] sm:$0xff] }
 0x40e   :  { %6733 = vmatpush1.bf16.msra.mxu1 %v6732_v3  ;;  %6223 = vmatprep.subr.bf16.mxu0 %v6222_v44  ;;  %v6236_v3 = vpack.c.bf16 %v3349_v41, %v3345_v31  ;;  %v1172_v44 = vrot.slane %v7407_v63, %v1139_v2  ;;  %v6750_v6 = vpack.c.bf16 %v3360_v55, %v3356_v48  ;;  %v3383_v48 = vld [vmem:[#allocation8 + $0x1cb0] sm:$0xff]  ;;  %v3386_v55 = vld [vmem:[#allocation8 + $0x1cc8] sm:$0xff] }
 0x40f   :  { %6735 = vmatprep.subr.bf16.mxu1 %v6734_v12  ;;  %v3357_v12 = vld [vmem:[#allocation8 + $0x1be0] sm:$0xff]  ;;  %v6752_v2 = vpack.c.bf16 %v3359_v7, %v3355_v52  ;;  %v6760_v41 = vpack.c.bf16 %v3375_v35, %v3371_v33  ;;  %v3387_v7 = vld [vmem:[#allocation8 + $0x1cd0] sm:$0xff]  ;;  %v3414_v33 = vld [vmem:[#allocation8 + $0x1da8] sm:$0xff] }
 0x410   :  { %v6842_v60 = vadd.f32 %v7364_v9, %v1172_v44  ;;  %v3374_v9 = vld [vmem:[#allocation8 + $0x1c68] sm:$0xff]  ;;  %v6844_v29 = vadd.f32 %v7372_v45, %v1172_v44  ;;  %v3380_v45 = vld [vmem:[#allocation8 + $0x1c98] sm:$0xff]  ;;  %v3385_v52 = vld [vmem:[#allocation8 + $0x1cc0] sm:$0xff] }
 0x411   :  { %6225 = vmatpush1.bf16.msra.mxu0 %v6224_v37  ;;  %v3364_v37 = vld [vmem:[#allocation8 + $0x1c18] sm:$0xff] }
 0x412   :  { %6737 = vmatpush1.bf16.msra.mxu1 %v6736_v11  ;;  %6227 = vmatprep.subr.bf16.mxu0 %v6226_v8  ;;  %v3368_v11 = vld [vmem:[#allocation8 + $0x1c38] sm:$0xff]  ;;  %v6240_v8 = vpack.c.bf16 %v3357_v12, %v3353_v43  ;;  %v2445_v61 = vmax.f32 %v6842_v60, 0.0  ;;  %v6764_v43 = vpack.c.bf16 %v3383_v48, %v3379_v47 }
 0x413   :  { %6739 = vmatprep.subr.bf16.mxu1 %v6738_v17  ;;  %v6845_v17 = vadd.f32 %v7376_v50, %v7417_v58  ;;  %v6754_v26 = vpack.c.bf16 %v3368_v11, %v3364_v37  ;;  %v6847_v50 = vadd.f32 %v7370_v28, %v7429_v5  ;;  %v6756_v58 = vpack.c.bf16 %v3367_v20, %v3363_v39  ;;  %v3388_v44 = vld [vmem:[#allocation8 + $0x1cd8] sm:$0xff]  ;;  %v3394_v37 = vld [vmem:[#allocation8 + $0x1d08] sm:$0xff]  ;;  %v3399_v20 = vld [vmem:[#allocation8 + $0x1d30] sm:$0xff] }
 0x414   :  { %v3398_v11 = vld [vmem:[#allocation8 + $0x1d28] sm:$0xff]  ;;  %v3400_v60 = vld [vmem:[#allocation8 + $0x1d38] sm:$0xff] }
 0x415   :  { %6229 = vmatpush1.bf16.msra.mxu0 %v6228_v16  ;;  %v3370_v16 = vld [vmem:[#allocation8 + $0x1c48] sm:$0xff]  ;;  %v2462_v63 = vmax.f32 %v6845_v17, 0.0  ;;  %v2448_v31 = vmax.f32 %v6847_v50, 0.0  ;;  %v6258_v17 = vpack.c.bf16 %v3398_v11, %v3394_v37  ;;  %v3401_v50 = vld [vmem:[#allocation8 + $0x1d40] sm:$0xff]  ;;  %v3416_v35 = vld [vmem:[#allocation8 + $0x1db8] sm:$0xff] }
 0x416   :  { %6741 = vmatpush1.bf16.msra.mxu1 %v6740_v23  ;;  %6231 = vmatprep.subr.bf16.mxu0 %v6230_v4  ;;  %v3372_v23 = vld [vmem:[#allocation8 + $0x1c58] sm:$0xff]  ;;  %v6246_v59 = vpack.c.bf16 %v3374_v9, %v3370_v16  ;;  %v3402_v16 = vld [vmem:[#allocation8 + $0x1d48] sm:$0xff]  ;;  %v3425_v11 = vld [vmem:[#allocation8 + $0x1e00] sm:$0xff] }
 0x417   :  { %6743 = vmatprep.subr.bf16.mxu1 %v6742_v30  ;;  %v3376_v4 = vld [vmem:[#allocation8 + $0x1c78] sm:$0xff]  ;;  %v3369_v30 = vld [vmem:[#allocation8 + $0x1c40] sm:$0xff]  ;;  %v3406_v9 = vld [vmem:[#allocation8 + $0x1d68] sm:$0xff] }
 0x418   :  { %v6758_v27 = vpack.c.bf16 %v3376_v4, %v3372_v23  ;;  %v6248_v28 = vpack.c.bf16 %v3373_v32, %v3369_v30  ;;  %v3404_v23 = vld [vmem:[#allocation8 + $0x1d58] sm:$0xff]  ;;  %v3407_v30 = vld [vmem:[#allocation8 + $0x1d70] sm:$0xff]  ;;  %v3410_v32 = vld [vmem:[#allocation8 + $0x1d88] sm:$0xff] }
 0x419   :  { %6233 = vmatpush1.bf16.msra.mxu0 %v6232_v51  ;;  %v3382_v51 = vld [vmem:[#allocation8 + $0x1ca8] sm:$0xff]  ;;  %v3408_v4 = vld [vmem:[#allocation8 + $0x1d78] sm:$0xff] }
 0x41a   :  { %6745 = vmatpush1.bf16.msra.mxu1 %v6744_v36  ;;  %6235 = vmatprep.subr.bf16.mxu0 %v6234_v18  ;;  %v3384_v36 = vld [vmem:[#allocation8 + $0x1cb8] sm:$0xff]  ;;  %v2461_v18 = vmax.f32 %v6844_v29, 0.0  ;;  %v6250_v42 = vpack.c.bf16 %v3382_v51, %v3378_v57  ;;  %v6772_v29 = vpack.c.bf16 %v3399_v20, %v3395_v21 }
 0x41b   :  { %6747 = vmatprep.subr.bf16.mxu1 %v6746_v38  ;;  %v3377_v38 = vld [vmem:[#allocation8 + $0x1c80] sm:$0xff]  ;;  %v6762_v53 = vpack.c.bf16 %v3384_v36, %v3380_v45  ;;  %v6266_v45 = vpack.c.bf16 %v3414_v33, %v3410_v32  ;;  %v3424_v47 = vld [vmem:[#allocation8 + $0x1df8] sm:$0xff] }
 0x41c   :  { %v3409_v36 = vld [vmem:[#allocation8 + $0x1d80] sm:$0xff]  ;;  %v3440_v21 = vld [vmem:[#allocation8 + $0x1e78] sm:$0xff] }
 0x41d   :  { %6237 = vmatpush1.bf16.msra.mxu0 %v6236_v3  ;;  %v3390_v3 = vld [vmem:[#allocation8 + $0x1ce8] sm:$0xff]  ;;  %v3441_v33 = vld [vmem:[#allocation8 + $0x1e80] sm:$0xff] }
 0x41e   :  { %6749 = vmatpush1.bf16.msra.mxu1 %v6748_v15  ;;  %6239 = vmatprep.subr.bf16.mxu0 %v6238_v19  ;;  %v3392_v15 = vld [vmem:[#allocation8 + $0x1cf8] sm:$0xff]  ;;  %v6252_v19 = vpack.c.bf16 %v3381_v46, %v3377_v38  ;;  %v6254_v12 = vpack.c.bf16 %v3390_v3, %v3386_v55  ;;  %v3422_v38 = vld [vmem:[#allocation8 + $0x1de8] sm:$0xff]  ;;  %v3417_v3 = vld [vmem:[#allocation8 + $0x1dc0] sm:$0xff] }
 0x41f   :  { %6751 = vmatprep.subr.bf16.mxu1 %v6750_v6  ;;  %v3389_v6 = vld [vmem:[#allocation8 + $0x1ce0] sm:$0xff]  ;;  %v6766_v10 = vpack.c.bf16 %v3392_v15, %v3388_v44  ;;  %v3420_v46 = vld [vmem:[#allocation8 + $0x1dd8] sm:$0xff]  ;;  %v3419_v15 = vld [vmem:[#allocation8 + $0x1dd0] sm:$0xff] }
 0x420   :  { %v3421_v44 = vld [vmem:[#allocation8 + $0x1de0] sm:$0xff] }
 0x421   :  { %6241 = vmatpush1.bf16.msra.mxu0 %v6240_v8  ;;  %v3396_v8 = vld [vmem:[#allocation8 + $0x1d18] sm:$0xff] }
 0x422   :  { %6753 = vmatpush1.bf16.msra.mxu1 %v6752_v2  ;;  %6243 = vmatprep.subr.bf16.mxu0 %v6242_v13  ;;  %v6256_v2 = vpack.c.bf16 %v3389_v6, %v3385_v52  ;;  %v6768_v13 = vpack.c.bf16 %v3391_v34, %v3387_v7  ;;  %v6770_v39 = vpack.c.bf16 %v3400_v60, %v3396_v8  ;;  %v3430_v52 = vld [vmem:[#allocation8 + $0x1e28] sm:$0xff]  ;;  %v3428_v6 = vld [vmem:[#allocation8 + $0x1e18] sm:$0xff]  ;;  %v3429_v8 = vld [vmem:[#allocation8 + $0x1e20] sm:$0xff] }
 0x423   :  { %6755 = vmatprep.subr.bf16.mxu1 %v6754_v26  ;;  %v3393_v26 = vld [vmem:[#allocation8 + $0x1d00] sm:$0xff]  ;;  %v3432_v7 = vld [vmem:[#allocation8 + $0x1e38] sm:$0xff]  ;;  %v3427_v60 = vld [vmem:[#allocation8 + $0x1e10] sm:$0xff] }
 0x424   :  { %4038 = vmatmul.mubr.f32.vlgmr.msra.gmra.mrb[16].mxu0 %v2445_v61 }
 0x425   :  { %4654 = vmatmul.mubr.f32.vlgmr.msra.gmra.mrb[16].mxu1 %v2445_v61  ;;  %4043 = vmatprep.mubr.f32.mxu0 %v2462_v63  ;;  %v6260_v61 = vpack.c.bf16 %v3397_v1, %v3393_v26  ;;  %v3438_v26 = vld [vmem:[#allocation8 + $0x1e68] sm:$0xff]  ;;  %v3436_v1 = vld [vmem:[#allocation8 + $0x1e58] sm:$0xff] }
 0x426   :  { %6245 = vmatpush1.bf16.msra.mxu0 %v6244_v62  ;;  %4659 = vmatprep.mubr.f32.mxu1 %v2462_v63  ;;  %v6262_v62 = vpack.c.bf16 %v3406_v9, %v3402_v16  ;;  %v3405_v63 = vld [vmem:[#allocation8 + $0x1d60] sm:$0xff] }
 0x427   :  { %6757 = vmatpush1.bf16.msra.mxu1 %v6756_v58  ;;  %6247 = vmatprep.subr.bf16.mxu0 %v6246_v59  ;;  %v3403_v58 = vld [vmem:[#allocation8 + $0x1d50] sm:$0xff]  ;;  %v6774_v59 = vpack.c.bf16 %v3408_v4, %v3404_v23  ;;  %v6264_v57 = vpack.c.bf16 %v3405_v63, %v3401_v50  ;;  %v3433_v9 = vld [vmem:[#allocation8 + $0x1e40] sm:$0xff]  ;;  %v3446_v50 = vld [vmem:[#allocation8 + $0x1ea8] sm:$0xff] }
 0x428   :  { %4044 = vmatmul.mubr.f32.gmra.mrb[18].mxu0 %v2461_v18  ;;  %6759 = vmatprep.subr.bf16.mxu1 %v6758_v27  ;;  %v3412_v27 = vld [vmem:[#allocation8 + $0x1d98] sm:$0xff]  ;;  %v6776_v51 = vpack.c.bf16 %v3407_v30, %v3403_v58  ;;  %v3437_v23 = vld [vmem:[#allocation8 + $0x1e60] sm:$0xff]  ;;  %v3435_v4 = vld [vmem:[#allocation8 + $0x1e50] sm:$0xff] }
 0x429   :  { %4660 = vmatmul.mubr.f32.gmra.mrb[18].mxu1 %v2461_v18  ;;  %4114 = vmatprep.mubr.f32.mxu0 %v2448_v31  ;;  %v3413_v18 = vld [vmem:[#allocation8 + $0x1da0] sm:$0xff]  ;;  %v3444_v63 = vld [vmem:[#allocation8 + $0x1e98] sm:$0xff] }
 0x42a   :  { %6249 = vmatpush1.bf16.msra.mxu0 %v6248_v28  ;;  %4730 = vmatprep.mubr.f32.mxu1 %v2448_v31  ;;  %v3411_v28 = vld [vmem:[#allocation8 + $0x1d90] sm:$0xff]  ;;  %v6778_v31 = vpack.c.bf16 %v3416_v35, %v3412_v27  ;;  %v3448_v58 = vld [vmem:[#allocation8 + $0x1eb8] sm:$0xff]  ;;  %v3445_v27 = vld [vmem:[#allocation8 + $0x1ea0] sm:$0xff] }
 0x42b   :  { %6761 = vmatpush1.bf16.msra.mxu1 %v6760_v41  ;;  %6251 = vmatprep.subr.bf16.mxu0 %v6250_v42  ;;  %v3415_v41 = vld [vmem:[#allocation8 + $0x1db0] sm:$0xff]  ;;  %v3418_v42 = vld [vmem:[#allocation8 + $0x1dc8] sm:$0xff] }
 0x42c   :  { %6763 = vmatprep.subr.bf16.mxu1 %v6762_v53  ;;  %v6268_v53 = vpack.c.bf16 %v3413_v18, %v3409_v36  ;;  %v6780_v48 = vpack.c.bf16 %v3415_v41, %v3411_v28  ;;  %v6270_v55 = vpack.c.bf16 %v3422_v38, %v3418_v42  ;;  %v3443_v35 = vld [vmem:[#allocation8 + $0x1e90] sm:$0xff]  ;;  %v3454_v36 = vld [vmem:[#allocation8 + $0x1ee8] sm:$0xff]  ;;  %v3452_v18 = vld [vmem:[#allocation8 + $0x1ed8] sm:$0xff] }
 0x42d   :  { %v3456_v28 = vld [vmem:[#allocation8 + $0x1ef8] sm:$0xff]  ;;  %v3449_v38 = vld [vmem:[#allocation8 + $0x1ec0] sm:$0xff] }
 0x42e   :  { %6253 = vmatpush1.bf16.msra.mxu0 %v6252_v19  ;;  %v6782_v19 = vpack.c.bf16 %v3424_v47, %v3420_v46  ;;  %v3453_v46 = vld [vmem:[#allocation8 + $0x1ee0] sm:$0xff]  ;;  %v3451_v47 = vld [vmem:[#allocation8 + $0x1ed0] sm:$0xff] }
 0x42f   :  { %6765 = vmatpush1.bf16.msra.mxu1 %v6764_v43  ;;  %6255 = vmatprep.subr.bf16.mxu0 %v6254_v12  ;;  %v3423_v43 = vld [vmem:[#allocation8 + $0x1df0] sm:$0xff]  ;;  %v3426_v12 = vld [vmem:[#allocation8 + $0x1e08] sm:$0xff] }
 0x430   :  { %6767 = vmatprep.subr.bf16.mxu1 %v6766_v10  ;;  %v6272_v10 = vpack.c.bf16 %v3421_v44, %v3417_v3  ;;  %v6784_v34 = vpack.c.bf16 %v3423_v43, %v3419_v15  ;;  %v6274_v37 = vpack.c.bf16 %v3430_v52, %v3426_v12  ;;  %v3462_v3 = vld [vmem:[#allocation8 + $0x1f28] sm:$0xff]  ;;  %v3460_v44 = vld [vmem:[#allocation8 + $0x1f18] sm:$0xff]  ;;  %v3457_v52 = vld [vmem:[#allocation8 + $0x1f00] sm:$0xff] }
 0x431   :  { %v3464_v15 = vld [vmem:[#allocation8 + $0x1f38] sm:$0xff] }
 0x432   :  { %6257 = vmatpush1.bf16.msra.mxu0 %v6256_v2  ;;  %v6786_v2 = vpack.c.bf16 %v3432_v7, %v3428_v6  ;;  %v3461_v6 = vld [vmem:[#allocation8 + $0x1f20] sm:$0xff]  ;;  %v3459_v7 = vld [vmem:[#allocation8 + $0x1f10] sm:$0xff] }
 0x433   :  { %6769 = vmatpush1.bf16.msra.mxu1 %v6768_v13  ;;  %6259 = vmatprep.subr.bf16.mxu0 %v6258_v17  ;;  %v3431_v13 = vld [vmem:[#allocation8 + $0x1e30] sm:$0xff]  ;;  %v3434_v17 = vld [vmem:[#allocation8 + $0x1e48] sm:$0xff] }
 0x434   :  { %6771 = vmatprep.subr.bf16.mxu1 %v6770_v39  ;;  %v6276_v39 = vpack.c.bf16 %v3429_v8, %v3425_v11  ;;  %v6788_v20 = vpack.c.bf16 %v3431_v13, %v3427_v60  ;;  %v6278_v16 = vpack.c.bf16 %v3438_v26, %v3434_v17  ;;  %v3470_v11 = vld [vmem:[#allocation8 + $0x1f68] sm:$0xff]  ;;  %v3468_v8 = vld [vmem:[#allocation8 + $0x1f58] sm:$0xff]  ;;  %v3465_v26 = vld [vmem:[#allocation8 + $0x1f40] sm:$0xff] }
 0x435   :  { %v3472_v60 = vld [vmem:[#allocation8 + $0x1f78] sm:$0xff] }
 0x436   :  { %6261 = vmatpush1.bf16.msra.mxu0 %v6260_v61  ;;  %v6790_v61 = vpack.c.bf16 %v3440_v21, %v3436_v1  ;;  %v3469_v1 = vld [vmem:[#allocation8 + $0x1f60] sm:$0xff]  ;;  %v3467_v21 = vld [vmem:[#allocation8 + $0x1f50] sm:$0xff] }
 0x437   :  { %6773 = vmatpush1.bf16.msra.mxu1 %v6772_v29  ;;  %6263 = vmatprep.subr.bf16.mxu0 %v6262_v62  ;;  %v3439_v29 = vld [vmem:[#allocation8 + $0x1e70] sm:$0xff]  ;;  %v3442_v62 = vld [vmem:[#allocation8 + $0x1e88] sm:$0xff] }
 0x438   :  { %6775 = vmatprep.subr.bf16.mxu1 %v6774_v59  ;;  %v6280_v59 = vpack.c.bf16 %v3437_v23, %v3433_v9  ;;  %v6792_v30 = vpack.c.bf16 %v3439_v29, %v3435_v4  ;;  %v6282_v32 = vpack.c.bf16 %v3446_v50, %v3442_v62  ;;  %v3478_v9 = vld [vmem:[#allocation8 + $0x1fa8] sm:$0xff]  ;;  %v3476_v23 = vld [vmem:[#allocation8 + $0x1f98] sm:$0xff]  ;;  %v3473_v50 = vld [vmem:[#allocation8 + $0x1f80] sm:$0xff] }
 0x439   :  { %v3480_v4 = vld [vmem:[#allocation8 + $0x1fb8] sm:$0xff] }
 0x43a   :  { %6265 = vmatpush1.bf16.msra.mxu0 %v6264_v57  ;;  %v6794_v57 = vpack.c.bf16 %v3448_v58, %v3444_v63  ;;  %v3477_v63 = vld [vmem:[#allocation8 + $0x1fa0] sm:$0xff]  ;;  %v3475_v58 = vld [vmem:[#allocation8 + $0x1f90] sm:$0xff] }
 0x43b   :  { %6777 = vmatpush1.bf16.msra.mxu1 %v6776_v51  ;;  %6267 = vmatprep.subr.bf16.mxu0 %v6266_v45  ;;  %v3447_v51 = vld [vmem:[#allocation8 + $0x1eb0] sm:$0xff]  ;;  %v3450_v45 = vld [vmem:[#allocation8 + $0x1ec8] sm:$0xff] }
 0x43c   :  { %6779 = vmatprep.subr.bf16.mxu1 %v6778_v31  ;;  %v6284_v31 = vpack.c.bf16 %v3445_v27, %v3441_v33  ;;  %v6796_v41 = vpack.c.bf16 %v3447_v51, %v3443_v35  ;;  %v6286_v42 = vpack.c.bf16 %v3454_v36, %v3450_v45  ;;  %v3486_v33 = vld [vmem:[#allocation8 + $0x1fe8] sm:$0xff]  ;;  %v3484_v27 = vld [vmem:[#allocation8 + $0x1fd8] sm:$0xff] }
 0x43d   :  { %v3488_v35 = vld [vmem:[#allocation8 + $0x1ff8] sm:$0xff] }
 0x43e   :  { %6269 = vmatpush1.bf16.msra.mxu0 %v6268_v53  ;;  %v6798_v53 = vpack.c.bf16 %v3456_v28, %v3452_v18  ;;  %v6979_v51 = vld [vmem:[#allocation7 + $0x8] sm:$0xff]  ;;  %v3481_v28 = vld [vmem:[#allocation8 + $0x1fc0] sm:$0xff] }
 0x43f   :  { %6781 = vmatpush1.bf16.msra.mxu1 %v6780_v48  ;;  %6271 = vmatprep.subr.bf16.mxu0 %v6270_v55  ;;  %v3455_v48 = vld [vmem:[#allocation8 + $0x1ef0] sm:$0xff]  ;;  %v3458_v55 = vld [vmem:[#allocation8 + $0x1f08] sm:$0xff]  ;;  %v1180_v45 = vrot.slane %v6979_v51, %v1147_v25 }
 0x440   :  { %6783 = vmatprep.subr.bf16.mxu1 %v6782_v19  ;;  %v6288_v19 = vpack.c.bf16 %v3453_v46, %v3449_v38  ;;  %v6800_v43 = vpack.c.bf16 %v3455_v48, %v3451_v47  ;;  %v6290_v12 = vpack.c.bf16 %v3462_v3, %v3458_v55  ;;  %v3487_v38 = vld [vmem:[#allocation8 + $0x1ff0] sm:$0xff]  ;;  %v2464_v55 = vmax.f32 %v6849_v0, 0.0 }
 0x441   :  { %v6846_v47 = vadd.f32 %v7366_v24, %v1180_v45  ;;  %v6848_v48 = vadd.f32 %v7374_v49, %v1180_v45  ;;  %v3489_v24 = vld [vmem:[#allocation10] sm:$0xf] }
 0x442   :  { %6273 = vmatpush1.bf16.msra.mxu0 %v6272_v10  ;;  %v6802_v10 = vpack.c.bf16 %v3464_v15, %v3460_v44  ;;  %v3494_v44 = vrot.slane %v3489_v24, %v7296_v14  ;;  %v3502_v15 = vrot.slane %v3489_v24, %v7330_v56  ;;  %v3498_v54 = vrot.slane %v3489_v24, %v7285_v22 }
 0x443   :  { %6785 = vmatpush1.bf16.msra.mxu1 %v6784_v34  ;;  %6275 = vmatprep.subr.bf16.mxu0 %v6274_v37  ;;  %v3463_v34 = vld [vmem:[#allocation8 + $0x1f30] sm:$0xff]  ;;  %v3466_v37 = vld [vmem:[#allocation8 + $0x1f48] sm:$0xff]  ;;  %v2447_v25 = vmax.f32 %v6846_v47, 0.0  ;;  %v2463_v3 = vmax.f32 %v6848_v48, 0.0  ;;  %v3506_v5 = vrot.slane %v3489_v24, %v7301_v40 }
 0x444   :  { %6787 = vmatprep.subr.bf16.mxu1 %v6786_v2  ;;  %v6292_v2 = vpack.c.bf16 %v3461_v6, %v3457_v52  ;;  %v6804_v13 = vpack.c.bf16 %v3463_v34, %v3459_v7  ;;  %v6294_v17 = vpack.c.bf16 %v3470_v11, %v3466_v37 }
 0x446   :  { %6277 = vmatpush1.bf16.msra.mxu0 %v6276_v39  ;;  %v6806_v39 = vpack.c.bf16 %v3472_v60, %v3468_v8 }
 0x447   :  { %6789 = vmatpush1.bf16.msra.mxu1 %v6788_v20  ;;  %6279 = vmatprep.subr.bf16.mxu0 %v6278_v16  ;;  %v3471_v20 = vld [vmem:[#allocation8 + $0x1f70] sm:$0xff]  ;;  %v3474_v16 = vld [vmem:[#allocation8 + $0x1f88] sm:$0xff] }
 0x448   :  { %6791 = vmatprep.subr.bf16.mxu1 %v6790_v61  ;;  %v6296_v61 = vpack.c.bf16 %v3469_v1, %v3465_v26  ;;  %v6808_v29 = vpack.c.bf16 %v3471_v20, %v3467_v21  ;;  %v6298_v62 = vpack.c.bf16 %v3478_v9, %v3474_v16 }
 0x44a   :  { %6281 = vmatpush1.bf16.msra.mxu0 %v6280_v59  ;;  %v6810_v59 = vpack.c.bf16 %v3480_v4, %v3476_v23 }
 0x44b   :  { %6793 = vmatpush1.bf16.msra.mxu1 %v6792_v30  ;;  %6283 = vmatprep.subr.bf16.mxu0 %v6282_v32  ;;  %v3479_v30 = vld [vmem:[#allocation8 + $0x1fb0] sm:$0xff]  ;;  %v3482_v32 = vld [vmem:[#allocation8 + $0x1fc8] sm:$0xff] }
 0x44c   :  { %6795 = vmatprep.subr.bf16.mxu1 %v6794_v57  ;;  %v6300_v57 = vpack.c.bf16 %v3477_v63, %v3473_v50  ;;  %v6812_v36 = vpack.c.bf16 %v3479_v30, %v3475_v58  ;;  %v6302_v18 = vpack.c.bf16 %v3486_v33, %v3482_v32 }
 0x44e   :  { %6285 = vmatpush1.bf16.msra.mxu0 %v6284_v31  ;;  %v3485_v31 = vld [vmem:[#allocation8 + $0x1fe0] sm:$0xff] }
 0x44f   :  { %6797 = vmatpush1.bf16.msra.mxu1 %v6796_v41  ;;  %6287 = vmatprep.subr.bf16.mxu0 %v6286_v42  ;;  %v6814_v41 = vpack.c.bf16 %v3488_v35, %v3484_v27  ;;  %v3483_v42 = vld [vmem:[#allocation8 + $0x1fd0] sm:$0xff]  ;;  %v6304_v46 = vpack.c.bf16 %v3485_v31, %v3481_v28 }
 0x450   :  { %6799 = vmatprep.subr.bf16.mxu1 %v6798_v53  ;;  %v6816_v53 = vpack.c.bf16 %v3487_v38, %v3483_v42 }
 0x452   :  { %6289 = vmatpush1.bf16.msra.mxu0 %v6288_v19 }
 0x453   :  { %6801 = vmatpush1.bf16.msra.mxu1 %v6800_v43  ;;  %6291 = vmatprep.subr.bf16.mxu0 %v6290_v12 }
 0x454   :  { %6803 = vmatprep.subr.bf16.mxu1 %v6802_v10 }
 0x456   :  { %6293 = vmatpush1.bf16.msra.mxu0 %v6292_v2 }
 0x457   :  { %6805 = vmatpush1.bf16.msra.mxu1 %v6804_v13  ;;  %6295 = vmatprep.subr.bf16.mxu0 %v6294_v17 }
 0x458   :  { %6807 = vmatprep.subr.bf16.mxu1 %v6806_v39 }
 0x45a   :  { %6297 = vmatpush1.bf16.msra.mxu0 %v6296_v61 }
 0x45b   :  { %6809 = vmatpush1.bf16.msra.mxu1 %v6808_v29  ;;  %6299 = vmatprep.subr.bf16.mxu0 %v6298_v62 }
 0x45c   :  { %6811 = vmatprep.subr.bf16.mxu1 %v6810_v59 }
 0x45e   :  { %6301 = vmatpush1.bf16.msra.mxu0 %v6300_v57 }
 0x45f   :  { %6813 = vmatpush1.bf16.msra.mxu1 %v6812_v36  ;;  %6303 = vmatprep.subr.bf16.mxu0 %v6302_v18 }
 0x460   :  { %6815 = vmatprep.subr.bf16.mxu1 %v6814_v41 }
 0x462   :  { %6305 = vmatpush1.bf16.msra.mxu0 %v6304_v46 }
 0x463   :  { %6817 = vmatpush1.bf16.msra.mxu1 %v6816_v53 }
 0x465   :  { %4115 = vmatmul.mubr.f32.vlgmr.msra.gmra.mrb[16].mxu0 %v2447_v25 }
 0x466   :  { %4731 = vmatmul.mubr.f32.vlgmr.msra.gmra.mrb[16].mxu1 %v2447_v25  ;;  %4120 = vmatprep.mubr.f32.mxu0 %v2464_v55 }
 0x467   :  { %4736 = vmatprep.mubr.f32.mxu1 %v2464_v55 }
 0x469   :  { %4121 = vmatmul.mubr.f32.gmra.mrb[18].mxu0 %v2463_v3 }
 0x46a   :  { %4737 = vmatmul.mubr.f32.gmra.mrb[18].mxu1 %v2463_v3 }
 0x538   :  { %v4116_v19 = vpop.f32.mrb[16].mxu0 }
 0x539   :  { %v6850_v49 = vadd.f32 %v4116_v19, %v3494_v44  ;;  %v4732_v43 = vpop.f32.mrb[16].mxu1  ;;  %v4118_v12 = vpop.f32.mrb[17].mxu0 }
 0x53a   :  { %v6854_v52 = vadd.f32 %v4732_v43, %v3502_v15  ;;  %v6851_v6 = vadd.f32 %v4118_v12, %v3498_v54  ;;  %v4734_v7 = vpop.f32.mrb[17].mxu1 }
 0x53b   :  { %4743 = vst [vmem:[#allocation11] sm:$0xff] %v6850_v49  ;;  %v6855_v10 = vadd.f32 %v4734_v7, %v3506_v5 }
 0x53c   :  { %4745 = vst [vmem:[#allocation11 + $0x10] sm:$0xff] %v6854_v52  ;;  %4744 = vst [vmem:[#allocation11 + $0x8] sm:$0xff] %v6851_v6  ;;  %v4122_v34 = vpop.f32.mrb[18].mxu0 }
 0x53d   :  { %4746 = vst [vmem:[#allocation11 + $0x18] sm:$0xff] %v6855_v10  ;;  %v6852_v14 = vadd.f32 %v4122_v34, %v3494_v44  ;;  %v4738_v56 = vpop.f32.mrb[18].mxu1  ;;  %v4124_v22 = vpop.f32.mrb[19].mxu0 }
 0x53e   :  { %v6856_v37 = vadd.f32 %v4738_v56, %v3502_v15  ;;  %v6853_v40 = vadd.f32 %v4124_v22, %v3498_v54  ;;  %v4740_v11 = vpop.f32.mrb[19].mxu1 }
 0x53f   :  { %4747 = vst [vmem:[#allocation11 + $0x20] sm:$0xff] %v6852_v14  ;;  %v6857_v8 = vadd.f32 %v4740_v11, %v3506_v5 }
 0x540   :  { %4749 = vst [vmem:[#allocation11 + $0x30] sm:$0xff] %v6856_v37  ;;  %4748 = vst [vmem:[#allocation11 + $0x28] sm:$0xff] %v6853_v40 }
 0x541   :  { %4750 = vst [vmem:[#allocation11 + $0x38] sm:$0xff] %v6857_v8 }
 0x542   :  { %7101 = shalt.err (!%p7098_p2)
}
 0x543   :  { %s7102_s7 = scalar_lea.hbm %s7466_s5, 1024 }
 0x544   :  { %p7103_p3 = scmp.ne.s32.totalorder %s7466_s5, %s7102_s7  ;;  %p7106_p4 = scmp.lt.u32.totalorder %s7102_s7, %s7466_s5 }
 0x546   :  { %p7108_p5 = pnand %p7106_p4, %p7103_p3 }
 0x548   :  { %7111 = shalt.err (!%p7108_p5)
}
 0x549   :  { %4762 = dma.vmem_to_hbm [thread:$0]  %s4757_s29, 1024, %s7466_s5, [#allocation4], %s7125_s18, %s7125_s18, %s7126_s19  }
 0x54a   :  { %7118 = dma.done.wait [#allocation4], 1024  }
 0x54b   :  { %7119 = vsyncadd [#allocation4], 4294966272 }
 0x54c   :  { %4766 = vsyncpa [#allocation3], 1 }
 0x54d   :  { %4767 = vsyncpa [#allocation6], 1 }
 0x54e   :  { %4768 = vsyncpa [#allocation9], 1 }
 0x54f   :  { %4769 = vsyncpa [#allocation4], 1 }

</bundles_post_ra>
